<compile_context>
chip_gen: v5e
topology: v5e:2x2
jax: 0.10.0
libtpu: 0.0.40
codegen_flags: <defaults>
</compile_context>

<pallas_src>
import jax
import jax.numpy as jnp
from jax.experimental import pallas as pl
from jax.experimental.pallas import tpu as pltpu


C_PAD = 128     # lane-padded channel width for conv activations (20/50 -> 128)
F1_PAD = 512    # lane-padded fc1 width (500 -> 512)


def _pool2x2(src_ref, n, h, w):
    """2x2 / stride-2 max pool of a (n, h, w, C_PAD) VMEM ref -> (n, h//2, w//2, C_PAD)."""
    wp = w // 2
    # W (sublane axis): even / odd columns via strided ref reads.
    m = jnp.maximum(src_ref[:, :, pl.ds(0, wp, 2), :],
                    src_ref[:, :, pl.ds(1, wp, 2), :])            # (n, h, wp, C)
    # H (outer axis): split into pairs and max.
    m = m.reshape(n, h // 2, 2, wp, C_PAD)
    return jnp.maximum(m[:, :, 0], m[:, :, 1])                    # (n, h//2, wp, C)


def _net_m_kernel(x_ref, w1_ref, b1_ref, w2_ref, b2_ref, w3_ref, b3_ref,
                  fw1_ref, fb1_ref, fw2_ref, fb2_ref, out_ref,
                  a1_ref, im2_ref, c2_ref, a2_ref, im3_ref, c3_ref, fcin_ref):
    f32 = jnp.float32
    bf16 = jnp.bfloat16
    n = x_ref.shape[0]

    # ---- conv1 (1->20, 5x5, 28->24) + bias + ReLU + fused 2x2 pool ----------
    # x_ref[n, h, w', t] is the host-built im2col: t = kh*5+kw tap, and the W
    # axis is pre-grouped [even cols | odd cols] so pooling is outer-axis max.
    w1v = w1_ref[...]
    b1v = b1_ref[...]
    HC = 4                                                        # output rows / chunk
    for h0 in range(0, 24, HC):
        lhs = x_ref[:, h0:h0 + HC, :, :].reshape(n * HC * 24, 32)  # bf16
        y = jnp.dot(lhs, w1v, preferred_element_type=f32)          # (n*HC*24, 128)
        y = jnp.maximum(y + b1v, 0.0).reshape(n, HC, 2, 12, C_PAD)
        yw = jnp.maximum(y[:, :, 0], y[:, :, 1])                   # W pool -> (n,HC,12,C)
        r0 = h0 // 2
        a1_ref[:, r0:r0 + 1, :, :] = \
            jnp.maximum(yw[:, 0], yw[:, 1]).reshape(n, 1, 12, C_PAD)
        a1_ref[:, r0 + 1:r0 + 2, :, :] = \
            jnp.maximum(yw[:, 2], yw[:, 3]).reshape(n, 1, 12, C_PAD)

    # ---- conv2 (20->50, 5x5, 12->8): K-folded im2col, ONE dot ---------------
    for t in range(25):
        kh, kw = divmod(t, 5)
        win = a1_ref[:, kh:kh + 8, kw:kw + 8, :].reshape(n * 64, C_PAD)
        im2_ref[:, t * C_PAD:(t + 1) * C_PAD] = win.astype(bf16)
    y2 = jnp.dot(im2_ref[...], w2_ref[...], preferred_element_type=f32)  # (n*64,128)
    c2_ref[...] = jnp.maximum(y2 + b2_ref[...], 0.0).reshape(n, 8, 8, C_PAD)

    # ---- pool2: 8x8 -> 4x4, into a zeroed 6x6 buffer (conv3 pad=1) ----------
    a2_ref[...] = jnp.zeros((n, 6, 6, C_PAD), f32)
    a2_ref[:, 1:5, 1:5, :] = _pool2x2(c2_ref, n, 8, 8)

    # ---- conv3 (50->50, 3x3, pad 1): K-folded im2col, ONE dot ---------------
    for t in range(9):
        kh, kw = divmod(t, 3)
        win = a2_ref[:, kh:kh + 4, kw:kw + 4, :].reshape(n * 16, C_PAD)
        im3_ref[:, t * C_PAD:(t + 1) * C_PAD] = win.astype(bf16)
    y3 = jnp.dot(im3_ref[...], w3_ref[...], preferred_element_type=f32)  # (n*16,128)
    c3_ref[...] = jnp.maximum(y3 + b3_ref[...], 0.0).reshape(n, 4, 4, C_PAD)

    # ---- pool3: 4x4 -> 2x2, packed straight into fc1's lane-folded input ----
    # fc1 weight rows were reordered on the host so lane block (h*2+w) holds
    # the (padded) 128 channels of spatial position (h, w).
    for hp in range(2):
        for wp in range(2):
            i0, j0 = 2 * hp, 2 * wp
            piece = jnp.maximum(
                jnp.maximum(c3_ref[:, i0, j0, :], c3_ref[:, i0, j0 + 1, :]),
                jnp.maximum(c3_ref[:, i0 + 1, j0, :], c3_ref[:, i0 + 1, j0 + 1, :]))
            idx = hp * 2 + wp
            fcin_ref[:, idx * C_PAD:(idx + 1) * C_PAD] = piece.astype(bf16)

    # ---- fc1 (+ReLU), fc2, log_softmax --------------------------------------
    h1 = jnp.dot(fcin_ref[...], fw1_ref[...], preferred_element_type=f32)
    h1 = jnp.maximum(h1 + fb1_ref[...], 0.0)                      # (n, 512) f32
    logits = jnp.dot(h1.astype(bf16), fw2_ref[...],
                     preferred_element_type=f32) + fb2_ref[...]   # (n, 10)
    mx = jnp.max(logits, axis=-1, keepdims=True)
    s = logits - mx
    out_ref[...] = s - jnp.log(jnp.sum(jnp.exp(s), axis=-1, keepdims=True))


def prepare_params(params):
    """Reorder + zero-pad + bf16-cast PyTorch-layout weights once (reusable)."""
    bf16 = jnp.bfloat16
    # conv1 (20,1,5,5) -> rows t=kh*5+kw, cols Cout; pad to (32, 128).
    w1 = jnp.transpose(params["conv1_w"][:, 0], (1, 2, 0)).reshape(25, 20)
    w1 = jnp.pad(w1, ((0, 7), (0, C_PAD - 20))).astype(bf16)
    b1 = jnp.pad(params["conv1_b"], (0, C_PAD - 20)).reshape(1, C_PAD)
    # conv2 (50,20,5,5) -> rows (kh*5+kw)*128 + cin, cols Cout; (3200, 128).
    w2 = jnp.transpose(params["conv2_w"], (2, 3, 1, 0))
    w2 = jnp.pad(w2, ((0, 0), (0, 0), (0, C_PAD - 20), (0, C_PAD - 50)))
    w2 = w2.reshape(25 * C_PAD, C_PAD).astype(bf16)
    b2 = jnp.pad(params["conv2_b"], (0, C_PAD - 50)).reshape(1, C_PAD)
    # conv3 (50,50,3,3) -> rows (kh*3+kw)*128 + cin; (1152, 128).
    w3 = jnp.transpose(params["conv3_w"], (2, 3, 1, 0))
    w3 = jnp.pad(w3, ((0, 0), (0, 0), (0, C_PAD - 50), (0, C_PAD - 50)))
    w3 = w3.reshape(9 * C_PAD, C_PAD).astype(bf16)
    b3 = jnp.pad(params["conv3_b"], (0, C_PAD - 50)).reshape(1, C_PAD)
    # fc1 (500,200): PyTorch flatten index = c*4 + h*2 + w (NCHW view) ->
    # rows (h*2+w)*128 + c; (512, 512).
    fw1 = jnp.transpose(params["fc1_w"].reshape(500, 50, 2, 2), (2, 3, 1, 0))
    fw1 = jnp.pad(fw1, ((0, 0), (0, 0), (0, C_PAD - 50), (0, F1_PAD - 500)))
    fw1 = fw1.reshape(4 * C_PAD, F1_PAD).astype(bf16)
    fb1 = jnp.pad(params["fc1_b"], (0, F1_PAD - 500)).reshape(1, F1_PAD)
    # fc2 (10,500) -> (512, 10).
    fw2 = jnp.pad(params["fc2_w"].T, ((0, F1_PAD - 500), (0, 0))).astype(bf16)
    fb2 = params["fc2_b"].reshape(1, 10)
    return dict(w1=w1, b1=b1, w2=w2, b2=b2, w3=w3, b3=b3,
                fw1=fw1, fb1=fb1, fw2=fw2, fb2=fb2)


def net_m_forward(x, prepped):
    # TODO(synk): `self.number += 1` / `sign` is Python-side bookkeeping with
    # no effect on the returned tensor; not represented in the kernel.
    n = x.shape[0]
    assert x.shape[1:] == (1, 28, 28), x.shape

    # Host-side conv1 im2col: all 25 taps folded into the lane axis (pad to 32)
    # and the W axis pre-grouped [even cols | odd cols] so the in-kernel 2x2
    # pool is pure outer-axis max.  Total: ~74 KB bf16 per 2-sample batch.
    img = x[:, 0, :, :]                                                 # (n,28,28)
    taps = [img[:, kh:kh + 24, kw:kw + 24] for kh in range(5) for kw in range(5)]
    xim = jnp.stack(taps, axis=-1)                                      # (n,24,24,25)
    xim = jnp.concatenate([xim[:, :, 0::2, :], xim[:, :, 1::2, :]], axis=2)
    xim = jnp.pad(xim, ((0, 0), (0, 0), (0, 0), (0, 7))).astype(jnp.bfloat16)

    def full_spec(shape):
        zeros = (0,) * len(shape)
        return pl.BlockSpec(shape, lambda i: zeros)

    p = prepped
    return pl.pallas_call(
        _net_m_kernel,
        out_shape=jax.ShapeDtypeStruct((n, 10), jnp.float32),
        grid=(1,),
        in_specs=[
            full_spec((n, 24, 24, 32)),         # conv1 im2col (bf16)
            full_spec((32, C_PAD)),             # conv1 taps
            full_spec((1, C_PAD)),              # conv1 bias (f32)
            full_spec((25 * C_PAD, C_PAD)),     # conv2 K-folded weight
            full_spec((1, C_PAD)),              # conv2 bias
            full_spec((9 * C_PAD, C_PAD)),      # conv3 K-folded weight
            full_spec((1, C_PAD)),              # conv3 bias
            full_spec((4 * C_PAD, F1_PAD)),     # fc1 K-folded weight
            full_spec((1, F1_PAD)),             # fc1 bias
            full_spec((F1_PAD, 10)),            # fc2 weight
            full_spec((1, 10)),                 # fc2 bias
        ],
        out_specs=full_spec((n, 10)),
        scratch_shapes=[
            pltpu.VMEM((n, 12, 12, C_PAD), jnp.float32),        # pool1 output
            pltpu.VMEM((n * 64, 25 * C_PAD), jnp.bfloat16),     # conv2 im2col
            pltpu.VMEM((n, 8, 8, C_PAD), jnp.float32),          # conv2 pre-pool
            pltpu.VMEM((n, 6, 6, C_PAD), jnp.float32),          # pool2 (+pad-1 border)
            pltpu.VMEM((n * 16, 9 * C_PAD), jnp.bfloat16),      # conv3 im2col
            pltpu.VMEM((n, 4, 4, C_PAD), jnp.float32),          # conv3 pre-pool
            pltpu.VMEM((n, 4 * C_PAD), jnp.bfloat16),           # fc1 lane-folded input
        ],
        compiler_params=pltpu.CompilerParams(
            dimension_semantics=("arbitrary",),
        ),
    )(xim, p["w1"], p["b1"], p["w2"], p["b2"], p["w3"], p["b3"],
      p["fw1"], p["fb1"], p["fw2"], p["fb2"])


def init_params(key):
    """Deterministic init with PyTorch-default-style uniform bounds."""
    ks = jax.random.split(key, 10)

    def u(k, shape, fan_in):
        bound = 1.0 / (fan_in ** 0.5)
        return jax.random.uniform(k, shape, jnp.float32, -bound, bound)

    return dict(
        conv1_w=u(ks[0], (20, 1, 5, 5), 25),
        conv1_b=u(ks[1], (20,), 25),
        conv2_w=u(ks[2], (50, 20, 5, 5), 500),
        conv2_b=u(ks[3], (50,), 500),
        conv3_w=u(ks[4], (50, 50, 3, 3), 450),
        conv3_b=u(ks[5], (50,), 450),
        fc1_w=u(ks[6], (500, 200), 200),
        fc1_b=u(ks[7], (500,), 200),
        fc2_w=u(ks[8], (10, 500), 500),
        fc2_b=u(ks[9], (10,), 500),
    )


def net_m_reference(x, params):
    """Pure-JAX (XLA, f32 HIGHEST) reference of the PyTorch module."""
    dn = ("NCHW", "OIHW", "NCHW")
    hi = jax.lax.Precision.HIGHEST

    def pool(y):
        nb, c, h, w = y.shape
        return y.reshape(nb, c, h // 2, 2, w // 2, 2).max(axis=(3, 5))

    y = jax.lax.conv_general_dilated(x, params["conv1_w"], (1, 1), "VALID",
                                     dimension_numbers=dn, precision=hi)
    y = pool(jax.nn.relu(y + params["conv1_b"].reshape(1, -1, 1, 1)))
    y = jax.lax.conv_general_dilated(y, params["conv2_w"], (1, 1), "VALID",
                                     dimension_numbers=dn, precision=hi)
    y = pool(jax.nn.relu(y + params["conv2_b"].reshape(1, -1, 1, 1)))
    y = jax.lax.conv_general_dilated(y, params["conv3_w"], (1, 1),
                                     ((1, 1), (1, 1)),
                                     dimension_numbers=dn, precision=hi)
    y = pool(jax.nn.relu(y + params["conv3_b"].reshape(1, -1, 1, 1)))
    y = y.reshape(x.shape[0], 200)
    y = jax.nn.relu(jnp.dot(y, params["fc1_w"].T, precision=hi) + params["fc1_b"])
    y = jnp.dot(y, params["fc2_w"].T, precision=hi) + params["fc2_b"]
    return jax.nn.log_softmax(y, axis=1)


if __name__ == "__main__":
    key = jax.random.PRNGKey(0)
    k_in, k_par = jax.random.split(key)
    # Input shape implied by the module: fc1 expects 2*2*50 => 28x28, 1 channel.
    x = jax.random.normal(k_in, (2, 1, 28, 28), dtype=jnp.float32)
    params = init_params(k_par)

    prepped = prepare_params(params)            # one-time weight reorder / pad / bf16
    out = jax.jit(net_m_forward)(x, prepped)
    out = jax.block_until_ready(out)

    assert out.shape == (2, 10), out.shape
    # rows of exp(log_softmax) must sum to 1
    assert bool(jnp.all(jnp.abs(jnp.sum(jnp.exp(out), axis=1) - 1.0) < 1e-4))
    # match the f32 reference; tolerance covers bf16 weight/activation rounding
    ref = jax.jit(net_m_reference)(x, params)
    assert bool(jnp.allclose(out, ref, atol=1e-2, rtol=1e-2)), \
        float(jnp.max(jnp.abs(out - ref)))
    print("KERNEL_OK")
</pallas_src>

<mosaic_0001>
module attributes {stable_mosaic.version = 11 : i64} {
  func.func @_net_m_kernel(%arg0: i32, %arg1: memref<2x24x24x32xbf16, #tpu.memory_space<vmem>>, %arg2: memref<32x128xbf16, #tpu.memory_space<vmem>>, %arg3: memref<1x128xf32, #tpu.memory_space<vmem>>, %arg4: memref<3200x128xbf16, #tpu.memory_space<vmem>>, %arg5: memref<1x128xf32, #tpu.memory_space<vmem>>, %arg6: memref<1152x128xbf16, #tpu.memory_space<vmem>>, %arg7: memref<1x128xf32, #tpu.memory_space<vmem>>, %arg8: memref<512x512xbf16, #tpu.memory_space<vmem>>, %arg9: memref<1x512xf32, #tpu.memory_space<vmem>>, %arg10: memref<512x10xbf16, #tpu.memory_space<vmem>>, %arg11: memref<1x10xf32, #tpu.memory_space<vmem>>, %arg12: memref<2x10xf32, #tpu.memory_space<vmem>>, %arg13: memref<2x12x12x128xf32, #tpu.memory_space<vmem>>, %arg14: memref<128x3200xbf16, #tpu.memory_space<vmem>>, %arg15: memref<2x8x8x128xf32, #tpu.memory_space<vmem>>, %arg16: memref<2x6x6x128xf32, #tpu.memory_space<vmem>>, %arg17: memref<32x1152xbf16, #tpu.memory_space<vmem>>, %arg18: memref<2x4x4x128xf32, #tpu.memory_space<vmem>>, %arg19: memref<2x512xbf16, #tpu.memory_space<vmem>>) attributes {dimension_semantics = [#tpu.dimension_semantics<arbitrary>], iteration_bounds = array<i64: 1>, scalar_prefetch = 0 : i64, scratch_operands = 7 : i64, tpu.core_type = #tpu.core_type<tc>, window_params = [{pipeline_mode = #tpu.pipeline_mode<synchronous>, transform_indices = @transform_0, window_bounds = array<i64: 2, 24, 24, 32>}, {pipeline_mode = #tpu.pipeline_mode<synchronous>, transform_indices = @transform_1, window_bounds = array<i64: 32, 128>}, {pipeline_mode = #tpu.pipeline_mode<synchronous>, transform_indices = @transform_2, window_bounds = array<i64: 1, 128>}, {pipeline_mode = #tpu.pipeline_mode<synchronous>, transform_indices = @transform_3, window_bounds = array<i64: 3200, 128>}, {pipeline_mode = #tpu.pipeline_mode<synchronous>, transform_indices = @transform_4, window_bounds = array<i64: 1, 128>}, {pipeline_mode = #tpu.pipeline_mode<synchronous>, transform_indices = @transform_5, window_bounds = array<i64: 1152, 128>}, {pipeline_mode = #tpu.pipeline_mode<synchronous>, transform_indices = @transform_6, window_bounds = array<i64: 1, 128>}, {pipeline_mode = #tpu.pipeline_mode<synchronous>, transform_indices = @transform_7, window_bounds = array<i64: 512, 512>}, {pipeline_mode = #tpu.pipeline_mode<synchronous>, transform_indices = @transform_8, window_bounds = array<i64: 1, 512>}, {pipeline_mode = #tpu.pipeline_mode<synchronous>, transform_indices = @transform_9, window_bounds = array<i64: 512, 10>}, {pipeline_mode = #tpu.pipeline_mode<synchronous>, transform_indices = @transform_10, window_bounds = array<i64: 1, 10>}, {pipeline_mode = #tpu.pipeline_mode<synchronous>, transform_indices = @transform_11, window_bounds = array<i64: 2, 10>}]} {
    %c0 = arith.constant 0 : index
    %c0_0 = arith.constant 0 : index
    %0 = vector.load %arg2[%c0, %c0_0] : memref<32x128xbf16, #tpu.memory_space<vmem>>, vector<32x128xbf16>
    %c0_1 = arith.constant 0 : index
    %c0_2 = arith.constant 0 : index
    %1 = vector.load %arg3[%c0_1, %c0_2] : memref<1x128xf32, #tpu.memory_space<vmem>>, vector<1x128xf32>
    %c0_3 = arith.constant 0 : index
    %c0_4 = arith.constant 0 : index
    %c0_5 = arith.constant 0 : index
    %c0_6 = arith.constant 0 : index
    %2 = vector.load %arg1[%c0_3, %c0_4, %c0_5, %c0_6] : memref<2x24x24x32xbf16, #tpu.memory_space<vmem>>, vector<2x4x24x32xbf16>
    %3 = vector.shape_cast %2 : vector<2x4x24x32xbf16> to vector<192x32xbf16>
    %cst = arith.constant dense<0.000000e+00> : vector<192x128xf32>
    %4 = tpu.matmul %3, %0, %cst {dimension_numbers = #tpu.dot_dimension_numbers<[1], [0], [0], [1], [0, 0, 1, 1], [], []>} : vector<192x32xbf16>, vector<32x128xbf16>, vector<192x128xf32> -> vector<192x128xf32>
    %5 = vector.broadcast %1 : vector<1x128xf32> to vector<192x128xf32>
    %6 = arith.addf %4, %5 : vector<192x128xf32>
    %cst_7 = arith.constant 0.000000e+00 : f32
    %7 = vector.broadcast %cst_7 : f32 to vector<192x128xf32>
    %8 = arith.maximumf %6, %7 : vector<192x128xf32>
    %9 = vector.shape_cast %8 : vector<192x128xf32> to vector<2x4x2x12x128xf32>
    %10 = vector.extract_strided_slice %9 {offsets = [0, 0, 0, 0, 0], sizes = [2, 4, 1, 12, 128], strides = [1, 1, 1, 1, 1]} : vector<2x4x2x12x128xf32> to vector<2x4x1x12x128xf32>
    %11 = vector.shape_cast %10 : vector<2x4x1x12x128xf32> to vector<2x4x12x128xf32>
    %12 = vector.extract_strided_slice %9 {offsets = [0, 0, 1, 0, 0], sizes = [2, 4, 1, 12, 128], strides = [1, 1, 1, 1, 1]} : vector<2x4x2x12x128xf32> to vector<2x4x1x12x128xf32>
    %13 = vector.shape_cast %12 : vector<2x4x1x12x128xf32> to vector<2x4x12x128xf32>
    %14 = arith.maximumf %11, %13 : vector<2x4x12x128xf32>
    %15 = vector.extract_strided_slice %14 {offsets = [0, 0, 0, 0], sizes = [2, 1, 12, 128], strides = [1, 1, 1, 1]} : vector<2x4x12x128xf32> to vector<2x1x12x128xf32>
    %16 = vector.shape_cast %15 : vector<2x1x12x128xf32> to vector<2x12x128xf32>
    %17 = vector.extract_strided_slice %14 {offsets = [0, 1, 0, 0], sizes = [2, 1, 12, 128], strides = [1, 1, 1, 1]} : vector<2x4x12x128xf32> to vector<2x1x12x128xf32>
    %18 = vector.shape_cast %17 : vector<2x1x12x128xf32> to vector<2x12x128xf32>
    %19 = arith.maximumf %16, %18 : vector<2x12x128xf32>
    %20 = vector.shape_cast %19 : vector<2x12x128xf32> to vector<2x1x12x128xf32>
    %c0_8 = arith.constant 0 : index
    %c0_9 = arith.constant 0 : index
    %c0_10 = arith.constant 0 : index
    %c0_11 = arith.constant 0 : index
    %21 = vector.load %arg13[%c0_8, %c0_9, %c0_10, %c0_11] : memref<2x12x12x128xf32, #tpu.memory_space<vmem>>, vector<2x1x12x128xf32>
    tpu.vector_store %arg13[%c0_8, %c0_9, %c0_10, %c0_11], %20 {strides = array<i32>} : memref<2x12x12x128xf32, #tpu.memory_space<vmem>>, vector<2x1x12x128xf32>,
    %22 = vector.extract_strided_slice %14 {offsets = [0, 2, 0, 0], sizes = [2, 1, 12, 128], strides = [1, 1, 1, 1]} : vector<2x4x12x128xf32> to vector<2x1x12x128xf32>
    %23 = vector.shape_cast %22 : vector<2x1x12x128xf32> to vector<2x12x128xf32>
    %24 = vector.extract_strided_slice %14 {offsets = [0, 3, 0, 0], sizes = [2, 1, 12, 128], strides = [1, 1, 1, 1]} : vector<2x4x12x128xf32> to vector<2x1x12x128xf32>
    %25 = vector.shape_cast %24 : vector<2x1x12x128xf32> to vector<2x12x128xf32>
    %26 = arith.maximumf %23, %25 : vector<2x12x128xf32>
    %27 = vector.shape_cast %26 : vector<2x12x128xf32> to vector<2x1x12x128xf32>
    %c0_12 = arith.constant 0 : index
    %c1 = arith.constant 1 : index
    %c0_13 = arith.constant 0 : index
    %c0_14 = arith.constant 0 : index
    %28 = vector.load %arg13[%c0_12, %c1, %c0_13, %c0_14] : memref<2x12x12x128xf32, #tpu.memory_space<vmem>>, vector<2x1x12x128xf32>
    tpu.vector_store %arg13[%c0_12, %c1, %c0_13, %c0_14], %27 {strides = array<i32>} : memref<2x12x12x128xf32, #tpu.memory_space<vmem>>, vector<2x1x12x128xf32>,
    %c0_15 = arith.constant 0 : index
    %c4 = arith.constant 4 : index
    %c0_16 = arith.constant 0 : index
    %c0_17 = arith.constant 0 : index
    %29 = vector.load %arg1[%c0_15, %c4, %c0_16, %c0_17] : memref<2x24x24x32xbf16, #tpu.memory_space<vmem>>, vector<2x4x24x32xbf16>
    %30 = vector.shape_cast %29 : vector<2x4x24x32xbf16> to vector<192x32xbf16>
    %cst_18 = arith.constant dense<0.000000e+00> : vector<192x128xf32>
    %31 = tpu.matmul %30, %0, %cst_18 {dimension_numbers = #tpu.dot_dimension_numbers<[1], [0], [0], [1], [0, 0, 1, 1], [], []>} : vector<192x32xbf16>, vector<32x128xbf16>, vector<192x128xf32> -> vector<192x128xf32>
    %32 = vector.broadcast %1 : vector<1x128xf32> to vector<192x128xf32>
    %33 = arith.addf %31, %32 : vector<192x128xf32>
    %cst_19 = arith.constant 0.000000e+00 : f32
    %34 = vector.broadcast %cst_19 : f32 to vector<192x128xf32>
    %35 = arith.maximumf %33, %34 : vector<192x128xf32>
    %36 = vector.shape_cast %35 : vector<192x128xf32> to vector<2x4x2x12x128xf32>
    %37 = vector.extract_strided_slice %36 {offsets = [0, 0, 0, 0, 0], sizes = [2, 4, 1, 12, 128], strides = [1, 1, 1, 1, 1]} : vector<2x4x2x12x128xf32> to vector<2x4x1x12x128xf32>
    %38 = vector.shape_cast %37 : vector<2x4x1x12x128xf32> to vector<2x4x12x128xf32>
    %39 = vector.extract_strided_slice %36 {offsets = [0, 0, 1, 0, 0], sizes = [2, 4, 1, 12, 128], strides = [1, 1, 1, 1, 1]} : vector<2x4x2x12x128xf32> to vector<2x4x1x12x128xf32>
    %40 = vector.shape_cast %39 : vector<2x4x1x12x128xf32> to vector<2x4x12x128xf32>
    %41 = arith.maximumf %38, %40 : vector<2x4x12x128xf32>
    %42 = vector.extract_strided_slice %41 {offsets = [0, 0, 0, 0], sizes = [2, 1, 12, 128], strides = [1, 1, 1, 1]} : vector<2x4x12x128xf32> to vector<2x1x12x128xf32>
    %43 = vector.shape_cast %42 : vector<2x1x12x128xf32> to vector<2x12x128xf32>
    %44 = vector.extract_strided_slice %41 {offsets = [0, 1, 0, 0], sizes = [2, 1, 12, 128], strides = [1, 1, 1, 1]} : vector<2x4x12x128xf32> to vector<2x1x12x128xf32>
    %45 = vector.shape_cast %44 : vector<2x1x12x128xf32> to vector<2x12x128xf32>
    %46 = arith.maximumf %43, %45 : vector<2x12x128xf32>
    %47 = vector.shape_cast %46 : vector<2x12x128xf32> to vector<2x1x12x128xf32>
    %c0_20 = arith.constant 0 : index
    %c2 = arith.constant 2 : index
    %c0_21 = arith.constant 0 : index
    %c0_22 = arith.constant 0 : index
    %48 = vector.load %arg13[%c0_20, %c2, %c0_21, %c0_22] : memref<2x12x12x128xf32, #tpu.memory_space<vmem>>, vector<2x1x12x128xf32>
    tpu.vector_store %arg13[%c0_20, %c2, %c0_21, %c0_22], %47 {strides = array<i32>} : memref<2x12x12x128xf32, #tpu.memory_space<vmem>>, vector<2x1x12x128xf32>,
    %49 = vector.extract_strided_slice %41 {offsets = [0, 2, 0, 0], sizes = [2, 1, 12, 128], strides = [1, 1, 1, 1]} : vector<2x4x12x128xf32> to vector<2x1x12x128xf32>
    %50 = vector.shape_cast %49 : vector<2x1x12x128xf32> to vector<2x12x128xf32>
    %51 = vector.extract_strided_slice %41 {offsets = [0, 3, 0, 0], sizes = [2, 1, 12, 128], strides = [1, 1, 1, 1]} : vector<2x4x12x128xf32> to vector<2x1x12x128xf32>
    %52 = vector.shape_cast %51 : vector<2x1x12x128xf32> to vector<2x12x128xf32>
    %53 = arith.maximumf %50, %52 : vector<2x12x128xf32>
    %54 = vector.shape_cast %53 : vector<2x12x128xf32> to vector<2x1x12x128xf32>
    %c0_23 = arith.constant 0 : index
    %c3 = arith.constant 3 : index
    %c0_24 = arith.constant 0 : index
    %c0_25 = arith.constant 0 : index
    %55 = vector.load %arg13[%c0_23, %c3, %c0_24, %c0_25] : memref<2x12x12x128xf32, #tpu.memory_space<vmem>>, vector<2x1x12x128xf32>
    tpu.vector_store %arg13[%c0_23, %c3, %c0_24, %c0_25], %54 {strides = array<i32>} : memref<2x12x12x128xf32, #tpu.memory_space<vmem>>, vector<2x1x12x128xf32>,
    %c0_26 = arith.constant 0 : index
    %c8 = arith.constant 8 : index
    %c0_27 = arith.constant 0 : index
    %c0_28 = arith.constant 0 : index
    %56 = vector.load %arg1[%c0_26, %c8, %c0_27, %c0_28] : memref<2x24x24x32xbf16, #tpu.memory_space<vmem>>, vector<2x4x24x32xbf16>
    %57 = vector.shape_cast %56 : vector<2x4x24x32xbf16> to vector<192x32xbf16>
    %cst_29 = arith.constant dense<0.000000e+00> : vector<192x128xf32>
    %58 = tpu.matmul %57, %0, %cst_29 {dimension_numbers = #tpu.dot_dimension_numbers<[1], [0], [0], [1], [0, 0, 1, 1], [], []>} : vector<192x32xbf16>, vector<32x128xbf16>, vector<192x128xf32> -> vector<192x128xf32>
    %59 = vector.broadcast %1 : vector<1x128xf32> to vector<192x128xf32>
    %60 = arith.addf %58, %59 : vector<192x128xf32>
    %cst_30 = arith.constant 0.000000e+00 : f32
    %61 = vector.broadcast %cst_30 : f32 to vector<192x128xf32>
    %62 = arith.maximumf %60, %61 : vector<192x128xf32>
    %63 = vector.shape_cast %62 : vector<192x128xf32> to vector<2x4x2x12x128xf32>
    %64 = vector.extract_strided_slice %63 {offsets = [0, 0, 0, 0, 0], sizes = [2, 4, 1, 12, 128], strides = [1, 1, 1, 1, 1]} : vector<2x4x2x12x128xf32> to vector<2x4x1x12x128xf32>
    %65 = vector.shape_cast %64 : vector<2x4x1x12x128xf32> to vector<2x4x12x128xf32>
    %66 = vector.extract_strided_slice %63 {offsets = [0, 0, 1, 0, 0], sizes = [2, 4, 1, 12, 128], strides = [1, 1, 1, 1, 1]} : vector<2x4x2x12x128xf32> to vector<2x4x1x12x128xf32>
    %67 = vector.shape_cast %66 : vector<2x4x1x12x128xf32> to vector<2x4x12x128xf32>
    %68 = arith.maximumf %65, %67 : vector<2x4x12x128xf32>
    %69 = vector.extract_strided_slice %68 {offsets = [0, 0, 0, 0], sizes = [2, 1, 12, 128], strides = [1, 1, 1, 1]} : vector<2x4x12x128xf32> to vector<2x1x12x128xf32>
    %70 = vector.shape_cast %69 : vector<2x1x12x128xf32> to vector<2x12x128xf32>
    %71 = vector.extract_strided_slice %68 {offsets = [0, 1, 0, 0], sizes = [2, 1, 12, 128], strides = [1, 1, 1, 1]} : vector<2x4x12x128xf32> to vector<2x1x12x128xf32>
    %72 = vector.shape_cast %71 : vector<2x1x12x128xf32> to vector<2x12x128xf32>
    %73 = arith.maximumf %70, %72 : vector<2x12x128xf32>
    %74 = vector.shape_cast %73 : vector<2x12x128xf32> to vector<2x1x12x128xf32>
    %c0_31 = arith.constant 0 : index
    %c4_32 = arith.constant 4 : index
    %c0_33 = arith.constant 0 : index
    %c0_34 = arith.constant 0 : index
    %75 = vector.load %arg13[%c0_31, %c4_32, %c0_33, %c0_34] : memref<2x12x12x128xf32, #tpu.memory_space<vmem>>, vector<2x1x12x128xf32>
    tpu.vector_store %arg13[%c0_31, %c4_32, %c0_33, %c0_34], %74 {strides = array<i32>} : memref<2x12x12x128xf32, #tpu.memory_space<vmem>>, vector<2x1x12x128xf32>,
    %76 = vector.extract_strided_slice %68 {offsets = [0, 2, 0, 0], sizes = [2, 1, 12, 128], strides = [1, 1, 1, 1]} : vector<2x4x12x128xf32> to vector<2x1x12x128xf32>
    %77 = vector.shape_cast %76 : vector<2x1x12x128xf32> to vector<2x12x128xf32>
    %78 = vector.extract_strided_slice %68 {offsets = [0, 3, 0, 0], sizes = [2, 1, 12, 128], strides = [1, 1, 1, 1]} : vector<2x4x12x128xf32> to vector<2x1x12x128xf32>
    %79 = vector.shape_cast %78 : vector<2x1x12x128xf32> to vector<2x12x128xf32>
    %80 = arith.maximumf %77, %79 : vector<2x12x128xf32>
    %81 = vector.shape_cast %80 : vector<2x12x128xf32> to vector<2x1x12x128xf32>
    %c0_35 = arith.constant 0 : index
    %c5 = arith.constant 5 : index
    %c0_36 = arith.constant 0 : index
    %c0_37 = arith.constant 0 : index
    %82 = vector.load %arg13[%c0_35, %c5, %c0_36, %c0_37] : memref<2x12x12x128xf32, #tpu.memory_space<vmem>>, vector<2x1x12x128xf32>
    tpu.vector_store %arg13[%c0_35, %c5, %c0_36, %c0_37], %81 {strides = array<i32>} : memref<2x12x12x128xf32, #tpu.memory_space<vmem>>, vector<2x1x12x128xf32>,
    %c0_38 = arith.constant 0 : index
    %c12 = arith.constant 12 : index
    %c0_39 = arith.constant 0 : index
    %c0_40 = arith.constant 0 : index
    %83 = vector.load %arg1[%c0_38, %c12, %c0_39, %c0_40] : memref<2x24x24x32xbf16, #tpu.memory_space<vmem>>, vector<2x4x24x32xbf16>
    %84 = vector.shape_cast %83 : vector<2x4x24x32xbf16> to vector<192x32xbf16>
    %cst_41 = arith.constant dense<0.000000e+00> : vector<192x128xf32>
    %85 = tpu.matmul %84, %0, %cst_41 {dimension_numbers = #tpu.dot_dimension_numbers<[1], [0], [0], [1], [0, 0, 1, 1], [], []>} : vector<192x32xbf16>, vector<32x128xbf16>, vector<192x128xf32> -> vector<192x128xf32>
    %86 = vector.broadcast %1 : vector<1x128xf32> to vector<192x128xf32>
    %87 = arith.addf %85, %86 : vector<192x128xf32>
    %cst_42 = arith.constant 0.000000e+00 : f32
    %88 = vector.broadcast %cst_42 : f32 to vector<192x128xf32>
    %89 = arith.maximumf %87, %88 : vector<192x128xf32>
    %90 = vector.shape_cast %89 : vector<192x128xf32> to vector<2x4x2x12x128xf32>
    %91 = vector.extract_strided_slice %90 {offsets = [0, 0, 0, 0, 0], sizes = [2, 4, 1, 12, 128], strides = [1, 1, 1, 1, 1]} : vector<2x4x2x12x128xf32> to vector<2x4x1x12x128xf32>
    %92 = vector.shape_cast %91 : vector<2x4x1x12x128xf32> to vector<2x4x12x128xf32>
    %93 = vector.extract_strided_slice %90 {offsets = [0, 0, 1, 0, 0], sizes = [2, 4, 1, 12, 128], strides = [1, 1, 1, 1, 1]} : vector<2x4x2x12x128xf32> to vector<2x4x1x12x128xf32>
    %94 = vector.shape_cast %93 : vector<2x4x1x12x128xf32> to vector<2x4x12x128xf32>
    %95 = arith.maximumf %92, %94 : vector<2x4x12x128xf32>
    %96 = vector.extract_strided_slice %95 {offsets = [0, 0, 0, 0], sizes = [2, 1, 12, 128], strides = [1, 1, 1, 1]} : vector<2x4x12x128xf32> to vector<2x1x12x128xf32>
    %97 = vector.shape_cast %96 : vector<2x1x12x128xf32> to vector<2x12x128xf32>
    %98 = vector.extract_strided_slice %95 {offsets = [0, 1, 0, 0], sizes = [2, 1, 12, 128], strides = [1, 1, 1, 1]} : vector<2x4x12x128xf32> to vector<2x1x12x128xf32>
    %99 = vector.shape_cast %98 : vector<2x1x12x128xf32> to vector<2x12x128xf32>
    %100 = arith.maximumf %97, %99 : vector<2x12x128xf32>
    %101 = vector.shape_cast %100 : vector<2x12x128xf32> to vector<2x1x12x128xf32>
    %c0_43 = arith.constant 0 : index
    %c6 = arith.constant 6 : index
    %c0_44 = arith.constant 0 : index
    %c0_45 = arith.constant 0 : index
    %102 = vector.load %arg13[%c0_43, %c6, %c0_44, %c0_45] : memref<2x12x12x128xf32, #tpu.memory_space<vmem>>, vector<2x1x12x128xf32>
    tpu.vector_store %arg13[%c0_43, %c6, %c0_44, %c0_45], %101 {strides = array<i32>} : memref<2x12x12x128xf32, #tpu.memory_space<vmem>>, vector<2x1x12x128xf32>,
    %103 = vector.extract_strided_slice %95 {offsets = [0, 2, 0, 0], sizes = [2, 1, 12, 128], strides = [1, 1, 1, 1]} : vector<2x4x12x128xf32> to vector<2x1x12x128xf32>
    %104 = vector.shape_cast %103 : vector<2x1x12x128xf32> to vector<2x12x128xf32>
    %105 = vector.extract_strided_slice %95 {offsets = [0, 3, 0, 0], sizes = [2, 1, 12, 128], strides = [1, 1, 1, 1]} : vector<2x4x12x128xf32> to vector<2x1x12x128xf32>
    %106 = vector.shape_cast %105 : vector<2x1x12x128xf32> to vector<2x12x128xf32>
    %107 = arith.maximumf %104, %106 : vector<2x12x128xf32>
    %108 = vector.shape_cast %107 : vector<2x12x128xf32> to vector<2x1x12x128xf32>
    %c0_46 = arith.constant 0 : index
    %c7 = arith.constant 7 : index
    %c0_47 = arith.constant 0 : index
    %c0_48 = arith.constant 0 : index
    %109 = vector.load %arg13[%c0_46, %c7, %c0_47, %c0_48] : memref<2x12x12x128xf32, #tpu.memory_space<vmem>>, vector<2x1x12x128xf32>
    tpu.vector_store %arg13[%c0_46, %c7, %c0_47, %c0_48], %108 {strides = array<i32>} : memref<2x12x12x128xf32, #tpu.memory_space<vmem>>, vector<2x1x12x128xf32>,
    %c0_49 = arith.constant 0 : index
    %c16 = arith.constant 16 : index
    %c0_50 = arith.constant 0 : index
    %c0_51 = arith.constant 0 : index
    %110 = vector.load %arg1[%c0_49, %c16, %c0_50, %c0_51] : memref<2x24x24x32xbf16, #tpu.memory_space<vmem>>, vector<2x4x24x32xbf16>
    %111 = vector.shape_cast %110 : vector<2x4x24x32xbf16> to vector<192x32xbf16>
    %cst_52 = arith.constant dense<0.000000e+00> : vector<192x128xf32>
    %112 = tpu.matmul %111, %0, %cst_52 {dimension_numbers = #tpu.dot_dimension_numbers<[1], [0], [0], [1], [0, 0, 1, 1], [], []>} : vector<192x32xbf16>, vector<32x128xbf16>, vector<192x128xf32> -> vector<192x128xf32>
    %113 = vector.broadcast %1 : vector<1x128xf32> to vector<192x128xf32>
    %114 = arith.addf %112, %113 : vector<192x128xf32>
    %cst_53 = arith.constant 0.000000e+00 : f32
    %115 = vector.broadcast %cst_53 : f32 to vector<192x128xf32>
    %116 = arith.maximumf %114, %115 : vector<192x128xf32>
    %117 = vector.shape_cast %116 : vector<192x128xf32> to vector<2x4x2x12x128xf32>
    %118 = vector.extract_strided_slice %117 {offsets = [0, 0, 0, 0, 0], sizes = [2, 4, 1, 12, 128], strides = [1, 1, 1, 1, 1]} : vector<2x4x2x12x128xf32> to vector<2x4x1x12x128xf32>
    %119 = vector.shape_cast %118 : vector<2x4x1x12x128xf32> to vector<2x4x12x128xf32>
    %120 = vector.extract_strided_slice %117 {offsets = [0, 0, 1, 0, 0], sizes = [2, 4, 1, 12, 128], strides = [1, 1, 1, 1, 1]} : vector<2x4x2x12x128xf32> to vector<2x4x1x12x128xf32>
    %121 = vector.shape_cast %120 : vector<2x4x1x12x128xf32> to vector<2x4x12x128xf32>
    %122 = arith.maximumf %119, %121 : vector<2x4x12x128xf32>
    %123 = vector.extract_strided_slice %122 {offsets = [0, 0, 0, 0], sizes = [2, 1, 12, 128], strides = [1, 1, 1, 1]} : vector<2x4x12x128xf32> to vector<2x1x12x128xf32>
    %124 = vector.shape_cast %123 : vector<2x1x12x128xf32> to vector<2x12x128xf32>
    %125 = vector.extract_strided_slice %122 {offsets = [0, 1, 0, 0], sizes = [2, 1, 12, 128], strides = [1, 1, 1, 1]} : vector<2x4x12x128xf32> to vector<2x1x12x128xf32>
    %126 = vector.shape_cast %125 : vector<2x1x12x128xf32> to vector<2x12x128xf32>
    %127 = arith.maximumf %124, %126 : vector<2x12x128xf32>
    %128 = vector.shape_cast %127 : vector<2x12x128xf32> to vector<2x1x12x128xf32>
    %c0_54 = arith.constant 0 : index
    %c8_55 = arith.constant 8 : index
    %c0_56 = arith.constant 0 : index
    %c0_57 = arith.constant 0 : index
    %129 = vector.load %arg13[%c0_54, %c8_55, %c0_56, %c0_57] : memref<2x12x12x128xf32, #tpu.memory_space<vmem>>, vector<2x1x12x128xf32>
    tpu.vector_store %arg13[%c0_54, %c8_55, %c0_56, %c0_57], %128 {strides = array<i32>} : memref<2x12x12x128xf32, #tpu.memory_space<vmem>>, vector<2x1x12x128xf32>,
    %130 = vector.extract_strided_slice %122 {offsets = [0, 2, 0, 0], sizes = [2, 1, 12, 128], strides = [1, 1, 1, 1]} : vector<2x4x12x128xf32> to vector<2x1x12x128xf32>
    %131 = vector.shape_cast %130 : vector<2x1x12x128xf32> to vector<2x12x128xf32>
    %132 = vector.extract_strided_slice %122 {offsets = [0, 3, 0, 0], sizes = [2, 1, 12, 128], strides = [1, 1, 1, 1]} : vector<2x4x12x128xf32> to vector<2x1x12x128xf32>
    %133 = vector.shape_cast %132 : vector<2x1x12x128xf32> to vector<2x12x128xf32>
    %134 = arith.maximumf %131, %133 : vector<2x12x128xf32>
    %135 = vector.shape_cast %134 : vector<2x12x128xf32> to vector<2x1x12x128xf32>
    %c0_58 = arith.constant 0 : index
    %c9 = arith.constant 9 : index
    %c0_59 = arith.constant 0 : index
    %c0_60 = arith.constant 0 : index
    %136 = vector.load %arg13[%c0_58, %c9, %c0_59, %c0_60] : memref<2x12x12x128xf32, #tpu.memory_space<vmem>>, vector<2x1x12x128xf32>
    tpu.vector_store %arg13[%c0_58, %c9, %c0_59, %c0_60], %135 {strides = array<i32>} : memref<2x12x12x128xf32, #tpu.memory_space<vmem>>, vector<2x1x12x128xf32>,
    %c0_61 = arith.constant 0 : index
    %c20 = arith.constant 20 : index
    %c0_62 = arith.constant 0 : index
    %c0_63 = arith.constant 0 : index
    %137 = vector.load %arg1[%c0_61, %c20, %c0_62, %c0_63] : memref<2x24x24x32xbf16, #tpu.memory_space<vmem>>, vector<2x4x24x32xbf16>
    %138 = vector.shape_cast %137 : vector<2x4x24x32xbf16> to vector<192x32xbf16>
    %cst_64 = arith.constant dense<0.000000e+00> : vector<192x128xf32>
    %139 = tpu.matmul %138, %0, %cst_64 {dimension_numbers = #tpu.dot_dimension_numbers<[1], [0], [0], [1], [0, 0, 1, 1], [], []>} : vector<192x32xbf16>, vector<32x128xbf16>, vector<192x128xf32> -> vector<192x128xf32>
    %140 = vector.broadcast %1 : vector<1x128xf32> to vector<192x128xf32>
    %141 = arith.addf %139, %140 : vector<192x128xf32>
    %cst_65 = arith.constant 0.000000e+00 : f32
    %142 = vector.broadcast %cst_65 : f32 to vector<192x128xf32>
    %143 = arith.maximumf %141, %142 : vector<192x128xf32>
    %144 = vector.shape_cast %143 : vector<192x128xf32> to vector<2x4x2x12x128xf32>
    %145 = vector.extract_strided_slice %144 {offsets = [0, 0, 0, 0, 0], sizes = [2, 4, 1, 12, 128], strides = [1, 1, 1, 1, 1]} : vector<2x4x2x12x128xf32> to vector<2x4x1x12x128xf32>
    %146 = vector.shape_cast %145 : vector<2x4x1x12x128xf32> to vector<2x4x12x128xf32>
    %147 = vector.extract_strided_slice %144 {offsets = [0, 0, 1, 0, 0], sizes = [2, 4, 1, 12, 128], strides = [1, 1, 1, 1, 1]} : vector<2x4x2x12x128xf32> to vector<2x4x1x12x128xf32>
    %148 = vector.shape_cast %147 : vector<2x4x1x12x128xf32> to vector<2x4x12x128xf32>
    %149 = arith.maximumf %146, %148 : vector<2x4x12x128xf32>
    %150 = vector.extract_strided_slice %149 {offsets = [0, 0, 0, 0], sizes = [2, 1, 12, 128], strides = [1, 1, 1, 1]} : vector<2x4x12x128xf32> to vector<2x1x12x128xf32>
    %151 = vector.shape_cast %150 : vector<2x1x12x128xf32> to vector<2x12x128xf32>
    %152 = vector.extract_strided_slice %149 {offsets = [0, 1, 0, 0], sizes = [2, 1, 12, 128], strides = [1, 1, 1, 1]} : vector<2x4x12x128xf32> to vector<2x1x12x128xf32>
    %153 = vector.shape_cast %152 : vector<2x1x12x128xf32> to vector<2x12x128xf32>
    %154 = arith.maximumf %151, %153 : vector<2x12x128xf32>
    %155 = vector.shape_cast %154 : vector<2x12x128xf32> to vector<2x1x12x128xf32>
    %c0_66 = arith.constant 0 : index
    %c10 = arith.constant 10 : index
    %c0_67 = arith.constant 0 : index
    %c0_68 = arith.constant 0 : index
    %156 = vector.load %arg13[%c0_66, %c10, %c0_67, %c0_68] : memref<2x12x12x128xf32, #tpu.memory_space<vmem>>, vector<2x1x12x128xf32>
    tpu.vector_store %arg13[%c0_66, %c10, %c0_67, %c0_68], %155 {strides = array<i32>} : memref<2x12x12x128xf32, #tpu.memory_space<vmem>>, vector<2x1x12x128xf32>,
    %157 = vector.extract_strided_slice %149 {offsets = [0, 2, 0, 0], sizes = [2, 1, 12, 128], strides = [1, 1, 1, 1]} : vector<2x4x12x128xf32> to vector<2x1x12x128xf32>
    %158 = vector.shape_cast %157 : vector<2x1x12x128xf32> to vector<2x12x128xf32>
    %159 = vector.extract_strided_slice %149 {offsets = [0, 3, 0, 0], sizes = [2, 1, 12, 128], strides = [1, 1, 1, 1]} : vector<2x4x12x128xf32> to vector<2x1x12x128xf32>
    %160 = vector.shape_cast %159 : vector<2x1x12x128xf32> to vector<2x12x128xf32>
    %161 = arith.maximumf %158, %160 : vector<2x12x128xf32>
    %162 = vector.shape_cast %161 : vector<2x12x128xf32> to vector<2x1x12x128xf32>
    %c0_69 = arith.constant 0 : index
    %c11 = arith.constant 11 : index
    %c0_70 = arith.constant 0 : index
    %c0_71 = arith.constant 0 : index
    %163 = vector.load %arg13[%c0_69, %c11, %c0_70, %c0_71] : memref<2x12x12x128xf32, #tpu.memory_space<vmem>>, vector<2x1x12x128xf32>
    tpu.vector_store %arg13[%c0_69, %c11, %c0_70, %c0_71], %162 {strides = array<i32>} : memref<2x12x12x128xf32, #tpu.memory_space<vmem>>, vector<2x1x12x128xf32>,
    %c0_72 = arith.constant 0 : index
    %c0_73 = arith.constant 0 : index
    %c0_74 = arith.constant 0 : index
    %c0_75 = arith.constant 0 : index
    %164 = vector.load %arg13[%c0_72, %c0_73, %c0_74, %c0_75] : memref<2x12x12x128xf32, #tpu.memory_space<vmem>>, vector<2x8x8x128xf32>
    %165 = vector.shape_cast %164 : vector<2x8x8x128xf32> to vector<128x128xf32>
    %166 = arith.truncf %165 : vector<128x128xf32> to vector<128x128xbf16>
    %c0_76 = arith.constant 0 : index
    %c0_77 = arith.constant 0 : index
    %167 = vector.load %arg14[%c0_76, %c0_77] : memref<128x3200xbf16, #tpu.memory_space<vmem>>, vector<128x128xbf16>
    tpu.vector_store %arg14[%c0_76, %c0_77], %166 {strides = array<i32>} : memref<128x3200xbf16, #tpu.memory_space<vmem>>, vector<128x128xbf16>,
    %c0_78 = arith.constant 0 : index
    %c0_79 = arith.constant 0 : index
    %c1_80 = arith.constant 1 : index
    %c0_81 = arith.constant 0 : index
    %168 = vector.load %arg13[%c0_78, %c0_79, %c1_80, %c0_81] : memref<2x12x12x128xf32, #tpu.memory_space<vmem>>, vector<2x8x8x128xf32>
    %169 = vector.shape_cast %168 : vector<2x8x8x128xf32> to vector<128x128xf32>
    %170 = arith.truncf %169 : vector<128x128xf32> to vector<128x128xbf16>
    %c0_82 = arith.constant 0 : index
    %c128 = arith.constant 128 : index
    %171 = vector.load %arg14[%c0_82, %c128] : memref<128x3200xbf16, #tpu.memory_space<vmem>>, vector<128x128xbf16>
    tpu.vector_store %arg14[%c0_82, %c128], %170 {strides = array<i32>} : memref<128x3200xbf16, #tpu.memory_space<vmem>>, vector<128x128xbf16>,
    %c0_83 = arith.constant 0 : index
    %c0_84 = arith.constant 0 : index
    %c2_85 = arith.constant 2 : index
    %c0_86 = arith.constant 0 : index
    %172 = vector.load %arg13[%c0_83, %c0_84, %c2_85, %c0_86] : memref<2x12x12x128xf32, #tpu.memory_space<vmem>>, vector<2x8x8x128xf32>
    %173 = vector.shape_cast %172 : vector<2x8x8x128xf32> to vector<128x128xf32>
    %174 = arith.truncf %173 : vector<128x128xf32> to vector<128x128xbf16>
    %c0_87 = arith.constant 0 : index
    %c256 = arith.constant 256 : index
    %175 = vector.load %arg14[%c0_87, %c256] : memref<128x3200xbf16, #tpu.memory_space<vmem>>, vector<128x128xbf16>
    tpu.vector_store %arg14[%c0_87, %c256], %174 {strides = array<i32>} : memref<128x3200xbf16, #tpu.memory_space<vmem>>, vector<128x128xbf16>,
    %c0_88 = arith.constant 0 : index
    %c0_89 = arith.constant 0 : index
    %c3_90 = arith.constant 3 : index
    %c0_91 = arith.constant 0 : index
    %176 = vector.load %arg13[%c0_88, %c0_89, %c3_90, %c0_91] : memref<2x12x12x128xf32, #tpu.memory_space<vmem>>, vector<2x8x8x128xf32>
    %177 = vector.shape_cast %176 : vector<2x8x8x128xf32> to vector<128x128xf32>
    %178 = arith.truncf %177 : vector<128x128xf32> to vector<128x128xbf16>
    %c0_92 = arith.constant 0 : index
    %c384 = arith.constant 384 : index
    %179 = vector.load %arg14[%c0_92, %c384] : memref<128x3200xbf16, #tpu.memory_space<vmem>>, vector<128x128xbf16>
    tpu.vector_store %arg14[%c0_92, %c384], %178 {strides = array<i32>} : memref<128x3200xbf16, #tpu.memory_space<vmem>>, vector<128x128xbf16>,
    %c0_93 = arith.constant 0 : index
    %c0_94 = arith.constant 0 : index
    %c4_95 = arith.constant 4 : index
    %c0_96 = arith.constant 0 : index
    %180 = vector.load %arg13[%c0_93, %c0_94, %c4_95, %c0_96] : memref<2x12x12x128xf32, #tpu.memory_space<vmem>>, vector<2x8x8x128xf32>
    %181 = vector.shape_cast %180 : vector<2x8x8x128xf32> to vector<128x128xf32>
    %182 = arith.truncf %181 : vector<128x128xf32> to vector<128x128xbf16>
    %c0_97 = arith.constant 0 : index
    %c512 = arith.constant 512 : index
    %183 = vector.load %arg14[%c0_97, %c512] : memref<128x3200xbf16, #tpu.memory_space<vmem>>, vector<128x128xbf16>
    tpu.vector_store %arg14[%c0_97, %c512], %182 {strides = array<i32>} : memref<128x3200xbf16, #tpu.memory_space<vmem>>, vector<128x128xbf16>,
    %c0_98 = arith.constant 0 : index
    %c1_99 = arith.constant 1 : index
    %c0_100 = arith.constant 0 : index
    %c0_101 = arith.constant 0 : index
    %184 = vector.load %arg13[%c0_98, %c1_99, %c0_100, %c0_101] : memref<2x12x12x128xf32, #tpu.memory_space<vmem>>, vector<2x8x8x128xf32>
    %185 = vector.shape_cast %184 : vector<2x8x8x128xf32> to vector<128x128xf32>
    %186 = arith.truncf %185 : vector<128x128xf32> to vector<128x128xbf16>
    %c0_102 = arith.constant 0 : index
    %c640 = arith.constant 640 : index
    %187 = vector.load %arg14[%c0_102, %c640] : memref<128x3200xbf16, #tpu.memory_space<vmem>>, vector<128x128xbf16>
    tpu.vector_store %arg14[%c0_102, %c640], %186 {strides = array<i32>} : memref<128x3200xbf16, #tpu.memory_space<vmem>>, vector<128x128xbf16>,
    %c0_103 = arith.constant 0 : index
    %c1_104 = arith.constant 1 : index
    %c1_105 = arith.constant 1 : index
    %c0_106 = arith.constant 0 : index
    %188 = vector.load %arg13[%c0_103, %c1_104, %c1_105, %c0_106] : memref<2x12x12x128xf32, #tpu.memory_space<vmem>>, vector<2x8x8x128xf32>
    %189 = vector.shape_cast %188 : vector<2x8x8x128xf32> to vector<128x128xf32>
    %190 = arith.truncf %189 : vector<128x128xf32> to vector<128x128xbf16>
    %c0_107 = arith.constant 0 : index
    %c768 = arith.constant 768 : index
    %191 = vector.load %arg14[%c0_107, %c768] : memref<128x3200xbf16, #tpu.memory_space<vmem>>, vector<128x128xbf16>
    tpu.vector_store %arg14[%c0_107, %c768], %190 {strides = array<i32>} : memref<128x3200xbf16, #tpu.memory_space<vmem>>, vector<128x128xbf16>,
    %c0_108 = arith.constant 0 : index
    %c1_109 = arith.constant 1 : index
    %c2_110 = arith.constant 2 : index
    %c0_111 = arith.constant 0 : index
    %192 = vector.load %arg13[%c0_108, %c1_109, %c2_110, %c0_111] : memref<2x12x12x128xf32, #tpu.memory_space<vmem>>, vector<2x8x8x128xf32>
    %193 = vector.shape_cast %192 : vector<2x8x8x128xf32> to vector<128x128xf32>
    %194 = arith.truncf %193 : vector<128x128xf32> to vector<128x128xbf16>
    %c0_112 = arith.constant 0 : index
    %c896 = arith.constant 896 : index
    %195 = vector.load %arg14[%c0_112, %c896] : memref<128x3200xbf16, #tpu.memory_space<vmem>>, vector<128x128xbf16>
    tpu.vector_store %arg14[%c0_112, %c896], %194 {strides = array<i32>} : memref<128x3200xbf16, #tpu.memory_space<vmem>>, vector<128x128xbf16>,
    %c0_113 = arith.constant 0 : index
    %c1_114 = arith.constant 1 : index
    %c3_115 = arith.constant 3 : index
    %c0_116 = arith.constant 0 : index
    %196 = vector.load %arg13[%c0_113, %c1_114, %c3_115, %c0_116] : memref<2x12x12x128xf32, #tpu.memory_space<vmem>>, vector<2x8x8x128xf32>
    %197 = vector.shape_cast %196 : vector<2x8x8x128xf32> to vector<128x128xf32>
    %198 = arith.truncf %197 : vector<128x128xf32> to vector<128x128xbf16>
    %c0_117 = arith.constant 0 : index
    %c1024 = arith.constant 1024 : index
    %199 = vector.load %arg14[%c0_117, %c1024] : memref<128x3200xbf16, #tpu.memory_space<vmem>>, vector<128x128xbf16>
    tpu.vector_store %arg14[%c0_117, %c1024], %198 {strides = array<i32>} : memref<128x3200xbf16, #tpu.memory_space<vmem>>, vector<128x128xbf16>,
    %c0_118 = arith.constant 0 : index
    %c1_119 = arith.constant 1 : index
    %c4_120 = arith.constant 4 : index
    %c0_121 = arith.constant 0 : index
    %200 = vector.load %arg13[%c0_118, %c1_119, %c4_120, %c0_121] : memref<2x12x12x128xf32, #tpu.memory_space<vmem>>, vector<2x8x8x128xf32>
    %201 = vector.shape_cast %200 : vector<2x8x8x128xf32> to vector<128x128xf32>
    %202 = arith.truncf %201 : vector<128x128xf32> to vector<128x128xbf16>
    %c0_122 = arith.constant 0 : index
    %c1152 = arith.constant 1152 : index
    %203 = vector.load %arg14[%c0_122, %c1152] : memref<128x3200xbf16, #tpu.memory_space<vmem>>, vector<128x128xbf16>
    tpu.vector_store %arg14[%c0_122, %c1152], %202 {strides = array<i32>} : memref<128x3200xbf16, #tpu.memory_space<vmem>>, vector<128x128xbf16>,
    %c0_123 = arith.constant 0 : index
    %c2_124 = arith.constant 2 : index
    %c0_125 = arith.constant 0 : index
    %c0_126 = arith.constant 0 : index
    %204 = vector.load %arg13[%c0_123, %c2_124, %c0_125, %c0_126] : memref<2x12x12x128xf32, #tpu.memory_space<vmem>>, vector<2x8x8x128xf32>
    %205 = vector.shape_cast %204 : vector<2x8x8x128xf32> to vector<128x128xf32>
    %206 = arith.truncf %205 : vector<128x128xf32> to vector<128x128xbf16>
    %c0_127 = arith.constant 0 : index
    %c1280 = arith.constant 1280 : index
    %207 = vector.load %arg14[%c0_127, %c1280] : memref<128x3200xbf16, #tpu.memory_space<vmem>>, vector<128x128xbf16>
    tpu.vector_store %arg14[%c0_127, %c1280], %206 {strides = array<i32>} : memref<128x3200xbf16, #tpu.memory_space<vmem>>, vector<128x128xbf16>,
    %c0_128 = arith.constant 0 : index
    %c2_129 = arith.constant 2 : index
    %c1_130 = arith.constant 1 : index
    %c0_131 = arith.constant 0 : index
    %208 = vector.load %arg13[%c0_128, %c2_129, %c1_130, %c0_131] : memref<2x12x12x128xf32, #tpu.memory_space<vmem>>, vector<2x8x8x128xf32>
    %209 = vector.shape_cast %208 : vector<2x8x8x128xf32> to vector<128x128xf32>
    %210 = arith.truncf %209 : vector<128x128xf32> to vector<128x128xbf16>
    %c0_132 = arith.constant 0 : index
    %c1408 = arith.constant 1408 : index
    %211 = vector.load %arg14[%c0_132, %c1408] : memref<128x3200xbf16, #tpu.memory_space<vmem>>, vector<128x128xbf16>
    tpu.vector_store %arg14[%c0_132, %c1408], %210 {strides = array<i32>} : memref<128x3200xbf16, #tpu.memory_space<vmem>>, vector<128x128xbf16>,
    %c0_133 = arith.constant 0 : index
    %c2_134 = arith.constant 2 : index
    %c2_135 = arith.constant 2 : index
    %c0_136 = arith.constant 0 : index
    %212 = vector.load %arg13[%c0_133, %c2_134, %c2_135, %c0_136] : memref<2x12x12x128xf32, #tpu.memory_space<vmem>>, vector<2x8x8x128xf32>
    %213 = vector.shape_cast %212 : vector<2x8x8x128xf32> to vector<128x128xf32>
    %214 = arith.truncf %213 : vector<128x128xf32> to vector<128x128xbf16>
    %c0_137 = arith.constant 0 : index
    %c1536 = arith.constant 1536 : index
    %215 = vector.load %arg14[%c0_137, %c1536] : memref<128x3200xbf16, #tpu.memory_space<vmem>>, vector<128x128xbf16>
    tpu.vector_store %arg14[%c0_137, %c1536], %214 {strides = array<i32>} : memref<128x3200xbf16, #tpu.memory_space<vmem>>, vector<128x128xbf16>,
    %c0_138 = arith.constant 0 : index
    %c2_139 = arith.constant 2 : index
    %c3_140 = arith.constant 3 : index
    %c0_141 = arith.constant 0 : index
    %216 = vector.load %arg13[%c0_138, %c2_139, %c3_140, %c0_141] : memref<2x12x12x128xf32, #tpu.memory_space<vmem>>, vector<2x8x8x128xf32>
    %217 = vector.shape_cast %216 : vector<2x8x8x128xf32> to vector<128x128xf32>
    %218 = arith.truncf %217 : vector<128x128xf32> to vector<128x128xbf16>
    %c0_142 = arith.constant 0 : index
    %c1664 = arith.constant 1664 : index
    %219 = vector.load %arg14[%c0_142, %c1664] : memref<128x3200xbf16, #tpu.memory_space<vmem>>, vector<128x128xbf16>
    tpu.vector_store %arg14[%c0_142, %c1664], %218 {strides = array<i32>} : memref<128x3200xbf16, #tpu.memory_space<vmem>>, vector<128x128xbf16>,
    %c0_143 = arith.constant 0 : index
    %c2_144 = arith.constant 2 : index
    %c4_145 = arith.constant 4 : index
    %c0_146 = arith.constant 0 : index
    %220 = vector.load %arg13[%c0_143, %c2_144, %c4_145, %c0_146] : memref<2x12x12x128xf32, #tpu.memory_space<vmem>>, vector<2x8x8x128xf32>
    %221 = vector.shape_cast %220 : vector<2x8x8x128xf32> to vector<128x128xf32>
    %222 = arith.truncf %221 : vector<128x128xf32> to vector<128x128xbf16>
    %c0_147 = arith.constant 0 : index
    %c1792 = arith.constant 1792 : index
    %223 = vector.load %arg14[%c0_147, %c1792] : memref<128x3200xbf16, #tpu.memory_space<vmem>>, vector<128x128xbf16>
    tpu.vector_store %arg14[%c0_147, %c1792], %222 {strides = array<i32>} : memref<128x3200xbf16, #tpu.memory_space<vmem>>, vector<128x128xbf16>,
    %c0_148 = arith.constant 0 : index
    %c3_149 = arith.constant 3 : index
    %c0_150 = arith.constant 0 : index
    %c0_151 = arith.constant 0 : index
    %224 = vector.load %arg13[%c0_148, %c3_149, %c0_150, %c0_151] : memref<2x12x12x128xf32, #tpu.memory_space<vmem>>, vector<2x8x8x128xf32>
    %225 = vector.shape_cast %224 : vector<2x8x8x128xf32> to vector<128x128xf32>
    %226 = arith.truncf %225 : vector<128x128xf32> to vector<128x128xbf16>
    %c0_152 = arith.constant 0 : index
    %c1920 = arith.constant 1920 : index
    %227 = vector.load %arg14[%c0_152, %c1920] : memref<128x3200xbf16, #tpu.memory_space<vmem>>, vector<128x128xbf16>
    tpu.vector_store %arg14[%c0_152, %c1920], %226 {strides = array<i32>} : memref<128x3200xbf16, #tpu.memory_space<vmem>>, vector<128x128xbf16>,
    %c0_153 = arith.constant 0 : index
    %c3_154 = arith.constant 3 : index
    %c1_155 = arith.constant 1 : index
    %c0_156 = arith.constant 0 : index
    %228 = vector.load %arg13[%c0_153, %c3_154, %c1_155, %c0_156] : memref<2x12x12x128xf32, #tpu.memory_space<vmem>>, vector<2x8x8x128xf32>
    %229 = vector.shape_cast %228 : vector<2x8x8x128xf32> to vector<128x128xf32>
    %230 = arith.truncf %229 : vector<128x128xf32> to vector<128x128xbf16>
    %c0_157 = arith.constant 0 : index
    %c2048 = arith.constant 2048 : index
    %231 = vector.load %arg14[%c0_157, %c2048] : memref<128x3200xbf16, #tpu.memory_space<vmem>>, vector<128x128xbf16>
    tpu.vector_store %arg14[%c0_157, %c2048], %230 {strides = array<i32>} : memref<128x3200xbf16, #tpu.memory_space<vmem>>, vector<128x128xbf16>,
    %c0_158 = arith.constant 0 : index
    %c3_159 = arith.constant 3 : index
    %c2_160 = arith.constant 2 : index
    %c0_161 = arith.constant 0 : index
    %232 = vector.load %arg13[%c0_158, %c3_159, %c2_160, %c0_161] : memref<2x12x12x128xf32, #tpu.memory_space<vmem>>, vector<2x8x8x128xf32>
    %233 = vector.shape_cast %232 : vector<2x8x8x128xf32> to vector<128x128xf32>
    %234 = arith.truncf %233 : vector<128x128xf32> to vector<128x128xbf16>
    %c0_162 = arith.constant 0 : index
    %c2176 = arith.constant 2176 : index
    %235 = vector.load %arg14[%c0_162, %c2176] : memref<128x3200xbf16, #tpu.memory_space<vmem>>, vector<128x128xbf16>
    tpu.vector_store %arg14[%c0_162, %c2176], %234 {strides = array<i32>} : memref<128x3200xbf16, #tpu.memory_space<vmem>>, vector<128x128xbf16>,
    %c0_163 = arith.constant 0 : index
    %c3_164 = arith.constant 3 : index
    %c3_165 = arith.constant 3 : index
    %c0_166 = arith.constant 0 : index
    %236 = vector.load %arg13[%c0_163, %c3_164, %c3_165, %c0_166] : memref<2x12x12x128xf32, #tpu.memory_space<vmem>>, vector<2x8x8x128xf32>
    %237 = vector.shape_cast %236 : vector<2x8x8x128xf32> to vector<128x128xf32>
    %238 = arith.truncf %237 : vector<128x128xf32> to vector<128x128xbf16>
    %c0_167 = arith.constant 0 : index
    %c2304 = arith.constant 2304 : index
    %239 = vector.load %arg14[%c0_167, %c2304] : memref<128x3200xbf16, #tpu.memory_space<vmem>>, vector<128x128xbf16>
    tpu.vector_store %arg14[%c0_167, %c2304], %238 {strides = array<i32>} : memref<128x3200xbf16, #tpu.memory_space<vmem>>, vector<128x128xbf16>,
    %c0_168 = arith.constant 0 : index
    %c3_169 = arith.constant 3 : index
    %c4_170 = arith.constant 4 : index
    %c0_171 = arith.constant 0 : index
    %240 = vector.load %arg13[%c0_168, %c3_169, %c4_170, %c0_171] : memref<2x12x12x128xf32, #tpu.memory_space<vmem>>, vector<2x8x8x128xf32>
    %241 = vector.shape_cast %240 : vector<2x8x8x128xf32> to vector<128x128xf32>
    %242 = arith.truncf %241 : vector<128x128xf32> to vector<128x128xbf16>
    %c0_172 = arith.constant 0 : index
    %c2432 = arith.constant 2432 : index
    %243 = vector.load %arg14[%c0_172, %c2432] : memref<128x3200xbf16, #tpu.memory_space<vmem>>, vector<128x128xbf16>
    tpu.vector_store %arg14[%c0_172, %c2432], %242 {strides = array<i32>} : memref<128x3200xbf16, #tpu.memory_space<vmem>>, vector<128x128xbf16>,
    %c0_173 = arith.constant 0 : index
    %c4_174 = arith.constant 4 : index
    %c0_175 = arith.constant 0 : index
    %c0_176 = arith.constant 0 : index
    %244 = vector.load %arg13[%c0_173, %c4_174, %c0_175, %c0_176] : memref<2x12x12x128xf32, #tpu.memory_space<vmem>>, vector<2x8x8x128xf32>
    %245 = vector.shape_cast %244 : vector<2x8x8x128xf32> to vector<128x128xf32>
    %246 = arith.truncf %245 : vector<128x128xf32> to vector<128x128xbf16>
    %c0_177 = arith.constant 0 : index
    %c2560 = arith.constant 2560 : index
    %247 = vector.load %arg14[%c0_177, %c2560] : memref<128x3200xbf16, #tpu.memory_space<vmem>>, vector<128x128xbf16>
    tpu.vector_store %arg14[%c0_177, %c2560], %246 {strides = array<i32>} : memref<128x3200xbf16, #tpu.memory_space<vmem>>, vector<128x128xbf16>,
    %c0_178 = arith.constant 0 : index
    %c4_179 = arith.constant 4 : index
    %c1_180 = arith.constant 1 : index
    %c0_181 = arith.constant 0 : index
    %248 = vector.load %arg13[%c0_178, %c4_179, %c1_180, %c0_181] : memref<2x12x12x128xf32, #tpu.memory_space<vmem>>, vector<2x8x8x128xf32>
    %249 = vector.shape_cast %248 : vector<2x8x8x128xf32> to vector<128x128xf32>
    %250 = arith.truncf %249 : vector<128x128xf32> to vector<128x128xbf16>
    %c0_182 = arith.constant 0 : index
    %c2688 = arith.constant 2688 : index
    %251 = vector.load %arg14[%c0_182, %c2688] : memref<128x3200xbf16, #tpu.memory_space<vmem>>, vector<128x128xbf16>
    tpu.vector_store %arg14[%c0_182, %c2688], %250 {strides = array<i32>} : memref<128x3200xbf16, #tpu.memory_space<vmem>>, vector<128x128xbf16>,
    %c0_183 = arith.constant 0 : index
    %c4_184 = arith.constant 4 : index
    %c2_185 = arith.constant 2 : index
    %c0_186 = arith.constant 0 : index
    %252 = vector.load %arg13[%c0_183, %c4_184, %c2_185, %c0_186] : memref<2x12x12x128xf32, #tpu.memory_space<vmem>>, vector<2x8x8x128xf32>
    %253 = vector.shape_cast %252 : vector<2x8x8x128xf32> to vector<128x128xf32>
    %254 = arith.truncf %253 : vector<128x128xf32> to vector<128x128xbf16>
    %c0_187 = arith.constant 0 : index
    %c2816 = arith.constant 2816 : index
    %255 = vector.load %arg14[%c0_187, %c2816] : memref<128x3200xbf16, #tpu.memory_space<vmem>>, vector<128x128xbf16>
    tpu.vector_store %arg14[%c0_187, %c2816], %254 {strides = array<i32>} : memref<128x3200xbf16, #tpu.memory_space<vmem>>, vector<128x128xbf16>,
    %c0_188 = arith.constant 0 : index
    %c4_189 = arith.constant 4 : index
    %c3_190 = arith.constant 3 : index
    %c0_191 = arith.constant 0 : index
    %256 = vector.load %arg13[%c0_188, %c4_189, %c3_190, %c0_191] : memref<2x12x12x128xf32, #tpu.memory_space<vmem>>, vector<2x8x8x128xf32>
    %257 = vector.shape_cast %256 : vector<2x8x8x128xf32> to vector<128x128xf32>
    %258 = arith.truncf %257 : vector<128x128xf32> to vector<128x128xbf16>
    %c0_192 = arith.constant 0 : index
    %c2944 = arith.constant 2944 : index
    %259 = vector.load %arg14[%c0_192, %c2944] : memref<128x3200xbf16, #tpu.memory_space<vmem>>, vector<128x128xbf16>
    tpu.vector_store %arg14[%c0_192, %c2944], %258 {strides = array<i32>} : memref<128x3200xbf16, #tpu.memory_space<vmem>>, vector<128x128xbf16>,
    %c0_193 = arith.constant 0 : index
    %c4_194 = arith.constant 4 : index
    %c4_195 = arith.constant 4 : index
    %c0_196 = arith.constant 0 : index
    %260 = vector.load %arg13[%c0_193, %c4_194, %c4_195, %c0_196] : memref<2x12x12x128xf32, #tpu.memory_space<vmem>>, vector<2x8x8x128xf32>
    %261 = vector.shape_cast %260 : vector<2x8x8x128xf32> to vector<128x128xf32>
    %262 = arith.truncf %261 : vector<128x128xf32> to vector<128x128xbf16>
    %c0_197 = arith.constant 0 : index
    %c3072 = arith.constant 3072 : index
    %263 = vector.load %arg14[%c0_197, %c3072] : memref<128x3200xbf16, #tpu.memory_space<vmem>>, vector<128x128xbf16>
    tpu.vector_store %arg14[%c0_197, %c3072], %262 {strides = array<i32>} : memref<128x3200xbf16, #tpu.memory_space<vmem>>, vector<128x128xbf16>,
    %c0_198 = arith.constant 0 : index
    %c0_199 = arith.constant 0 : index
    %264 = vector.load %arg14[%c0_198, %c0_199] : memref<128x3200xbf16, #tpu.memory_space<vmem>>, vector<128x3200xbf16>
    %c0_200 = arith.constant 0 : index
    %c0_201 = arith.constant 0 : index
    %265 = vector.load %arg4[%c0_200, %c0_201] : memref<3200x128xbf16, #tpu.memory_space<vmem>>, vector<3200x128xbf16>
    %cst_202 = arith.constant dense<0.000000e+00> : vector<128x128xf32>
    %266 = tpu.matmul %264, %265, %cst_202 {dimension_numbers = #tpu.dot_dimension_numbers<[1], [0], [0], [1], [0, 0, 1, 1], [], []>} : vector<128x3200xbf16>, vector<3200x128xbf16>, vector<128x128xf32> -> vector<128x128xf32>
    %c0_203 = arith.constant 0 : index
    %c0_204 = arith.constant 0 : index
    %267 = vector.load %arg5[%c0_203, %c0_204] : memref<1x128xf32, #tpu.memory_space<vmem>>, vector<1x128xf32>
    %268 = vector.broadcast %267 : vector<1x128xf32> to vector<128x128xf32>
    %269 = arith.addf %266, %268 : vector<128x128xf32>
    %cst_205 = arith.constant 0.000000e+00 : f32
    %270 = vector.broadcast %cst_205 : f32 to vector<128x128xf32>
    %271 = arith.maximumf %269, %270 : vector<128x128xf32>
    %272 = vector.shape_cast %271 : vector<128x128xf32> to vector<2x8x8x128xf32>
    %c0_206 = arith.constant 0 : index
    %c0_207 = arith.constant 0 : index
    %c0_208 = arith.constant 0 : index
    %c0_209 = arith.constant 0 : index
    %273 = vector.load %arg15[%c0_206, %c0_207, %c0_208, %c0_209] : memref<2x8x8x128xf32, #tpu.memory_space<vmem>>, vector<2x8x8x128xf32>
    tpu.vector_store %arg15[%c0_206, %c0_207, %c0_208, %c0_209], %272 {strides = array<i32>} : memref<2x8x8x128xf32, #tpu.memory_space<vmem>>, vector<2x8x8x128xf32>,
    %cst_210 = arith.constant 0.000000e+00 : f32
    %274 = vector.broadcast %cst_210 : f32 to vector<2x6x6x128xf32>
    %c0_211 = arith.constant 0 : index
    %c0_212 = arith.constant 0 : index
    %c0_213 = arith.constant 0 : index
    %c0_214 = arith.constant 0 : index
    %275 = vector.load %arg16[%c0_211, %c0_212, %c0_213, %c0_214] : memref<2x6x6x128xf32, #tpu.memory_space<vmem>>, vector<2x6x6x128xf32>
    tpu.vector_store %arg16[%c0_211, %c0_212, %c0_213, %c0_214], %274 {strides = array<i32>} : memref<2x6x6x128xf32, #tpu.memory_space<vmem>>, vector<2x6x6x128xf32>,
    %c0_215 = arith.constant 0 : index
    %c0_216 = arith.constant 0 : index
    %c0_217 = arith.constant 0 : index
    %c0_218 = arith.constant 0 : index
    %276 = tpu.strided_load %arg15[%c0_215, %c0_216, %c0_217, %c0_218] {strides = array<i32: 1, 1, 2, 1>} : memref<2x8x8x128xf32, #tpu.memory_space<vmem>>, vector<2x8x4x128xf32>
    %c0_219 = arith.constant 0 : index
    %c0_220 = arith.constant 0 : index
    %c1_221 = arith.constant 1 : index
    %c0_222 = arith.constant 0 : index
    %277 = tpu.strided_load %arg15[%c0_219, %c0_220, %c1_221, %c0_222] {strides = array<i32: 1, 1, 2, 1>} : memref<2x8x8x128xf32, #tpu.memory_space<vmem>>, vector<2x8x4x128xf32>
    %278 = arith.maximumf %276, %277 : vector<2x8x4x128xf32>
    %279 = vector.shape_cast %278 : vector<2x8x4x128xf32> to vector<2x4x2x4x128xf32>
    %280 = vector.extract_strided_slice %279 {offsets = [0, 0, 0, 0, 0], sizes = [2, 4, 1, 4, 128], strides = [1, 1, 1, 1, 1]} : vector<2x4x2x4x128xf32> to vector<2x4x1x4x128xf32>
    %281 = vector.shape_cast %280 : vector<2x4x1x4x128xf32> to vector<2x4x4x128xf32>
    %282 = vector.extract_strided_slice %279 {offsets = [0, 0, 1, 0, 0], sizes = [2, 4, 1, 4, 128], strides = [1, 1, 1, 1, 1]} : vector<2x4x2x4x128xf32> to vector<2x4x1x4x128xf32>
    %283 = vector.shape_cast %282 : vector<2x4x1x4x128xf32> to vector<2x4x4x128xf32>
    %284 = arith.maximumf %281, %283 : vector<2x4x4x128xf32>
    %c0_223 = arith.constant 0 : index
    %c1_224 = arith.constant 1 : index
    %c1_225 = arith.constant 1 : index
    %c0_226 = arith.constant 0 : index
    %285 = vector.load %arg16[%c0_223, %c1_224, %c1_225, %c0_226] : memref<2x6x6x128xf32, #tpu.memory_space<vmem>>, vector<2x4x4x128xf32>
    tpu.vector_store %arg16[%c0_223, %c1_224, %c1_225, %c0_226], %284 {strides = array<i32>} : memref<2x6x6x128xf32, #tpu.memory_space<vmem>>, vector<2x4x4x128xf32>,
    %c0_227 = arith.constant 0 : index
    %c0_228 = arith.constant 0 : index
    %c0_229 = arith.constant 0 : index
    %c0_230 = arith.constant 0 : index
    %286 = vector.load %arg16[%c0_227, %c0_228, %c0_229, %c0_230] : memref<2x6x6x128xf32, #tpu.memory_space<vmem>>, vector<2x4x4x128xf32>
    %287 = vector.shape_cast %286 : vector<2x4x4x128xf32> to vector<32x128xf32>
    %288 = arith.truncf %287 : vector<32x128xf32> to vector<32x128xbf16>
    %c0_231 = arith.constant 0 : index
    %c0_232 = arith.constant 0 : index
    %289 = vector.load %arg17[%c0_231, %c0_232] : memref<32x1152xbf16, #tpu.memory_space<vmem>>, vector<32x128xbf16>
    tpu.vector_store %arg17[%c0_231, %c0_232], %288 {strides = array<i32>} : memref<32x1152xbf16, #tpu.memory_space<vmem>>, vector<32x128xbf16>,
    %c0_233 = arith.constant 0 : index
    %c0_234 = arith.constant 0 : index
    %c1_235 = arith.constant 1 : index
    %c0_236 = arith.constant 0 : index
    %290 = vector.load %arg16[%c0_233, %c0_234, %c1_235, %c0_236] : memref<2x6x6x128xf32, #tpu.memory_space<vmem>>, vector<2x4x4x128xf32>
    %291 = vector.shape_cast %290 : vector<2x4x4x128xf32> to vector<32x128xf32>
    %292 = arith.truncf %291 : vector<32x128xf32> to vector<32x128xbf16>
    %c0_237 = arith.constant 0 : index
    %c128_238 = arith.constant 128 : index
    %293 = vector.load %arg17[%c0_237, %c128_238] : memref<32x1152xbf16, #tpu.memory_space<vmem>>, vector<32x128xbf16>
    tpu.vector_store %arg17[%c0_237, %c128_238], %292 {strides = array<i32>} : memref<32x1152xbf16, #tpu.memory_space<vmem>>, vector<32x128xbf16>,
    %c0_239 = arith.constant 0 : index
    %c0_240 = arith.constant 0 : index
    %c2_241 = arith.constant 2 : index
    %c0_242 = arith.constant 0 : index
    %294 = vector.load %arg16[%c0_239, %c0_240, %c2_241, %c0_242] : memref<2x6x6x128xf32, #tpu.memory_space<vmem>>, vector<2x4x4x128xf32>
    %295 = vector.shape_cast %294 : vector<2x4x4x128xf32> to vector<32x128xf32>
    %296 = arith.truncf %295 : vector<32x128xf32> to vector<32x128xbf16>
    %c0_243 = arith.constant 0 : index
    %c256_244 = arith.constant 256 : index
    %297 = vector.load %arg17[%c0_243, %c256_244] : memref<32x1152xbf16, #tpu.memory_space<vmem>>, vector<32x128xbf16>
    tpu.vector_store %arg17[%c0_243, %c256_244], %296 {strides = array<i32>} : memref<32x1152xbf16, #tpu.memory_space<vmem>>, vector<32x128xbf16>,
    %c0_245 = arith.constant 0 : index
    %c1_246 = arith.constant 1 : index
    %c0_247 = arith.constant 0 : index
    %c0_248 = arith.constant 0 : index
    %298 = vector.load %arg16[%c0_245, %c1_246, %c0_247, %c0_248] : memref<2x6x6x128xf32, #tpu.memory_space<vmem>>, vector<2x4x4x128xf32>
    %299 = vector.shape_cast %298 : vector<2x4x4x128xf32> to vector<32x128xf32>
    %300 = arith.truncf %299 : vector<32x128xf32> to vector<32x128xbf16>
    %c0_249 = arith.constant 0 : index
    %c384_250 = arith.constant 384 : index
    %301 = vector.load %arg17[%c0_249, %c384_250] : memref<32x1152xbf16, #tpu.memory_space<vmem>>, vector<32x128xbf16>
    tpu.vector_store %arg17[%c0_249, %c384_250], %300 {strides = array<i32>} : memref<32x1152xbf16, #tpu.memory_space<vmem>>, vector<32x128xbf16>,
    %c0_251 = arith.constant 0 : index
    %c1_252 = arith.constant 1 : index
    %c1_253 = arith.constant 1 : index
    %c0_254 = arith.constant 0 : index
    %302 = vector.load %arg16[%c0_251, %c1_252, %c1_253, %c0_254] : memref<2x6x6x128xf32, #tpu.memory_space<vmem>>, vector<2x4x4x128xf32>
    %303 = vector.shape_cast %302 : vector<2x4x4x128xf32> to vector<32x128xf32>
    %304 = arith.truncf %303 : vector<32x128xf32> to vector<32x128xbf16>
    %c0_255 = arith.constant 0 : index
    %c512_256 = arith.constant 512 : index
    %305 = vector.load %arg17[%c0_255, %c512_256] : memref<32x1152xbf16, #tpu.memory_space<vmem>>, vector<32x128xbf16>
    tpu.vector_store %arg17[%c0_255, %c512_256], %304 {strides = array<i32>} : memref<32x1152xbf16, #tpu.memory_space<vmem>>, vector<32x128xbf16>,
    %c0_257 = arith.constant 0 : index
    %c1_258 = arith.constant 1 : index
    %c2_259 = arith.constant 2 : index
    %c0_260 = arith.constant 0 : index
    %306 = vector.load %arg16[%c0_257, %c1_258, %c2_259, %c0_260] : memref<2x6x6x128xf32, #tpu.memory_space<vmem>>, vector<2x4x4x128xf32>
    %307 = vector.shape_cast %306 : vector<2x4x4x128xf32> to vector<32x128xf32>
    %308 = arith.truncf %307 : vector<32x128xf32> to vector<32x128xbf16>
    %c0_261 = arith.constant 0 : index
    %c640_262 = arith.constant 640 : index
    %309 = vector.load %arg17[%c0_261, %c640_262] : memref<32x1152xbf16, #tpu.memory_space<vmem>>, vector<32x128xbf16>
    tpu.vector_store %arg17[%c0_261, %c640_262], %308 {strides = array<i32>} : memref<32x1152xbf16, #tpu.memory_space<vmem>>, vector<32x128xbf16>,
    %c0_263 = arith.constant 0 : index
    %c2_264 = arith.constant 2 : index
    %c0_265 = arith.constant 0 : index
    %c0_266 = arith.constant 0 : index
    %310 = vector.load %arg16[%c0_263, %c2_264, %c0_265, %c0_266] : memref<2x6x6x128xf32, #tpu.memory_space<vmem>>, vector<2x4x4x128xf32>
    %311 = vector.shape_cast %310 : vector<2x4x4x128xf32> to vector<32x128xf32>
    %312 = arith.truncf %311 : vector<32x128xf32> to vector<32x128xbf16>
    %c0_267 = arith.constant 0 : index
    %c768_268 = arith.constant 768 : index
    %313 = vector.load %arg17[%c0_267, %c768_268] : memref<32x1152xbf16, #tpu.memory_space<vmem>>, vector<32x128xbf16>
    tpu.vector_store %arg17[%c0_267, %c768_268], %312 {strides = array<i32>} : memref<32x1152xbf16, #tpu.memory_space<vmem>>, vector<32x128xbf16>,
    %c0_269 = arith.constant 0 : index
    %c2_270 = arith.constant 2 : index
    %c1_271 = arith.constant 1 : index
    %c0_272 = arith.constant 0 : index
    %314 = vector.load %arg16[%c0_269, %c2_270, %c1_271, %c0_272] : memref<2x6x6x128xf32, #tpu.memory_space<vmem>>, vector<2x4x4x128xf32>
    %315 = vector.shape_cast %314 : vector<2x4x4x128xf32> to vector<32x128xf32>
    %316 = arith.truncf %315 : vector<32x128xf32> to vector<32x128xbf16>
    %c0_273 = arith.constant 0 : index
    %c896_274 = arith.constant 896 : index
    %317 = vector.load %arg17[%c0_273, %c896_274] : memref<32x1152xbf16, #tpu.memory_space<vmem>>, vector<32x128xbf16>
    tpu.vector_store %arg17[%c0_273, %c896_274], %316 {strides = array<i32>} : memref<32x1152xbf16, #tpu.memory_space<vmem>>, vector<32x128xbf16>,
    %c0_275 = arith.constant 0 : index
    %c2_276 = arith.constant 2 : index
    %c2_277 = arith.constant 2 : index
    %c0_278 = arith.constant 0 : index
    %318 = vector.load %arg16[%c0_275, %c2_276, %c2_277, %c0_278] : memref<2x6x6x128xf32, #tpu.memory_space<vmem>>, vector<2x4x4x128xf32>
    %319 = vector.shape_cast %318 : vector<2x4x4x128xf32> to vector<32x128xf32>
    %320 = arith.truncf %319 : vector<32x128xf32> to vector<32x128xbf16>
    %c0_279 = arith.constant 0 : index
    %c1024_280 = arith.constant 1024 : index
    %321 = vector.load %arg17[%c0_279, %c1024_280] : memref<32x1152xbf16, #tpu.memory_space<vmem>>, vector<32x128xbf16>
    tpu.vector_store %arg17[%c0_279, %c1024_280], %320 {strides = array<i32>} : memref<32x1152xbf16, #tpu.memory_space<vmem>>, vector<32x128xbf16>,
    %c0_281 = arith.constant 0 : index
    %c0_282 = arith.constant 0 : index
    %322 = vector.load %arg17[%c0_281, %c0_282] : memref<32x1152xbf16, #tpu.memory_space<vmem>>, vector<32x1152xbf16>
    %c0_283 = arith.constant 0 : index
    %c0_284 = arith.constant 0 : index
    %323 = vector.load %arg6[%c0_283, %c0_284] : memref<1152x128xbf16, #tpu.memory_space<vmem>>, vector<1152x128xbf16>
    %cst_285 = arith.constant dense<0.000000e+00> : vector<32x128xf32>
    %324 = tpu.matmul %322, %323, %cst_285 {dimension_numbers = #tpu.dot_dimension_numbers<[1], [0], [0], [1], [0, 0, 1, 1], [], []>} : vector<32x1152xbf16>, vector<1152x128xbf16>, vector<32x128xf32> -> vector<32x128xf32>
    %c0_286 = arith.constant 0 : index
    %c0_287 = arith.constant 0 : index
    %325 = vector.load %arg7[%c0_286, %c0_287] : memref<1x128xf32, #tpu.memory_space<vmem>>, vector<1x128xf32>
    %326 = vector.broadcast %325 : vector<1x128xf32> to vector<32x128xf32>
    %327 = arith.addf %324, %326 : vector<32x128xf32>
    %cst_288 = arith.constant 0.000000e+00 : f32
    %328 = vector.broadcast %cst_288 : f32 to vector<32x128xf32>
    %329 = arith.maximumf %327, %328 : vector<32x128xf32>
    %330 = vector.shape_cast %329 : vector<32x128xf32> to vector<2x4x4x128xf32>
    %c0_289 = arith.constant 0 : index
    %c0_290 = arith.constant 0 : index
    %c0_291 = arith.constant 0 : index
    %c0_292 = arith.constant 0 : index
    %331 = vector.load %arg18[%c0_289, %c0_290, %c0_291, %c0_292] : memref<2x4x4x128xf32, #tpu.memory_space<vmem>>, vector<2x4x4x128xf32>
    tpu.vector_store %arg18[%c0_289, %c0_290, %c0_291, %c0_292], %330 {strides = array<i32>} : memref<2x4x4x128xf32, #tpu.memory_space<vmem>>, vector<2x4x4x128xf32>,
    %c0_293 = arith.constant 0 : index
    %c0_294 = arith.constant 0 : index
    %c0_295 = arith.constant 0 : index
    %c0_296 = arith.constant 0 : index
    %332 = vector.load %arg18[%c0_293, %c0_294, %c0_295, %c0_296] : memref<2x4x4x128xf32, #tpu.memory_space<vmem>>, vector<2x1x1x128xf32>
    %333 = vector.shape_cast %332 : vector<2x1x1x128xf32> to vector<2x128xf32>
    %c0_297 = arith.constant 0 : index
    %c0_298 = arith.constant 0 : index
    %c1_299 = arith.constant 1 : index
    %c0_300 = arith.constant 0 : index
    %334 = vector.load %arg18[%c0_297, %c0_298, %c1_299, %c0_300] : memref<2x4x4x128xf32, #tpu.memory_space<vmem>>, vector<2x1x1x128xf32>
    %335 = vector.shape_cast %334 : vector<2x1x1x128xf32> to vector<2x128xf32>
    %336 = arith.maximumf %333, %335 : vector<2x128xf32>
    %c0_301 = arith.constant 0 : index
    %c1_302 = arith.constant 1 : index
    %c0_303 = arith.constant 0 : index
    %c0_304 = arith.constant 0 : index
    %337 = vector.load %arg18[%c0_301, %c1_302, %c0_303, %c0_304] : memref<2x4x4x128xf32, #tpu.memory_space<vmem>>, vector<2x1x1x128xf32>
    %338 = vector.shape_cast %337 : vector<2x1x1x128xf32> to vector<2x128xf32>
    %c0_305 = arith.constant 0 : index
    %c1_306 = arith.constant 1 : index
    %c1_307 = arith.constant 1 : index
    %c0_308 = arith.constant 0 : index
    %339 = vector.load %arg18[%c0_305, %c1_306, %c1_307, %c0_308] : memref<2x4x4x128xf32, #tpu.memory_space<vmem>>, vector<2x1x1x128xf32>
    %340 = vector.shape_cast %339 : vector<2x1x1x128xf32> to vector<2x128xf32>
    %341 = arith.maximumf %338, %340 : vector<2x128xf32>
    %342 = arith.maximumf %336, %341 : vector<2x128xf32>
    %343 = arith.truncf %342 : vector<2x128xf32> to vector<2x128xbf16>
    %c0_309 = arith.constant 0 : index
    %c0_310 = arith.constant 0 : index
    %344 = vector.load %arg19[%c0_309, %c0_310] : memref<2x512xbf16, #tpu.memory_space<vmem>>, vector<2x128xbf16>
    tpu.vector_store %arg19[%c0_309, %c0_310], %343 {strides = array<i32>} : memref<2x512xbf16, #tpu.memory_space<vmem>>, vector<2x128xbf16>,
    %c0_311 = arith.constant 0 : index
    %c0_312 = arith.constant 0 : index
    %c2_313 = arith.constant 2 : index
    %c0_314 = arith.constant 0 : index
    %345 = vector.load %arg18[%c0_311, %c0_312, %c2_313, %c0_314] : memref<2x4x4x128xf32, #tpu.memory_space<vmem>>, vector<2x1x1x128xf32>
    %346 = vector.shape_cast %345 : vector<2x1x1x128xf32> to vector<2x128xf32>
    %c0_315 = arith.constant 0 : index
    %c0_316 = arith.constant 0 : index
    %c3_317 = arith.constant 3 : index
    %c0_318 = arith.constant 0 : index
    %347 = vector.load %arg18[%c0_315, %c0_316, %c3_317, %c0_318] : memref<2x4x4x128xf32, #tpu.memory_space<vmem>>, vector<2x1x1x128xf32>
    %348 = vector.shape_cast %347 : vector<2x1x1x128xf32> to vector<2x128xf32>
    %349 = arith.maximumf %346, %348 : vector<2x128xf32>
    %c0_319 = arith.constant 0 : index
    %c1_320 = arith.constant 1 : index
    %c2_321 = arith.constant 2 : index
    %c0_322 = arith.constant 0 : index
    %350 = vector.load %arg18[%c0_319, %c1_320, %c2_321, %c0_322] : memref<2x4x4x128xf32, #tpu.memory_space<vmem>>, vector<2x1x1x128xf32>
    %351 = vector.shape_cast %350 : vector<2x1x1x128xf32> to vector<2x128xf32>
    %c0_323 = arith.constant 0 : index
    %c1_324 = arith.constant 1 : index
    %c3_325 = arith.constant 3 : index
    %c0_326 = arith.constant 0 : index
    %352 = vector.load %arg18[%c0_323, %c1_324, %c3_325, %c0_326] : memref<2x4x4x128xf32, #tpu.memory_space<vmem>>, vector<2x1x1x128xf32>
    %353 = vector.shape_cast %352 : vector<2x1x1x128xf32> to vector<2x128xf32>
    %354 = arith.maximumf %351, %353 : vector<2x128xf32>
    %355 = arith.maximumf %349, %354 : vector<2x128xf32>
    %356 = arith.truncf %355 : vector<2x128xf32> to vector<2x128xbf16>
    %c0_327 = arith.constant 0 : index
    %c128_328 = arith.constant 128 : index
    %357 = vector.load %arg19[%c0_327, %c128_328] : memref<2x512xbf16, #tpu.memory_space<vmem>>, vector<2x128xbf16>
    tpu.vector_store %arg19[%c0_327, %c128_328], %356 {strides = array<i32>} : memref<2x512xbf16, #tpu.memory_space<vmem>>, vector<2x128xbf16>,
    %c0_329 = arith.constant 0 : index
    %c2_330 = arith.constant 2 : index
    %c0_331 = arith.constant 0 : index
    %c0_332 = arith.constant 0 : index
    %358 = vector.load %arg18[%c0_329, %c2_330, %c0_331, %c0_332] : memref<2x4x4x128xf32, #tpu.memory_space<vmem>>, vector<2x1x1x128xf32>
    %359 = vector.shape_cast %358 : vector<2x1x1x128xf32> to vector<2x128xf32>
    %c0_333 = arith.constant 0 : index
    %c2_334 = arith.constant 2 : index
    %c1_335 = arith.constant 1 : index
    %c0_336 = arith.constant 0 : index
    %360 = vector.load %arg18[%c0_333, %c2_334, %c1_335, %c0_336] : memref<2x4x4x128xf32, #tpu.memory_space<vmem>>, vector<2x1x1x128xf32>
    %361 = vector.shape_cast %360 : vector<2x1x1x128xf32> to vector<2x128xf32>
    %362 = arith.maximumf %359, %361 : vector<2x128xf32>
    %c0_337 = arith.constant 0 : index
    %c3_338 = arith.constant 3 : index
    %c0_339 = arith.constant 0 : index
    %c0_340 = arith.constant 0 : index
    %363 = vector.load %arg18[%c0_337, %c3_338, %c0_339, %c0_340] : memref<2x4x4x128xf32, #tpu.memory_space<vmem>>, vector<2x1x1x128xf32>
    %364 = vector.shape_cast %363 : vector<2x1x1x128xf32> to vector<2x128xf32>
    %c0_341 = arith.constant 0 : index
    %c3_342 = arith.constant 3 : index
    %c1_343 = arith.constant 1 : index
    %c0_344 = arith.constant 0 : index
    %365 = vector.load %arg18[%c0_341, %c3_342, %c1_343, %c0_344] : memref<2x4x4x128xf32, #tpu.memory_space<vmem>>, vector<2x1x1x128xf32>
    %366 = vector.shape_cast %365 : vector<2x1x1x128xf32> to vector<2x128xf32>
    %367 = arith.maximumf %364, %366 : vector<2x128xf32>
    %368 = arith.maximumf %362, %367 : vector<2x128xf32>
    %369 = arith.truncf %368 : vector<2x128xf32> to vector<2x128xbf16>
    %c0_345 = arith.constant 0 : index
    %c256_346 = arith.constant 256 : index
    %370 = vector.load %arg19[%c0_345, %c256_346] : memref<2x512xbf16, #tpu.memory_space<vmem>>, vector<2x128xbf16>
    tpu.vector_store %arg19[%c0_345, %c256_346], %369 {strides = array<i32>} : memref<2x512xbf16, #tpu.memory_space<vmem>>, vector<2x128xbf16>,
    %c0_347 = arith.constant 0 : index
    %c2_348 = arith.constant 2 : index
    %c2_349 = arith.constant 2 : index
    %c0_350 = arith.constant 0 : index
    %371 = vector.load %arg18[%c0_347, %c2_348, %c2_349, %c0_350] : memref<2x4x4x128xf32, #tpu.memory_space<vmem>>, vector<2x1x1x128xf32>
    %372 = vector.shape_cast %371 : vector<2x1x1x128xf32> to vector<2x128xf32>
    %c0_351 = arith.constant 0 : index
    %c2_352 = arith.constant 2 : index
    %c3_353 = arith.constant 3 : index
    %c0_354 = arith.constant 0 : index
    %373 = vector.load %arg18[%c0_351, %c2_352, %c3_353, %c0_354] : memref<2x4x4x128xf32, #tpu.memory_space<vmem>>, vector<2x1x1x128xf32>
    %374 = vector.shape_cast %373 : vector<2x1x1x128xf32> to vector<2x128xf32>
    %375 = arith.maximumf %372, %374 : vector<2x128xf32>
    %c0_355 = arith.constant 0 : index
    %c3_356 = arith.constant 3 : index
    %c2_357 = arith.constant 2 : index
    %c0_358 = arith.constant 0 : index
    %376 = vector.load %arg18[%c0_355, %c3_356, %c2_357, %c0_358] : memref<2x4x4x128xf32, #tpu.memory_space<vmem>>, vector<2x1x1x128xf32>
    %377 = vector.shape_cast %376 : vector<2x1x1x128xf32> to vector<2x128xf32>
    %c0_359 = arith.constant 0 : index
    %c3_360 = arith.constant 3 : index
    %c3_361 = arith.constant 3 : index
    %c0_362 = arith.constant 0 : index
    %378 = vector.load %arg18[%c0_359, %c3_360, %c3_361, %c0_362] : memref<2x4x4x128xf32, #tpu.memory_space<vmem>>, vector<2x1x1x128xf32>
    %379 = vector.shape_cast %378 : vector<2x1x1x128xf32> to vector<2x128xf32>
    %380 = arith.maximumf %377, %379 : vector<2x128xf32>
    %381 = arith.maximumf %375, %380 : vector<2x128xf32>
    %382 = arith.truncf %381 : vector<2x128xf32> to vector<2x128xbf16>
    %c0_363 = arith.constant 0 : index
    %c384_364 = arith.constant 384 : index
    %383 = vector.load %arg19[%c0_363, %c384_364] : memref<2x512xbf16, #tpu.memory_space<vmem>>, vector<2x128xbf16>
    tpu.vector_store %arg19[%c0_363, %c384_364], %382 {strides = array<i32>} : memref<2x512xbf16, #tpu.memory_space<vmem>>, vector<2x128xbf16>,
    %c0_365 = arith.constant 0 : index
    %c0_366 = arith.constant 0 : index
    %384 = vector.load %arg19[%c0_365, %c0_366] : memref<2x512xbf16, #tpu.memory_space<vmem>>, vector<2x512xbf16>
    %c0_367 = arith.constant 0 : index
    %c0_368 = arith.constant 0 : index
    %385 = vector.load %arg8[%c0_367, %c0_368] : memref<512x512xbf16, #tpu.memory_space<vmem>>, vector<512x512xbf16>
    %cst_369 = arith.constant dense<0.000000e+00> : vector<2x512xf32>
    %386 = tpu.matmul %384, %385, %cst_369 {dimension_numbers = #tpu.dot_dimension_numbers<[1], [0], [0], [1], [0, 0, 1, 1], [], []>} : vector<2x512xbf16>, vector<512x512xbf16>, vector<2x512xf32> -> vector<2x512xf32>
    %c0_370 = arith.constant 0 : index
    %c0_371 = arith.constant 0 : index
    %387 = vector.load %arg9[%c0_370, %c0_371] : memref<1x512xf32, #tpu.memory_space<vmem>>, vector<1x512xf32>
    %388 = vector.broadcast %387 : vector<1x512xf32> to vector<2x512xf32>
    %389 = arith.addf %386, %388 : vector<2x512xf32>
    %cst_372 = arith.constant 0.000000e+00 : f32
    %390 = vector.broadcast %cst_372 : f32 to vector<2x512xf32>
    %391 = arith.maximumf %389, %390 : vector<2x512xf32>
    %392 = arith.truncf %391 : vector<2x512xf32> to vector<2x512xbf16>
    %c0_373 = arith.constant 0 : index
    %c0_374 = arith.constant 0 : index
    %393 = vector.load %arg10[%c0_373, %c0_374] : memref<512x10xbf16, #tpu.memory_space<vmem>>, vector<512x10xbf16>
    %cst_375 = arith.constant dense<0.000000e+00> : vector<2x10xf32>
    %394 = tpu.matmul %392, %393, %cst_375 {dimension_numbers = #tpu.dot_dimension_numbers<[1], [0], [0], [1], [0, 0, 1, 1], [], []>} : vector<2x512xbf16>, vector<512x10xbf16>, vector<2x10xf32> -> vector<2x10xf32>
    %c0_376 = arith.constant 0 : index
    %c0_377 = arith.constant 0 : index
    %395 = vector.load %arg11[%c0_376, %c0_377] : memref<1x10xf32, #tpu.memory_space<vmem>>, vector<1x10xf32>
    %396 = vector.broadcast %395 : vector<1x10xf32> to vector<2x10xf32>
    %397 = arith.addf %394, %396 : vector<2x10xf32>
    %cst_378 = arith.constant dense<0xFF800000> : vector<2xf32>
    %398 = vector.multi_reduction <maximumf>, %397, %cst_378 [1] : vector<2x10xf32> to vector<2xf32>
    %399 = vector.shape_cast %398 : vector<2xf32> to vector<2x1xf32>
    %400 = vector.broadcast %399 : vector<2x1xf32> to vector<2x10xf32>
    %401 = arith.subf %397, %400 : vector<2x10xf32>
    %402 = math.exp %401 : vector<2x10xf32>
    %cst_379 = arith.constant dense<0.000000e+00> : vector<2xf32>
    %403 = vector.multi_reduction <add>, %402, %cst_379 [1] : vector<2x10xf32> to vector<2xf32>
    %404 = vector.shape_cast %403 : vector<2xf32> to vector<2x1xf32>
    %405 = math.log %404 : vector<2x1xf32>
    %406 = vector.broadcast %405 : vector<2x1xf32> to vector<2x10xf32>
    %407 = arith.subf %401, %406 : vector<2x10xf32>
    %c0_380 = arith.constant 0 : index
    %c0_381 = arith.constant 0 : index
    %408 = vector.load %arg12[%c0_380, %c0_381] : memref<2x10xf32, #tpu.memory_space<vmem>>, vector<2x10xf32>
    tpu.vector_store %arg12[%c0_380, %c0_381], %407 {strides = array<i32>} : memref<2x10xf32, #tpu.memory_space<vmem>>, vector<2x10xf32>,
    return
  }
  func.func @transform_0(%arg0: i32) -> (i32, i32, i32, i32) {
    %c0_i32 = arith.constant 0 : i32
    %c0_i32_0 = arith.constant 0 : i32
    %c0_i32_1 = arith.constant 0 : i32
    %c0_i32_2 = arith.constant 0 : i32
    %c0_i32_3 = arith.constant 0 : i32
    return %c0_i32, %c0_i32_0, %c0_i32_1, %c0_i32_2 : i32, i32, i32, i32
  }
  func.func @transform_1(%arg0: i32) -> (i32, i32) {
    %c0_i32 = arith.constant 0 : i32
    %c0_i32_0 = arith.constant 0 : i32
    %c0_i32_1 = arith.constant 0 : i32
    return %c0_i32, %c0_i32_0 : i32, i32
  }
  func.func @transform_2(%arg0: i32) -> (i32, i32) {
    %c0_i32 = arith.constant 0 : i32
    %c0_i32_0 = arith.constant 0 : i32
    %c0_i32_1 = arith.constant 0 : i32
    return %c0_i32, %c0_i32_0 : i32, i32
  }
  func.func @transform_3(%arg0: i32) -> (i32, i32) {
    %c0_i32 = arith.constant 0 : i32
    %c0_i32_0 = arith.constant 0 : i32
    %c0_i32_1 = arith.constant 0 : i32
    return %c0_i32, %c0_i32_0 : i32, i32
  }
  func.func @transform_4(%arg0: i32) -> (i32, i32) {
    %c0_i32 = arith.constant 0 : i32
    %c0_i32_0 = arith.constant 0 : i32
    %c0_i32_1 = arith.constant 0 : i32
    return %c0_i32, %c0_i32_0 : i32, i32
  }
  func.func @transform_5(%arg0: i32) -> (i32, i32) {
    %c0_i32 = arith.constant 0 : i32
    %c0_i32_0 = arith.constant 0 : i32
    %c0_i32_1 = arith.constant 0 : i32
    return %c0_i32, %c0_i32_0 : i32, i32
  }
  func.func @transform_6(%arg0: i32) -> (i32, i32) {
    %c0_i32 = arith.constant 0 : i32
    %c0_i32_0 = arith.constant 0 : i32
    %c0_i32_1 = arith.constant 0 : i32
    return %c0_i32, %c0_i32_0 : i32, i32
  }
  func.func @transform_7(%arg0: i32) -> (i32, i32) {
    %c0_i32 = arith.constant 0 : i32
    %c0_i32_0 = arith.constant 0 : i32
    %c0_i32_1 = arith.constant 0 : i32
    return %c0_i32, %c0_i32_0 : i32, i32
  }
  func.func @transform_8(%arg0: i32) -> (i32, i32) {
    %c0_i32 = arith.constant 0 : i32
    %c0_i32_0 = arith.constant 0 : i32
    %c0_i32_1 = arith.constant 0 : i32
    return %c0_i32, %c0_i32_0 : i32, i32
  }
  func.func @transform_9(%arg0: i32) -> (i32, i32) {
    %c0_i32 = arith.constant 0 : i32
    %c0_i32_0 = arith.constant 0 : i32
    %c0_i32_1 = arith.constant 0 : i32
    return %c0_i32, %c0_i32_0 : i32, i32
  }
  func.func @transform_10(%arg0: i32) -> (i32, i32) {
    %c0_i32 = arith.constant 0 : i32
    %c0_i32_0 = arith.constant 0 : i32
    %c0_i32_1 = arith.constant 0 : i32
    return %c0_i32, %c0_i32_0 : i32, i32
  }
  func.func @transform_11(%arg0: i32) -> (i32, i32) {
    %c0_i32 = arith.constant 0 : i32
    %c0_i32_0 = arith.constant 0 : i32
    %c0_i32_1 = arith.constant 0 : i32
    return %c0_i32, %c0_i32_0 : i32, i32
  }
}

</mosaic_0001>

<bundles_post_ra>
// kernel: net_m_forward.1
= control target key start
LH: loop header
LB: loop body
LE: loop exit
PB: predicated region body
PF: predicated region fallthrough
CT: control target
= control target key end

     0   :  { %s18444_s0 = inlined_call_operand.vmem [shape: bf16[2,24,24,32], index: 0, kind: input, shape index: {}]   ;;  %s18445_s1 = inlined_call_operand.vmem [shape: bf16[32,128], index: 1, kind: input, shape index: {}]   ;;  %s18446_s2 = inlined_call_operand.vmem [shape: f32[1,128], index: 2, kind: input, shape index: {}]   ;;  %s18447_s3 = inlined_call_operand.vmem [shape: bf16[3200,128], index: 3, kind: input, shape index: {}]   ;;  %s18448_s4 = inlined_call_operand.vmem [shape: f32[1,128], index: 4, kind: input, shape index: {}]   ;;  %s18449_s5 = inlined_call_operand.vmem [shape: bf16[1152,128], index: 5, kind: input, shape index: {}]   ;;  %s18450_s6 = inlined_call_operand.vmem [shape: f32[1,128], index: 6, kind: input, shape index: {}]   ;;  %s18451_s7 = inlined_call_operand.vmem [shape: bf16[512,512], index: 7, kind: input, shape index: {}]   ;;  %s18452_s8 = inlined_call_operand.vmem [shape: f32[1,512], index: 8, kind: input, shape index: {}]   ;;  %s18453_s9 = inlined_call_operand.vmem [shape: bf16[512,10], index: 9, kind: input, shape index: {}]   ;;  %s18454_s10 = inlined_call_operand.vmem [shape: f32[1,10], index: 10, kind: input, shape index: {}]   ;;  %s18455_s11 = inlined_call_operand.hbm [shape: f32[2,10], index: 11, kind: output, shape index: {}]  }
   0x1   :  { %v13664_v0 = vld [vmem:[%s18445_s1 + $0x8] sm:$0xff]  ;;  %v13663_v1 = vld [vmem:[%s18445_s1] sm:$0xff] }
   0x2   :  { %187 = vmatpush.bf16.msra.mxu0 %v13664_v0  ;;  %14387 = vmatpush.bf16.msra.mxu1 %v13664_v0  ;;  %v13665_v2 = vld [vmem:[%s18444_s0] sm:$0xff]  ;;  %v13676_v3 = vld [vmem:[%s18444_s0 + $0x148] sm:$0xff] }
   0x3   :  { %950 = vmatpush.bf16.msra.mxu2 %v13664_v0  ;;  %1332 = vmatpush.bf16.msra.mxu3 %v13664_v0 }
   0x4   :  { %16 = vsyncpa [#allocation10], 0  ;;  %vm144_vm0 = vcmask 261120   ;;  %v13689_v4 = vld [vmem:[%s18444_s0 + $0x60] sm:$0xff]  ;;  %v13701_v5 = vld [vmem:[%s18444_s0 + $0x90] sm:$0xff]  ;;  %vm9068_vm1 = vcmask 1040384  }
   0x5   :  { %v13666_v6 = vld [vmem:[%s18444_s0 + $0x8] sm:$0xff]  ;;  %v13677_v7 = vld [vmem:[%s18444_s0 + $0x30] sm:$0xff]  ;;  %v13702_v9 = vld [vmem:[%s18444_s0 + $0x98] sm:$0xff]  ;;  %vm9085_vm2 = vcmask 1041409   ;;  %vm10545_vm3 = vcmask 74752   ;;  %s10566_s26 = sshll.u32 %s18455_s11, 4  ;;  %s10567_s26 = int_to_ptr.hbm [resolvable:$true] %s10566_s26 }
   0x6   :  { %188 = vmatpush.bf16.msra.mxu0 %v13663_v1  ;;  %14388 = vmatpush.bf16.msra.mxu1 %v13663_v1  ;;  %v13690_v8 = vld [vmem:[%s18444_s0 + $0x68] sm:$0xff]  ;;  %v13667_v10 = vld [vmem:[%s18444_s0 + $0x10] sm:$0xff]  ;;  %v13678_v11 = vld [vmem:[%s18444_s0 + $0x38] sm:$0xff] }
   0x7   :  { %951 = vmatpush.bf16.msra.mxu2 %v13663_v1  ;;  %1333 = vmatpush.bf16.msra.mxu3 %v13663_v1  ;;  %v13691_v12 = vld [vmem:[%s18444_s0 + $0x70] sm:$0xff]  ;;  %v13703_v13 = vld [vmem:[%s18444_s0 + $0xa0] sm:$0xff]  ;;  %v13668_v14 = vld [vmem:[%s18444_s0 + $0x18] sm:$0xff] }
   0x8   :  { %v13679_v15 = vld [vmem:[%s18444_s0 + $0x40] sm:$0xff]  ;;  %v13692_v16 = vld [vmem:[%s18444_s0 + $0x78] sm:$0xff]  ;;  %v13704_v17 = vld [vmem:[%s18444_s0 + $0xa8] sm:$0xff] }
   0x9   :  { %10631 = vmatmul.msk.bf16.vlgmr.msra.gmra.mxu0 %vm144_vm0, %v13665_v2  ;;  %10642 = vmatmul.msk.bf16.vlgmr.msra.gmra.mxu1 %vm144_vm0, %v13676_v3  ;;  %v13669_v18 = vld [vmem:[%s18444_s0 + $0x20] sm:$0xff]  ;;  %v13680_v19 = vld [vmem:[%s18444_s0 + $0x48] sm:$0xff]  ;;  %v13705_v21 = vld [vmem:[%s18444_s0 + $0xb0] sm:$0xff] }
   0xa   :  { %568 = vmatpush.bf16.msrb.mxu1 %v13664_v0  ;;  %1714 = vmatpush.bf16.msrb.mxu0 %v13664_v0  ;;  %v13693_v20 = vld [vmem:[%s18444_s0 + $0x80] sm:$0xff]  ;;  %v13944_v22 = vld [vmem:[%s18447_s3 + $0x38] sm:$0xff]  ;;  %v13670_v24 = vld [vmem:[%s18444_s0 + $0x28] sm:$0xff] }
   0xb   :  { %10799 = vmatmul.msk.bf16.vlgmr.msra.gmra.mxu2 %vm144_vm0, %v13689_v4  ;;  %10883 = vmatmul.msk.bf16.vlgmr.msra.gmra.mxu3 %vm144_vm0, %v13701_v5  ;;  %v13952_v23 = vld [vmem:[%s18447_s3 + $0x78] sm:$0xff]  ;;  %v13681_v25 = vld [vmem:[%s18444_s0 + $0x50] sm:$0xff]  ;;  %v13694_v26 = vld [vmem:[%s18444_s0 + $0x88] sm:$0xff] }
   0xc   :  { %6371 = vmatpush.bf16.msrb.mxu2 %v13944_v22  ;;  %6420 = vmatpush.bf16.msrb.mxu3 %v13952_v23  ;;  %v13706_v27 = vld [vmem:[%s18444_s0 + $0xb8] sm:$0xff]  ;;  %v13671_v28 = vld [vmem:[%s18444_s0 + $0x120] sm:$0xff]  ;;  %v13707_v31 = vld [vmem:[%s18444_s0 + $0x1b0] sm:$0xff] }
   0xd   :  { %v13682_v29 = vld [vmem:[%s18444_s0 + $0x58] sm:$0xff]  ;;  %v13695_v30 = vld [vmem:[%s18444_s0 + $0x180] sm:$0xff]  ;;  %v13943_v32 = vld [vmem:[%s18447_s3 + $0x30] sm:$0xff] }
   0xe   :  { %569 = vmatpush.bf16.msrb.mxu1 %v13663_v1  ;;  %1715 = vmatpush.bf16.msrb.mxu0 %v13663_v1  ;;  %v13951_v33 = vld [vmem:[%s18447_s3 + $0x70] sm:$0xff]  ;;  %v13672_v34 = vld [vmem:[%s18444_s0 + $0x128] sm:$0xff]  ;;  %v13708_v37 = vld [vmem:[%s18444_s0 + $0x1b8] sm:$0xff] }
   0xf   :  { %v13683_v35 = vld [vmem:[%s18444_s0 + $0x150] sm:$0xff]  ;;  %v13696_v36 = vld [vmem:[%s18444_s0 + $0x188] sm:$0xff]  ;;  %v13684_v39 = vld [vmem:[%s18444_s0 + $0x158] sm:$0xff] }
  0x10   :  { %6372 = vmatpush.bf16.msrb.mxu2 %v13943_v32  ;;  %6421 = vmatpush.bf16.msrb.mxu3 %v13951_v33  ;;  %v13673_v38 = vld [vmem:[%s18444_s0 + $0x130] sm:$0xff]  ;;  %v13942_v40 = vld [vmem:[%s18447_s3 + $0x28] sm:$0xff]  ;;  %v13709_v45 = vld [vmem:[%s18444_s0 + $0x1c0] sm:$0xff] }
  0x11   :  { %v13950_v41 = vld [vmem:[%s18447_s3 + $0x68] sm:$0xff]  ;;  %v13697_v44 = vld [vmem:[%s18444_s0 + $0x190] sm:$0xff]  ;;  %v14663_v46 = vld [vmem:[%s18446_s2] ss:$0 sm:$0xff] }
  0x12   :  { %2096 = vmatpush.bf16.msra.mxu1 %v13664_v0  ;;  %v13674_v59 = vld [vmem:[%s18444_s0 + $0x138] sm:$0xff]  ;;  %v13685_v60 = vld [vmem:[%s18444_s0 + $0x160] sm:$0xff]  ;;  %v13710_v2 = vld [vmem:[%s18444_s0 + $0x1c8] sm:$0xff] }
  0x14   :  { %6373 = vmatpush.bf16.msrb.mxu2 %v13942_v40  ;;  %6422 = vmatpush.bf16.msrb.mxu3 %v13950_v41 }
  0x16   :  { %2097 = vmatpush.bf16.msra.mxu1 %v13663_v1  ;;  %v13698_v1 = vld [vmem:[%s18444_s0 + $0x198] sm:$0xff] }
  0x19   :  { %10632 = vmatmul.msk.bf16.gmra.mxu0 %vm144_vm0, %v13666_v6  ;;  %10715 = vmatmul.msk.bf16.vlgmr.msrb.gmra.mxu1 %vm144_vm0, %v13677_v7 }
  0x1b   :  { %10800 = vmatmul.msk.bf16.gmra.mxu2 %vm144_vm0, %v13690_v8  ;;  %10884 = vmatmul.msk.bf16.gmra.mxu3 %vm144_vm0, %v13702_v9 }
  0x29   :  { %10633 = vmatmul.msk.bf16.gmra.mxu0 %vm144_vm0, %v13667_v10  ;;  %10716 = vmatmul.msk.bf16.gmra.mxu1 %vm144_vm0, %v13678_v11 }
  0x2b   :  { %10801 = vmatmul.msk.bf16.gmra.mxu2 %vm144_vm0, %v13691_v12  ;;  %10885 = vmatmul.msk.bf16.gmra.mxu3 %vm144_vm0, %v13703_v13 }
  0x39   :  { %10634 = vmatmul.msk.bf16.gmra.mxu0 %vm144_vm0, %v13668_v14  ;;  %10717 = vmatmul.msk.bf16.gmra.mxu1 %vm144_vm0, %v13679_v15 }
  0x3b   :  { %10802 = vmatmul.msk.bf16.gmra.mxu2 %vm144_vm0, %v13692_v16  ;;  %10886 = vmatmul.msk.bf16.gmra.mxu3 %vm144_vm0, %v13704_v17 }
  0x49   :  { %10635 = vmatmul.msk.bf16.gmra.mxu0 %vm144_vm0, %v13669_v18  ;;  %10718 = vmatmul.msk.bf16.gmra.mxu1 %vm144_vm0, %v13680_v19  ;;  %v13941_v19 = vld [vmem:[%s18447_s3 + $0x20] sm:$0xff] }
  0x4a   :  { %6374 = vmatpush.bf16.msrb.mxu2 %v13941_v19 }
  0x4b   :  { %10803 = vmatmul.msk.bf16.gmra.mxu2 %vm144_vm0, %v13693_v20  ;;  %10887 = vmatmul.msk.bf16.gmra.mxu3 %vm144_vm0, %v13705_v21  ;;  %v13949_v20 = vld [vmem:[%s18447_s3 + $0x60] sm:$0xff] }
  0x4c   :  { %6423 = vmatpush.bf16.msrb.mxu3 %v13949_v20 }
  0x59   :  { %10636 = vmatmul.msk.bf16.gmra.mxu0 %vm144_vm0, %v13670_v24  ;;  %10719 = vmatmul.msk.bf16.gmra.mxu1 %vm144_vm0, %v13681_v25 }
  0x5b   :  { %10804 = vmatmul.msk.bf16.gmra.mxu2 %vm144_vm0, %v13694_v26  ;;  %10888 = vmatmul.msk.bf16.gmra.mxu3 %vm144_vm0, %v13706_v27 }
  0x69   :  { %10637 = vmatmul.msk.bf16.gmra.mxu0 %vm144_vm0, %v13671_v28  ;;  %10720 = vmatmul.msk.bf16.gmra.mxu1 %vm144_vm0, %v13682_v29 }
  0x6b   :  { %10805 = vmatmul.msk.bf16.gmra.mxu2 %vm144_vm0, %v13695_v30  ;;  %10889 = vmatmul.msk.bf16.gmra.mxu3 %vm144_vm0, %v13707_v31  ;;  %v13675_v30 = vld [vmem:[%s18444_s0 + $0x140] sm:$0xff]  ;;  %v13686_v31 = vld [vmem:[%s18444_s0 + $0x168] sm:$0xff] }
  0x79   :  { %10638 = vmatmul.msk.bf16.gmra.mxu0 %vm144_vm0, %v13672_v34  ;;  %10721 = vmatmul.msk.bf16.gmra.mxu1 %vm144_vm0, %v13683_v35  ;;  %v13699_v34 = vld [vmem:[%s18444_s0 + $0x1a0] sm:$0xff]  ;;  %v13711_v35 = vld [vmem:[%s18444_s0 + $0x1d0] sm:$0xff] }
  0x7b   :  { %10806 = vmatmul.msk.bf16.gmra.mxu2 %vm144_vm0, %v13696_v36  ;;  %10890 = vmatmul.msk.bf16.gmra.mxu3 %vm144_vm0, %v13708_v37 }
  0x86   :  { %v190_v42 = vpop.f32.mrf.mxu0  ;;  %v245_v43 = vpop.f32.mrf.mxu1 }
  0x87   :  { %v14666_v51 = vadd.f32 %v14663_v46, %v245_v43  ;;  %v191_v25 = vadd.f32 %v14663_v46, %v190_v42 }
  0x89   :  { %10639 = vmatmul.msk.bf16.gmra.mxu0 %vm144_vm0, %v13673_v38  ;;  %10722 = vmatmul.msk.bf16.gmra.mxu1 %vm144_vm0, %v13684_v39  ;;  %v18457_v54 = vmax.f32 %v14666_v51, 0.0  ;;  %v250_v39 = vmax.f32 %v191_v25, 0.0 }
  0x8b   :  { %10807 = vmatmul.msk.bf16.gmra.mxu2 %vm144_vm0, %v13697_v44  ;;  %10891 = vmatmul.msk.bf16.gmra.mxu3 %vm144_vm0, %v13709_v45 }
  0x8e   :  { %v953_v47 = vpop.f32.mrf.mxu2  ;;  %v1335_v48 = vpop.f32.mrf.mxu3 }
  0x8f   :  { %v192_v49 = vpop.f32.mrf.mxu0  ;;  %v247_v50 = vpop.f32.mrf.mxu1  ;;  %v14690_v61 = vadd.f32 %v14663_v46, %v953_v47  ;;  %v14693_v62 = vadd.f32 %v14663_v46, %v1335_v48 }
  0x90   :  { %v14669_v52 = vadd.f32 %v14663_v46, %v247_v50  ;;  %v193_v15 = vadd.f32 %v14663_v46, %v192_v49 }
  0x91   :  { %v1013_v3 = vmax.f32 %v14690_v61, 0.0  ;;  %v18458_v4 = vmax.f32 %v14693_v62, 0.0 }
  0x92   :  { %v18456_v53 = vmax.f32 %v14669_v52, 0.0  ;;  %v251_v26 = vmax.f32 %v193_v15, 0.0 }
  0x93   :  { %v1061_v7 = vrot.slane %v1013_v3, 4  ;;  %v1443_v8 = vrot.slane %v18458_v4, 4 }
  0x94   :  { %v321_v55 = vrot.slane %v18456_v53, 4  ;;  %v299_v40 = vrot.slane %v251_v26, 4 }
  0x96   :  { %v14677_v56 = vmax.f32 %v18457_v54, %v321_v55  ;;  %v14679_v57 = vpop.f32.mrf.mxu2  ;;  %v14681_v58 = vpop.f32.mrf.mxu3  ;;  %v346_v50 = vmax.f32 %v250_v39, %v299_v40 }
  0x97   :  { %v195_v63 = vpop.f32.mrf.mxu0  ;;  %v571_v0 = vpop.f32.mrf.mxu1 }
  0x98   :  { %v572_v13 = vadd.f32 %v14663_v46, %v571_v0  ;;  %v196_v41 = vadd.f32 %v14663_v46, %v195_v63 }
  0x99   :  { %10640 = vmatmul.msk.bf16.gmra.mxu0 %vm144_vm0, %v13674_v59  ;;  %10723 = vmatmul.msk.bf16.gmra.mxu1 %vm144_vm0, %v13685_v60 }
  0x9a   :  { %v631_v23 = vmax.f32 %v572_v13, 0.0  ;;  %v252_v55 = vmax.f32 %v196_v41, 0.0 }
  0x9b   :  { %10808 = vmatmul.msk.bf16.gmra.mxu2 %vm144_vm0, %v13698_v1  ;;  %10892 = vmatmul.msk.bf16.gmra.mxu3 %vm144_vm0, %v13710_v2 }
  0x9c   :  { %v679_v42 = vrot.slane %v631_v23, 4 }
  0x9e   :  { %v958_v5 = vpop.f32.mrf.mxu2  ;;  %v1340_v6 = vpop.f32.mrf.mxu3 }
  0x9f   :  { %v14712_v9 = vadd.f32 %v14663_v46, %v958_v5  ;;  %v14715_v10 = vadd.f32 %v14663_v46, %v1340_v6  ;;  %v197_v11 = vpop.f32.mrf.mxu0  ;;  %v573_v12 = vpop.f32.mrf.mxu1  ;;  %v298_v5 = vrot.slane %v250_v39, 4 }
  0xa0   :  { %v574_v14 = vadd.f32 %v14663_v46, %v573_v12  ;;  %v198_v36 = vadd.f32 %v14663_v46, %v197_v11 }
  0xa1   :  { %v1015_v16 = vmax.f32 %v14712_v9, 0.0  ;;  %v1397_v17 = vmax.f32 %v14715_v10, 0.0  ;;  %v347_v13 = vmax.f32 %v298_v5, %v252_v55 }
  0xa2   :  { %v632_v18 = vmax.f32 %v574_v14, 0.0  ;;  %v253_v45 = vmax.f32 %v198_v36, 0.0 }
  0xa3   :  { %v14730_v21 = vmax.f32 %v1061_v7, %v1015_v16  ;;  %v14734_v22 = vmax.f32 %v1443_v8, %v1397_v17  ;;  %v300_v8 = vrot.slane %v252_v55, 4 }
  0xa4   :  { %v680_v24 = vrot.slane %v632_v18, 4  ;;  %v301_v11 = vrot.slane %v253_v45, 4 }
  0xa5   :  { %v348_v19 = vmax.f32 %v251_v26, %v300_v8 }
  0xa6   :  { %v14737_v27 = vmax.f32 %v631_v23, %v680_v24  ;;  %v14739_v28 = vpop.f32.mrf.mxu2  ;;  %v14741_v29 = vpop.f32.mrf.mxu3 }
  0xa7   :  { %v200_v32 = vpop.f32.mrf.mxu0  ;;  %v576_v33 = vpop.f32.mrf.mxu1 }
  0xa8   :  { %v201_v37 = vadd.f32 %v14663_v46, %v200_v32  ;;  %v577_v38 = vadd.f32 %v14663_v46, %v576_v33  ;;  %v13948_v32 = vld [vmem:[%s18447_s3 + $0x58] sm:$0xff] }
  0xa9   :  { %10641 = vmatmul.msk.bf16.gmra.mxu0 %vm144_vm0, %v13675_v30  ;;  %10724 = vmatmul.msk.bf16.gmra.mxu1 %vm144_vm0, %v13686_v31  ;;  %v13713_v30 = vld [vmem:[%s18444_s0 + $0xc0] sm:$0xff]  ;;  %v13940_v31 = vld [vmem:[%s18447_s3 + $0x18] sm:$0xff] }
  0xaa   :  { %v254_v43 = vmax.f32 %v201_v37, 0.0  ;;  %v633_v44 = vmax.f32 %v577_v38, 0.0  ;;  %6375 = vmatpush.bf16.msrb.mxu2 %v13940_v31  ;;  %6424 = vmatpush.bf16.msrb.mxu3 %v13948_v32  ;;  %v13725_v31 = vld [vmem:[%s18444_s0 + $0xf0] sm:$0xff] }
  0xab   :  { %10809 = vmatmul.msk.bf16.gmra.mxu2 %vm144_vm0, %v13699_v34  ;;  %10893 = vmatmul.msk.bf16.gmra.mxu3 %vm144_vm0, %v13711_v35  ;;  %v13700_v34 = vld [vmem:[%s18444_s0 + $0x1a8] sm:$0xff]  ;;  %v13712_v35 = vld [vmem:[%s18444_s0 + $0x1d8] sm:$0xff] }
  0xac   :  { %v302_v47 = vrot.slane %v254_v43, 4  ;;  %v681_v48 = vrot.slane %v633_v44, 4  ;;  %v14763_v49 = vmax.f32 %v679_v42, %v633_v44 }
  0xae   :  { %v349_v59 = vmax.f32 %v253_v45, %v302_v47  ;;  %v14765_v60 = vmax.f32 %v632_v18, %v681_v48  ;;  %v14767_v63 = vpop.f32.mrf.mxu2  ;;  %v14769_v0 = vpop.f32.mrf.mxu3  ;;  %v13687_v18 = vld [vmem:[%s18444_s0 + $0x170] sm:$0xff]  ;;  %v13688_v47 = vld [vmem:[%s18444_s0 + $0x178] sm:$0xff]  ;;  %v13714_v48 = vld [vmem:[%s18444_s0 + $0xc8] sm:$0xff] }
  0xaf   :  { %v202_v1 = vpop.f32.mrf.mxu0  ;;  %v14771_v2 = vpop.f32.mrf.mxu1 }
  0xb0   :  { %v370_v6 = vmax.f32 %v346_v50, %v349_v59  ;;  %v203_v7 = vadd.f32 %v14663_v46, %v202_v1 }
  0xb2   :  { %382 = vst [vmem:[#allocation1] ss:$2 sm:$0xff] %v370_v6  ;;  %v255_v12 = vmax.f32 %v203_v7, 0.0 }
  0xb4   :  { %v303_v14 = vrot.slane %v255_v12, 4  ;;  %v350_v15 = vmax.f32 %v301_v11, %v255_v12 }
  0xb6   :  { %v351_v20 = vmax.f32 %v254_v43, %v303_v14  ;;  %v371_v23 = vmax.f32 %v347_v13, %v350_v15  ;;  %v14777_v24 = vpop.f32.mrf.mxu2  ;;  %v14779_v25 = vpop.f32.mrf.mxu3 }
  0xb7   :  { %v205_v33 = vpop.f32.mrf.mxu0  ;;  %v14790_v26 = vpop.f32.mrf.mxu1 }
  0xb8   :  { %v372_v36 = vmax.f32 %v348_v19, %v351_v20  ;;  %384 = vst [vmem:[#allocation1 + $0x1] ss:$2 sm:$0xff] %v371_v23  ;;  %v206_v19 = vadd.f32 %v14663_v46, %v205_v33 }
  0xb9   :  { %10725 = vmatmul.msk.bf16.gmra.mxu1 %vm144_vm0, %v13687_v18  ;;  %10967 = vmatmul.msk.bf16.vlgmr.msrb.gmra.mxu0 %vm144_vm0, %v13713_v30  ;;  %v13939_v18 = vld [vmem:[%s18447_s3 + $0x10] sm:$0xff] }
  0xba   :  { %386 = vst [vmem:[#allocation1 + $0x10] ss:$2 sm:$0xff] %v372_v36  ;;  %6376 = vmatpush.bf16.msrb.mxu2 %v13939_v18  ;;  %v13715_v30 = vld [vmem:[%s18444_s0 + $0xd0] sm:$0xff] }
  0xbb   :  { %10810 = vmatmul.msk.bf16.gmra.mxu2 %vm144_vm0, %v13700_v34  ;;  %10894 = vmatmul.msk.bf16.gmra.mxu3 %vm144_vm0, %v13712_v35 }
  0xbe   :  { %v14802_v37 = vpop.f32.mrf.mxu2  ;;  %v14804_v38 = vpop.f32.mrf.mxu3 }
  0xbf   :  { %v387_v39 = vld.sshfl [vmem:[#allocation1] sm:$0xff pattern:$0x75316420]  ;;  %v207_v40 = vpop.f32.mrf.mxu0  ;;  %v583_v41 = vpop.f32.mrf.mxu1 }
  0xc0   :  { %401 = vst [vmem:[#allocation2] sm:$0xff] %v387_v39  ;;  %v2367_v42 = vpack.c.bf16 %v387_v39, %v387_v39  ;;  %v208_v15 = vadd.f32 %v14663_v46, %v207_v40  ;;  %v256_v39 = vmax.f32 %v206_v19, 0.0 }
  0xc1   :  { %v388_v43 = vld.sshfl [vmem:[#allocation1 + $0x10] sm:$0xff pattern:$0x75316420] }
  0xc2   :  { %402 = vst [vmem:[#allocation2 + $0x8] sm:$0xf] %v388_v43  ;;  %v257_v20 = vmax.f32 %v208_v15, 0.0 }
  0xc3   :  { %2383 = vst [vmem:[#allocation3] sm:$0xf] %v2367_v42 }
  0xc4   :  { %v305_v33 = vrot.slane %v257_v20, 4 }
  0xc6   :  { %v14806_v44 = vpop.f32.mrf.mxu2  ;;  %v14808_v45 = vpop.f32.mrf.mxu3 }
  0xc7   :  { %v210_v50 = vpop.f32.mrf.mxu0  ;;  %v14816_v55 = vpop.f32.mrf.mxu1 }
  0xc8   :  { %v211_v40 = vadd.f32 %v14663_v46, %v210_v50  ;;  %v13938_v50 = vld [vmem:[%s18447_s3 + $0x8] sm:$0xff] }
  0xc9   :  { %v2399_v59 = vld [vmem:[#allocation2 + $0x1] sm:$0xff]  ;;  %10726 = vmatmul.msk.bf16.gmra.mxu1 %vm144_vm0, %v13688_v47  ;;  %10968 = vmatmul.msk.bf16.gmra.mxu0 %vm144_vm0, %v13714_v48 }
  0xca   :  { %v2543_v1 = vld [vmem:[#allocation2 + $0x4] sm:$0xff]  ;;  %v2415_v6 = vpack.c.bf16 %v2399_v59, %v2399_v59  ;;  %6377 = vmatpush.bf16.msrb.mxu2 %v13938_v50 }
  0xcb   :  { %v2447_v5 = vld [vmem:[#allocation2 + $0x2] sm:$0xff]  ;;  %v2559_v7 = vpack.c.bf16 %v2543_v1, %v2543_v1  ;;  %v582_v1 = vadd.f32 %v14663_v46, %v14790_v26 }
  0xcc   :  { %v2463_v8 = vpack.c.bf16 %v2447_v5, %v2447_v5  ;;  %2431 = vst [vmem:[#allocation3 + $0x4] sm:$0xf] %v2415_v6  ;;  %v13947_v47 = vld [vmem:[%s18447_s3 + $0x50] sm:$0xff]  ;;  %v352_v6 = vmax.f32 %v256_v39, %v305_v33 }
  0xcd   :  { %2575 = vst [vmem:[#allocation3 + $0x10] sm:$0xf] %v2559_v7  ;;  %6425 = vmatpush.bf16.msrb.mxu3 %v13947_v47  ;;  %v2495_v5 = vld [vmem:[#allocation2 + $0x3] sm:$0xff]  ;;  %v258_v7 = vmax.f32 %v211_v40, 0.0  ;;  %v635_v33 = vmax.f32 %v582_v1, 0.0  ;;  %v13726_v1 = vld [vmem:[%s18444_s0 + $0xf8] sm:$0xff] }
  0xce   :  { %v14820_v11 = vpop.f32.mrf.mxu2  ;;  %2479 = vst [vmem:[#allocation3 + $0x8] sm:$0xf] %v2463_v8  ;;  %v14824_v14 = vpop.f32.mrf.mxu3  ;;  %v2511_v15 = vpack.c.bf16 %v2495_v5, %v2495_v5 }
  0xcf   :  { %v212_v12 = vpop.f32.mrf.mxu0  ;;  %v14822_v13 = vpop.f32.mrf.mxu1  ;;  %v306_v40 = vrot.slane %v258_v7, 4 }
  0xd0   :  { %v213_v35 = vadd.f32 %v14663_v46, %v212_v12  ;;  %2527 = vst [vmem:[#allocation3 + $0xc] sm:$0xf] %v2511_v15  ;;  %v683_v15 = vrot.slane %v635_v33, 4 }
  0xd2   :  { %v259_v48 = vmax.f32 %v213_v35, 0.0  ;;  %v579_v35 = vadd.f32 %v14663_v46, %v14771_v2 }
  0xd4   :  { %v307_v47 = vrot.slane %v259_v48, 4 }
  0xd6   :  { %v14831_v23 = vpop.f32.mrf.mxu2  ;;  %v14844_v42 = vpop.f32.mrf.mxu3 }
  0xd7   :  { %v215_v32 = vpop.f32.mrf.mxu0  ;;  %v14839_v34 = vpop.f32.mrf.mxu1 }
  0xd8   :  { %v216_v36 = vadd.f32 %v14663_v46, %v215_v32 }
  0xd9   :  { %10969 = vmatmul.msk.bf16.gmra.mxu0 %vm144_vm0, %v13715_v30  ;;  %11051 = vmatmul.msk.bf16.vlgmr.msra.gmra.mxu1 %vm144_vm0, %v13725_v31  ;;  %v304_v30 = vrot.slane %v256_v39, 4  ;;  %v584_v31 = vadd.f32 %v14663_v46, %v583_v41 }
  0xda   :  { %v260_v43 = vmax.f32 %v216_v36, 0.0  ;;  %v13937_v36 = vld [vmem:[%s18447_s3] sm:$0xff] }
  0xdb   :  { %6378 = vmatpush.bf16.msrb.mxu2 %v13937_v36  ;;  %v636_v39 = vmax.f32 %v584_v31, 0.0  ;;  %v353_v50 = vmax.f32 %v304_v30, %v258_v7  ;;  %v13946_v31 = vld [vmem:[%s18447_s3 + $0x48] sm:$0xff] }
  0xdc   :  { %v308_v59 = vrot.slane %v260_v43, 4  ;;  %6426 = vmatpush.bf16.msrb.mxu3 %v13946_v31 }
  0xde   :  { %v355_v8 = vmax.f32 %v259_v48, %v308_v59  ;;  %v14856_v12 = vpop.f32.mrf.mxu2  ;;  %v14865_v41 = vpop.f32.mrf.mxu3  ;;  %v13716_v48 = vld [vmem:[%s18444_s0 + $0xd8] sm:$0xff] }
  0xdf   :  { %v217_v18 = vpop.f32.mrf.mxu0  ;;  %v593_v19 = vpop.f32.mrf.mxu1  ;;  %v14961_v4 = vadd.f32 %v14663_v46, %v14856_v12  ;;  %v14971_v12 = vadd.f32 %v14663_v46, %v14802_v37 }
  0xe0   :  { %v405_v32 = vmax.f32 %v352_v6, %v355_v8  ;;  %v218_v26 = vadd.f32 %v14663_v46, %v217_v18  ;;  %v634_v8 = vmax.f32 %v579_v35, 0.0  ;;  %v354_v18 = vmax.f32 %v257_v20, %v306_v40 }
  0xe1   :  { %v684_v20 = vrot.slane %v636_v39, 4  ;;  %v594_v36 = vadd.f32 %v14663_v46, %v593_v19 }
  0xe2   :  { %417 = vst [vmem:[#allocation1] ss:$2 sm:$0xff] %v405_v32  ;;  %v261_v59 = vmax.f32 %v218_v26, 0.0  ;;  %v682_v32 = vrot.slane %v634_v8, 4  ;;  %v730_v35 = vmax.f32 %v634_v8, %v683_v15 }
  0xe3   :  { %v640_v8 = vmax.f32 %v594_v36, 0.0 }
  0xe4   :  { %v309_v5 = vrot.slane %v261_v59, 4  ;;  %v356_v6 = vmax.f32 %v307_v47, %v261_v59  ;;  %v731_v40 = vmax.f32 %v682_v32, %v636_v39  ;;  %v589_v47 = vadd.f32 %v14663_v46, %v14822_v13 }
  0xe5   :  { %v592_v59 = vadd.f32 %v14663_v46, %v14839_v34  ;;  %v14900_v13 = vadd.f32 %v14663_v46, %v14767_v63  ;;  %v14913_v63 = vadd.f32 %v14663_v46, %v14681_v58  ;;  %v961_v32 = vadd.f32 %v14663_v46, %v14739_v28 }
  0xe6   :  { %v357_v2 = vmax.f32 %v260_v43, %v309_v5  ;;  %v406_v53 = vmax.f32 %v353_v50, %v356_v6  ;;  %v14867_v54 = vpop.f32.mrf.mxu2  ;;  %v732_v50 = vmax.f32 %v635_v33, %v684_v20  ;;  %v587_v5 = vadd.f32 %v14663_v46, %v14816_v55  ;;  %v14894_v39 = vpop.f32.mrf.mxu3 }
  0xe7   :  { %v14875_v7 = vpop.f32.mrf.mxu0  ;;  %v596_v30 = vpop.f32.mrf.mxu1  ;;  %v751_v6 = vmax.f32 %v14737_v27, %v730_v35  ;;  %v752_v34 = vmax.f32 %v14763_v49, %v731_v40  ;;  %v639_v33 = vmax.f32 %v592_v59, 0.0  ;;  %v14907_v27 = vadd.f32 %v14663_v46, %v14679_v57 }
  0xe8   :  { %v407_v43 = vmax.f32 %v354_v18, %v357_v2  ;;  %419 = vst [vmem:[#allocation1 + $0x1] ss:$2 sm:$0xff] %v406_v53  ;;  %v597_v26 = vadd.f32 %v14663_v46, %v596_v30  ;;  %v13945_v53 = vld [vmem:[%s18447_s3 + $0x40] sm:$0xff]  ;;  %v638_v18 = vmax.f32 %v589_v47, 0.0  ;;  %v637_v30 = vmax.f32 %v587_v5, 0.0 }
  0xe9   :  { %10970 = vmatmul.msk.bf16.gmra.mxu0 %vm144_vm0, %v13716_v48  ;;  %11052 = vmatmul.msk.bf16.gmra.mxu1 %vm144_vm0, %v13726_v1  ;;  %v753_v1 = vmax.f32 %v14765_v60, %v732_v50  ;;  %v688_v57 = vrot.slane %v640_v8, 4  ;;  %v1017_v60 = vmax.f32 %v14900_v13, 0.0  ;;  %v14920_v35 = vadd.f32 %v14663_v46, %v14777_v24 }
  0xea   :  { %421 = vst [vmem:[#allocation1 + $0x10] ss:$2 sm:$0xff] %v407_v43  ;;  %v641_v19 = vmax.f32 %v597_v26, 0.0  ;;  %6427 = vmatpush.bf16.msrb.mxu3 %v13945_v53  ;;  %v686_v36 = vrot.slane %v638_v18, 4  ;;  %v687_v40 = vrot.slane %v639_v33, 4  ;;  %v1014_v58 = vmax.f32 %v14907_v27, 0.0 }
  0xeb   :  { %v685_v47 = vrot.slane %v637_v30, 4  ;;  %v1396_v28 = vmax.f32 %v14913_v63, 0.0  ;;  %v14926_v50 = vadd.f32 %v14663_v46, %v14741_v29  ;;  %v14930_v24 = vadd.f32 %v14663_v46, %v14769_v0  ;;  %v13727_v29 = vld [vmem:[%s18444_s0 + $0x100] sm:$0xff] }
  0xec   :  { %v689_v20 = vrot.slane %v641_v19, 4  ;;  %v735_v0 = vmax.f32 %v638_v18, %v687_v40  ;;  %v15046_v63 = vadd.f32 %v14663_v46, %v14804_v38 }
  0xee   :  { %v14896_v15 = vpop.f32.mrf.mxu2  ;;  %v736_v5 = vmax.f32 %v640_v8, %v689_v20  ;;  %v1065_v8 = vrot.slane %v1017_v60, 4 }
  0xef   :  { %v422_v2 = vld.sshfl [vmem:[#allocation1] sm:$0xff pattern:$0x75316420]  ;;  %v14903_v48 = vpop.f32.mrf.mxu0  ;;  %v598_v55 = vpop.f32.mrf.mxu1 }
  0xf0   :  { %763 = vst [vmem:[#allocation1] ss:$2 sm:$0xff] %v751_v6  ;;  %v599_v31 = vadd.f32 %v14663_v46, %v598_v55  ;;  %v2368_v43 = vpack.c.bf16 %v422_v2, %v422_v2  ;;  %v1016_v6 = vmax.f32 %v961_v32, 0.0  ;;  %v14949_v32 = vpop.f32.mrf.mxu3 }
  0xf1   :  { %v423_v49 = vld.sshfl [vmem:[#allocation1 + $0x10] sm:$0xff pattern:$0x75316420]  ;;  %765 = vst [vmem:[#allocation1 + $0x1] ss:$2 sm:$0xff] %v752_v34  ;;  %v734_v34 = vmax.f32 %v685_v47, %v639_v33  ;;  %v1062_v33 = vrot.slane %v1014_v58, 4 }
  0xf2   :  { %767 = vst [vmem:[#allocation1 + $0x10] ss:$2 sm:$0xff] %v753_v1  ;;  %v642_v26 = vmax.f32 %v599_v31, 0.0  ;;  %v13717_v1 = vld [vmem:[%s18444_s0 + $0xe0] sm:$0xff]  ;;  %v1018_v31 = vmax.f32 %v14920_v35, 0.0  ;;  %v1063_v35 = vrot.slane %v1015_v16, 4  ;;  %v1112_v16 = vmax.f32 %v1016_v6, %v1065_v8 }
  0xf3   :  { %437 = vst [vmem:[#allocation2 + $0x10] sm:$0xff] %v422_v2  ;;  %v1064_v40 = vrot.slane %v1016_v6, 4  ;;  %v1398_v47 = vmax.f32 %v14926_v50, 0.0  ;;  %v14979_v6 = vadd.f32 %v14663_v46, %v14831_v23  ;;  %v14991_v23 = vadd.f32 %v14663_v46, %v14820_v11 }
  0xf4   :  { %438 = vst [vmem:[#allocation2 + $0x18] sm:$0xf] %v423_v49  ;;  %v690_v59 = vrot.slane %v642_v26, 4  ;;  %v737_v53 = vmax.f32 %v688_v57, %v642_v26  ;;  %v733_v49 = vmax.f32 %v637_v30, %v686_v36  ;;  %v14953_v26 = vrot.slane %v1396_v28, 4 }
  0xf5   :  { %2384 = vst [vmem:[#allocation3 + $0x64] sm:$0xf] %v2368_v43  ;;  %v15104_v50 = vadd.f32 %v14663_v46, %v14865_v41  ;;  %v15116_v41 = vadd.f32 %v14663_v46, %v14894_v39 }
  0xf6   :  { %v738_v2 = vmax.f32 %v641_v19, %v690_v59  ;;  %v14932_v55 = vpop.f32.mrf.mxu2  ;;  %v788_v57 = vmax.f32 %v734_v34, %v737_v53  ;;  %v787_v18 = vmax.f32 %v733_v49, %v736_v5  ;;  %v18459_v59 = vmax.f32 %v14930_v24, 0.0 }
  0xf7   :  { %v14943_v20 = vpop.f32.mrf.mxu0  ;;  %v14945_v19 = vpop.f32.mrf.mxu1  ;;  %v1066_v53 = vrot.slane %v1018_v31, 4  ;;  %v14967_v5 = vadd.f32 %v14663_v46, %v14779_v25  ;;  %v1405_v39 = vmax.f32 %v15104_v50, 0.0 }
  0xf8   :  { %v768_v43 = vld.sshfl [vmem:[#allocation1] sm:$0xff pattern:$0x75316420]  ;;  %v789_v36 = vmax.f32 %v735_v0, %v738_v2  ;;  %v14983_v0 = vadd.f32 %v14663_v46, %v14867_v54  ;;  %v1111_v54 = vmax.f32 %v1014_v58, %v1063_v35  ;;  %v15004_v61 = vrot.slane %v18459_v59, 4 }
  0xf9   :  { %v769_v30 = vld.sshfl [vmem:[#allocation1 + $0x10] sm:$0xff pattern:$0x75316420]  ;;  %783 = vst [vmem:[#allocation2 + $0x20] sm:$0xff] %v768_v43  ;;  %10971 = vmatmul.msk.bf16.gmra.mxu0 %vm144_vm0, %v13717_v1  ;;  %11053 = vmatmul.msk.bf16.gmra.mxu1 %vm144_vm0, %v13727_v29  ;;  %v2369_v2 = vpack.c.bf16 %v768_v43, %v768_v43  ;;  %v14975_v1 = vadd.f32 %v14663_v46, %v14806_v44  ;;  %v11065_v29 = vld [vmem:[#allocation3] sm:$0xf] }
  0xfa   :  { %784 = vst [vmem:[#allocation2 + $0x28] sm:$0xf] %v769_v30  ;;  %v2591_v9 = vld [vmem:[#allocation2 + $0x10] sm:$0xff]  ;;  %v1109_v44 = vmax.f32 %v1013_v3, %v1062_v33  ;;  %v1113_v3 = vmax.f32 %v1064_v40, %v1018_v31  ;;  %v1114_v33 = vmax.f32 %v1017_v60, %v1066_v53  ;;  %v1400_v27 = vmax.f32 %v14967_v5, 0.0  ;;  %v15022_v53 = vpop.f32.mrf.mxu3 }
  0xfb   :  { %799 = vst [vmem:[#allocation1] ss:$2 sm:$0xff] %v787_v18  ;;  %v2400_v34 = vld [vmem:[#allocation2 + $0x11] sm:$0xff]  ;;  %v2607_v30 = vpack.c.bf16 %v2591_v9, %v2591_v9  ;;  %v1445_v18 = vrot.slane %v1397_v17, 4  ;;  %v1022_v58 = vmax.f32 %v14979_v6, 0.0  ;;  %v1019_v9 = vmax.f32 %v14971_v12, 0.0 }
  0xfc   :  { %v2544_v49 = vld [vmem:[#allocation2 + $0x14] sm:$0xff]  ;;  %801 = vst [vmem:[#allocation1 + $0x1] ss:$2 sm:$0xff] %v788_v57  ;;  %v13749_v25 = vld [vmem:[#allocation3 + $0x60] sm:$0xf0]  ;;  %v2416_v8 = vpack.c.bf16 %v2400_v34, %v2400_v34  ;;  %v1023_v57 = vmax.f32 %v14961_v4, 0.0  ;;  %v1133_v11 = vmax.f32 %v1109_v44, %v1112_v16  ;;  %v15020_v60 = vadd.f32 %v14663_v46, %v14903_v48 }
  0xfd   :  { %803 = vst [vmem:[#allocation1 + $0x10] ss:$2 sm:$0xff] %v789_v36  ;;  %v11066_v43 = vor.u32 %v13749_v25, %v11065_v29  ;;  %v2560_v37 = vpack.c.bf16 %v2544_v49, %v2544_v49  ;;  %v15000_v36 = vrot.slane %v1398_v47, 4  ;;  %v1020_v49 = vmax.f32 %v14975_v1, 0.0 }
  0xfe   :  { %v14994_v34 = vpop.f32.mrf.mxu2  ;;  %2432 = vst [vmem:[#allocation3 + $0x68] sm:$0xf] %v2416_v8  ;;  %v1024_v31 = vmax.f32 %v14983_v0, 0.0  ;;  %v1070_v16 = vrot.slane %v1022_v58, 4  ;;  %v1071_v13 = vrot.slane %v1023_v57, 4  ;;  %v1134_v12 = vmax.f32 %v14730_v21, %v1113_v3  ;;  %v13718_v3 = vld [vmem:[%s18444_s0 + $0xe8] sm:$0xff] }
  0xff   :  { %v227_v10 = vpop.f32.mrf.mxu0  ;;  %v15006_v17 = vpop.f32.mrf.mxu1  ;;  %6379 = vmatmul.bf16.vlgmr.msrb.gmra.mxu2 %v11066_v43  ;;  %2385 = vst [vmem:[#allocation3 + $0xc8] sm:$0xf] %v2369_v2  ;;  %v1021_v2 = vmax.f32 %v14991_v23, 0.0  ;;  %v18462_v29 = vmax.f32 %v14693_v62, 0.0  ;;  %v1135_v8 = vmax.f32 %v1111_v54, %v1114_v33  ;;  %v15032_v21 = vmax.f32 %v1396_v28, %v1445_v18 }
 0x100   :  { %2576 = vst [vmem:[#allocation3 + $0x74] sm:$0xf] %v2560_v37  ;;  %v2592_v35 = vld [vmem:[#allocation2 + $0x20] sm:$0xff]  ;;  %v1067_v37 = vrot.slane %v1019_v9, 4  ;;  %v1072_v48 = vrot.slane %v1024_v31, 4  ;;  %v15036_v23 = vadd.f32 %v14663_v46, %v14875_v7  ;;  %v263_v62 = vmax.f32 %v15020_v60, 0.0 }
 0x101   :  { %v2608_v40 = vpack.c.bf16 %v2592_v35, %v2592_v35  ;;  %2623 = vst [vmem:[#allocation3 + $0x14] sm:$0xf] %v2607_v30  ;;  %v2401_v1 = vld [vmem:[#allocation2 + $0x21] sm:$0xff]  ;;  %v15028_v25 = vmax.f32 %v18462_v29, %v14953_v26  ;;  %v1068_v30 = vrot.slane %v1020_v49, 4  ;;  %v1069_v28 = vrot.slane %v1021_v2, 4 }
 0x102   :  { %v2545_v43 = vld [vmem:[#allocation2 + $0x24] sm:$0xff]  ;;  %v1118_v18 = vmax.f32 %v1022_v58, %v1071_v13  ;;  %v1119_v29 = vmax.f32 %v1070_v16, %v1024_v31  ;;  %v15061_v13 = vadd.f32 %v14663_v46, %v14808_v45  ;;  %v1120_v59 = vmax.f32 %v1023_v57, %v1072_v48  ;;  %v13976_v31 = vld [vmem:[%s18447_s3 + $0x138] sm:$0xff] }
 0x103   :  { %v804_v6 = vld.sshfl [vmem:[#allocation1] sm:$0xff pattern:$0x75316420]  ;;  %2624 = vst [vmem:[#allocation3 + $0x78] sm:$0xf] %v2608_v40  ;;  %v13728_v40 = vld [vmem:[%s18444_s0 + $0x108] sm:$0xff]  ;;  %v1115_v58 = vmax.f32 %v1019_v9, %v1068_v30  ;;  %v15073_v9 = vadd.f32 %v14663_v46, %v14943_v20  ;;  %v1117_v4 = vmax.f32 %v1020_v49, %v1069_v28  ;;  %v15079_v57 = vadd.f32 %v14663_v46, %v14844_v42 }
 0x104   :  { %v805_v0 = vld.sshfl [vmem:[#allocation1 + $0x10] sm:$0xff pattern:$0x75316420]  ;;  %1145 = vst [vmem:[#allocation1] ss:$2 sm:$0xff] %v1133_v11  ;;  %v2370_v44 = vpack.c.bf16 %v804_v6, %v804_v6  ;;  %v2417_v11 = vpack.c.bf16 %v2401_v1, %v2401_v1  ;;  %v15054_v1 = vadd.f32 %v14663_v46, %v227_v10  ;;  %v262_v10 = vmax.f32 %v15036_v23, 0.0  ;;  %6567 = vmatpush.bf16.msra.mxu0 %v13976_v31 }
 0x105   :  { %1147 = vst [vmem:[#allocation1 + $0x1] ss:$2 sm:$0xff] %v1134_v12  ;;  %v11067_v54 = vld [vmem:[#allocation3 + $0x64] sm:$0xf0]  ;;  %v13737_v7 = vld [vmem:[#allocation3 + $0x4] sm:$0xf]  ;;  %v2561_v12 = vpack.c.bf16 %v2545_v43, %v2545_v43  ;;  %v15111_v5 = vadd.f32 %v14663_v46, %v14824_v14 }
 0x106   :  { %1149 = vst [vmem:[#allocation1 + $0x10] ss:$2 sm:$0xff] %v1135_v8  ;;  %v15039_v26 = vpop.f32.mrf.mxu2  ;;  %v11070_v8 = vor.u32 %v13737_v7, %v11067_v54  ;;  %v311_v16 = vrot.slane %v263_v62, 4  ;;  %v13975_v20 = vld [vmem:[%s18447_s3 + $0x130] sm:$0xff]  ;;  %v265_v42 = vmax.f32 %v15054_v1, 0.0  ;;  %v1448_v48 = vrot.slane %v1400_v27, 4 }
 0x107   :  { %819 = vst [vmem:[#allocation2 + $0x30] sm:$0xff] %v804_v6  ;;  %v230_v33 = vpop.f32.mrf.mxu0  ;;  %v15048_v35 = vpop.f32.mrf.mxu1  ;;  %v1116_v6 = vmax.f32 %v1067_v37, %v1021_v2  ;;  %v1169_v2 = vmax.f32 %v1115_v58, %v1118_v18  ;;  %v1401_v23 = vmax.f32 %v15046_v63, 0.0  ;;  %v1402_v28 = vmax.f32 %v15061_v13, 0.0  ;;  %v13729_v60 = vld [vmem:[%s18444_s0 + $0x110] sm:$0xff] }
 0x108   :  { %820 = vst [vmem:[#allocation2 + $0x38] sm:$0xf] %v805_v0  ;;  %v15057_v38 = vadd.f32 %v14663_v46, %v230_v33  ;;  %6428 = vmatmul.bf16.vlgmr.msrb.gmra.mxu3 %v11070_v8  ;;  %v15088_v0 = vmax.f32 %v1398_v47, %v15004_v61  ;;  %v15090_v37 = vpop.f32.mrf.mxu3  ;;  %v1171_v47 = vmax.f32 %v1117_v4, %v1120_v59  ;;  %v310_v58 = vrot.slane %v262_v10, 4 }
 0x109   :  { %2386 = vst [vmem:[#allocation3 + $0x12c] sm:$0xf] %v2370_v44  ;;  %10972 = vmatmul.msk.bf16.gmra.mxu0 %vm144_vm0, %v13718_v3  ;;  %11054 = vmatmul.msk.bf16.gmra.mxu1 %vm144_vm0, %v13728_v40  ;;  %v1170_v43 = vmax.f32 %v1116_v6, %v1119_v29  ;;  %v15100_v44 = vmax.f32 %v15000_v36, %v1400_v27  ;;  %v264_v3 = vmax.f32 %v15073_v9, 0.0  ;;  %v1404_v36 = vmax.f32 %v15079_v57, 0.0 }
 0x10a   :  { %v266_v45 = vmax.f32 %v15057_v38, 0.0  ;;  %2433 = vst [vmem:[#allocation3 + $0xcc] sm:$0xf] %v2417_v11  ;;  %v358_v54 = vmax.f32 %v262_v10, %v311_v16  ;;  %6568 = vmatpush.bf16.msra.mxu0 %v13975_v20  ;;  %v18463_v16 = vmax.f32 %v14930_v24, 0.0  ;;  %v313_v57 = vrot.slane %v265_v42, 4 }
 0x10b   :  { %2577 = vst [vmem:[#allocation3 + $0xd8] sm:$0xf] %v2561_v12  ;;  %v11165_v12 = vld [vmem:[#allocation3 + $0xc8] sm:$0xf]  ;;  %v312_v4 = vrot.slane %v264_v3, 4  ;;  %v1449_v20 = vrot.slane %v1401_v23, 4  ;;  %v359_v50 = vmax.f32 %v310_v58, %v264_v3 }
 0x10c   :  { %v1150_v49 = vld.sshfl [vmem:[#allocation1] sm:$0xff pattern:$0x75316420]  ;;  %v314_v30 = vrot.slane %v266_v45, 4  ;;  %v1496_v9 = vmax.f32 %v18463_v16, %v1448_v48  ;;  %v1406_v10 = vmax.f32 %v15116_v41, 0.0  ;;  %v1450_v24 = vrot.slane %v1402_v28, 4 }
 0x10d   :  { %v1151_v61 = vld.sshfl [vmem:[#allocation1 + $0x10] sm:$0xff pattern:$0x75316420]  ;;  %1181 = vst [vmem:[#allocation1] ss:$2 sm:$0xff] %v1169_v2  ;;  %v2371_v8 = vpack.c.bf16 %v1150_v49, %v1150_v49  ;;  %v1516_v48 = vmax.f32 %v14734_v22, %v15100_v44  ;;  %v13719_v22 = vld [vmem:[%s18444_s0 + $0x1e0] sm:$0xff] }
 0x10e   :  { %1183 = vst [vmem:[#allocation1 + $0x1] ss:$2 sm:$0xff] %v1170_v43  ;;  %v361_v11 = vmax.f32 %v265_v42, %v314_v30  ;;  %v15120_v40 = vpop.f32.mrf.mxu2  ;;  %v1403_v43 = vmax.f32 %v15111_v5, 0.0  ;;  %v1454_v41 = vrot.slane %v1406_v10, 4 }
 0x10f   :  { %1185 = vst [vmem:[#allocation1 + $0x10] ss:$2 sm:$0xff] %v1171_v47  ;;  %v232_v59 = vpop.f32.mrf.mxu0  ;;  %v15118_v27 = vpop.f32.mrf.mxu1  ;;  %v2402_v18 = vld [vmem:[#allocation2 + $0x31] sm:$0xff]  ;;  %v1517_v47 = vmax.f32 %v15032_v21, %v1496_v9 }
 0x110   :  { %v2546_v7 = vld [vmem:[#allocation2 + $0x34] sm:$0xff]  ;;  %1165 = vst [vmem:[#allocation2 + $0x40] sm:$0xff] %v1150_v49  ;;  %v373_v33 = vmax.f32 %v358_v54, %v361_v11  ;;  %v233_v14 = vadd.f32 %v14663_v46, %v232_v59  ;;  %v13774_v29 = vld [vmem:[#allocation3 + $0x128] sm:$0xf0]  ;;  %v2418_v1 = vpack.c.bf16 %v2402_v18, %v2402_v18  ;;  %v1515_v46 = vmax.f32 %v15028_v25, %v15088_v0  ;;  %v15139_v11 = vpop.f32.mrf.mxu3 }
 0x111   :  { %1166 = vst [vmem:[#allocation2 + $0x48] sm:$0xf] %v1151_v61  ;;  %v11166_v6 = vor.u32 %v13774_v29, %v11165_v12  ;;  %v2562_v31 = vpack.c.bf16 %v2546_v7, %v2546_v7  ;;  %v1452_v49 = vrot.slane %v1404_v36, 4  ;;  %v1453_v25 = vrot.slane %v1405_v39, 4 }
 0x112   :  { %390 = vst [vmem:[#allocation1 + $0x20] ss:$2 sm:$0xff] %v373_v33  ;;  %v267_v2 = vmax.f32 %v233_v14, 0.0  ;;  %v360_v54 = vmax.f32 %v263_v62, %v312_v4  ;;  %v1451_v44 = vrot.slane %v1403_v43, 4  ;;  %v1498_v33 = vmax.f32 %v1449_v20, %v1403_v43 }
 0x113   :  { %6384 = vmatmul.bf16.gmra.mxu2 %v11166_v6  ;;  %2434 = vst [vmem:[#allocation3 + $0x130] sm:$0xf] %v2418_v1  ;;  %v1500_v18 = vmax.f32 %v1404_v36, %v1453_v25  ;;  %v1501_v14 = vmax.f32 %v1452_v49, %v1406_v10  ;;  %v1502_v58 = vmax.f32 %v1405_v39, %v1454_v41  ;;  %v13762_v6 = vld [vmem:[#allocation3 + $0xcc] sm:$0xf] }
 0x114   :  { %v315_v30 = vrot.slane %v267_v2, 4  ;;  %v362_v42 = vmax.f32 %v313_v57, %v267_v2  ;;  %2387 = vst [vmem:[#allocation3 + $0x190] sm:$0xf] %v2371_v8  ;;  %v1499_v8 = vmax.f32 %v1402_v28, %v1451_v44 }
 0x115   :  { %v1186_v0 = vld.sshfl [vmem:[#allocation1] sm:$0xff pattern:$0x75316420]  ;;  %2578 = vst [vmem:[#allocation3 + $0x13c] sm:$0xf] %v2562_v31  ;;  %v1552_v36 = vmax.f32 %v1498_v33, %v1501_v14 }
 0x116   :  { %v1187_v61 = vld.sshfl [vmem:[#allocation1 + $0x10] sm:$0xff pattern:$0x75316420]  ;;  %1527 = vst [vmem:[#allocation1] ss:$2 sm:$0xff] %v1515_v46  ;;  %v363_v5 = vmax.f32 %v266_v45, %v315_v30  ;;  %v374_v3 = vmax.f32 %v359_v50, %v362_v42  ;;  %v1497_v45 = vmax.f32 %v1401_v23, %v1450_v24  ;;  %v2372_v7 = vpack.c.bf16 %v1186_v0, %v1186_v0  ;;  %v15155_v12 = vpop.f32.mrf.mxu2  ;;  %v13974_v30 = vld [vmem:[%s18447_s3 + $0x128] sm:$0xff] }
 0x117   :  { %1529 = vst [vmem:[#allocation1 + $0x1] ss:$2 sm:$0xff] %v1516_v48  ;;  %v15146_v59 = vpop.f32.mrf.mxu0  ;;  %v15148_v21 = vpop.f32.mrf.mxu1  ;;  %v1553_v16 = vmax.f32 %v1499_v8, %v1502_v58  ;;  %v15171_v48 = vld [vmem:[%s18446_s2] ss:$0 sm:$0xff]  ;;  %v13730_v50 = vld [vmem:[%s18444_s0 + $0x118] sm:$0xff]  ;;  %6569 = vmatpush.bf16.msra.mxu0 %v13974_v30 }
 0x118   :  { %1531 = vst [vmem:[#allocation1 + $0x10] ss:$2 sm:$0xff] %v1517_v47  ;;  %v375_v62 = vmax.f32 %v360_v54, %v363_v5  ;;  %v2403_v38 = vld [vmem:[#allocation2 + $0x41] sm:$0xff]  ;;  %v1551_v23 = vmax.f32 %v1497_v45, %v1500_v18  ;;  %v15161_v13 = vpop.f32.mrf.mxu3  ;;  %v15175_v25 = vadd.f32 %v15171_v48, %v15048_v35  ;;  %v15196_v18 = vadd.f32 %v15171_v48, %v15146_v59 }
 0x119   :  { %1201 = vst [vmem:[#allocation2 + $0x50] sm:$0xff] %v1186_v0  ;;  %10973 = vmatmul.msk.bf16.gmra.mxu0 %vm144_vm0, %v13719_v22  ;;  %v2419_v1 = vpack.c.bf16 %v2403_v38, %v2403_v38  ;;  %11055 = vmatmul.msk.bf16.gmra.mxu1 %vm144_vm0, %v13729_v60  ;;  %v2547_v42 = vld [vmem:[#allocation2 + $0x44] sm:$0xff]  ;;  %v2448_v38 = vld [vmem:[#allocation2 + $0x12] sm:$0xff]  ;;  %v15224_v30 = vadd.f32 %v15171_v48, %v15006_v17 }
 0x11a   :  { %1202 = vst [vmem:[#allocation2 + $0x58] sm:$0xf] %v1187_v61  ;;  %v11167_v29 = vld [vmem:[#allocation3 + $0x12c] sm:$0xf0]  ;;  %v13720_v0 = vld [vmem:[%s18444_s0 + $0x1e8] sm:$0xff] }
 0x11b   :  { %392 = vst [vmem:[#allocation1 + $0x21] ss:$2 sm:$0xff] %v374_v3  ;;  %v11170_v63 = vor.u32 %v13762_v6, %v11167_v29  ;;  %v11265_v10 = vld [vmem:[#allocation3 + $0x190] sm:$0xf] }
 0x11c   :  { %394 = vst [vmem:[#allocation1 + $0x30] ss:$2 sm:$0xff] %v375_v62  ;;  %v2563_v62 = vpack.c.bf16 %v2547_v42, %v2547_v42  ;;  %v2496_v29 = vld [vmem:[#allocation2 + $0x13] sm:$0xff] }
 0x11d   :  { %2388 = vst [vmem:[#allocation3 + $0x1f4] sm:$0xf] %v2372_v7  ;;  %6433 = vmatmul.bf16.gmra.mxu3 %v11170_v63 }
 0x11e   :  { %v1532_v31 = vld.sshfl [vmem:[#allocation1] sm:$0xff pattern:$0x75316420]  ;;  %2435 = vst [vmem:[#allocation3 + $0x194] sm:$0xf] %v2419_v1  ;;  %v15163_v43 = vpop.f32.mrf.mxu2  ;;  %v645_v1 = vmax.f32 %v15175_v25, 0.0 }
 0x11f   :  { %v1533_v9 = vld.sshfl [vmem:[#allocation1 + $0x10] sm:$0xff pattern:$0x75316420]  ;;  %1563 = vst [vmem:[#allocation1] ss:$2 sm:$0xff] %v1551_v23  ;;  %v237_v4 = vpop.f32.mrf.mxu0  ;;  %v613_v57 = vpop.f32.mrf.mxu1  ;;  %v2373_v20 = vpack.c.bf16 %v1532_v31, %v1532_v31 }
 0x120   :  { %1565 = vst [vmem:[#allocation1 + $0x1] ss:$2 sm:$0xff] %v1552_v36  ;;  %v238_v61 = vadd.f32 %v15171_v48, %v237_v4  ;;  %v15185_v54 = vadd.f32 %v15171_v48, %v613_v57  ;;  %v15192_v45 = vpop.f32.mrf.mxu3  ;;  %v2464_v36 = vpack.c.bf16 %v2448_v38, %v2448_v38  ;;  %v13968_v4 = vld [vmem:[%s18447_s3 + $0xf8] sm:$0xff] }
 0x121   :  { %1567 = vst [vmem:[#allocation1 + $0x10] ss:$2 sm:$0xff] %v1553_v16  ;;  %v2404_v28 = vld [vmem:[#allocation2 + $0x51] sm:$0xff]  ;;  %6518 = vmatpush.bf16.msra.mxu3 %v13968_v4  ;;  %v609_v4 = vadd.f32 %v15171_v48, %v15118_v27 }
 0x122   :  { %1547 = vst [vmem:[#allocation2 + $0x60] sm:$0xff] %v1532_v31  ;;  %v395_v39 = vld.sshfl [vmem:[#allocation1 + $0x20] sm:$0xff pattern:$0x75316420]  ;;  %v2420_v2 = vpack.c.bf16 %v2404_v28, %v2404_v28  ;;  %v269_v8 = vmax.f32 %v238_v61, 0.0  ;;  %v648_v58 = vmax.f32 %v15185_v54, 0.0  ;;  %v15207_v31 = vadd.f32 %v15171_v48, %v15148_v21 }
 0x123   :  { %1548 = vst [vmem:[#allocation2 + $0x68] sm:$0xf] %v1533_v9  ;;  %v396_v46 = vld.sshfl [vmem:[#allocation1 + $0x30] sm:$0xff pattern:$0x75316420]  ;;  %v2375_v35 = vpack.c.bf16 %v395_v39, %v395_v39  ;;  %v2548_v44 = vld [vmem:[#allocation2 + $0x54] sm:$0xff]  ;;  %v15215_v28 = vpack.c.bf16 %v2496_v29, %v2496_v29 }
 0x124   :  { %403 = vst [vmem:[#allocation2 + $0xc0] sm:$0xff] %v395_v39  ;;  %v13799_v24 = vld [vmem:[#allocation3 + $0x1f0] sm:$0xf0]  ;;  %v2564_v14 = vpack.c.bf16 %v2548_v44, %v2548_v44  ;;  %v268_v39 = vmax.f32 %v15196_v18, 0.0  ;;  %v317_v17 = vrot.slane %v269_v8, 4  ;;  %v696_v61 = vrot.slane %v648_v58, 4 }
 0x125   :  { %404 = vst [vmem:[#allocation2 + $0xc8] sm:$0xf] %v396_v46  ;;  %v11266_v49 = vor.u32 %v13799_v24, %v11265_v10  ;;  %v13787_v63 = vld [vmem:[#allocation3 + $0x194] sm:$0xf]  ;;  %v2594_v10 = vld [vmem:[#allocation2 + $0x40] sm:$0xff]  ;;  %v18464_v24 = vmax.f32 %v14666_v51, 0.0 }
 0x126   :  { %2436 = vst [vmem:[#allocation3 + $0x1f8] sm:$0xf] %v2420_v2  ;;  %v13960_v9 = vld [vmem:[%s18447_s3 + $0xb8] sm:$0xff]  ;;  %v15218_v2 = vpop.f32.mrf.mxu2  ;;  %v13973_v51 = vld [vmem:[%s18447_s3 + $0x120] sm:$0xff] }
 0x127   :  { %v1568_v47 = vld.sshfl [vmem:[#allocation1] sm:$0xff pattern:$0x75316420]  ;;  %6389 = vmatmul.bf16.gmra.mxu2 %v11266_v49  ;;  %v240_v5 = vpop.f32.mrf.mxu0  ;;  %v15187_v22 = vpop.f32.mrf.mxu1  ;;  %2389 = vst [vmem:[#allocation3 + $0x258] sm:$0xf] %v2373_v20  ;;  %v2593_v20 = vld [vmem:[#allocation2 + $0x30] sm:$0xff]  ;;  %6570 = vmatpush.bf16.msra.mxu0 %v13973_v51 }
 0x128   :  { %v1569_v41 = vld.sshfl [vmem:[#allocation1 + $0x10] sm:$0xff pattern:$0x75316420]  ;;  %1583 = vst [vmem:[#allocation2 + $0x70] sm:$0xff] %v1568_v47  ;;  %v15190_v3 = vadd.f32 %v15171_v48, %v240_v5  ;;  %v2374_v60 = vpack.c.bf16 %v1568_v47, %v1568_v47  ;;  %v320_v49 = vrot.slane %v18464_v24, 4  ;;  %6469 = vmatpush.bf16.msra.mxu2 %v13960_v9  ;;  %v646_v51 = vmax.f32 %v609_v4, 0.0 }
 0x129   :  { %1584 = vst [vmem:[#allocation2 + $0x78] sm:$0xf] %v1569_v41  ;;  %10974 = vmatmul.msk.bf16.gmra.mxu0 %vm144_vm0, %v13720_v0  ;;  %11056 = vmatmul.msk.bf16.gmra.mxu1 %vm144_vm0, %v13730_v50  ;;  %v13959_v50 = vld [vmem:[%s18447_s3 + $0xb0] sm:$0xff] }
 0x12a   :  { %v270_v7 = vmax.f32 %v15190_v3, 0.0  ;;  %2390 = vst [vmem:[#allocation3 + $0x2bc] sm:$0xf] %v2374_v60  ;;  %v2405_v33 = vld [vmem:[#allocation2 + $0x61] sm:$0xff]  ;;  %v693_v60 = vrot.slane %v645_v1, 4  ;;  %v2450_v3 = vld [vmem:[#allocation2 + $0x32] sm:$0xff] }
 0x12b   :  { %v2421_v6 = vpack.c.bf16 %v2405_v33, %v2405_v33  ;;  %2391 = vst [vmem:[#allocation3 + $0x320] sm:$0xf] %v2375_v35  ;;  %v13967_v47 = vld [vmem:[%s18447_s3 + $0xf0] sm:$0xff]  ;;  %v2609_v33 = vpack.c.bf16 %v2593_v20, %v2593_v20 }
 0x12c   :  { %v318_v59 = vrot.slane %v270_v7, 4  ;;  %v2407_v23 = vld [vmem:[#allocation2 + $0xc1] sm:$0xff]  ;;  %2579 = vst [vmem:[#allocation3 + $0x1a0] sm:$0xf] %v2563_v62  ;;  %v647_v62 = vmax.f32 %v15207_v31, 0.0  ;;  %6470 = vmatpush.bf16.msra.mxu2 %v13959_v50  ;;  %6519 = vmatpush.bf16.msra.mxu3 %v13967_v47 }
 0x12d   :  { %v11267_v16 = vld [vmem:[#allocation3 + $0x1f4] sm:$0xf0]  ;;  %2437 = vst [vmem:[#allocation3 + $0x25c] sm:$0xf] %v2421_v6  ;;  %v2423_v57 = vpack.c.bf16 %v2407_v23, %v2407_v23  ;;  %v2449_v41 = vld [vmem:[#allocation2 + $0x22] sm:$0xff]  ;;  %v644_v6 = vmax.f32 %v15224_v30, 0.0  ;;  %v15246_v23 = vpop.f32.mrf.mxu3 }
 0x12e   :  { %v11270_v46 = vor.u32 %v13787_v63, %v11267_v16  ;;  %v366_v21 = vmax.f32 %v269_v8, %v318_v59  ;;  %2580 = vst [vmem:[#allocation3 + $0x204] sm:$0xf] %v2564_v14  ;;  %v316_v14 = vrot.slane %v268_v39, 4  ;;  %v2610_v8 = vpack.c.bf16 %v2594_v10, %v2594_v10  ;;  %v13721_v24 = vld [vmem:[%s18444_s0 + $0x1f0] sm:$0xff] }
 0x12f   :  { %v242_v42 = vpop.f32.mrf.mxu0  ;;  %v15226_v0 = vpop.f32.mrf.mxu1  ;;  %2439 = vst [vmem:[#allocation3 + $0x324] sm:$0xf] %v2423_v57  ;;  %v2465_v59 = vpack.c.bf16 %v2449_v41, %v2449_v41  ;;  %v744_v31 = vmax.f32 %v647_v62, %v696_v61  ;;  %v741_v57 = vmax.f32 %v644_v6, %v693_v60  ;;  %v2497_v47 = vld [vmem:[#allocation2 + $0x23] sm:$0xff]  ;;  %v2498_v61 = vld [vmem:[#allocation2 + $0x33] sm:$0xff] }
 0x130   :  { %6438 = vmatmul.bf16.gmra.mxu3 %v11270_v46  ;;  %v410_v5 = vmax.f32 %v366_v21, %v14677_v56  ;;  %v243_v35 = vadd.f32 %v15171_v48, %v242_v42  ;;  %v2406_v44 = vld [vmem:[#allocation2 + $0x71] sm:$0xff]  ;;  %2480 = vst [vmem:[#allocation3 + $0x6c] sm:$0xf] %v2464_v36  ;;  %v364_v36 = vmax.f32 %v268_v39, %v317_v17  ;;  %v18465_v21 = vmax.f32 %v14669_v52, 0.0  ;;  %v2549_v39 = vld [vmem:[#allocation2 + $0x64] sm:$0xff]  ;;  %v15266_v42 = vpop.f32.mrf.mxu2 }
 0x131   :  { %v13824_v38 = vld [vmem:[#allocation3 + $0x2b8] sm:$0xf0]  ;;  %v2422_v18 = vpack.c.bf16 %v2406_v44, %v2406_v44  ;;  %2528 = vst [vmem:[#allocation3 + $0x70] sm:$0xf] %v15215_v28  ;;  %v11365_v56 = vld [vmem:[#allocation3 + $0x258] sm:$0xf]  ;;  %v365_v46 = vmax.f32 %v316_v14, %v270_v7  ;;  %v756_v7 = vmax.f32 %v741_v57, %v744_v31  ;;  %v2466_v44 = vpack.c.bf16 %v2450_v3, %v2450_v3 }
 0x132   :  { %429 = vst [vmem:[#allocation1 + $0x30] ss:$2 sm:$0xff] %v410_v5  ;;  %v271_v29 = vmax.f32 %v243_v35, 0.0  ;;  %v11366_v63 = vor.u32 %v13824_v38, %v11365_v56  ;;  %v13731_v52 = vld [vmem:[%s18444_s0 + $0x210] sm:$0xff]  ;;  %v695_v5 = vrot.slane %v647_v62, 4  ;;  %v15270_v38 = vpack.c.bf16 %v2497_v47, %v2497_v47  ;;  %v2550_v4 = vld [vmem:[#allocation2 + $0x74] sm:$0xff] }
 0x133   :  { %2438 = vst [vmem:[#allocation3 + $0x2c0] sm:$0xf] %v2422_v18  ;;  %v692_v18 = vrot.slane %v644_v6, 4  ;;  %v15272_v14 = vpack.c.bf16 %v2498_v61, %v2498_v61  ;;  %v15276_v62 = vadd.f32 %v15171_v48, %v14896_v15  ;;  %v15291_v15 = vadd.f32 %v15171_v48, %v14932_v55  ;;  %v13722_v47 = vld [vmem:[%s18444_s0 + $0x1f8] sm:$0xff] }
 0x134   :  { %v319_v16 = vrot.slane %v271_v29, 4  ;;  %v367_v9 = vmax.f32 %v271_v29, %v320_v49  ;;  %2625 = vst [vmem:[#allocation3 + $0xdc] sm:$0xf] %v2609_v33  ;;  %v602_v49 = vadd.f32 %v15171_v48, %v14945_v19  ;;  %v2565_v19 = vpack.c.bf16 %v2549_v39, %v2549_v39  ;;  %v13812_v60 = vld [vmem:[#allocation3 + $0x25c] sm:$0xf]  ;;  %v2596_v39 = vld [vmem:[#allocation2 + $0x60] sm:$0xff] }
 0x135   :  { %2626 = vst [vmem:[#allocation3 + $0x140] sm:$0xf] %v2610_v8  ;;  %v694_v29 = vrot.slane %v646_v51, 4  ;;  %v742_v56 = vmax.f32 %v646_v51, %v695_v5  ;;  %v15278_v8 = vpop.f32.mrf.mxu3  ;;  %v1025_v55 = vmax.f32 %v15276_v62, 0.0  ;;  %v15307_v57 = vadd.f32 %v15171_v48, %v15022_v53  ;;  %v2551_v51 = vld [vmem:[#allocation2 + $0xc4] sm:$0xff] }
 0x136   :  { %v368_v20 = vmax.f32 %v319_v16, %v18465_v21  ;;  %v408_v10 = vmax.f32 %v364_v36, %v367_v9  ;;  %2481 = vst [vmem:[#allocation3 + $0xd0] sm:$0xf] %v2465_v59  ;;  %v643_v41 = vmax.f32 %v602_v49, 0.0  ;;  %v15302_v9 = vadd.f32 %v15171_v48, %v15226_v0 }
 0x137   :  { %6394 = vmatmul.bf16.gmra.mxu2 %v11366_v63  ;;  %v15259_v27 = vpop.f32.mrf.mxu1  ;;  %v15261_v30 = vpop.f32.mrf.mxu0  ;;  %2581 = vst [vmem:[#allocation3 + $0x268] sm:$0xf] %v2565_v19  ;;  %v15282_v63 = vadd.f32 %v15171_v48, %v14949_v32  ;;  %v743_v6 = vmax.f32 %v694_v29, %v648_v58  ;;  %v15296_v32 = vadd.f32 %v15171_v48, %v14994_v34  ;;  %v2595_v34 = vld [vmem:[#allocation2 + $0x50] sm:$0xff] }
 0x138   :  { %v409_v50 = vmax.f32 %v365_v46, %v368_v20  ;;  %425 = vst [vmem:[#allocation1 + $0x20] ss:$2 sm:$0xff] %v408_v10  ;;  %v691_v59 = vrot.slane %v643_v41, 4  ;;  %v739_v16 = vmax.f32 %v643_v41, %v692_v18  ;;  %v15309_v21 = vpop.f32.mrf.mxu2  ;;  %v1026_v10 = vmax.f32 %v15291_v15, 0.0  ;;  %v2451_v41 = vld [vmem:[#allocation2 + $0x42] sm:$0xff]  ;;  %v2452_v29 = vld [vmem:[#allocation2 + $0x52] sm:$0xff] }
 0x139   :  { %v431_v17 = vld.sshfl [vmem:[#allocation1 + $0x30] sm:$0xff pattern:$0x75316420]  ;;  %10975 = vmatmul.msk.bf16.gmra.mxu0 %vm144_vm0, %v13721_v24  ;;  %11057 = vmatmul.msk.bf16.gmra.mxu1 %vm144_vm0, %v13731_v52  ;;  %2482 = vst [vmem:[#allocation3 + $0x134] sm:$0xf] %v2466_v44  ;;  %v18461_v25 = vmax.f32 %v15282_v63, 0.0  ;;  %v2566_v24 = vpack.c.bf16 %v2550_v4, %v2550_v4  ;;  %v15316_v53 = vadd.f32 %v15171_v48, %v15090_v37 }
 0x13a   :  { %775 = vst [vmem:[#allocation1 + $0x30] ss:$2 sm:$0xff] %v756_v7  ;;  %v11367_v35 = vld [vmem:[#allocation3 + $0x2bc] sm:$0xf0]  ;;  %v740_v54 = vmax.f32 %v691_v59, %v645_v1  ;;  %v754_v46 = vmax.f32 %v739_v16, %v742_v56  ;;  %v1027_v49 = vmax.f32 %v15296_v32, 0.0  ;;  %v650_v52 = vmax.f32 %v15302_v9, 0.0 }
 0x13b   :  { %440 = vst [vmem:[#allocation2 + $0xd8] sm:$0xf] %v431_v17  ;;  %v11370_v33 = vor.u32 %v13812_v60, %v11367_v35  ;;  %v2611_v3 = vpack.c.bf16 %v2595_v34, %v2595_v34  ;;  %v1073_v7 = vrot.slane %v1025_v55, 4  ;;  %v15325_v17 = vrot.slane %v18461_v25, 4  ;;  %v13732_v35 = vld [vmem:[%s18444_s0 + $0x218] sm:$0xff] }
 0x13c   :  { %427 = vst [vmem:[#allocation1 + $0x21] ss:$2 sm:$0xff] %v409_v50  ;;  %v755_v1 = vmax.f32 %v740_v54, %v743_v6  ;;  %v18460_v50 = vmax.f32 %v15307_v57, 0.0  ;;  %v15329_v37 = vadd.f32 %v15171_v48, %v15120_v40  ;;  %v15333_v19 = vadd.f32 %v15171_v48, %v15187_v22 }
 0x13d   :  { %2529 = vst [vmem:[#allocation3 + $0xd4] sm:$0xf] %v15270_v38  ;;  %v2612_v44 = vpack.c.bf16 %v2596_v39, %v2596_v39  ;;  %v1074_v60 = vrot.slane %v1026_v10, 4  ;;  %v15340_v18 = vpop.f32.mrf.mxu3  ;;  %v2567_v22 = vpack.c.bf16 %v2551_v51, %v2551_v51  ;;  %v1075_v62 = vrot.slane %v1027_v49, 4  ;;  %v2500_v51 = vld [vmem:[#allocation2 + $0x53] sm:$0xff] }
 0x13e   :  { %2530 = vst [vmem:[#allocation3 + $0x138] sm:$0xf] %v15272_v14  ;;  %v1409_v56 = vmax.f32 %v15316_v53, 0.0  ;;  %v15351_v59 = vadd.f32 %v15171_v48, %v15039_v26  ;;  %v698_v6 = vrot.slane %v650_v52, 4  ;;  %v15361_v15 = vadd.f32 %v15171_v48, %v15259_v27 }
 0x13f   :  { %v623_v36 = vpop.f32.mrf.mxu1  ;;  %v15286_v31 = vpop.f32.mrf.mxu0  ;;  %2582 = vst [vmem:[#allocation3 + $0x2cc] sm:$0xf] %v2566_v24  ;;  %v2467_v32 = vpack.c.bf16 %v2451_v41, %v2451_v41  ;;  %v1029_v26 = vmax.f32 %v15329_v37, 0.0  ;;  %v15368_v54 = vadd.f32 %v15171_v48, %v15155_v12  ;;  %v2468_v4 = vpack.c.bf16 %v2452_v29, %v2452_v29 }
 0x140   :  { %6443 = vmatmul.bf16.gmra.mxu3 %v11370_v33  ;;  %v15343_v40 = vadd.f32 %v15171_v48, %v623_v36  ;;  %2627 = vst [vmem:[#allocation3 + $0x1a4] sm:$0xf] %v2611_v3  ;;  %v15357_v36 = vrot.slane %v18460_v50, 4  ;;  %v15372_v27 = vmax.f32 %v1025_v55, %v1074_v60  ;;  %v15383_v24 = vmax.f32 %v1073_v7, %v1027_v49  ;;  %v2597_v60 = vld [vmem:[#allocation2 + $0x70] sm:$0xff] }
 0x141   :  { %v777_v58 = vld.sshfl [vmem:[#allocation1 + $0x30] sm:$0xff pattern:$0x75316420]  ;;  %2583 = vst [vmem:[#allocation3 + $0x330] sm:$0xf] %v2567_v22  ;;  %v15385_v39 = vmax.f32 %v1026_v10, %v1075_v62  ;;  %v1028_v55 = vmax.f32 %v15351_v59, 0.0  ;;  %v15463_v25 = vadd.f32 %v15171_v48, %v15309_v21 }
 0x142   :  { %786 = vst [vmem:[#allocation2 + $0xe8] sm:$0xf] %v777_v58  ;;  %v649_v58 = vmax.f32 %v15333_v19, 0.0  ;;  %v651_v19 = vmax.f32 %v15361_v15, 0.0  ;;  %v1077_v49 = vrot.slane %v1029_v26, 4  ;;  %v1030_v10 = vmax.f32 %v15368_v54, 0.0 }
 0x143   :  { %v430_v20 = vld.sshfl [vmem:[#allocation1 + $0x20] sm:$0xff pattern:$0x75316420]  ;;  %2628 = vst [vmem:[#allocation3 + $0x208] sm:$0xf] %v2612_v44  ;;  %v2453_v62 = vld [vmem:[#allocation2 + $0x62] sm:$0xff] }
 0x144   :  { %771 = vst [vmem:[#allocation1 + $0x20] ss:$2 sm:$0xff] %v754_v46  ;;  %v2376_v0 = vpack.c.bf16 %v430_v20, %v430_v20  ;;  %v15376_v46 = vadd.f32 %v15171_v48, %v15139_v11  ;;  %v745_v3 = vmax.f32 %v649_v58, %v698_v6  ;;  %v13971_v21 = vld [vmem:[%s18447_s3 + $0x110] sm:$0xff] }
 0x145   :  { %773 = vst [vmem:[#allocation1 + $0x21] ss:$2 sm:$0xff] %v755_v1  ;;  %v15378_v1 = vpop.f32.mrf.mxu2 }
 0x146   :  { %439 = vst [vmem:[#allocation2 + $0xd0] sm:$0xff] %v430_v20  ;;  %v652_v20 = vmax.f32 %v15343_v40, 0.0  ;;  %v15443_v9 = vadd.f32 %v15171_v48, %v15378_v1 }
 0x147   :  { %v626_v61 = vpop.f32.mrf.mxu1  ;;  %v15335_v5 = vpop.f32.mrf.mxu0  ;;  %2392 = vst [vmem:[#allocation3 + $0x384] sm:$0xf] %v2376_v0  ;;  %v2499_v0 = vld [vmem:[#allocation2 + $0x43] sm:$0xff] }
 0x148   :  { %v15346_v33 = vadd.f32 %v15171_v48, %v626_v61  ;;  %2483 = vst [vmem:[#allocation3 + $0x198] sm:$0xf] %v2467_v32  ;;  %v15392_v29 = vpack.c.bf16 %v2499_v0, %v2499_v0  ;;  %v15396_v32 = vpack.c.bf16 %v2500_v51, %v2500_v51  ;;  %v15404_v0 = vpop.f32.mrf.mxu3  ;;  %v15406_v51 = vmax.f32 %v1028_v55, %v1077_v49 }
 0x149   :  { %10976 = vmatmul.msk.bf16.gmra.mxu0 %vm144_vm0, %v13722_v47  ;;  %11058 = vmatmul.msk.bf16.gmra.mxu1 %vm144_vm0, %v13732_v35  ;;  %v11465_v47 = vld [vmem:[#allocation3 + $0x320] sm:$0xf]  ;;  %2484 = vst [vmem:[#allocation3 + $0x1fc] sm:$0xf] %v2468_v4  ;;  %v2613_v4 = vpack.c.bf16 %v2597_v60, %v2597_v60 }
 0x14a   :  { %v653_v16 = vmax.f32 %v15346_v33, 0.0  ;;  %2531 = vst [vmem:[#allocation3 + $0x19c] sm:$0xf] %v15392_v29 }
 0x14b   :  { %2532 = vst [vmem:[#allocation3 + $0x200] sm:$0xf] %v15396_v32 }
 0x14c   :  { %v776_v34 = vld.sshfl [vmem:[#allocation1 + $0x20] sm:$0xff pattern:$0x75316420]  ;;  %v701_v12 = vrot.slane %v653_v16, 4  ;;  %2629 = vst [vmem:[#allocation3 + $0x26c] sm:$0xf] %v2613_v4 }
 0x14d   :  { %785 = vst [vmem:[#allocation2 + $0xe0] sm:$0xff] %v776_v34  ;;  %v2408_v11 = vld [vmem:[#allocation2 + $0xd1] sm:$0xff]  ;;  %v2377_v41 = vpack.c.bf16 %v776_v34, %v776_v34  ;;  %v15398_v34 = vrot.slane %v1028_v55, 4 }
 0x14e   :  { %v748_v61 = vmax.f32 %v652_v20, %v701_v12  ;;  %v13849_v35 = vld [vmem:[#allocation3 + $0x380] sm:$0xf0]  ;;  %v2424_v44 = vpack.c.bf16 %v2408_v11, %v2408_v11  ;;  %v697_v12 = vrot.slane %v649_v58, 4  ;;  %v15402_v11 = vadd.f32 %v15171_v48, %v15286_v31  ;;  %v13972_v4 = vld [vmem:[%s18447_s3 + $0x118] sm:$0xff]  ;;  %2767 = vst [vmem:[#allocation3 + $0x20] sm:$0xf] %v15215_v28 }
 0x14f   :  { %v628_v7 = vpop.f32.mrf.mxu1  ;;  %v1724_v40 = vpop.f32.mrf.mxu0  ;;  %v11466_v22 = vor.u32 %v13849_v35, %v11465_v47  ;;  %2393 = vst [vmem:[#allocation3 + $0x3e8] sm:$0xf] %v2377_v41  ;;  %v699_v47 = vrot.slane %v651_v19, 4  ;;  %v700_v35 = vrot.slane %v652_v20, 4  ;;  %v15410_v58 = vadd.f32 %v15171_v48, %v15161_v13  ;;  %v2501_v13 = vld [vmem:[#allocation2 + $0x63] sm:$0xff]  ;;  %6571 = vmatpush.bf16.msra.mxu0 %v13972_v4  ;;  %v13969_v28 = vld [vmem:[%s18447_s3 + $0x100] sm:$0xff] }
 0x150   :  { %v790_v6 = vmax.f32 %v745_v3, %v748_v61  ;;  %v629_v15 = vadd.f32 %v15171_v48, %v628_v7  ;;  %2440 = vst [vmem:[#allocation3 + $0x388] sm:$0xf] %v2424_v44  ;;  %v2454_v61 = vld [vmem:[#allocation2 + $0x72] sm:$0xff]  ;;  %v2469_v44 = vpack.c.bf16 %v2453_v62, %v2453_v62  ;;  %v1078_v31 = vrot.slane %v1030_v10, 4  ;;  %v15489_v4 = vpop.f32.mrf.mxu3 }
 0x151   :  { %6399 = vmatmul.bf16.gmra.mxu2 %v11466_v22  ;;  %v15416_v41 = vadd.f32 %v15171_v48, %v15163_v43  ;;  %v15421_v20 = vadd.f32 %v15171_v48, %v15218_v2  ;;  %v746_v60 = vmax.f32 %v697_v12, %v651_v19  ;;  %v2502_v22 = vld [vmem:[#allocation2 + $0x73] sm:$0xff]  ;;  %v15426_v62 = vadd.f32 %v15171_v48, %v15266_v42  ;;  %v1010_v12 = vpop.f32.mrf.mxu2 }
 0x152   :  { %807 = vst [vmem:[#allocation1 + $0x20] ss:$2 sm:$0xff] %v790_v6  ;;  %v654_v3 = vmax.f32 %v629_v15, 0.0  ;;  %v1778_v43 = vmax.f32 %v15402_v11, 0.0  ;;  %v13837_v6 = vld [vmem:[#allocation3 + $0x324] sm:$0xf]  ;;  %v2470_v50 = vpack.c.bf16 %v2454_v61, %v2454_v61  ;;  %v747_v2 = vmax.f32 %v650_v52, %v699_v47 }
 0x153   :  { %v1718_v19 = vadd.f32 %v15171_v48, %v15261_v30  ;;  %v13723_v42 = vld [vmem:[%s18444_s0 + $0x200] sm:$0xff]  ;;  %2485 = vst [vmem:[#allocation3 + $0x260] sm:$0xf] %v2469_v44  ;;  %v2455_v61 = vld [vmem:[#allocation2 + $0xc2] sm:$0xff]  ;;  %v15446_v30 = vadd.f32 %v15171_v48, %v1724_v40  ;;  %v15455_v44 = vpack.c.bf16 %v2502_v22, %v2502_v22  ;;  %v1031_v1 = vmax.f32 %v15416_v41, 0.0  ;;  %6572 = vmatpush.bf16.msra.mxu0 %v13971_v21 }
 0x154   :  { %v702_v55 = vrot.slane %v654_v3, 4  ;;  %v749_v49 = vmax.f32 %v700_v35, %v654_v3  ;;  %v2409_v7 = vld [vmem:[#allocation2 + $0xe1] sm:$0xff]  ;;  %v13733_v47 = vld [vmem:[%s18444_s0 + $0x220] sm:$0xff]  ;;  %v15468_v22 = vadd.f32 %v15171_v48, %v1010_v12  ;;  %2486 = vst [vmem:[#allocation3 + $0x2c4] sm:$0xf] %v2470_v50  ;;  %v1411_v12 = vmax.f32 %v15410_v58, 0.0 }
 0x155   :  { %v2425_v15 = vpack.c.bf16 %v2409_v7, %v2409_v7  ;;  %v1777_v59 = vmax.f32 %v1718_v19, 0.0  ;;  %v1125_v50 = vmax.f32 %v15398_v34, %v1030_v10  ;;  %v1035_v19 = vmax.f32 %v15443_v9, 0.0  ;;  %2534 = vst [vmem:[#allocation3 + $0x2c8] sm:$0xf] %v15455_v44  ;;  %v13957_v11 = vld [vmem:[%s18447_s3 + $0xa0] sm:$0xff] }
 0x156   :  { %v750_v35 = vmax.f32 %v653_v16, %v702_v55  ;;  %v791_v3 = vmax.f32 %v746_v60, %v749_v49  ;;  %v15453_v60 = vpack.c.bf16 %v2501_v13, %v2501_v13  ;;  %v2503_v55 = vld [vmem:[#allocation2 + $0xc3] sm:$0xff]  ;;  %v1826_v13 = vrot.slane %v1778_v43, 4  ;;  %2768 = vst [vmem:[#allocation3 + $0x84] sm:$0xf] %v15270_v38 }
 0x157   :  { %v11467_v52 = vld [vmem:[#allocation3 + $0x384] sm:$0xf0]  ;;  %v1727_v33 = vpop.f32.mrf.mxu0  ;;  %v15448_v16 = vpop.f32.mrf.mxu1  ;;  %2441 = vst [vmem:[#allocation3 + $0x3ec] sm:$0xf] %v2425_v15  ;;  %v2471_v15 = vpack.c.bf16 %v2455_v61, %v2455_v61  ;;  %v1780_v54 = vmax.f32 %v15446_v30, 0.0  ;;  %v1079_v37 = vrot.slane %v1031_v1, 4 }
 0x158   :  { %v792_v49 = vmax.f32 %v747_v2, %v750_v35  ;;  %809 = vst [vmem:[#allocation1 + $0x21] ss:$2 sm:$0xff] %v791_v3  ;;  %v11470_v40 = vor.u32 %v13837_v6, %v11467_v52  ;;  %v15459_v7 = vadd.f32 %v15171_v48, %v1727_v33  ;;  %v1723_v6 = vadd.f32 %v15171_v48, %v15335_v5  ;;  %v13970_v30 = vld [vmem:[%s18447_s3 + $0x108] sm:$0xff] }
 0x159   :  { %10977 = vmatmul.msk.bf16.gmra.mxu0 %vm144_vm0, %v13723_v42  ;;  %v2519_v35 = vpack.c.bf16 %v2503_v55, %v2503_v55  ;;  %v1126_v5 = vmax.f32 %v1029_v26, %v1078_v31  ;;  %11059 = vmatmul.msk.bf16.gmra.mxu1 %vm144_vm0, %v13733_v47  ;;  %2533 = vst [vmem:[#allocation3 + $0x264] sm:$0xf] %v15453_v60  ;;  %v1032_v42 = vmax.f32 %v15421_v20, 0.0  ;;  %v1033_v26 = vmax.f32 %v15426_v62, 0.0  ;;  %v13984_v20 = vld [vmem:[%s18447_s3 + $0x178] sm:$0xff] }
 0x15a   :  { %811 = vst [vmem:[#allocation1 + $0x30] ss:$2 sm:$0xff] %v792_v49  ;;  %6448 = vmatmul.bf16.gmra.mxu3 %v11470_v40  ;;  %v1781_v2 = vmax.f32 %v15459_v7, 0.0  ;;  %v1136_v3 = vmax.f32 %v15372_v27, %v15406_v51  ;;  %v1873_v34 = vmax.f32 %v1777_v59, %v1826_v13  ;;  %v1036_v27 = vmax.f32 %v15468_v22, 0.0  ;;  %6573 = vmatpush.bf16.msra.mxu0 %v13970_v30  ;;  %v2552_v30 = vld [vmem:[#allocation2 + $0xd4] sm:$0xff] }
 0x15b   :  { %2487 = vst [vmem:[#allocation3 + $0x328] sm:$0xf] %v2471_v15  ;;  %v1034_v51 = vmax.f32 %v15463_v25, 0.0  ;;  %v1825_v31 = vrot.slane %v1777_v59, 4  ;;  %v1779_v61 = vmax.f32 %v1723_v6, 0.0  ;;  %v1137_v52 = vmax.f32 %v15383_v24, %v1125_v50  ;;  %6616 = vmatpush.bf16.msrb.mxu1 %v13984_v20  ;;  %v13981_v20 = vld [vmem:[%s18447_s3 + $0x160] sm:$0xff] }
 0x15c   :  { %v1829_v10 = vrot.slane %v1781_v2, 4  ;;  %2535 = vst [vmem:[#allocation3 + $0x32c] sm:$0xf] %v2519_v35  ;;  %v1138_v33 = vmax.f32 %v15385_v39, %v1126_v5  ;;  %v15507_v62 = vadd.f32 %v15171_v48, %v15192_v45  ;;  %v1083_v47 = vrot.slane %v1035_v19, 4 }
 0x15d   :  { %v1080_v59 = vrot.slane %v1032_v42, 4  ;;  %v1082_v40 = vrot.slane %v1034_v51, 4  ;;  %v1828_v13 = vrot.slane %v1780_v54, 4  ;;  %v1084_v39 = vrot.slane %v1036_v27, 4  ;;  %2769 = vst [vmem:[#allocation3 + $0xe8] sm:$0xf] %v15272_v14 }
 0x15e   :  { %v1876_v9 = vmax.f32 %v1780_v54, %v1829_v10  ;;  %v1827_v15 = vrot.slane %v1779_v61, 4  ;;  %v1874_v6 = vmax.f32 %v1825_v31, %v1779_v61  ;;  %v1457_v50 = vrot.slane %v1409_v56, 4  ;;  %6574 = vmatpush.bf16.msra.mxu0 %v13969_v28  ;;  %2770 = vst [vmem:[#allocation3 + $0x14c] sm:$0xf] %v15392_v29  ;;  %v13739_v14 = vld [vmem:[#allocation3 + $0x14] sm:$0xf] }
 0x15f   :  { %v812_v55 = vld.sshfl [vmem:[#allocation1 + $0x20] sm:$0xff pattern:$0x75316420]  ;;  %v1729_v49 = vpop.f32.mrf.mxu0  ;;  %v15509_v25 = vpop.f32.mrf.mxu1  ;;  %v1412_v5 = vmax.f32 %v15507_v62, 0.0  ;;  %v1130_v54 = vmax.f32 %v1034_v51, %v1083_v47  ;;  %v18466_v10 = vmax.f32 %v15376_v46, 0.0  ;;  %v13958_v51 = vld [vmem:[%s18447_s3 + $0xa8] sm:$0xff]  ;;  %v2568_v47 = vpack.c.bf16 %v2552_v30, %v2552_v30 }
 0x160   :  { %1153 = vst [vmem:[#allocation1 + $0x20] ss:$2 sm:$0xff] %v1136_v3  ;;  %v1730_v24 = vadd.f32 %v15171_v48, %v1729_v49  ;;  %v1897_v45 = vmax.f32 %v1873_v34, %v1876_v9  ;;  %v2378_v35 = vpack.c.bf16 %v812_v55, %v812_v55  ;;  %v1081_v3 = vrot.slane %v1033_v26, 4  ;;  %6471 = vmatpush.bf16.msra.mxu2 %v13958_v51  ;;  %v13982_v62 = vld [vmem:[%s18447_s3 + $0x168] sm:$0xff] }
 0x161   :  { %v813_v22 = vld.sshfl [vmem:[#allocation1 + $0x30] sm:$0xff pattern:$0x75316420]  ;;  %1155 = vst [vmem:[#allocation1 + $0x21] ss:$2 sm:$0xff] %v1137_v52  ;;  %v1458_v34 = vrot.slane %v18466_v10, 4  ;;  %v1131_v9 = vmax.f32 %v1082_v40, %v1036_v27  ;;  %v1132_v49 = vmax.f32 %v1035_v19, %v1084_v39  ;;  %v1392_v40 = vpop.f32.mrf.mxu3 }
 0x162   :  { %1157 = vst [vmem:[#allocation1 + $0x30] ss:$2 sm:$0xff] %v1138_v33  ;;  %v1782_v21 = vmax.f32 %v1730_v24, 0.0  ;;  %v1459_v52 = vrot.slane %v1411_v12, 4  ;;  %v1127_v33 = vmax.f32 %v1031_v1, %v1080_v59  ;;  %v13966_v27 = vld [vmem:[%s18447_s3 + $0xe8] sm:$0xff]  ;;  %v1460_v59 = vrot.slane %v1412_v5, 4 }
 0x163   :  { %821 = vst [vmem:[#allocation2 + $0xf0] sm:$0xff] %v812_v55  ;;  %v1128_v55 = vmax.f32 %v1079_v37, %v1033_v26  ;;  %v13724_v19 = vld [vmem:[%s18444_s0 + $0x208] sm:$0xff]  ;;  %v1129_v24 = vmax.f32 %v1032_v42, %v1081_v3  ;;  %6520 = vmatpush.bf16.msra.mxu3 %v13966_v27  ;;  %v15559_v42 = vadd.f32 %v15171_v48, %v15246_v23  ;;  %v18468_v10 = vmax.f32 %v15307_v57, 0.0 }
 0x164   :  { %822 = vst [vmem:[#allocation2 + $0xf8] sm:$0xf] %v813_v22  ;;  %v1830_v31 = vrot.slane %v1782_v21, 4  ;;  %v1877_v61 = vmax.f32 %v1828_v13, %v1782_v21  ;;  %v1875_v13 = vmax.f32 %v1778_v43, %v1827_v15  ;;  %v1172_v37 = vmax.f32 %v1127_v33, %v1130_v54  ;;  %v13965_v43 = vld [vmem:[%s18447_s3 + $0xe0] sm:$0xff]  ;;  %6472 = vmatpush.bf16.msra.mxu2 %v13957_v11 }
 0x165   :  { %1909 = vst [vmem:[#allocation1] ss:$2 sm:$0xff] %v1897_v45  ;;  %v15563_v26 = vadd.f32 %v15171_v48, %v15278_v8  ;;  %v1173_v39 = vmax.f32 %v1128_v55, %v1131_v9  ;;  %v13734_v45 = vld [vmem:[%s18444_s0 + $0x228] sm:$0xff]  ;;  %v15570_v15 = vadd.f32 %v15171_v48, %v15340_v18  ;;  %v1174_v23 = vmax.f32 %v1129_v24, %v1132_v49  ;;  %v13983_v8 = vld [vmem:[%s18447_s3 + $0x170] sm:$0xff] }
 0x166   :  { %v1878_v41 = vmax.f32 %v1781_v2, %v1830_v31  ;;  %v1898_v1 = vmax.f32 %v1874_v6, %v1877_v61  ;;  %2394 = vst [vmem:[#allocation3 + $0x44c] sm:$0xf] %v2378_v35  ;;  %v15574_v6 = vadd.f32 %v15171_v48, %v15489_v4  ;;  %v15581_v35 = vadd.f32 %v15171_v48, %v15404_v0  ;;  %v13964_v0 = vld [vmem:[%s18447_s3 + $0xd8] sm:$0xff] }
 0x167   :  { %v15550_v7 = vpop.f32.mrf.mxu0  ;;  %v15552_v2 = vpop.f32.mrf.mxu1  ;;  %2584 = vst [vmem:[#allocation3 + $0x394] sm:$0xf] %v2568_v47  ;;  %v15584_v28 = vadd.f32 %v15171_v48, %v1392_v40  ;;  %v18467_v4 = vmax.f32 %v15282_v63, 0.0  ;;  %v1504_v54 = vmax.f32 %v15325_v17, %v1409_v56  ;;  %v1505_v9 = vmax.f32 %v18468_v10, %v1457_v50  ;;  %6521 = vmatpush.bf16.msra.mxu3 %v13965_v43  ;;  %v13956_v48 = vld [vmem:[%s18447_s3 + $0x98] sm:$0xff]  ;;  %v11565_v50 = vld [vmem:[#allocation3 + $0x3e8] sm:$0xf] }
 0x168   :  { %v1158_v22 = vld.sshfl [vmem:[#allocation1 + $0x20] sm:$0xff pattern:$0x75316420]  ;;  %1911 = vst [vmem:[#allocation1 + $0x1] ss:$2 sm:$0xff] %v1898_v1  ;;  %v1899_v18 = vmax.f32 %v1875_v13, %v1878_v41  ;;  %v1507_v17 = vmax.f32 %v1458_v34, %v1412_v5  ;;  %v1413_v57 = vmax.f32 %v15559_v42, 0.0  ;;  %v1508_v31 = vmax.f32 %v1411_v12, %v1460_v59  ;;  %6617 = vmatpush.bf16.msrb.mxu1 %v13983_v8 }
 0x169   :  { %v1159_v21 = vld.sshfl [vmem:[#allocation1 + $0x30] sm:$0xff pattern:$0x75316420]  ;;  %1189 = vst [vmem:[#allocation1 + $0x20] ss:$2 sm:$0xff] %v1172_v37  ;;  %10978 = vmatmul.msk.bf16.gmra.mxu0 %vm144_vm0, %v13724_v19  ;;  %v1503_v3 = vmax.f32 %v18467_v4, %v15357_v36  ;;  %v18469_v36 = vmax.f32 %v15376_v46, 0.0  ;;  %11060 = vmatmul.msk.bf16.gmra.mxu1 %vm144_vm0, %v13734_v45  ;;  %v2379_v5 = vpack.c.bf16 %v1158_v22, %v1158_v22 }
 0x16a   :  { %1191 = vst [vmem:[#allocation1 + $0x21] ss:$2 sm:$0xff] %v1173_v39  ;;  %v1414_v56 = vmax.f32 %v15563_v26, 0.0  ;;  %v1417_v61 = vmax.f32 %v15574_v6, 0.0  ;;  %v1415_v34 = vmax.f32 %v15570_v15, 0.0  ;;  %v1418_v33 = vmax.f32 %v15584_v28, 0.0  ;;  %6473 = vmatpush.bf16.msra.mxu2 %v13956_v48 }
 0x16b   :  { %1193 = vst [vmem:[#allocation1 + $0x30] ss:$2 sm:$0xff] %v1174_v23  ;;  %v2410_v63 = vld [vmem:[#allocation2 + $0xf1] sm:$0xff]  ;;  %v1506_v53 = vmax.f32 %v18469_v36, %v1459_v52  ;;  %v1416_v52 = vmax.f32 %v15581_v35, 0.0  ;;  %v13955_v12 = vld [vmem:[%s18447_s3 + $0x90] sm:$0xff]  ;;  %6522 = vmatpush.bf16.msra.mxu3 %v13964_v0  ;;  %v1461_v40 = vrot.slane %v1413_v57, 4  ;;  %v1519_v41 = vmax.f32 %v1504_v54, %v1507_v17 }
 0x16c   :  { %1167 = vst [vmem:[#allocation2 + $0x100] sm:$0xff] %v1158_v22  ;;  %v2426_v46 = vpack.c.bf16 %v2410_v63, %v2410_v63  ;;  %v13963_v47 = vld [vmem:[%s18447_s3 + $0xd0] sm:$0xff]  ;;  %v1462_v13 = vrot.slane %v1414_v56, 4  ;;  %v1465_v1 = vrot.slane %v1417_v61, 4  ;;  %6618 = vmatpush.bf16.msrb.mxu1 %v13982_v62  ;;  %v1520_v59 = vmax.f32 %v1505_v9, %v1508_v31  ;;  %v13751_v42 = vld [vmem:[#allocation3 + $0x70] sm:$0xf0] }
 0x16d   :  { %1168 = vst [vmem:[#allocation2 + $0x108] sm:$0xf] %v1159_v21  ;;  %v13874_v30 = vld [vmem:[#allocation3 + $0x448] sm:$0xf0]  ;;  %v1518_v55 = vmax.f32 %v1503_v3, %v1506_v53  ;;  %v1464_v24 = vrot.slane %v1416_v52, 4  ;;  %v1463_v11 = vrot.slane %v1415_v34, 4  ;;  %v1510_v21 = vmax.f32 %v1461_v40, %v1415_v34 }
 0x16e   :  { %1913 = vst [vmem:[#allocation1 + $0x10] ss:$2 sm:$0xff] %v1899_v18  ;;  %v11566_v58 = vor.u32 %v13874_v30, %v11565_v50  ;;  %v1466_v43 = vrot.slane %v1418_v33, 4  ;;  %6474 = vmatpush.bf16.msra.mxu2 %v13955_v12  ;;  %v1509_v22 = vmax.f32 %v1413_v57, %v1462_v13  ;;  %v1512_v45 = vmax.f32 %v1416_v52, %v1465_v1  ;;  %v13980_v23 = vld [vmem:[%s18447_s3 + $0x158] sm:$0xff]  ;;  %v13862_v35 = vld [vmem:[#allocation3 + $0x3ec] sm:$0xf] }
 0x16f   :  { %v1914_v49 = vld.sshfl [vmem:[#allocation1] sm:$0xff pattern:$0x75316420]  ;;  %v15620_v51 = vpop.f32.mrf.mxu0  ;;  %v15622_v27 = vpop.f32.mrf.mxu1  ;;  %2442 = vst [vmem:[#allocation3 + $0x450] sm:$0xf] %v2426_v46  ;;  %6523 = vmatpush.bf16.msra.mxu3 %v13963_v47  ;;  %v1513_v8 = vmax.f32 %v1464_v24, %v1418_v33  ;;  %v1511_v18 = vmax.f32 %v1414_v56, %v1463_v11  ;;  %v13735_v48 = vld [vmem:[%s18444_s0 + $0x230] sm:$0xff] }
 0x170   :  { %1929 = vst [vmem:[#allocation2 + $0x80] sm:$0xff] %v1914_v49  ;;  %6404 = vmatmul.bf16.gmra.mxu2 %v11566_v58  ;;  %6619 = vmatpush.bf16.msrb.mxu1 %v13981_v20  ;;  %v1514_v4 = vmax.f32 %v1417_v61, %v1466_v43  ;;  %v11081_v9 = vld [vmem:[#allocation3 + $0x10] sm:$0xf]  ;;  %v1554_v63 = vmax.f32 %v1509_v22, %v1512_v45  ;;  %v13979_v17 = vld [vmem:[%s18447_s3 + $0x150] sm:$0xff]  ;;  %v15647_v46 = vld [vmem:[%s18446_s2] ss:$0 sm:$0xff] }
 0x171   :  { %v1194_v19 = vld.sshfl [vmem:[#allocation1 + $0x20] sm:$0xff pattern:$0x75316420]  ;;  %2395 = vst [vmem:[#allocation3 + $0x4b0] sm:$0xf] %v2379_v5  ;;  %v11082_v0 = vor.u32 %v13751_v42, %v11081_v9  ;;  %v1555_v36 = vmax.f32 %v1510_v21, %v1513_v8  ;;  %v2553_v50 = vld [vmem:[#allocation2 + $0xe4] sm:$0xff]  ;;  %v15651_v62 = vadd.f32 %v15647_v46, %v15620_v51  ;;  %v1733_v22 = vadd.f32 %v15647_v46, %v15550_v7 }
 0x172   :  { %v1195_v37 = vld.sshfl [vmem:[#allocation1 + $0x30] sm:$0xff pattern:$0x75316420]  ;;  %1535 = vst [vmem:[#allocation1 + $0x20] ss:$2 sm:$0xff] %v1518_v55  ;;  %v2380_v26 = vpack.c.bf16 %v1194_v19, %v1194_v19  ;;  %v1556_v57 = vmax.f32 %v1511_v18, %v1514_v4  ;;  %v2599_v31 = vld [vmem:[#allocation2 + $0xd0] sm:$0xff]  ;;  %v2569_v52 = vpack.c.bf16 %v2553_v50, %v2553_v50 }
 0x173   :  { %1537 = vst [vmem:[#allocation1 + $0x21] ss:$2 sm:$0xff] %v1519_v41  ;;  %v13978_v34 = vld [vmem:[%s18447_s3 + $0x148] sm:$0xff]  ;;  %v2615_v47 = vpack.c.bf16 %v2599_v31, %v2599_v31  ;;  %v2456_v13 = vld [vmem:[#allocation2 + $0xd2] sm:$0xff]  ;;  %v1784_v41 = vmax.f32 %v15651_v62, 0.0  ;;  %v1783_v31 = vmax.f32 %v1733_v22, 0.0 }
 0x174   :  { %1539 = vst [vmem:[#allocation1 + $0x30] ss:$2 sm:$0xff] %v1520_v59  ;;  %v2411_v39 = vld [vmem:[#allocation2 + $0x101] sm:$0xff]  ;;  %6620 = vmatpush.bf16.msrb.mxu1 %v13980_v23  ;;  %v13977_v1 = vld [vmem:[%s18447_s3 + $0x140] sm:$0xff]  ;;  %v2472_v42 = vpack.c.bf16 %v2456_v13, %v2456_v13  ;;  %v2601_v21 = vld [vmem:[#allocation2 + $0xf0] sm:$0xff] }
 0x175   :  { %1203 = vst [vmem:[#allocation2 + $0x110] sm:$0xff] %v1194_v19  ;;  %v1915_v15 = vld.sshfl [vmem:[#allocation1 + $0x10] sm:$0xff pattern:$0x75316420]  ;;  %v2427_v6 = vpack.c.bf16 %v2411_v39, %v2411_v39  ;;  %v13954_v51 = vld [vmem:[%s18447_s3 + $0x88] sm:$0xff]  ;;  %v1832_v45 = vrot.slane %v1784_v41, 4 }
 0x176   :  { %1204 = vst [vmem:[#allocation2 + $0x118] sm:$0xf] %v1195_v37  ;;  %v11567_v28 = vld [vmem:[#allocation3 + $0x44c] sm:$0xf0]  ;;  %v2600_v40 = vld [vmem:[#allocation2 + $0xe0] sm:$0xff]  ;;  %6475 = vmatpush.bf16.msra.mxu2 %v13954_v51 }
 0x177   :  { %1930 = vst [vmem:[#allocation2 + $0x88] sm:$0xf] %v1915_v15  ;;  %v11570_v3 = vor.u32 %v13862_v35, %v11567_v28  ;;  %v15633_v54 = vpop.f32.mrf.mxu0  ;;  %v15635_v10 = vpop.f32.mrf.mxu1  ;;  %v2616_v24 = vpack.c.bf16 %v2600_v40, %v2600_v40  ;;  %v2504_v37 = vld [vmem:[#allocation2 + $0xd3] sm:$0xff]  ;;  %v13776_v43 = vld [vmem:[#allocation3 + $0x138] sm:$0xf0]  ;;  %v2457_v39 = vld [vmem:[#allocation2 + $0xe2] sm:$0xff] }
 0x178   :  { %2396 = vst [vmem:[#allocation3 + $0x514] sm:$0xf] %v2380_v26  ;;  %6621 = vmatpush.bf16.msrb.mxu1 %v13979_v17  ;;  %v11665_v12 = vld [vmem:[#allocation3 + $0x4b0] sm:$0xf]  ;;  %v11181_v26 = vld [vmem:[#allocation3 + $0xd8] sm:$0xf]  ;;  %v15674_v23 = vpack.c.bf16 %v2504_v37, %v2504_v37  ;;  %v15678_v35 = vadd.f32 %v15647_v46, %v15633_v54  ;;  %v2473_v50 = vpack.c.bf16 %v2457_v39, %v2457_v39 }
 0x179   :  { %6453 = vmatmul.bf16.gmra.mxu3 %v11570_v3  ;;  %2443 = vst [vmem:[#allocation3 + $0x4b4] sm:$0xf] %v2427_v6  ;;  %6575 = vmatmul.bf16.vlgmr.msra.gmra.mxu0 %v11082_v0  ;;  %v15672_v15 = vld [vmem:[%s18448_s4] ss:$0 sm:$0xff]  ;;  %v2505_v8 = vld [vmem:[#allocation2 + $0xe3] sm:$0xff]  ;;  %v11182_v4 = vor.u32 %v13776_v43, %v11181_v26 }
 0x17a   :  { %v1540_v53 = vld.sshfl [vmem:[#allocation1 + $0x20] sm:$0xff pattern:$0x75316420]  ;;  %11061 = vmatmul.msk.bf16.gmra.mxu1 %vm144_vm0, %v13735_v48  ;;  %2585 = vst [vmem:[#allocation3 + $0x3f8] sm:$0xf] %v2569_v52  ;;  %v15707_v52 = vadd.f32 %v15647_v46, %v15622_v27  ;;  %v2602_v22 = vld [vmem:[#allocation2 + $0x100] sm:$0xff] }
 0x17b   :  { %v1541_v56 = vld.sshfl [vmem:[#allocation1 + $0x30] sm:$0xff pattern:$0x75316420]  ;;  %1571 = vst [vmem:[#allocation1 + $0x20] ss:$2 sm:$0xff] %v1554_v63  ;;  %v2381_v30 = vpack.c.bf16 %v1540_v53, %v1540_v53  ;;  %v2554_v54 = vld [vmem:[#allocation2 + $0xf4] sm:$0xff] }
 0x17c   :  { %1573 = vst [vmem:[#allocation1 + $0x21] ss:$2 sm:$0xff] %v1555_v36  ;;  %6622 = vmatpush.bf16.msrb.mxu1 %v13978_v34  ;;  %v13736_v36 = vld [vmem:[%s18444_s0 + $0x238] sm:$0xff]  ;;  %v15703_v34 = vadd.f32 %v15647_v46, %v15509_v25  ;;  %v13961_v27 = vld [vmem:[%s18447_s3 + $0xc0] sm:$0xff] }
 0x17d   :  { %1575 = vst [vmem:[#allocation1 + $0x30] ss:$2 sm:$0xff] %v1556_v57  ;;  %v2412_v61 = vld [vmem:[#allocation2 + $0x111] sm:$0xff]  ;;  %v15691_v57 = vadd.f32 %v15647_v46, %v15448_v16 }
 0x17e   :  { %1549 = vst [vmem:[#allocation2 + $0x120] sm:$0xff] %v1540_v53  ;;  %v2428_v5 = vpack.c.bf16 %v2412_v61, %v2412_v61  ;;  %v2617_v53 = vpack.c.bf16 %v2601_v21, %v2601_v21  ;;  %v2458_v17 = vld [vmem:[#allocation2 + $0xf2] sm:$0xff]  ;;  %v2618_v21 = vpack.c.bf16 %v2602_v22, %v2602_v22 }
 0x17f   :  { %1550 = vst [vmem:[#allocation2 + $0x128] sm:$0xf] %v1541_v56  ;;  %v1739_v33 = vpop.f32.mrf.mxu0  ;;  %v15656_v58 = vpop.f32.mrf.mxu1  ;;  %v13899_v49 = vld [vmem:[#allocation3 + $0x510] sm:$0xf0]  ;;  %v2570_v56 = vpack.c.bf16 %v2554_v54, %v2554_v54  ;;  %v2474_v16 = vpack.c.bf16 %v2458_v17, %v2458_v17  ;;  %v2159_v13 = vmax.f32 %v15691_v57, 0.0  ;;  %v2160_v17 = vmax.f32 %v15703_v34, 0.0 }
 0x180   :  { %v11666_v55 = vor.u32 %v13899_v49, %v11665_v12  ;;  %2444 = vst [vmem:[#allocation3 + $0x518] sm:$0xf] %v2428_v5  ;;  %6623 = vmatpush.bf16.msrb.mxu1 %v13977_v1  ;;  %v13887_v28 = vld [vmem:[#allocation3 + $0x4b4] sm:$0xf]  ;;  %v1740_v9 = vadd.f32 %v15647_v46, %v1739_v33  ;;  %v13953_v5 = vld [vmem:[%s18447_s3 + $0x80] sm:$0xff]  ;;  %v1785_v33 = vmax.f32 %v15678_v35, 0.0  ;;  %v15710_v49 = vpack.c.bf16 %v2505_v8, %v2505_v8 }
 0x181   :  { %2397 = vst [vmem:[#allocation3 + $0x578] sm:$0xf] %v2381_v30  ;;  %v13962_v30 = vld [vmem:[%s18447_s3 + $0xc8] sm:$0xff]  ;;  %v2105_v1 = vadd.f32 %v15647_v46, %v15552_v2  ;;  %6476 = vmatpush.bf16.msra.mxu2 %v13953_v5  ;;  %v2506_v43 = vld [vmem:[#allocation2 + $0xf3] sm:$0xff]  ;;  %v2162_v2 = vmax.f32 %v15707_v52, 0.0 }
 0x182   :  { %6409 = vmatmul.bf16.gmra.mxu2 %v11666_v55  ;;  %v6380_v59 = vpop.f32.mrf.mxu2  ;;  %2631 = vst [vmem:[#allocation3 + $0x334] sm:$0xf] %v2615_v47  ;;  %v1879_v47 = vmax.f32 %v1783_v31, %v1832_v45  ;;  %v1786_v55 = vmax.f32 %v1740_v9, 0.0  ;;  %6524 = vmatpush.bf16.msra.mxu3 %v13962_v30  ;;  %v1833_v45 = vrot.slane %v1785_v33, 4  ;;  %v13801_v54 = vld [vmem:[#allocation3 + $0x200] sm:$0xf0] }
 0x183   :  { %v1576_v19 = vld.sshfl [vmem:[#allocation1 + $0x20] sm:$0xff pattern:$0x75316420]  ;;  %2632 = vst [vmem:[#allocation3 + $0x398] sm:$0xf] %v2616_v24  ;;  %v6381_v40 = vadd.f32 %v15672_v15, %v6380_v59 }
 0x184   :  { %v1577_v11 = vld.sshfl [vmem:[#allocation1 + $0x30] sm:$0xff pattern:$0x75316420]  ;;  %1585 = vst [vmem:[#allocation2 + $0x130] sm:$0xff] %v1576_v19  ;;  %v2382_v20 = vpack.c.bf16 %v1576_v19, %v1576_v19  ;;  %v15724_v19 = vadd.f32 %v15647_v46, %v15656_v58  ;;  %v15733_v58 = vadd.f32 %v15647_v46, %v15635_v10  ;;  %v1834_v8 = vrot.slane %v1786_v55, 4  ;;  %v2783_v22 = vld [vmem:[#allocation2 + $0x14] sm:$0xff] }
 0x185   :  { %1586 = vst [vmem:[#allocation2 + $0x138] sm:$0xf] %v1577_v11  ;;  %v2799_v29 = vpack.c.bf16 %v2783_v22, %v2783_v22 }
 0x186   :  { %2398 = vst [vmem:[#allocation3 + $0x5dc] sm:$0xf] %v2382_v20  ;;  %v2413_v6 = vld [vmem:[#allocation2 + $0x121] sm:$0xff]  ;;  %v1831_v20 = vrot.slane %v1783_v31, 4  ;;  %6525 = vmatpush.bf16.msra.mxu3 %v13961_v27  ;;  %v2164_v9 = vmax.f32 %v15724_v19, 0.0  ;;  %v2163_v31 = vmax.f32 %v15733_v58, 0.0 }
 0x187   :  { %v11667_v7 = vld [vmem:[#allocation3 + $0x514] sm:$0xf0]  ;;  %v1742_v18 = vpop.f32.mrf.mxu0  ;;  %v2429_v3 = vpack.c.bf16 %v2413_v6, %v2413_v6  ;;  %v15684_v63 = vpop.f32.mrf.mxu1  ;;  %2488 = vst [vmem:[#allocation3 + $0x38c] sm:$0xf] %v2472_v42  ;;  %v2208_v27 = vrot.slane %v2160_v17, 4 }
 0x188   :  { %v11670_v48 = vor.u32 %v13887_v28, %v11667_v7  ;;  %v15682_v0 = vadd.f32 %v15647_v46, %v1742_v18  ;;  %2536 = vst [vmem:[#allocation3 + $0x390] sm:$0xf] %v15674_v23  ;;  %v11765_v12 = vld [vmem:[#allocation3 + $0x578] sm:$0xf]  ;;  %v2555_v18 = vld [vmem:[#allocation2 + $0x104] sm:$0xff] }
 0x189   :  { %2445 = vst [vmem:[#allocation3 + $0x57c] sm:$0xf] %v2429_v3  ;;  %6580 = vmatmul.bf16.gmra.mxu0 %v11182_v4  ;;  %v15738_v4 = vpack.c.bf16 %v2506_v43, %v2506_v43  ;;  %v2161_v3 = vmax.f32 %v2105_v1, 0.0  ;;  %v2571_v10 = vpack.c.bf16 %v2555_v18, %v2555_v18  ;;  %v13750_v18 = vld [vmem:[#allocation3 + $0x68] sm:$0xf0] }
 0x18a   :  { %6458 = vmatmul.bf16.gmra.mxu3 %v11670_v48  ;;  %v1787_v61 = vmax.f32 %v15682_v0, 0.0  ;;  %2586 = vst [vmem:[#allocation3 + $0x45c] sm:$0xf] %v2570_v56  ;;  %11062 = vmatmul.msk.bf16.gmra.mxu1 %vm144_vm0, %v13736_v36  ;;  %v15726_v59 = vpop.f32.mrf.mxu2  ;;  %v1880_v48 = vmax.f32 %v1831_v20, %v1785_v33  ;;  %v2210_v56 = vrot.slane %v2162_v2, 4  ;;  %v2211_v0 = vrot.slane %v2163_v31, 4 }
 0x18b   :  { %2633 = vst [vmem:[#allocation3 + $0x3fc] sm:$0xf] %v2617_v53  ;;  %v6429_v24 = vpop.f32.mrf.mxu3  ;;  %v2207_v53 = vrot.slane %v2159_v13, 4  ;;  %v2209_v33 = vrot.slane %v2161_v3, 4 }
 0x18c   :  { %v1835_v51 = vrot.slane %v1787_v61, 4  ;;  %v2414_v25 = vld [vmem:[#allocation2 + $0x131] sm:$0xff]  ;;  %2489 = vst [vmem:[#allocation3 + $0x3f0] sm:$0xf] %v2473_v50  ;;  %v15728_v26 = vadd.f32 %v6429_v24, %v6381_v40  ;;  %v1881_v50 = vmax.f32 %v1784_v41, %v1833_v45  ;;  %v2598_v40 = vld [vmem:[#allocation2 + $0x80] sm:$0xff] }
 0x18d   :  { %v13924_v37 = vld [vmem:[#allocation3 + $0x5d8] sm:$0xf0]  ;;  %v2430_v11 = vpack.c.bf16 %v2414_v25, %v2414_v25  ;;  %2490 = vst [vmem:[#allocation3 + $0x454] sm:$0xf] %v2474_v16  ;;  %v11281_v16 = vld [vmem:[#allocation3 + $0x1a0] sm:$0xf]  ;;  %v2256_v1 = vmax.f32 %v2207_v53, %v2161_v3  ;;  %v2614_v38 = vpack.c.bf16 %v2598_v40, %v2598_v40  ;;  %v2257_v58 = vmax.f32 %v2160_v17, %v2209_v33 }
 0x18e   :  { %v1882_v42 = vmax.f32 %v1786_v55, %v1835_v51  ;;  %v11766_v39 = vor.u32 %v13924_v37, %v11765_v12  ;;  %2537 = vst [vmem:[#allocation3 + $0x3f4] sm:$0xf] %v15710_v49  ;;  %v2212_v12 = vrot.slane %v2164_v9, 4  ;;  %v11282_v41 = vor.u32 %v13801_v54, %v11281_v16  ;;  %v2603_v25 = vld [vmem:[#allocation2 + $0x110] sm:$0xff]  ;;  %v2784_v53 = vld [vmem:[#allocation2 + $0x24] sm:$0xff] }
 0x18f   :  { %v1744_v6 = vpop.f32.mrf.mxu0  ;;  %2446 = vst [vmem:[#allocation3 + $0x5e0] sm:$0xf] %v2430_v11  ;;  %v15736_v7 = vpop.f32.mrf.mxu1  ;;  %v11083_v11 = vld [vmem:[#allocation3 + $0x74] sm:$0xf0]  ;;  %v13992_v16 = vld [vmem:[%s18447_s3 + $0x1b8] sm:$0xff] }
 0x190   :  { %v1933_v35 = vmax.f32 %v1879_v47, %v1882_v42  ;;  %v1745_v28 = vadd.f32 %v15647_v46, %v1744_v6  ;;  %2634 = vst [vmem:[#allocation3 + $0x460] sm:$0xf] %v2618_v21  ;;  %v13912_v47 = vld [vmem:[#allocation3 + $0x57c] sm:$0xf]  ;;  %v2556_v42 = vld [vmem:[#allocation2 + $0x114] sm:$0xff]  ;;  %v2260_v6 = vmax.f32 %v2163_v31, %v2212_v12  ;;  %v11086_v21 = vor.u32 %v13739_v14, %v11083_v11 }
 0x191   :  { %2587 = vst [vmem:[#allocation3 + $0x4c0] sm:$0xf] %v2571_v10  ;;  %v2572_v45 = vpack.c.bf16 %v2556_v42, %v2556_v42  ;;  %v15772_v52 = vadd.f32 %v15647_v46, %v15736_v7  ;;  %v2639_v31 = vld [vmem:[#allocation2 + $0x11] sm:$0xff]  ;;  %v2640_v7 = vld [vmem:[#allocation2 + $0x21] sm:$0xff]  ;;  %v2800_v12 = vpack.c.bf16 %v2784_v53, %v2784_v53  ;;  %v13826_v40 = vld [vmem:[#allocation3 + $0x2c8] sm:$0xf0]  ;;  %6665 = vmatpush.bf16.msrb.mxu2 %v13992_v16 }
 0x192   :  { %1945 = vst [vmem:[#allocation1] ss:$2 sm:$0xff] %v1933_v35  ;;  %v1788_v36 = vmax.f32 %v1745_v28, 0.0  ;;  %6414 = vmatmul.bf16.gmra.mxu2 %v11766_v39  ;;  %v2619_v39 = vpack.c.bf16 %v2603_v25, %v2603_v25  ;;  %v2258_v35 = vmax.f32 %v2162_v2, %v2211_v0  ;;  %v2281_v3 = vmax.f32 %v2257_v58, %v2260_v6  ;;  %v14000_v33 = vld [vmem:[%s18447_s3 + $0x1f8] sm:$0xff]  ;;  %v11381_v11 = vld [vmem:[#allocation3 + $0x268] sm:$0xf] }
 0x193   :  { %2538 = vst [vmem:[#allocation3 + $0x458] sm:$0xf] %v15738_v4  ;;  %v15754_v51 = vpop.f32.mrf.mxu3  ;;  %6714 = vmatpush.bf16.msrb.mxu3 %v14000_v33  ;;  %v2656_v25 = vpack.c.bf16 %v2640_v7, %v2640_v7  ;;  %v2558_v22 = vld [vmem:[#allocation2 + $0x134] sm:$0xff]  ;;  %v11173_v33 = vld [vmem:[#allocation3 + $0xd0] sm:$0xf] }
 0x194   :  { %v1836_v30 = vrot.slane %v1788_v36, 4  ;;  %v1883_v5 = vmax.f32 %v1834_v8, %v1788_v36  ;;  %2630 = vst [vmem:[#allocation3 + $0x2d0] sm:$0xf] %v2614_v38  ;;  %v2255_v8 = vmax.f32 %v2159_v13, %v2208_v27  ;;  %v2604_v36 = vld [vmem:[#allocation2 + $0x120] sm:$0xff]  ;;  %v2115_v27 = vadd.f32 %v15647_v46, %v15684_v63  ;;  %v13764_v63 = vld [vmem:[#allocation3 + $0xdc] sm:$0xf] }
 0x195   :  { %2588 = vst [vmem:[#allocation3 + $0x524] sm:$0xf] %v2572_v45  ;;  %v2688_v38 = vld [vmem:[#allocation2 + $0x22] sm:$0xff] }
 0x196   :  { %v1884_v34 = vmax.f32 %v1787_v61, %v1836_v30  ;;  %v1934_v55 = vmax.f32 %v1880_v48, %v1883_v5  ;;  %v11767_v62 = vld [vmem:[#allocation3 + $0x5dc] sm:$0xf0]  ;;  %v6385_v37 = vpop.f32.mrf.mxu2  ;;  %v2259_v61 = vmax.f32 %v2210_v56, %v2164_v9  ;;  %2635 = vst [vmem:[#allocation3 + $0x4c4] sm:$0xf] %v2619_v39  ;;  %v11073_v9 = vld [vmem:[#allocation3 + $0x8] sm:$0xf]  ;;  %v2279_v57 = vmax.f32 %v2255_v8, %v2258_v35 }
 0x197   :  { %v11770_v19 = vor.u32 %v13912_v47, %v11767_v62  ;;  %v15757_v24 = vpop.f32.mrf.mxu0  ;;  %v15760_v20 = vpop.f32.mrf.mxu1  ;;  %2771 = vst [vmem:[#allocation3 + $0x1b0] sm:$0xf] %v15396_v32  ;;  %v6386_v13 = vadd.f32 %v15672_v15, %v6385_v37  ;;  %v11074_v54 = vor.u32 %v13750_v18, %v11073_v9  ;;  %v2557_v32 = vld [vmem:[#allocation2 + $0x124] sm:$0xff]  ;;  %v2620_v5 = vpack.c.bf16 %v2604_v36, %v2604_v36  ;;  %v13738_v62 = vld [vmem:[#allocation3 + $0xc] sm:$0xf]  ;;  %v2785_v8 = vld [vmem:[#allocation2 + $0x34] sm:$0xff] }
 0x198   :  { %v1935_v43 = vmax.f32 %v1881_v50, %v1884_v34  ;;  %1947 = vst [vmem:[#allocation1 + $0x1] ss:$2 sm:$0xff] %v1934_v55  ;;  %v2280_v28 = vmax.f32 %v2256_v1, %v2259_v61  ;;  %v2573_v50 = vpack.c.bf16 %v2557_v32, %v2557_v32  ;;  %v2166_v47 = vmax.f32 %v15772_v52, 0.0  ;;  %v14008_v34 = vld [vmem:[%s18447_s3 + $0x238] sm:$0xff]  ;;  %v11183_v1 = vld [vmem:[#allocation3 + $0x13c] sm:$0xf0] }
 0x199   :  { %6585 = vmatmul.bf16.gmra.mxu0 %v11282_v41  ;;  %2772 = vst [vmem:[#allocation3 + $0x214] sm:$0xf] %v15453_v60  ;;  %v2655_v55 = vpack.c.bf16 %v2639_v31, %v2639_v31  ;;  %v11075_v41 = vld [vmem:[#allocation3 + $0x6c] sm:$0xf0]  ;;  %v15797_v61 = vadd.f32 %v15647_v46, %v15760_v20  ;;  %v11382_v39 = vor.u32 %v13826_v40, %v11381_v11  ;;  %v2165_v20 = vmax.f32 %v2115_v27, 0.0  ;;  %v2786_v18 = vld [vmem:[#allocation2 + $0x44] sm:$0xff] }
 0x19a   :  { %1949 = vst [vmem:[#allocation1 + $0x10] ss:$2 sm:$0xff] %v1935_v43  ;;  %6463 = vmatmul.bf16.gmra.mxu3 %v11770_v19  ;;  %6624 = vmatmul.bf16.vlgmr.msrb.gmra.mxu1 %v11086_v21  ;;  %v2687_v19 = vld [vmem:[#allocation2 + $0x12] sm:$0xff]  ;;  %v2214_v0 = vrot.slane %v2166_v47, 4  ;;  %v11078_v43 = vor.u32 %v13738_v62, %v11075_v41  ;;  %v2574_v21 = vpack.c.bf16 %v2558_v22, %v2558_v22  ;;  %v13998_v52 = vld [vmem:[%s18447_s3 + $0x1e8] sm:$0xff] }
 0x19b   :  { %2815 = vst [vmem:[#allocation3 + $0x24] sm:$0xf] %v2799_v29  ;;  %6763 = vmatpush.bf16.msrb.mxu0 %v14008_v34  ;;  %v2703_v29 = vpack.c.bf16 %v2687_v19, %v2687_v19  ;;  %v11186_v35 = vor.u32 %v13764_v63, %v11183_v1  ;;  %v2689_v31 = vld [vmem:[#allocation2 + $0x32] sm:$0xff] }
 0x19c   :  { %2589 = vst [vmem:[#allocation3 + $0x588] sm:$0xf] %v2573_v50  ;;  %v11175_v19 = vld [vmem:[#allocation3 + $0x134] sm:$0xf0]  ;;  %v15820_v11 = vpack.c.bf16 %v2689_v31, %v2689_v31  ;;  %v13851_v63 = vld [vmem:[#allocation3 + $0x390] sm:$0xf0] }
 0x19d   :  { %2636 = vst [vmem:[#allocation3 + $0x528] sm:$0xf] %v2620_v5  ;;  %v2213_v5 = vrot.slane %v2165_v20, 4  ;;  %v2787_v22 = vld [vmem:[#allocation2 + $0x54] sm:$0xff]  ;;  %v2644_v31 = vld [vmem:[#allocation2 + $0x61] sm:$0xff] }
 0x19e   :  { %v15775_v56 = vpop.f32.mrf.mxu2  ;;  %2816 = vst [vmem:[#allocation3 + $0x88] sm:$0xf] %v2800_v12  ;;  %v2690_v12 = vld [vmem:[#allocation2 + $0x42] sm:$0xff] }
 0x19f   :  { %v1950_v10 = vld.sshfl [vmem:[#allocation1] sm:$0xff pattern:$0x75316420]  ;;  %v15768_v48 = vpop.f32.mrf.mxu0  ;;  %v2121_v2 = vpop.f32.mrf.mxu1  ;;  %2671 = vst [vmem:[#allocation3 + $0x18] sm:$0xf] %v2655_v55 }
 0x1a0   :  { %2293 = vst [vmem:[#allocation1 + $0x1] ss:$2 sm:$0xff] %v2280_v28  ;;  %v6434_v60 = vpop.f32.mrf.mxu3  ;;  %v2122_v45 = vadd.f32 %v15647_v46, %v2121_v2  ;;  %v15805_v28 = vpack.c.bf16 %v2688_v38, %v2688_v38  ;;  %v2801_v2 = vpack.c.bf16 %v2785_v8, %v2785_v8  ;;  %v15817_v55 = vadd.f32 %v15647_v46, %v15768_v48  ;;  %v13991_v48 = vld [vmem:[%s18447_s3 + $0x1b0] sm:$0xff] }
 0x1a1   :  { %v1951_v17 = vld.sshfl [vmem:[#allocation1 + $0x10] sm:$0xff pattern:$0x75316420]  ;;  %1965 = vst [vmem:[#allocation2 + $0x90] sm:$0xff] %v1950_v10  ;;  %v15777_v30 = vadd.f32 %v6434_v60, %v6386_v13  ;;  %v13775_v13 = vld [vmem:[#allocation3 + $0x130] sm:$0xf0]  ;;  %6666 = vmatpush.bf16.msrb.mxu2 %v13991_v48 }
 0x1a2   :  { %2295 = vst [vmem:[#allocation1 + $0x10] ss:$2 sm:$0xff] %v2281_v3  ;;  %6477 = vmatmul.bf16.vlgmr.msra.gmra.mxu2 %v11074_v54  ;;  %v2641_v3 = vld [vmem:[#allocation2 + $0x31] sm:$0xff]  ;;  %v2261_v54 = vmax.f32 %v2165_v20, %v2214_v0  ;;  %v2168_v32 = vmax.f32 %v2122_v45, 0.0  ;;  %v2642_v60 = vld [vmem:[#allocation2 + $0x41] sm:$0xff]  ;;  %v11174_v41 = vor.u32 %v13775_v13, %v11173_v33 }
 0x1a3   :  { %1966 = vst [vmem:[#allocation2 + $0x98] sm:$0xf] %v1951_v17  ;;  %v2802_v17 = vpack.c.bf16 %v2786_v18, %v2786_v18  ;;  %v15812_v50 = vpack.c.bf16 %v2641_v3, %v2641_v3  ;;  %v2658_v40 = vpack.c.bf16 %v2642_v60, %v2642_v60  ;;  %v13999_v38 = vld [vmem:[%s18447_s3 + $0x1f0] sm:$0xff]  ;;  %v11481_v18 = vld [vmem:[#allocation3 + $0x330] sm:$0xf]  ;;  %v13990_v13 = vld [vmem:[%s18447_s3 + $0x1a8] sm:$0xff] }
 0x1a4   :  { %2291 = vst [vmem:[#allocation1] ss:$2 sm:$0xff] %v2279_v57  ;;  %v2167_v57 = vmax.f32 %v15797_v61, 0.0  ;;  %v14007_v0 = vld [vmem:[%s18447_s3 + $0x230] sm:$0xff]  ;;  %v15833_v61 = vpack.c.bf16 %v2690_v12, %v2690_v12  ;;  %6715 = vmatpush.bf16.msrb.mxu3 %v13999_v38  ;;  %v13800_v38 = vld [vmem:[#allocation3 + $0x1f8] sm:$0xf0] }
 0x1a5   :  { %2672 = vst [vmem:[#allocation3 + $0x7c] sm:$0xf] %v2656_v25  ;;  %v2216_v25 = vrot.slane %v2168_v32, 4  ;;  %6764 = vmatpush.bf16.msrb.mxu0 %v14007_v0  ;;  %v2788_v3 = vld [vmem:[#allocation2 + $0x64] sm:$0xff]  ;;  %6667 = vmatpush.bf16.msrb.mxu2 %v13990_v13  ;;  %v2693_v13 = vld [vmem:[#allocation2 + $0x72] sm:$0xff] }
 0x1a6   :  { %2590 = vst [vmem:[#allocation3 + $0x5ec] sm:$0xf] %v2574_v21  ;;  %v2215_v34 = vrot.slane %v2167_v57, 4  ;;  %v13763_v21 = vld [vmem:[#allocation3 + $0xd4] sm:$0xf] }
 0x1a7   :  { %v15791_v37 = vpop.f32.mrf.mxu0  ;;  %v2124_v42 = vpop.f32.mrf.mxu1  ;;  %2719 = vst [vmem:[#allocation3 + $0x1c] sm:$0xf] %v2703_v29  ;;  %v11283_v60 = vld [vmem:[#allocation3 + $0x204] sm:$0xf0] }
 0x1a8   :  { %v15800_v58 = vpop.f32.mrf.mxu3  ;;  %v15803_v6 = vadd.f32 %v15647_v46, %v2124_v42  ;;  %2720 = vst [vmem:[#allocation3 + $0x80] sm:$0xf] %v15805_v28  ;;  %v2263_v29 = vmax.f32 %v2166_v47, %v2215_v34  ;;  %v2803_v47 = vpack.c.bf16 %v2787_v22, %v2787_v22  ;;  %6716 = vmatpush.bf16.msrb.mxu3 %v13998_v52 }
 0x1a9   :  { %v2297_v14 = vld.sshfl [vmem:[#allocation1 + $0x10] sm:$0xff pattern:$0x75316420]  ;;  %6590 = vmatmul.bf16.gmra.mxu0 %v11382_v39  ;;  %2773 = vst [vmem:[#allocation3 + $0x278] sm:$0xf] %v15455_v44 }
 0x1aa   :  { %2312 = vst [vmem:[#allocation2 + $0xa8] sm:$0xf] %v2297_v14  ;;  %6526 = vmatmul.bf16.vlgmr.msra.gmra.mxu3 %v11078_v43  ;;  %v2169_v9 = vmax.f32 %v15803_v6, 0.0  ;;  %v6390_v36 = vpop.f32.mrf.mxu2  ;;  %6629 = vmatmul.bf16.gmra.mxu1 %v11186_v35  ;;  %v2262_v43 = vmax.f32 %v2213_v5, %v2167_v57  ;;  %v1790_v14 = vmax.f32 %v15817_v55, 0.0  ;;  %v11482_v57 = vor.u32 %v13851_v63, %v11481_v18  ;;  %v2691_v6 = vld [vmem:[#allocation2 + $0x52] sm:$0xff] }
 0x1ab   :  { %v2296_v10 = vld.sshfl [vmem:[#allocation1] sm:$0xff pattern:$0x75316420]  ;;  %2817 = vst [vmem:[#allocation3 + $0xec] sm:$0xf] %v2801_v2  ;;  %v6391_v44 = vadd.f32 %v15672_v15, %v6390_v36  ;;  %v11178_v36 = vor.u32 %v13763_v21, %v11175_v19 }
 0x1ac   :  { %2311 = vst [vmem:[#allocation2 + $0xa0] sm:$0xff] %v2296_v10  ;;  %v2217_v53 = vrot.slane %v2169_v9, 4  ;;  %v1748_v10 = vadd.f32 %v15647_v46, %v15757_v24  ;;  %v2643_v2 = vld [vmem:[#allocation2 + $0x51] sm:$0xff]  ;;  %v1838_v5 = vrot.slane %v1790_v14, 4 }
 0x1ad   :  { %2818 = vst [vmem:[#allocation3 + $0x150] sm:$0xf] %v2802_v17  ;;  %v15866_v12 = vpack.c.bf16 %v2643_v2, %v2643_v2 }
 0x1ae   :  { %v2264_v7 = vmax.f32 %v2168_v32, %v2217_v53  ;;  %2673 = vst [vmem:[#allocation3 + $0xe0] sm:$0xf] %v15812_v50  ;;  %v1789_v34 = vmax.f32 %v1748_v10, 0.0 }
 0x1af   :  { %v1754_v16 = vpop.f32.mrf.mxu0  ;;  %v2126_v62 = vpop.f32.mrf.mxu1  ;;  %2674 = vst [vmem:[#allocation3 + $0x144] sm:$0xf] %v2658_v40  ;;  %v2660_v40 = vpack.c.bf16 %v2644_v31, %v2644_v31 }
 0x1b0   :  { %v2315_v27 = vmax.f32 %v2261_v54, %v2264_v7  ;;  %v2127_v1 = vadd.f32 %v15647_v46, %v2126_v62  ;;  %2721 = vst [vmem:[#allocation3 + $0xe4] sm:$0xf] %v15820_v11  ;;  %v1753_v54 = vadd.f32 %v15647_v46, %v15791_v37  ;;  %v1755_v32 = vadd.f32 %v15647_v46, %v1754_v16  ;;  %v13789_v16 = vld [vmem:[#allocation3 + $0x1a4] sm:$0xf] }
 0x1b1   :  { %2722 = vst [vmem:[#allocation3 + $0x148] sm:$0xf] %v15833_v61  ;;  %v2804_v37 = vpack.c.bf16 %v2788_v3, %v2788_v3  ;;  %v1885_v19 = vmax.f32 %v1789_v34, %v1838_v5  ;;  %v1837_v0 = vrot.slane %v1789_v34, 4 }
 0x1b2   :  { %6482 = vmatmul.bf16.gmra.mxu2 %v11174_v41  ;;  %2327 = vst [vmem:[#allocation1] ss:$2 sm:$0xff] %v2315_v27  ;;  %v2170_v39 = vmax.f32 %v2127_v1, 0.0  ;;  %v15840_v35 = vpop.f32.mrf.mxu2  ;;  %v11286_v41 = vor.u32 %v13789_v16, %v11283_v60  ;;  %v1792_v27 = vmax.f32 %v1755_v32, 0.0  ;;  %v15871_v1 = vpack.c.bf16 %v2691_v6, %v2691_v6 }
 0x1b3   :  { %v6439_v42 = vpop.f32.mrf.mxu3  ;;  %2775 = vst [vmem:[#allocation3 + $0x340] sm:$0xf] %v15674_v23  ;;  %v2692_v23 = vld [vmem:[#allocation2 + $0x62] sm:$0xff]  ;;  %v2709_v6 = vpack.c.bf16 %v2693_v13, %v2693_v13  ;;  %v14004_v13 = vld [vmem:[%s18447_s3 + $0x218] sm:$0xff] }
 0x1b4   :  { %v15836_v45 = vadd.f32 %v6439_v42, %v6391_v44  ;;  %v2218_v8 = vrot.slane %v2170_v39, 4  ;;  %v2265_v20 = vmax.f32 %v2216_v25, %v2170_v39  ;;  %2776 = vst [vmem:[#allocation3 + $0x3a4] sm:$0xf] %v15710_v49  ;;  %v1791_v25 = vmax.f32 %v1753_v54, 0.0  ;;  %v11273_v42 = vld [vmem:[#allocation3 + $0x198] sm:$0xf] }
 0x1b5   :  { %2819 = vst [vmem:[#allocation3 + $0x1b4] sm:$0xf] %v2803_v47  ;;  %v15873_v48 = vpack.c.bf16 %v2692_v23, %v2692_v23  ;;  %v1840_v63 = vrot.slane %v1792_v27, 4  ;;  %v11274_v10 = vor.u32 %v13800_v38, %v11273_v42  ;;  %v13788_v23 = vld [vmem:[#allocation3 + $0x19c] sm:$0xf]  ;;  %v2976_v42 = vld [vmem:[#allocation2 + $0x33] sm:$0xff] }
 0x1b6   :  { %v2266_v24 = vmax.f32 %v2169_v9, %v2218_v8  ;;  %v2316_v53 = vmax.f32 %v2262_v43, %v2265_v20  ;;  %2820 = vst [vmem:[#allocation3 + $0x218] sm:$0xf] %v2804_v37  ;;  %v1839_v39 = vrot.slane %v1791_v25, 4  ;;  %v1886_v52 = vmax.f32 %v1837_v0, %v1791_v25  ;;  %v13876_v37 = vld [vmem:[#allocation3 + $0x458] sm:$0xf0]  ;;  %v2975_v0 = vld [vmem:[#allocation2 + $0x23] sm:$0xff] }
 0x1b7   :  { %v1757_v17 = vpop.f32.mrf.mxu0  ;;  %v15863_v33 = vpop.f32.mrf.mxu1  ;;  %2675 = vst [vmem:[#allocation3 + $0x1a8] sm:$0xf] %v15866_v12  ;;  %v13825_v38 = vld [vmem:[#allocation3 + $0x2c0] sm:$0xf0] }
 0x1b8   :  { %v15861_v7 = vadd.f32 %v15647_v46, %v1757_v17  ;;  %v2317_v9 = vmax.f32 %v2263_v29, %v2266_v24  ;;  %2329 = vst [vmem:[#allocation1 + $0x1] ss:$2 sm:$0xff] %v2316_v53  ;;  %v2789_v29 = vld [vmem:[#allocation2 + $0x74] sm:$0xff]  ;;  %v1887_v17 = vmax.f32 %v1790_v14, %v1839_v39 }
 0x1b9   :  { %6595 = vmatmul.bf16.gmra.mxu0 %v11482_v57  ;;  %2676 = vst [vmem:[#allocation3 + $0x20c] sm:$0xf] %v2660_v40  ;;  %v14006_v57 = vld [vmem:[%s18447_s3 + $0x228] sm:$0xff]  ;;  %v2805_v32 = vpack.c.bf16 %v2789_v29, %v2789_v29  ;;  %v11383_v40 = vld [vmem:[#allocation3 + $0x2cc] sm:$0xf0] }
 0x1ba   :  { %6531 = vmatmul.bf16.gmra.mxu3 %v11178_v36  ;;  %v1793_v62 = vmax.f32 %v15861_v7, 0.0  ;;  %2331 = vst [vmem:[#allocation1 + $0x10] ss:$2 sm:$0xff] %v2317_v9  ;;  %6634 = vmatmul.bf16.gmra.mxu1 %v11286_v41  ;;  %v6395_v22 = vpop.f32.mrf.mxu2  ;;  %v2645_v36 = vld [vmem:[#allocation2 + $0x71] sm:$0xff]  ;;  %v11275_v7 = vld [vmem:[#allocation3 + $0x1fc] sm:$0xf0] }
 0x1bb   :  { %v15869_v49 = vpop.f32.mrf.mxu3  ;;  %2723 = vst [vmem:[#allocation3 + $0x1ac] sm:$0xf] %v15871_v1  ;;  %v6396_v2 = vadd.f32 %v15672_v15, %v6395_v22  ;;  %6765 = vmatpush.bf16.msrb.mxu0 %v14006_v57  ;;  %v15885_v53 = vpack.c.bf16 %v2645_v36, %v2645_v36  ;;  %v11581_v41 = vld [vmem:[#allocation3 + $0x3f8] sm:$0xf]  ;;  %v11278_v14 = vor.u32 %v13788_v23, %v11275_v7  ;;  %v2831_v22 = vld [vmem:[#allocation2 + $0x20] sm:$0xff]  ;;  %v2832_v29 = vld [vmem:[#allocation2 + $0x30] sm:$0xff] }
 0x1bc   :  { %v1841_v44 = vrot.slane %v1793_v62, 4  ;;  %2724 = vst [vmem:[#allocation3 + $0x210] sm:$0xf] %v15873_v48  ;;  %v2977_v36 = vld [vmem:[#allocation2 + $0x43] sm:$0xff]  ;;  %v13839_v23 = vld [vmem:[#allocation3 + $0x334] sm:$0xf] }
 0x1bd   :  { %2777 = vst [vmem:[#allocation3 + $0x408] sm:$0xf] %v15738_v4  ;;  %v13989_v4 = vld [vmem:[%s18447_s3 + $0x1a0] sm:$0xff]  ;;  %v11375_v57 = vld [vmem:[#allocation3 + $0x2c4] sm:$0xf0] }
 0x1be   :  { %v1888_v43 = vmax.f32 %v1792_v27, %v1841_v44  ;;  %2821 = vst [vmem:[#allocation3 + $0x27c] sm:$0xf] %v2805_v32  ;;  %v11582_v27 = vor.u32 %v13876_v37, %v11581_v41  ;;  %6668 = vmatpush.bf16.msrb.mxu2 %v13989_v4  ;;  %v13813_v32 = vld [vmem:[#allocation3 + $0x264] sm:$0xf] }
 0x1bf   :  { %v1759_v21 = vpop.f32.mrf.mxu0  ;;  %v2332_v8 = vld.sshfl [vmem:[#allocation1] sm:$0xff pattern:$0x75316420]  ;;  %v15878_v3 = vpop.f32.mrf.mxu1  ;;  %2677 = vst [vmem:[#allocation3 + $0x270] sm:$0xf] %v15885_v53  ;;  %v11378_v7 = vor.u32 %v13813_v32, %v11375_v57  ;;  %v2833_v41 = vld [vmem:[#allocation2 + $0x40] sm:$0xff] }
 0x1c0   :  { %v1900_v20 = vmax.f32 %v1885_v19, %v1888_v43  ;;  %v1760_v18 = vadd.f32 %v15647_v46, %v1759_v21  ;;  %2347 = vst [vmem:[#allocation2 + $0xb0] sm:$0xff] %v2332_v8  ;;  %v13814_v19 = vld [vmem:[#allocation3 + $0x26c] sm:$0xf]  ;;  %v11373_v43 = vld [vmem:[#allocation3 + $0x260] sm:$0xf]  ;;  %v2991_v21 = vpack.c.bf16 %v2975_v0, %v2975_v0 }
 0x1c1   :  { %v2333_v47 = vld.sshfl [vmem:[#allocation1 + $0x10] sm:$0xff pattern:$0x75316420]  ;;  %2725 = vst [vmem:[#allocation3 + $0x274] sm:$0xf] %v2709_v6  ;;  %v11386_v44 = vor.u32 %v13814_v19, %v11383_v40  ;;  %v2834_v40 = vld [vmem:[#allocation2 + $0x50] sm:$0xff] }
 0x1c2   :  { %1917 = vst [vmem:[#allocation1 + $0x20] ss:$2 sm:$0xff] %v1900_v20  ;;  %v1794_v54 = vmax.f32 %v1760_v18, 0.0  ;;  %6487 = vmatmul.bf16.gmra.mxu2 %v11274_v10  ;;  %v15915_v8 = vpop.f32.mrf.mxu2  ;;  %v2879_v20 = vld [vmem:[#allocation2 + $0x21] sm:$0xff]  ;;  %v2847_v18 = vpack.c.bf16 %v2831_v22, %v2831_v22  ;;  %v2848_v10 = vpack.c.bf16 %v2832_v29, %v2832_v29  ;;  %v2695_v19 = vld [vmem:[#allocation2 + $0xd2] sm:$0xff]  ;;  %v2850_v22 = vpack.c.bf16 %v2834_v40, %v2834_v40 }
 0x1c3   :  { %2348 = vst [vmem:[#allocation2 + $0xb8] sm:$0xf] %v2333_v47  ;;  %v6444_v24 = vpop.f32.mrf.mxu3  ;;  %v15946_v32 = vld [vmem:[%s18446_s2] ss:$0 sm:$0xff] }
 0x1c4   :  { %v15889_v60 = vadd.f32 %v6444_v24, %v6396_v2  ;;  %v1842_v31 = vrot.slane %v1794_v54, 4  ;;  %v1889_v5 = vmax.f32 %v1840_v63, %v1794_v54  ;;  %2959 = vst [vmem:[#allocation3 + $0x30] sm:$0xf] %v15805_v28  ;;  %v13901_v2 = vld [vmem:[#allocation3 + $0x520] sm:$0xf0]  ;;  %v2978_v54 = vld [vmem:[#allocation2 + $0x53] sm:$0xff]  ;;  %v2993_v24 = vpack.c.bf16 %v2977_v36, %v2977_v36 }
 0x1c5   :  { %2960 = vst [vmem:[#allocation3 + $0x94] sm:$0xf] %v15820_v11  ;;  %v11374_v11 = vor.u32 %v13825_v38, %v11373_v43  ;;  %v2881_v38 = vld [vmem:[#allocation2 + $0x41] sm:$0xff]  ;;  %v2849_v43 = vpack.c.bf16 %v2833_v41, %v2833_v41 }
 0x1c6   :  { %v1890_v9 = vmax.f32 %v1793_v62, %v1842_v31  ;;  %v1901_v16 = vmax.f32 %v1886_v52, %v1889_v5  ;;  %v13997_v62 = vld [vmem:[%s18447_s3 + $0x1e0] sm:$0xff]  ;;  %2961 = vst [vmem:[#allocation3 + $0xf8] sm:$0xf] %v15833_v61  ;;  %v2895_v52 = vpack.c.bf16 %v2879_v20, %v2879_v20  ;;  %v11681_v31 = vld [vmem:[#allocation3 + $0x4c0] sm:$0xf] }
 0x1c7   :  { %v15892_v34 = vpop.f32.mrf.mxu0  ;;  %v15895_v25 = vpop.f32.mrf.mxu1  ;;  %6717 = vmatpush.bf16.msrb.mxu3 %v13997_v62  ;;  %2962 = vst [vmem:[#allocation3 + $0x15c] sm:$0xf] %v15871_v1  ;;  %v2992_v1 = vpack.c.bf16 %v2976_v42, %v2976_v42  ;;  %v11483_v5 = vld [vmem:[#allocation3 + $0x394] sm:$0xf0]  ;;  %v11583_v41 = vld [vmem:[#allocation3 + $0x45c] sm:$0xf0] }
 0x1c8   :  { %v1902_v55 = vmax.f32 %v1887_v17, %v1890_v9  ;;  %1919 = vst [vmem:[#allocation1 + $0x21] ss:$2 sm:$0xff] %v1901_v16  ;;  %v2994_v9 = vpack.c.bf16 %v2978_v54, %v2978_v54  ;;  %v11475_v54 = vld [vmem:[#allocation3 + $0x38c] sm:$0xf0] }
 0x1c9   :  { %6600 = vmatmul.bf16.gmra.mxu0 %v11582_v27  ;;  %2963 = vst [vmem:[#allocation3 + $0x1c0] sm:$0xf] %v15873_v48  ;;  %v14005_v48 = vld [vmem:[%s18447_s3 + $0x220] sm:$0xff] }
 0x1ca   :  { %1921 = vst [vmem:[#allocation1 + $0x30] ss:$2 sm:$0xff] %v1902_v55  ;;  %6536 = vmatmul.bf16.gmra.mxu3 %v11278_v14  ;;  %6639 = vmatmul.bf16.gmra.mxu1 %v11386_v44  ;;  %v11486_v55 = vor.u32 %v13839_v23, %v11483_v5  ;;  %v2791_v14 = vld [vmem:[#allocation2 + $0xd4] sm:$0xff]  ;;  %v2711_v44 = vpack.c.bf16 %v2695_v19, %v2695_v19  ;;  %v13838_v5 = vld [vmem:[#allocation3 + $0x32c] sm:$0xf] }
 0x1cb   :  { %2964 = vst [vmem:[#allocation3 + $0x224] sm:$0xf] %v2709_v6  ;;  %6766 = vmatpush.bf16.msrb.mxu0 %v14005_v48  ;;  %v15923_v47 = vpop.f32.mrf.mxu3  ;;  %v11682_v6 = vor.u32 %v13901_v2, %v11681_v31  ;;  %v2647_v27 = vld [vmem:[#allocation2 + $0xd1] sm:$0xff]  ;;  %v2807_v4 = vpack.c.bf16 %v2791_v14, %v2791_v14  ;;  %v2459_v48 = vld [vmem:[#allocation2 + $0x102] sm:$0xff] }
 0x1cc   :  { %3007 = vst [vmem:[#allocation3 + $0x34] sm:$0xf] %v2991_v21  ;;  %v2663_v62 = vpack.c.bf16 %v2647_v27, %v2647_v27  ;;  %v15933_v21 = vpack.c.bf16 %v2881_v38, %v2881_v38  ;;  %v2475_v36 = vpack.c.bf16 %v2459_v48, %v2459_v48  ;;  %v15962_v27 = vadd.f32 %v15946_v32, %v15863_v33  ;;  %v14003_v38 = vld [vmem:[%s18447_s3 + $0x210] sm:$0xff]  ;;  %v13996_v33 = vld [vmem:[%s18447_s3 + $0x1d8] sm:$0xff] }
 0x1cd   :  { %3008 = vst [vmem:[#allocation3 + $0x98] sm:$0xf] %v2992_v1  ;;  %6718 = vmatpush.bf16.msrb.mxu3 %v13996_v33  ;;  %v2509_v33 = vld [vmem:[#allocation2 + $0x123] sm:$0xff] }
 0x1ce   :  { %2863 = vst [vmem:[#allocation3 + $0x28] sm:$0xf] %v2847_v18  ;;  %v2507_v18 = vld [vmem:[#allocation2 + $0x103] sm:$0xff] }
 0x1cf   :  { %v15907_v39 = vld.sshfl [vmem:[#allocation1 + $0x20] sm:$0xff pattern:$0x75316420]  ;;  %v15909_v63 = vpop.f32.mrf.mxu0  ;;  %v15913_v28 = vpop.f32.mrf.mxu1  ;;  %2864 = vst [vmem:[#allocation3 + $0x8c] sm:$0xf] %v2848_v10  ;;  %6767 = vmatpush.bf16.msrb.mxu0 %v14004_v13  ;;  %v2792_v10 = vld [vmem:[#allocation2 + $0xe4] sm:$0xff]  ;;  %v2523_v57 = vpack.c.bf16 %v2507_v18, %v2507_v18 }
 0x1d0   :  { %1931 = vst [vmem:[#allocation2 + $0x140] sm:$0xff] %v15907_v39  ;;  %v15937_v1 = vadd.f32 %v15647_v46, %v15909_v63  ;;  %v2648_v13 = vld [vmem:[#allocation2 + $0xe1] sm:$0xff]  ;;  %v13926_v46 = vld [vmem:[#allocation3 + $0x5e8] sm:$0xf0]  ;;  %v2808_v63 = vpack.c.bf16 %v2792_v10, %v2792_v10  ;;  %v11573_v18 = vld [vmem:[#allocation3 + $0x3f0] sm:$0xf] }
 0x1d1   :  { %v1923_v61 = vld.sshfl [vmem:[#allocation1 + $0x30] sm:$0xff pattern:$0x75316420]  ;;  %2911 = vst [vmem:[#allocation3 + $0x2c] sm:$0xf] %v2895_v52  ;;  %v2664_v31 = vpack.c.bf16 %v2648_v13, %v2648_v13  ;;  %v2171_v10 = vmax.f32 %v15962_v27, 0.0 }
 0x1d2   :  { %1932 = vst [vmem:[#allocation2 + $0x148] sm:$0xf] %v1923_v61  ;;  %6492 = vmatmul.bf16.gmra.mxu2 %v11374_v11  ;;  %v11473_v61 = vld [vmem:[#allocation3 + $0x328] sm:$0xf]  ;;  %v1796_v2 = vmax.f32 %v15937_v1, 0.0 }
 0x1d3   :  { %2912 = vst [vmem:[#allocation3 + $0x90] sm:$0xf] %v15812_v50  ;;  %v13850_v50 = vld [vmem:[#allocation3 + $0x388] sm:$0xf0]  ;;  %v2696_v52 = vld [vmem:[#allocation2 + $0xe2] sm:$0xff]  ;;  %6768 = vmatpush.bf16.msrb.mxu0 %v14003_v38 }
 0x1d4   :  { %v6400_v16 = vpop.f32.mrf.mxu2  ;;  %3009 = vst [vmem:[#allocation3 + $0xfc] sm:$0xf] %v2993_v24  ;;  %v11474_v20 = vor.u32 %v13850_v50, %v11473_v61  ;;  %v1763_v24 = vadd.f32 %v15946_v32, %v15892_v34  ;;  %v1844_v40 = vrot.slane %v1796_v2, 4  ;;  %v13875_v50 = vld [vmem:[#allocation3 + $0x450] sm:$0xf0]  ;;  %v13987_v13 = vld [vmem:[%s18447_s3 + $0x190] sm:$0xff] }
 0x1d5   :  { %v6401_v0 = vadd.f32 %v15672_v15, %v6400_v16  ;;  %3010 = vst [vmem:[#allocation3 + $0x160] sm:$0xf] %v2994_v9  ;;  %v11478_v9 = vor.u32 %v13838_v5, %v11475_v54  ;;  %v2460_v54 = vld [vmem:[#allocation2 + $0x112] sm:$0xff]  ;;  %v16012_v5 = vadd.f32 %v15946_v32, %v15878_v3  ;;  %v14014_v38 = vld [vmem:[%s18447_s3 + $0x268] sm:$0xff] }
 0x1d6   :  { %2823 = vst [vmem:[#allocation3 + $0x344] sm:$0xf] %v2807_v4  ;;  %v1795_v19 = vmax.f32 %v1763_v24, 0.0  ;;  %v2476_v24 = vpack.c.bf16 %v2460_v54, %v2460_v54  ;;  %v14001_v3 = vld [vmem:[%s18447_s3 + $0x200] sm:$0xff]  ;;  %v2605_v54 = vld [vmem:[#allocation2 + $0x130] sm:$0xff] }
 0x1d7   :  { %v15925_v17 = vpop.f32.mrf.mxu0  ;;  %v15927_v37 = vpop.f32.mrf.mxu1  ;;  %2679 = vst [vmem:[#allocation3 + $0x338] sm:$0xf] %v2663_v62  ;;  %v13864_v62 = vld [vmem:[#allocation3 + $0x3fc] sm:$0xf] }
 0x1d8   :  { %2727 = vst [vmem:[#allocation3 + $0x33c] sm:$0xf] %v2711_v44 }
 0x1d9   :  { %6605 = vmatmul.bf16.gmra.mxu0 %v11682_v6  ;;  %2865 = vst [vmem:[#allocation3 + $0xf0] sm:$0xf] %v2849_v43  ;;  %v2712_v6 = vpack.c.bf16 %v2696_v52, %v2696_v52  ;;  %v15978_v43 = vadd.f32 %v15946_v32, %v15913_v28  ;;  %v14002_v28 = vld [vmem:[%s18447_s3 + $0x208] sm:$0xff]  ;;  %v13995_v52 = vld [vmem:[%s18447_s3 + $0x1d0] sm:$0xff] }
 0x1da   :  { %6541 = vmatmul.bf16.gmra.mxu3 %v11378_v7  ;;  %6644 = vmatmul.bf16.gmra.mxu1 %v11486_v55  ;;  %2866 = vst [vmem:[#allocation3 + $0x154] sm:$0xf] %v2850_v22  ;;  %v11781_v7 = vld [vmem:[#allocation3 + $0x588] sm:$0xf]  ;;  %v15954_v55 = vadd.f32 %v15946_v32, %v15925_v17  ;;  %v11586_v17 = vor.u32 %v13864_v62, %v11583_v41  ;;  %v14016_v22 = vld [vmem:[%s18447_s3 + $0x278] sm:$0xff] }
 0x1db   :  { %2913 = vst [vmem:[#allocation3 + $0xf4] sm:$0xf] %v15933_v21  ;;  %v11782_v23 = vor.u32 %v13926_v46, %v11781_v7  ;;  %v1843_v46 = vrot.slane %v1795_v19, 4  ;;  %6812 = vmatpush.bf16.msra.mxu1 %v14016_v22  ;;  %v2174_v7 = vmax.f32 %v15978_v43, 0.0  ;;  %6769 = vmatpush.bf16.msrb.mxu0 %v14002_v28  ;;  %v2525_v28 = vpack.c.bf16 %v2509_v33, %v2509_v33  ;;  %v2510_v33 = vld [vmem:[#allocation2 + $0x133] sm:$0xff] }
 0x1dc   :  { %2491 = vst [vmem:[#allocation3 + $0x4b8] sm:$0xf] %v2475_v36  ;;  %v1797_v61 = vmax.f32 %v15954_v55, 0.0  ;;  %6719 = vmatpush.bf16.msrb.mxu3 %v13995_v52  ;;  %v13753_v52 = vld [vmem:[#allocation3 + $0x80] sm:$0xf0] }
 0x1dd   :  { %v6449_v42 = vpop.f32.mrf.mxu3  ;;  %2539 = vst [vmem:[#allocation3 + $0x4bc] sm:$0xf] %v2523_v57  ;;  %v2222_v22 = vrot.slane %v2174_v7, 4 }
 0x1de   :  { %v15931_v11 = vadd.f32 %v6449_v42, %v6401_v0  ;;  %2778 = vst [vmem:[#allocation3 + $0x46c] sm:$0xf] %v2523_v57  ;;  %v13988_v0 = vld [vmem:[%s18447_s3 + $0x198] sm:$0xff]  ;;  %v15980_v42 = vpop.f32.mrf.mxu2  ;;  %v15994_v57 = vadd.f32 %v15946_v32, %v15895_v25 }
 0x1df   :  { %v1769_v29 = vpop.f32.mrf.mxu0  ;;  %v15939_v15 = vpop.f32.mrf.mxu1  ;;  %2824 = vst [vmem:[#allocation3 + $0x3a8] sm:$0xf] %v2808_v63  ;;  %6669 = vmatpush.bf16.msrb.mxu2 %v13988_v0  ;;  %v11574_v63 = vor.u32 %v13875_v50, %v11573_v18  ;;  %v2461_v0 = vld [vmem:[#allocation2 + $0x122] sm:$0xff]  ;;  %v2172_v50 = vmax.f32 %v16012_v5, 0.0  ;;  %6770 = vmatpush.bf16.msrb.mxu0 %v14001_v3 }
 0x1e0   :  { %v1770_v34 = vadd.f32 %v15946_v32, %v1769_v29  ;;  %2680 = vst [vmem:[#allocation3 + $0x39c] sm:$0xf] %v2664_v31  ;;  %v1891_v29 = vmax.f32 %v1795_v19, %v1844_v40  ;;  %v2508_v31 = vld [vmem:[#allocation2 + $0x113] sm:$0xff]  ;;  %v13889_v3 = vld [vmem:[#allocation3 + $0x4c4] sm:$0xf] }
 0x1e1   :  { %2728 = vst [vmem:[#allocation3 + $0x3a0] sm:$0xf] %v2712_v6  ;;  %v2220_v5 = vrot.slane %v2172_v50, 4 }
 0x1e2   :  { %6497 = vmatmul.bf16.gmra.mxu2 %v11474_v20  ;;  %2730 = vst [vmem:[#allocation3 + $0x468] sm:$0xf] %v2475_v36  ;;  %v1798_v20 = vmax.f32 %v1770_v34, 0.0  ;;  %v15998_v36 = vadd.f32 %v15946_v32, %v15939_v15  ;;  %v14015_v15 = vld [vmem:[%s18447_s3 + $0x270] sm:$0xff]  ;;  %v2219_v34 = vrot.slane %v2171_v10, 4 }
 0x1e3   :  { %2914 = vst [vmem:[#allocation3 + $0x158] sm:$0xf] %v15866_v12  ;;  %6670 = vmatpush.bf16.msrb.mxu2 %v13987_v13  ;;  %6813 = vmatpush.bf16.msra.mxu1 %v14015_v15 }
 0x1e4   :  { %2967 = vst [vmem:[#allocation3 + $0x350] sm:$0xf] %v2712_v6  ;;  %v1846_v41 = vrot.slane %v1798_v20, 4  ;;  %v2176_v19 = vmax.f32 %v15998_v36, 0.0  ;;  %v1892_v6 = vmax.f32 %v1843_v46, %v1797_v61  ;;  %v11097_v46 = vld [vmem:[#allocation3 + $0x20] sm:$0xf] }
 0x1e5   :  { %2492 = vst [vmem:[#allocation3 + $0x51c] sm:$0xf] %v2476_v24 }
 0x1e6   :  { %v2224_v24 = vrot.slane %v2176_v19, 4  ;;  %2541 = vst [vmem:[#allocation3 + $0x584] sm:$0xf] %v2525_v28 }
 0x1e7   :  { %v1772_v16 = vpop.f32.mrf.mxu0  ;;  %v15964_v4 = vpop.f32.mrf.mxu1  ;;  %6814 = vmatpush.bf16.msra.mxu1 %v14014_v38  ;;  %2780 = vst [vmem:[#allocation3 + $0x534] sm:$0xf] %v2525_v28  ;;  %v11673_v28 = vld [vmem:[#allocation3 + $0x4b8] sm:$0xf] }
 0x1e8   :  { %v15958_v14 = vadd.f32 %v15946_v32, %v1772_v16  ;;  %v2524_v16 = vpack.c.bf16 %v2508_v31, %v2508_v31  ;;  %v13863_v31 = vld [vmem:[#allocation3 + $0x3f4] sm:$0xf]  ;;  %2916 = vst [vmem:[#allocation3 + $0x220] sm:$0xf] %v15885_v53 }
 0x1e9   :  { %6610 = vmatmul.bf16.gmra.mxu0 %v11782_v23  ;;  %v1845_v23 = vrot.slane %v1797_v61, 4  ;;  %3152 = vst [vmem:[#allocation3 + $0xa4] sm:$0xf] %v15933_v21  ;;  %v11199_v21 = vld [vmem:[#allocation3 + $0x14c] sm:$0xf0] }
 0x1ea   :  { %6546 = vmatmul.bf16.gmra.mxu3 %v11478_v9  ;;  %v1799_v44 = vmax.f32 %v15958_v14, 0.0  ;;  %6649 = vmatmul.bf16.gmra.mxu1 %v11586_v17  ;;  %v16017_v9 = vadd.f32 %v15946_v32, %v15927_v37  ;;  %v2173_v37 = vmax.f32 %v15994_v57, 0.0  ;;  %2540 = vst [vmem:[#allocation3 + $0x520] sm:$0xf] %v2524_v16  ;;  %v16038_v57 = vpop.f32.mrf.mxu3 }
 0x1eb   :  { %2779 = vst [vmem:[#allocation3 + $0x4d0] sm:$0xf] %v2524_v16  ;;  %v1893_v61 = vmax.f32 %v1796_v2, %v1845_v23  ;;  %v11683_v16 = vld [vmem:[#allocation3 + $0x524] sm:$0xf0]  ;;  %v11098_v23 = vor.u32 %v13753_v52, %v11097_v46 }
 0x1ec   :  { %v1847_v48 = vrot.slane %v1799_v44, 4  ;;  %v2175_v18 = vmax.f32 %v16017_v9, 0.0  ;;  %v2221_v15 = vrot.slane %v2173_v37, 4  ;;  %v11686_v38 = vor.u32 %v13889_v3, %v11683_v16  ;;  %v13900_v52 = vld [vmem:[#allocation3 + $0x518] sm:$0xf0]  ;;  %v14011_v16 = vld [vmem:[%s18447_s3 + $0x250] sm:$0xff] }
 0x1ee   :  { %v1894_v25 = vmax.f32 %v1798_v20, %v1847_v48  ;;  %v2477_v48 = vpack.c.bf16 %v2461_v0, %v2461_v0  ;;  %v2462_v0 = vld [vmem:[#allocation2 + $0x132] sm:$0xff] }
 0x1ef   :  { %v1774_v12 = vpop.f32.mrf.mxu0  ;;  %v16027_v62 = vpop.f32.mrf.mxu1 }
 0x1f0   :  { %v1936_v40 = vmax.f32 %v1891_v29, %v1894_v25  ;;  %v1775_v55 = vadd.f32 %v15946_v32, %v1774_v12  ;;  %v11575_v29 = vld [vmem:[#allocation3 + $0x454] sm:$0xf0]  ;;  %v2621_v25 = vpack.c.bf16 %v2605_v54, %v2605_v54  ;;  %2493 = vst [vmem:[#allocation3 + $0x580] sm:$0xf] %v2477_v48  ;;  %v16068_v46 = vadd.f32 %v15946_v32, %v16027_v62 }
 0x1f1   :  { %v11578_v9 = vor.u32 %v13863_v31, %v11575_v29  ;;  %v2526_v29 = vpack.c.bf16 %v2510_v33, %v2510_v33  ;;  %2732 = vst [vmem:[#allocation3 + $0x530] sm:$0xf] %v2477_v48  ;;  %v2793_v48 = vld [vmem:[#allocation2 + $0xf4] sm:$0xff] }
 0x1f2   :  { %1953 = vst [vmem:[#allocation1 + $0x20] ss:$2 sm:$0xff] %v1936_v40  ;;  %v1800_v17 = vmax.f32 %v1775_v55, 0.0  ;;  %6502 = vmatmul.bf16.gmra.mxu2 %v11574_v63  ;;  %v2622_v63 = vpack.c.bf16 %v15907_v39, %v15907_v39  ;;  %v14013_v39 = vld [vmem:[%s18447_s3 + $0x260] sm:$0xff]  ;;  %v2223_v40 = vrot.slane %v2175_v18, 4  ;;  %v2271_v55 = vmax.f32 %v2222_v22, %v2176_v19 }
 0x1f3   :  { %v6405_v20 = vpop.f32.mrf.mxu2  ;;  %2637 = vst [vmem:[#allocation3 + $0x58c] sm:$0xf] %v2621_v25  ;;  %6815 = vmatpush.bf16.msra.mxu1 %v14013_v39  ;;  %v2478_v22 = vpack.c.bf16 %v2462_v0, %v2462_v0  ;;  %v2178_v62 = vmax.f32 %v16068_v46, 0.0  ;;  %v2809_v31 = vpack.c.bf16 %v2793_v48, %v2793_v48  ;;  %v11197_v0 = vld [vmem:[#allocation3 + $0xe8] sm:$0xf] }
 0x1f4   :  { %v1848_v36 = vrot.slane %v1800_v17, 4  ;;  %v1895_v13 = vmax.f32 %v1846_v41, %v1800_v17  ;;  %v2268_v41 = vmax.f32 %v2219_v34, %v2173_v37  ;;  %2638 = vst [vmem:[#allocation3 + $0x5f0] sm:$0xf] %v2622_v63  ;;  %v2272_v17 = vmax.f32 %v2175_v18, %v2224_v24  ;;  %v16054_v34 = vld [vmem:[%s18448_s4] ss:$0 sm:$0xff]  ;;  %v2794_v24 = vld [vmem:[#allocation2 + $0x104] sm:$0xff] }
 0x1f5   :  { %v6406_v37 = vadd.f32 %v16054_v34, %v6405_v20  ;;  %v2270_v18 = vmax.f32 %v2174_v7, %v2223_v40  ;;  %2494 = vst [vmem:[#allocation3 + $0x5e4] sm:$0xf] %v2478_v22  ;;  %v11674_v7 = vor.u32 %v13900_v52, %v11673_v28  ;;  %v2810_v39 = vpack.c.bf16 %v2794_v24, %v2794_v24  ;;  %v11675_v40 = vld [vmem:[#allocation3 + $0x51c] sm:$0xf0]  ;;  %v2790_v24 = vld [vmem:[#allocation2 + $0x84] sm:$0xff] }
 0x1f6   :  { %v1896_v1 = vmax.f32 %v1799_v44, %v1848_v36  ;;  %v1937_v2 = vmax.f32 %v1892_v6, %v1895_v13  ;;  %v2269_v6 = vmax.f32 %v2172_v50, %v2221_v15  ;;  %v14012_v50 = vld [vmem:[%s18447_s3 + $0x258] sm:$0xff]  ;;  %v2283_v36 = vmax.f32 %v2268_v41, %v2271_v55  ;;  %2542 = vst [vmem:[#allocation3 + $0x5e8] sm:$0xf] %v2526_v29 }
 0x1f7   :  { %v16044_v12 = vpop.f32.mrf.mxu0  ;;  %v16049_v44 = vpop.f32.mrf.mxu1  ;;  %6816 = vmatpush.bf16.msra.mxu1 %v14012_v50  ;;  %2781 = vst [vmem:[#allocation3 + $0x598] sm:$0xf] %v2526_v29  ;;  %v16074_v15 = vadd.f32 %v15946_v32, %v15964_v4  ;;  %v13986_v4 = vld [vmem:[%s18447_s3 + $0x188] sm:$0xff]  ;;  %v13985_v50 = vld [vmem:[%s18447_s3 + $0x180] sm:$0xff] }
 0x1f8   :  { %v1938_v14 = vmax.f32 %v1893_v61, %v1896_v1  ;;  %1955 = vst [vmem:[#allocation1 + $0x21] ss:$2 sm:$0xff] %v1937_v2  ;;  %v2267_v61 = vmax.f32 %v2171_v10, %v2220_v5  ;;  %v2284_v54 = vmax.f32 %v2269_v6, %v2272_v17  ;;  %v2649_v1 = vld [vmem:[#allocation2 + $0xf1] sm:$0xff]  ;;  %v2650_v5 = vld [vmem:[#allocation2 + $0x101] sm:$0xff]  ;;  %v2226_v17 = vrot.slane %v2178_v62, 4  ;;  %6671 = vmatpush.bf16.msrb.mxu2 %v13986_v4 }
 0x1f9   :  { %6771 = vmatmul.bf16.vlgmr.msrb.gmra.mxu0 %v11098_v23  ;;  %v13994_v23 = vld [vmem:[%s18447_s3 + $0x1c8] sm:$0xff]  ;;  %v16089_v3 = vpack.c.bf16 %v2649_v1, %v2649_v1  ;;  %v2177_v6 = vmax.f32 %v16074_v15, 0.0  ;;  %2825 = vst [vmem:[#allocation3 + $0x40c] sm:$0xf] %v2809_v31  ;;  %v2666_v22 = vpack.c.bf16 %v2650_v5, %v2650_v5  ;;  %v2806_v31 = vpack.c.bf16 %v2790_v24, %v2790_v24 }
 0x1fa   :  { %1957 = vst [vmem:[#allocation1 + $0x30] ss:$2 sm:$0xff] %v1938_v14  ;;  %6551 = vmatmul.bf16.gmra.mxu3 %v11578_v9  ;;  %6654 = vmatmul.bf16.gmra.mxu1 %v11686_v38  ;;  %v2282_v43 = vmax.f32 %v2267_v61, %v2270_v18  ;;  %v13778_v14 = vld [vmem:[#allocation3 + $0x148] sm:$0xf0]  ;;  %v13888_v38 = vld [vmem:[#allocation3 + $0x4bc] sm:$0xf] }
 0x1fb   :  { %v6407_v19 = vpop.f32.mrf.mxu2  ;;  %6817 = vmatpush.bf16.msra.mxu1 %v14011_v16  ;;  %6720 = vmatpush.bf16.msrb.mxu3 %v13994_v23  ;;  %v11678_v29 = vor.u32 %v13888_v38, %v11675_v40  ;;  %v13914_v61 = vld [vmem:[#allocation3 + $0x58c] sm:$0xf]  ;;  %v11198_v18 = vor.u32 %v13778_v14, %v11197_v0  ;;  %2826 = vst [vmem:[#allocation3 + $0x470] sm:$0xf] %v2810_v39  ;;  %v2796_v24 = vld [vmem:[#allocation2 + $0x124] sm:$0xff] }
 0x1fc   :  { %v6454_v13 = vpop.f32.mrf.mxu3  ;;  %v6408_v2 = vadd.f32 %v16054_v34, %v6407_v19  ;;  %v14010_v19 = vld [vmem:[%s18447_s3 + $0x248] sm:$0xff]  ;;  %2681 = vst [vmem:[#allocation3 + $0x400] sm:$0xf] %v16089_v3  ;;  %6672 = vmatpush.bf16.msrb.mxu2 %v13985_v50  ;;  %v2273_v23 = vmax.f32 %v2177_v6, %v2226_v17  ;;  %v2225_v17 = vrot.slane %v2177_v6, 4  ;;  %v2812_v6 = vpack.c.bf16 %v2796_v24, %v2796_v24 }
 0x1fd   :  { %v16064_v20 = vadd.f32 %v6454_v13, %v6406_v37  ;;  %v11783_v37 = vld [vmem:[#allocation3 + $0x5ec] sm:$0xf0]  ;;  %2682 = vst [vmem:[#allocation3 + $0x464] sm:$0xf] %v2666_v22  ;;  %v13925_v38 = vld [vmem:[#allocation3 + $0x5e0] sm:$0xf0] }
 0x1fe   :  { %v2697_v13 = vld [vmem:[#allocation2 + $0xf2] sm:$0xff]  ;;  %v11786_v48 = vor.u32 %v13914_v61, %v11783_v37  ;;  %2822 = vst [vmem:[#allocation3 + $0x2e0] sm:$0xf] %v2806_v31  ;;  %v11773_v61 = vld [vmem:[#allocation3 + $0x580] sm:$0xf] }
 0x1ff   :  { %v1958_v27 = vld.sshfl [vmem:[#allocation1 + $0x20] sm:$0xff pattern:$0x75316420]  ;;  %v16070_v10 = vpop.f32.mrf.mxu0  ;;  %v2151_v63 = vpop.f32.mrf.mxu1  ;;  %6818 = vmatpush.bf16.msra.mxu1 %v14010_v19  ;;  %v2713_v0 = vpack.c.bf16 %v2697_v13, %v2697_v13  ;;  %v2979_v13 = vld [vmem:[#allocation2 + $0x63] sm:$0xff]  ;;  %2828 = vst [vmem:[#allocation3 + $0x538] sm:$0xf] %v2812_v6 }
 0x200   :  { %2301 = vst [vmem:[#allocation1 + $0x21] ss:$2 sm:$0xff] %v2283_v36  ;;  %v13993_v36 = vld [vmem:[%s18447_s3 + $0x1c0] sm:$0xff]  ;;  %v2835_v15 = vld [vmem:[#allocation2 + $0x60] sm:$0xff] }
 0x201   :  { %v1959_v25 = vld.sshfl [vmem:[#allocation1 + $0x30] sm:$0xff pattern:$0x75316420]  ;;  %1967 = vst [vmem:[#allocation2 + $0x150] sm:$0xff] %v1958_v27  ;;  %v14009_v27 = vld [vmem:[%s18447_s3 + $0x240] sm:$0xff]  ;;  %6721 = vmatpush.bf16.msrb.mxu3 %v13993_v36  ;;  %v11774_v36 = vor.u32 %v13925_v38, %v11773_v61 }
 0x202   :  { %2303 = vst [vmem:[#allocation1 + $0x30] ss:$2 sm:$0xff] %v2284_v54  ;;  %6507 = vmatmul.bf16.gmra.mxu2 %v11674_v7  ;;  %v16107_v54 = vadd.f32 %v15946_v32, %v16049_v44  ;;  %v2646_v44 = vld [vmem:[#allocation2 + $0x81] sm:$0xff]  ;;  %v2795_v37 = vld [vmem:[#allocation2 + $0x114] sm:$0xff] }
 0x203   :  { %1968 = vst [vmem:[#allocation2 + $0x158] sm:$0xf] %v1959_v25  ;;  %v2742_v25 = vld [vmem:[#allocation2 + $0x83] sm:$0xff]  ;;  %v2662_v5 = vpack.c.bf16 %v2646_v44, %v2646_v44  ;;  %6819 = vmatpush.bf16.msra.mxu1 %v14009_v27  ;;  %v2995_v44 = vpack.c.bf16 %v2979_v13, %v2979_v13  ;;  %v13803_v38 = vld [vmem:[#allocation3 + $0x210] sm:$0xf0] }
 0x204   :  { %2299 = vst [vmem:[#allocation1 + $0x20] ss:$2 sm:$0xff] %v2282_v43  ;;  %v6456_v9 = vpop.f32.mrf.mxu3  ;;  %v2152_v43 = vadd.f32 %v15946_v32, %v2151_v63  ;;  %v2179_v39 = vmax.f32 %v16107_v54, 0.0  ;;  %v14024_v54 = vld [vmem:[%s18447_s3 + $0x2b8] sm:$0xff]  ;;  %v13913_v61 = vld [vmem:[#allocation3 + $0x584] sm:$0xf] }
 0x205   :  { %v16087_v41 = vadd.f32 %v6456_v9, %v6408_v2  ;;  %v6410_v55 = vpop.f32.mrf.mxu2  ;;  %v2758_v2 = vpack.c.bf16 %v2742_v25, %v2742_v25  ;;  %v2694_v9 = vld [vmem:[#allocation2 + $0x82] sm:$0xff]  ;;  %2678 = vst [vmem:[#allocation3 + $0x2d4] sm:$0xf] %v2662_v5  ;;  %6861 = vmatpush.bf16.msra.mxu2 %v14024_v54 }
 0x206   :  { %v6411_v63 = vadd.f32 %v16054_v34, %v6410_v55  ;;  %v2710_v4 = vpack.c.bf16 %v2694_v9, %v2694_v9  ;;  %v2180_v19 = vmax.f32 %v2152_v43, 0.0  ;;  %v2811_v55 = vpack.c.bf16 %v2795_v37, %v2795_v37  ;;  %2729 = vst [vmem:[#allocation3 + $0x404] sm:$0xf] %v2713_v0  ;;  %v2836_v9 = vld [vmem:[#allocation2 + $0x70] sm:$0xff] }
 0x207   :  { %v16094_v33 = vpop.f32.mrf.mxu0  ;;  %v2154_v28 = vpop.f32.mrf.mxu1  ;;  %2774 = vst [vmem:[#allocation3 + $0x2dc] sm:$0xf] %v2758_v2  ;;  %v2227_v43 = vrot.slane %v2179_v39, 4 }
 0x208   :  { %v16115_v7 = vadd.f32 %v15946_v32, %v2154_v28  ;;  %2726 = vst [vmem:[#allocation3 + $0x2d8] sm:$0xf] %v2710_v4  ;;  %v2980_v28 = vld [vmem:[#allocation2 + $0x73] sm:$0xff] }
 0x209   :  { %v2305_v52 = vld.sshfl [vmem:[#allocation1 + $0x30] sm:$0xff pattern:$0x75316420]  ;;  %6776 = vmatmul.bf16.gmra.mxu0 %v11198_v18  ;;  %2827 = vst [vmem:[#allocation3 + $0x4d4] sm:$0xf] %v2811_v55  ;;  %v2996_v5 = vpack.c.bf16 %v2980_v28, %v2980_v28  ;;  %v2275_v37 = vmax.f32 %v2178_v62, %v2227_v43  ;;  %v14032_v62 = vld [vmem:[%s18447_s3 + $0x2f8] sm:$0xff] }
 0x20a   :  { %2314 = vst [vmem:[#allocation2 + $0x168] sm:$0xf] %v2305_v52  ;;  %6556 = vmatmul.bf16.gmra.mxu3 %v11678_v29  ;;  %v2181_v16 = vmax.f32 %v16115_v7, 0.0  ;;  %6659 = vmatmul.bf16.gmra.mxu1 %v11786_v48  ;;  %v2228_v48 = vrot.slane %v2180_v19, 4  ;;  %v2883_v55 = vld [vmem:[#allocation2 + $0x61] sm:$0xff]  ;;  %v3119_v43 = vld [vmem:[#allocation2 + $0x31] sm:$0xff] }
 0x20b   :  { %v2304_v1 = vld.sshfl [vmem:[#allocation1 + $0x20] sm:$0xff pattern:$0x75316420]  ;;  %2965 = vst [vmem:[#allocation3 + $0x288] sm:$0xf] %v2710_v4  ;;  %v16148_v28 = vpack.c.bf16 %v2883_v55, %v2883_v55  ;;  %6910 = vmatpush.bf16.msra.mxu3 %v14032_v62 }
 0x20c   :  { %2313 = vst [vmem:[#allocation2 + $0x160] sm:$0xff] %v2304_v1  ;;  %v2229_v50 = vrot.slane %v2181_v16, 4  ;;  %v2274_v1 = vmax.f32 %v2225_v17, %v2179_v39  ;;  %v11297_v39 = vld [vmem:[#allocation3 + $0x1b0] sm:$0xf]  ;;  %v11099_v17 = vld [vmem:[#allocation3 + $0x84] sm:$0xf0] }
 0x20d   :  { %v6459_v40 = vpop.f32.mrf.mxu3  ;;  %v6412_v14 = vpop.f32.mrf.mxu2  ;;  %2968 = vst [vmem:[#allocation3 + $0x3b4] sm:$0xf] %v2713_v0  ;;  %v11298_v46 = vor.u32 %v13803_v38, %v11297_v39  ;;  %v13741_v0 = vld [vmem:[#allocation3 + $0x24] sm:$0xf]  ;;  %v11091_v39 = vld [vmem:[#allocation3 + $0x7c] sm:$0xf0] }
 0x20e   :  { %v16124_v22 = vadd.f32 %v6459_v40, %v6411_v63  ;;  %v2276_v18 = vmax.f32 %v2180_v19, %v2229_v50  ;;  %v6413_v31 = vadd.f32 %v16054_v34, %v6412_v14  ;;  %v11775_v40 = vld [vmem:[#allocation3 + $0x5e4] sm:$0xf0]  ;;  %3011 = vst [vmem:[#allocation3 + $0x1c4] sm:$0xf] %v2995_v44  ;;  %v11102_v7 = vor.u32 %v13741_v0, %v11099_v17 }
 0x20f   :  { %v16126_v29 = vpop.f32.mrf.mxu0  ;;  %v2156_v52 = vpop.f32.mrf.mxu1  ;;  %3012 = vst [vmem:[#allocation3 + $0x228] sm:$0xf] %v2996_v5 }
 0x210   :  { %v2318_v25 = vmax.f32 %v2273_v23, %v2276_v18  ;;  %v2157_v27 = vadd.f32 %v15946_v32, %v2156_v52  ;;  %v2851_v32 = vpack.c.bf16 %v2835_v15, %v2835_v15  ;;  %v2852_v18 = vpack.c.bf16 %v2836_v9, %v2836_v9  ;;  %v13752_v15 = vld [vmem:[#allocation3 + $0x78] sm:$0xf0]  ;;  %2915 = vst [vmem:[#allocation3 + $0x1bc] sm:$0xf] %v16148_v28 }
 0x211   :  { %v11778_v52 = vor.u32 %v13913_v61, %v11775_v40  ;;  %2920 = vst [vmem:[#allocation3 + $0x3b0] sm:$0xf] %v16089_v3  ;;  %v2651_v40 = vld [vmem:[#allocation2 + $0x111] sm:$0xff]  ;;  %v13828_v61 = vld [vmem:[#allocation3 + $0x2d8] sm:$0xf0] }
 0x212   :  { %6512 = vmatmul.bf16.gmra.mxu2 %v11774_v36  ;;  %2335 = vst [vmem:[#allocation1 + $0x20] ss:$2 sm:$0xff] %v2318_v25  ;;  %v2182_v2 = vmax.f32 %v2157_v27, 0.0  ;;  %v3135_v25 = vpack.c.bf16 %v3119_v43, %v3119_v43  ;;  %v2667_v53 = vpack.c.bf16 %v2651_v40, %v2651_v40  ;;  %v3121_v3 = vld [vmem:[#allocation2 + $0x51] sm:$0xff] }
 0x213   :  { %2867 = vst [vmem:[#allocation3 + $0x1b8] sm:$0xf] %v2851_v32  ;;  %v3137_v17 = vpack.c.bf16 %v3121_v3, %v3121_v3 }
 0x214   :  { %v2230_v19 = vrot.slane %v2182_v2, 4  ;;  %v2277_v50 = vmax.f32 %v2228_v48, %v2182_v2  ;;  %2868 = vst [vmem:[#allocation3 + $0x21c] sm:$0xf] %v2852_v18 }
 0x215   :  { %v6461_v63 = vpop.f32.mrf.mxu3  ;;  %v6415_v23 = vpop.f32.mrf.mxu2  ;;  %3151 = vst [vmem:[#allocation3 + $0x40] sm:$0xf] %v3135_v25  ;;  %v2652_v25 = vld [vmem:[#allocation2 + $0x121] sm:$0xff] }
 0x216   :  { %v16137_v4 = vadd.f32 %v6461_v63, %v6413_v31  ;;  %v2278_v36 = vmax.f32 %v2181_v16, %v2230_v19  ;;  %v2319_v13 = vmax.f32 %v2274_v1, %v2277_v50  ;;  %v6416_v16 = vadd.f32 %v16054_v34, %v6415_v23  ;;  %v11089_v1 = vld [vmem:[#allocation3 + $0x18] sm:$0xf]  ;;  %v14040_v31 = vld [vmem:[%s18447_s3 + $0x338] sm:$0xff]  ;;  %v14023_v63 = vld [vmem:[%s18447_s3 + $0x2b0] sm:$0xff]  ;;  %2683 = vst [vmem:[#allocation3 + $0x4c8] sm:$0xf] %v2667_v53 }
 0x217   :  { %v16139_v14 = vpop.f32.mrf.mxu0  ;;  %v16146_v54 = vpop.f32.mrf.mxu1  ;;  %v11090_v2 = vor.u32 %v13752_v15, %v11089_v1  ;;  %6959 = vmatpush.bf16.msra.mxu0 %v14040_v31  ;;  %v2699_v23 = vld [vmem:[#allocation2 + $0x112] sm:$0xff]  ;;  %6862 = vmatpush.bf16.msra.mxu2 %v14023_v63  ;;  %2922 = vst [vmem:[#allocation3 + $0x478] sm:$0xf] %v2667_v53  ;;  %v2668_v15 = vpack.c.bf16 %v2652_v25, %v2652_v25  ;;  %v2983_v1 = vld [vmem:[#allocation2 + $0xe3] sm:$0xff] }
 0x218   :  { %v2320_v48 = vmax.f32 %v2275_v37, %v2278_v36  ;;  %2337 = vst [vmem:[#allocation1 + $0x21] ss:$2 sm:$0xff] %v2319_v13  ;;  %v2715_v32 = vpack.c.bf16 %v2699_v23, %v2699_v23  ;;  %v3123_v19 = vld [vmem:[#allocation2 + $0x71] sm:$0xff]  ;;  %v13740_v36 = vld [vmem:[#allocation3 + $0x1c] sm:$0xf]  ;;  %v2887_v31 = vld [vmem:[#allocation2 + $0xe1] sm:$0xff] }
 0x219   :  { %6781 = vmatmul.bf16.gmra.mxu0 %v11298_v46  ;;  %v11397_v46 = vld [vmem:[#allocation3 + $0x278] sm:$0xf]  ;;  %v3139_v62 = vpack.c.bf16 %v3123_v19, %v3123_v19  ;;  %v11094_v0 = vor.u32 %v13740_v36, %v11091_v39  ;;  %3153 = vst [vmem:[#allocation3 + $0x108] sm:$0xf] %v3137_v17  ;;  %v2903_v40 = vpack.c.bf16 %v2887_v31, %v2887_v31  ;;  %v3023_v23 = vld [vmem:[#allocation2 + $0x24] sm:$0xff]  ;;  %v3071_v25 = vld [vmem:[#allocation2 + $0x30] sm:$0xff] }
 0x21a   :  { %6561 = vmatmul.bf16.gmra.mxu3 %v11778_v52  ;;  %2339 = vst [vmem:[#allocation1 + $0x30] ss:$2 sm:$0xff] %v2320_v48  ;;  %6820 = vmatmul.bf16.vlgmr.msra.gmra.mxu1 %v11102_v7  ;;  %v11398_v43 = vor.u32 %v13828_v61, %v11397_v46  ;;  %v13766_v48 = vld [vmem:[#allocation3 + $0xec] sm:$0xf]  ;;  %v11189_v39 = vld [vmem:[#allocation3 + $0xe0] sm:$0xf] }
 0x21b   :  { %2731 = vst [vmem:[#allocation3 + $0x4cc] sm:$0xf] %v2715_v32  ;;  %v14031_v7 = vld [vmem:[%s18447_s3 + $0x2f0] sm:$0xff]  ;;  %v13853_v31 = vld [vmem:[#allocation3 + $0x3a0] sm:$0xf0] }
 0x21c   :  { %2970 = vst [vmem:[#allocation3 + $0x47c] sm:$0xf] %v2715_v32  ;;  %6911 = vmatpush.bf16.msra.mxu3 %v14031_v7  ;;  %v13777_v32 = vld [vmem:[#allocation3 + $0x140] sm:$0xf0]  ;;  %v14039_v36 = vld [vmem:[%s18447_s3 + $0x330] sm:$0xff] }
 0x21d   :  { %v6464_v27 = vpop.f32.mrf.mxu3  ;;  %v6417_v24 = vpop.f32.mrf.mxu2  ;;  %3154 = vst [vmem:[#allocation3 + $0x16c] sm:$0xf] %v16148_v28  ;;  %v3039_v28 = vpack.c.bf16 %v3023_v23, %v3023_v23  ;;  %v11190_v17 = vor.u32 %v13777_v32, %v11189_v39  ;;  %6960 = vmatpush.bf16.msra.mxu0 %v14039_v36  ;;  %v3087_v23 = vpack.c.bf16 %v3071_v25, %v3071_v25  ;;  %v3026_v36 = vld [vmem:[#allocation2 + $0x54] sm:$0xff] }
 0x21e   :  { %v16152_v6 = vadd.f32 %v6464_v27, %v6416_v16  ;;  %v6418_v37 = vadd.f32 %v16054_v34, %v6417_v24  ;;  %v3168_v27 = vld [vmem:[#allocation2 + $0x42] sm:$0xff]  ;;  %v11202_v24 = vor.u32 %v13766_v48, %v11199_v21  ;;  %3155 = vst [vmem:[#allocation3 + $0x1d0] sm:$0xf] %v3139_v62  ;;  %v2797_v21 = vld [vmem:[#allocation2 + $0x134] sm:$0xff] }
 0x21f   :  { %v16155_v44 = vpop.f32.mrf.mxu0  ;;  %v2340_v5 = vld.sshfl [vmem:[#allocation1 + $0x20] sm:$0xff pattern:$0x75316420]  ;;  %v16161_v9 = vpop.f32.mrf.mxu1  ;;  %2684 = vst [vmem:[#allocation3 + $0x52c] sm:$0xf] %v2668_v15 }
 0x220   :  { %2349 = vst [vmem:[#allocation2 + $0x170] sm:$0xff] %v2340_v5  ;;  %v2999_v5 = vpack.c.bf16 %v2983_v1, %v2983_v1  ;;  %v2653_v62 = vld [vmem:[#allocation2 + $0x131] sm:$0xff]  ;;  %v13765_v1 = vld [vmem:[#allocation3 + $0xe4] sm:$0xf] }
 0x221   :  { %v2341_v38 = vld.sshfl [vmem:[#allocation1 + $0x30] sm:$0xff pattern:$0x75316420]  ;;  %2919 = vst [vmem:[#allocation3 + $0x34c] sm:$0xf] %v2903_v40  ;;  %v3024_v48 = vld [vmem:[#allocation2 + $0x34] sm:$0xff] }
 0x222   :  { %6673 = vmatmul.bf16.vlgmr.msrb.gmra.mxu2 %v11090_v2  ;;  %2350 = vst [vmem:[#allocation2 + $0x178] sm:$0xf] %v2341_v38  ;;  %v2839_v2 = vld [vmem:[#allocation2 + $0xe0] sm:$0xff] }
 0x223   :  { %v2855_v63 = vpack.c.bf16 %v2839_v2, %v2839_v2  ;;  %3015 = vst [vmem:[#allocation3 + $0x354] sm:$0xf] %v2999_v5  ;;  %v3169_v5 = vld [vmem:[#allocation2 + $0x52] sm:$0xff] }
 0x224   :  { %3055 = vst [vmem:[#allocation3 + $0x38] sm:$0xf] %v3039_v28 }
 0x225   :  { %v6466_v50 = vpop.f32.mrf.mxu3  ;;  %v6478_v55 = vpop.f32.mrf.mxu2  ;;  %2871 = vst [vmem:[#allocation3 + $0x348] sm:$0xf] %v2855_v63 }
 0x226   :  { %v16168_v18 = vadd.f32 %v6466_v50, %v6418_v37  ;;  %v6479_v13 = vadd.f32 %v6478_v55, %v15728_v26  ;;  %v3167_v26 = vld [vmem:[#allocation2 + $0x32] sm:$0xff]  ;;  %v3184_v37 = vpack.c.bf16 %v3168_v27, %v3168_v27  ;;  %v6383_v55 = vadd.f32 %v16054_v34, %v15726_v59  ;;  %v11191_v27 = vld [vmem:[#allocation3 + $0x144] sm:$0xf0]  ;;  %3103 = vst [vmem:[#allocation3 + $0x3c] sm:$0xf] %v3087_v23 }
 0x227   :  { %v16171_v52 = vpop.f32.mrf.mxu0  ;;  %v16176_v16 = vpop.f32.mrf.mxu1  ;;  %v3183_v53 = vpack.c.bf16 %v3167_v26, %v3167_v26  ;;  %v11194_v28 = vor.u32 %v13765_v1, %v11191_v27  ;;  %v3171_v27 = vld [vmem:[#allocation2 + $0x72] sm:$0xff] }
 0x228   :  { %3200 = vst [vmem:[#allocation3 + $0xa8] sm:$0xf] %v3184_v37  ;;  %v6432_v59 = vadd.f32 %v15754_v51, %v6383_v55  ;;  %v3040_v51 = vpack.c.bf16 %v3024_v48, %v3024_v48  ;;  %v3074_v48 = vld [vmem:[#allocation2 + $0x60] sm:$0xff]  ;;  %v3187_v23 = vpack.c.bf16 %v3171_v27, %v3171_v27  ;;  %v11597_v27 = vld [vmem:[#allocation3 + $0x408] sm:$0xf] }
 0x229   :  { %6786 = vmatmul.bf16.gmra.mxu0 %v11398_v43  ;;  %3199 = vst [vmem:[#allocation3 + $0x44] sm:$0xf] %v3183_v53  ;;  %v2701_v43 = vld [vmem:[#allocation2 + $0x132] sm:$0xff] }
 0x22a   :  { %6722 = vmatmul.bf16.vlgmr.msrb.gmra.mxu3 %v11094_v0  ;;  %6825 = vmatmul.bf16.gmra.mxu1 %v11202_v24  ;;  %v2669_v0 = vpack.c.bf16 %v2653_v62, %v2653_v62  ;;  %v2717_v7 = vpack.c.bf16 %v2701_v43, %v2701_v43  ;;  %v3072_v24 = vld [vmem:[#allocation2 + $0x40] sm:$0xff]  ;;  %v11299_v53 = vld [vmem:[#allocation3 + $0x214] sm:$0xf0]  ;;  %3056 = vst [vmem:[#allocation3 + $0x9c] sm:$0xf] %v3040_v51 }
 0x22b   :  { %v16198_v37 = vpack.c.bf16 %v3072_v24, %v3072_v24  ;;  %v3042_v43 = vpack.c.bf16 %v3026_v36, %v3026_v36  ;;  %v6388_v51 = vadd.f32 %v16054_v34, %v15775_v56  ;;  %3203 = vst [vmem:[#allocation3 + $0x1d4] sm:$0xf] %v3187_v23 }
 0x22c   :  { %2685 = vst [vmem:[#allocation3 + $0x590] sm:$0xf] %v2669_v0 }
 0x22d   :  { %v6527_v3 = vpop.f32.mrf.mxu3  ;;  %v6480_v38 = vpop.f32.mrf.mxu2  ;;  %2733 = vst [vmem:[#allocation3 + $0x594] sm:$0xf] %v2717_v7 }
 0x22e   :  { %v6528_v19 = vadd.f32 %v6527_v3, %v6479_v13  ;;  %v14022_v13 = vld [vmem:[%s18447_s3 + $0x2a8] sm:$0xff]  ;;  %v6481_v26 = vadd.f32 %v6480_v38, %v6432_v59  ;;  %2972 = vst [vmem:[#allocation3 + $0x544] sm:$0xf] %v2717_v7  ;;  %v3073_v59 = vld [vmem:[#allocation2 + $0x50] sm:$0xff] }
 0x22f   :  { %v16179_v50 = vpop.f32.mrf.mxu0  ;;  %v16189_v46 = vpop.f32.mrf.mxu1  ;;  %6863 = vmatpush.bf16.msra.mxu2 %v14022_v13  ;;  %v3170_v3 = vld [vmem:[#allocation2 + $0x62] sm:$0xff]  ;;  %2924 = vst [vmem:[#allocation3 + $0x540] sm:$0xf] %v2669_v0  ;;  %v16209_v0 = vpack.c.bf16 %v3073_v59, %v3073_v59 }
 0x230   :  { %v16184_v61 = vadd.f32 %v16044_v12, %v6528_v19  ;;  %v2813_v12 = vpack.c.bf16 %v2797_v21, %v2797_v21  ;;  %v11497_v38 = vld [vmem:[#allocation3 + $0x340] sm:$0xf]  ;;  %v3025_v19 = vld [vmem:[#allocation2 + $0x44] sm:$0xff]  ;;  %v13791_v21 = vld [vmem:[#allocation3 + $0x1b4] sm:$0xf]  ;;  %v3186_v62 = vpack.c.bf16 %v3170_v3, %v3170_v3 }
 0x231   :  { %v11498_v55 = vor.u32 %v13853_v31, %v11497_v38  ;;  %3104 = vst [vmem:[#allocation3 + $0xa0] sm:$0xf] %v16198_v37  ;;  %v3027_v31 = vld [vmem:[#allocation2 + $0x64] sm:$0xff]  ;;  %v3028_v3 = vld [vmem:[#allocation2 + $0x74] sm:$0xff] }
 0x232   :  { %6678 = vmatmul.bf16.gmra.mxu2 %v11190_v17  ;;  %2829 = vst [vmem:[#allocation3 + $0x59c] sm:$0xf] %v2813_v12  ;;  %v3185_v17 = vpack.c.bf16 %v3169_v5, %v3169_v5  ;;  %v11302_v12 = vor.u32 %v13791_v21, %v11299_v53  ;;  %v14038_v53 = vld [vmem:[%s18447_s3 + $0x328] sm:$0xff]  ;;  %v3044_v36 = vpack.c.bf16 %v3028_v3, %v3028_v3 }
 0x233   :  { %3202 = vst [vmem:[#allocation3 + $0x170] sm:$0xf] %v3186_v62  ;;  %6961 = vmatpush.bf16.msra.mxu0 %v14038_v53  ;;  %v2937_v3 = vld [vmem:[#allocation2 + $0x102] sm:$0xff] }
 0x234   :  { %3201 = vst [vmem:[#allocation3 + $0x10c] sm:$0xf] %v3185_v17 }
 0x235   :  { %v6529_v15 = vpop.f32.mrf.mxu3  ;;  %v6483_v2 = vpop.f32.mrf.mxu2  ;;  %3058 = vst [vmem:[#allocation3 + $0x164] sm:$0xf] %v3042_v43  ;;  %v13878_v43 = vld [vmem:[#allocation3 + $0x468] sm:$0xf0] }
 0x236   :  { %v6530_v63 = vadd.f32 %v6529_v15, %v6481_v26  ;;  %v6484_v40 = vadd.f32 %v6483_v2, %v15777_v30  ;;  %v14030_v30 = vld [vmem:[%s18447_s3 + $0x2e8] sm:$0xff]  ;;  %v13802_v26 = vld [vmem:[#allocation3 + $0x208] sm:$0xf0]  ;;  %v16211_v15 = vpack.c.bf16 %v3074_v48, %v3074_v48  ;;  %v11289_v2 = vld [vmem:[#allocation3 + $0x1a8] sm:$0xf] }
 0x237   :  { %v16196_v32 = vpop.f32.mrf.mxu0  ;;  %v16206_v13 = vpop.f32.mrf.mxu1  ;;  %6912 = vmatpush.bf16.msra.mxu3 %v14030_v30  ;;  %3105 = vst [vmem:[#allocation3 + $0x104] sm:$0xf] %v16209_v0  ;;  %v3043_v30 = vpack.c.bf16 %v3027_v31, %v3027_v31  ;;  %v13790_v48 = vld [vmem:[#allocation3 + $0x1ac] sm:$0xf]  ;;  %v11598_v31 = vor.u32 %v13878_v43, %v11597_v27  ;;  %v2750_v43 = vld [vmem:[#allocation2 + $0x143] sm:$0xff] }
 0x238   :  { %v16201_v39 = vadd.f32 %v16070_v10, %v6530_v63  ;;  %v3041_v10 = vpack.c.bf16 %v3025_v19, %v3025_v19  ;;  %v11290_v63 = vor.u32 %v13802_v26, %v11289_v2  ;;  %v14021_v19 = vld [vmem:[%s18447_s3 + $0x2a0] sm:$0xff]  ;;  %3106 = vst [vmem:[#allocation3 + $0x168] sm:$0xf] %v16211_v15  ;;  %v2766_v27 = vpack.c.bf16 %v2750_v43, %v2750_v43 }
 0x239   :  { %6791 = vmatmul.bf16.gmra.mxu0 %v11498_v55  ;;  %v2984_v55 = vld [vmem:[#allocation2 + $0xf3] sm:$0xff]  ;;  %6864 = vmatpush.bf16.msra.mxu2 %v14021_v19  ;;  %3059 = vst [vmem:[#allocation3 + $0x1c8] sm:$0xf] %v3043_v30  ;;  %v2953_v19 = vpack.c.bf16 %v2937_v3, %v2937_v3 }
 0x23a   :  { %6727 = vmatmul.bf16.gmra.mxu3 %v11194_v28  ;;  %6830 = vmatmul.bf16.gmra.mxu1 %v11302_v12  ;;  %3057 = vst [vmem:[#allocation3 + $0x100] sm:$0xf] %v3041_v10  ;;  %v3075_v28 = vld [vmem:[#allocation2 + $0x70] sm:$0xff]  ;;  %v3000_v17 = vpack.c.bf16 %v2984_v55, %v2984_v55  ;;  %v11391_v3 = vld [vmem:[#allocation3 + $0x2d4] sm:$0xf0] }
 0x23b   :  { %v16231_v62 = vpack.c.bf16 %v3075_v28, %v3075_v28  ;;  %v11291_v12 = vld [vmem:[#allocation3 + $0x20c] sm:$0xf0]  ;;  %3060 = vst [vmem:[#allocation3 + $0x22c] sm:$0xf] %v3044_v36  ;;  %v2889_v28 = vld [vmem:[#allocation2 + $0x101] sm:$0xff] }
 0x23c   :  { %3016 = vst [vmem:[#allocation3 + $0x3b8] sm:$0xf] %v3000_v17  ;;  %v11294_v2 = vor.u32 %v13790_v48, %v11291_v12  ;;  %v2905_v55 = vpack.c.bf16 %v2889_v28, %v2889_v28  ;;  %v13827_v17 = vld [vmem:[#allocation3 + $0x2d0] sm:$0xf0] }
 0x23d   :  { %v6532_v7 = vpop.f32.mrf.mxu3  ;;  %v6485_v25 = vpop.f32.mrf.mxu2  ;;  %3107 = vst [vmem:[#allocation3 + $0x1cc] sm:$0xf] %v16231_v62  ;;  %v2842_v48 = vld [vmem:[#allocation2 + $0x110] sm:$0xff] }
 0x23e   :  { %v6533_v24 = vadd.f32 %v6532_v7, %v6484_v40  ;;  %v2840_v40 = vld [vmem:[#allocation2 + $0xf0] sm:$0xff]  ;;  %3343 = vst [vmem:[#allocation3 + $0x50] sm:$0xf] %v16198_v37 }
 0x23f   :  { %v16213_v1 = vpop.f32.mrf.mxu0  ;;  %v16224_v38 = vpop.f32.mrf.mxu1  ;;  %v2856_v56 = vpack.c.bf16 %v2840_v40, %v2840_v40  ;;  %3344 = vst [vmem:[#allocation3 + $0xb4] sm:$0xf] %v16209_v0  ;;  %v6393_v0 = vadd.f32 %v16054_v34, %v15840_v35  ;;  %v3359_v35 = vld [vmem:[#allocation2 + $0x41] sm:$0xff] }
 0x240   :  { %v16218_v5 = vadd.f32 %v16094_v33, %v6533_v24  ;;  %v6437_v33 = vadd.f32 %v15800_v58, %v6388_v51  ;;  %v11399_v24 = vld [vmem:[#allocation3 + $0x2dc] sm:$0xf0]  ;;  %v14029_v51 = vld [vmem:[%s18447_s3 + $0x2e0] sm:$0xff]  ;;  %2969 = vst [vmem:[#allocation3 + $0x418] sm:$0xf] %v2953_v19  ;;  %v3375_v19 = vpack.c.bf16 %v3359_v35, %v3359_v35 }
 0x241   :  { %2872 = vst [vmem:[#allocation3 + $0x3ac] sm:$0xf] %v2856_v56  ;;  %6913 = vmatpush.bf16.msra.mxu3 %v14029_v51  ;;  %v2985_v56 = vld [vmem:[#allocation2 + $0x103] sm:$0xff] }
 0x242   :  { %6683 = vmatmul.bf16.gmra.mxu2 %v11290_v63  ;;  %v6486_v21 = vadd.f32 %v6485_v25, %v6437_v33  ;;  %v2841_v63 = vld [vmem:[#allocation2 + $0x100] sm:$0xff]  ;;  %v3001_v33 = vpack.c.bf16 %v2985_v56, %v2985_v56  ;;  %2921 = vst [vmem:[#allocation3 + $0x414] sm:$0xf] %v2905_v55  ;;  %v14035_v51 = vld [vmem:[%s18447_s3 + $0x310] sm:$0xff] }
 0x243   :  { %v2857_v40 = vpack.c.bf16 %v2841_v63, %v2841_v63  ;;  %3160 = vst [vmem:[#allocation3 + $0x3c4] sm:$0xf] %v2905_v55  ;;  %v2885_v63 = vld [vmem:[#allocation2 + $0x81] sm:$0xff] }
 0x244   :  { %3017 = vst [vmem:[#allocation3 + $0x41c] sm:$0xf] %v3001_v33  ;;  %v13903_v33 = vld [vmem:[#allocation3 + $0x530] sm:$0xf0] }
 0x245   :  { %v6534_v59 = vpop.f32.mrf.mxu3  ;;  %v6488_v10 = vpop.f32.mrf.mxu2  ;;  %2873 = vst [vmem:[#allocation3 + $0x410] sm:$0xf] %v2857_v40 }
 0x246   :  { %v6535_v58 = vadd.f32 %v6534_v59, %v6486_v21  ;;  %v6489_v7 = vadd.f32 %v6488_v10, %v15836_v45  ;;  %v13816_v45 = vld [vmem:[#allocation3 + $0x27c] sm:$0xf]  ;;  %3112 = vst [vmem:[#allocation3 + $0x3c0] sm:$0xf] %v2857_v40  ;;  %v11389_v59 = vld [vmem:[#allocation3 + $0x270] sm:$0xf]  ;;  %v2901_v40 = vpack.c.bf16 %v2885_v63, %v2885_v63 }
 0x247   :  { %v16234_v26 = vpop.f32.mrf.mxu0  ;;  %v16243_v53 = vpop.f32.mrf.mxu1  ;;  %v11402_v23 = vor.u32 %v13816_v45, %v11399_v24  ;;  %v11390_v10 = vor.u32 %v13827_v17, %v11389_v59  ;;  %v14020_v24 = vld [vmem:[%s18447_s3 + $0x298] sm:$0xff]  ;;  %3345 = vst [vmem:[#allocation3 + $0x118] sm:$0xf] %v16211_v15 }
 0x248   :  { %v16237_v25 = vadd.f32 %v16126_v29, %v6535_v58  ;;  %v14037_v29 = vld [vmem:[%s18447_s3 + $0x320] sm:$0xff]  ;;  %v14036_v58 = vld [vmem:[%s18447_s3 + $0x318] sm:$0xff]  ;;  %3346 = vst [vmem:[#allocation3 + $0x17c] sm:$0xf] %v16231_v62  ;;  %6865 = vmatpush.bf16.msra.mxu2 %v14020_v24 }
 0x249   :  { %6796 = vmatmul.bf16.gmra.mxu0 %v11598_v31  ;;  %v6442_v31 = vadd.f32 %v15869_v49, %v6393_v0  ;;  %v2986_v45 = vld [vmem:[#allocation2 + $0x113] sm:$0xff]  ;;  %2782 = vst [vmem:[#allocation3 + $0x5fc] sm:$0xf] %v2766_v27  ;;  %v3216_v49 = vld [vmem:[#allocation2 + $0x43] sm:$0xff] }
 0x24a   :  { %6732 = vmatmul.bf16.gmra.mxu3 %v11294_v2  ;;  %6835 = vmatmul.bf16.gmra.mxu1 %v11402_v23  ;;  %v2858_v2 = vpack.c.bf16 %v2842_v48, %v2842_v48  ;;  %v3002_v23 = vpack.c.bf16 %v2986_v45, %v2986_v45  ;;  %2917 = vst [vmem:[#allocation3 + $0x284] sm:$0xf] %v2901_v40  ;;  %v14028_v24 = vld [vmem:[%s18447_s3 + $0x2d8] sm:$0xff]  ;;  %v2987_v45 = vld [vmem:[#allocation2 + $0x123] sm:$0xff] }
 0x24b   :  { %6962 = vmatpush.bf16.msra.mxu0 %v14037_v29  ;;  %v3215_v29 = vld [vmem:[#allocation2 + $0x33] sm:$0xff]  ;;  %3156 = vst [vmem:[#allocation3 + $0x234] sm:$0xf] %v2901_v40  ;;  %v3232_v43 = vpack.c.bf16 %v3216_v49, %v3216_v49  ;;  %6914 = vmatpush.bf16.msra.mxu3 %v14028_v24  ;;  %v2981_v40 = vld [vmem:[#allocation2 + $0x83] sm:$0xff]  ;;  %v13852_v49 = vld [vmem:[#allocation3 + $0x398] sm:$0xf0] }
 0x24c   :  { %2874 = vst [vmem:[#allocation3 + $0x474] sm:$0xf] %v2858_v2  ;;  %v3231_v59 = vpack.c.bf16 %v3215_v29, %v3215_v29  ;;  %v3003_v29 = vpack.c.bf16 %v2987_v45, %v2987_v45 }
 0x24d   :  { %v6537_v37 = vpop.f32.mrf.mxu3  ;;  %v6490_v30 = vpop.f32.mrf.mxu2  ;;  %3018 = vst [vmem:[#allocation3 + $0x480] sm:$0xf] %v3002_v23  ;;  %v2837_v23 = vld [vmem:[#allocation2 + $0x80] sm:$0xff] }
 0x24e   :  { %v6538_v36 = vadd.f32 %v6537_v37, %v6489_v7  ;;  %v6491_v15 = vadd.f32 %v6490_v30, %v6442_v31  ;;  %v3263_v37 = vld [vmem:[#allocation2 + $0x34] sm:$0xff]  ;;  %v11697_v30 = vld [vmem:[#allocation3 + $0x4d0] sm:$0xf]  ;;  %3391 = vst [vmem:[#allocation3 + $0x54] sm:$0xf] %v3375_v19  ;;  %v2939_v31 = vld [vmem:[#allocation2 + $0x122] sm:$0xff] }
 0x24f   :  { %v16250_v21 = vpop.f32.mrf.mxu0  ;;  %v16260_v7 = vpop.f32.mrf.mxu1  ;;  %6963 = vmatpush.bf16.msra.mxu0 %v14036_v58  ;;  %v11698_v27 = vor.u32 %v13903_v33, %v11697_v30  ;;  %v3279_v2 = vpack.c.bf16 %v3263_v37, %v3263_v37  ;;  %3247 = vst [vmem:[#allocation3 + $0x48] sm:$0xf] %v3231_v59  ;;  %v2955_v63 = vpack.c.bf16 %v2939_v31, %v2939_v31  ;;  %v3361_v30 = vld [vmem:[#allocation2 + $0x61] sm:$0xff] }
 0x250   :  { %v16255_v12 = vadd.f32 %v16139_v14, %v6538_v36  ;;  %v3360_v14 = vld [vmem:[#allocation2 + $0x51] sm:$0xff]  ;;  %3248 = vst [vmem:[#allocation3 + $0xac] sm:$0xf] %v3232_v43  ;;  %v2853_v33 = vpack.c.bf16 %v2837_v23, %v2837_v23  ;;  %v3377_v31 = vpack.c.bf16 %v3361_v30, %v3361_v30 }
 0x251   :  { %v3376_v55 = vpack.c.bf16 %v3360_v14, %v3360_v14  ;;  %v13815_v36 = vld [vmem:[#allocation3 + $0x274] sm:$0xf]  ;;  %v13841_v14 = vld [vmem:[#allocation3 + $0x344] sm:$0xf]  ;;  %3295 = vst [vmem:[#allocation3 + $0x4c] sm:$0xf] %v3279_v2 }
 0x252   :  { %6688 = vmatmul.bf16.gmra.mxu2 %v11390_v10  ;;  %v11499_v10 = vld [vmem:[#allocation3 + $0x3a4] sm:$0xf0]  ;;  %v11394_v48 = vor.u32 %v13815_v36, %v11391_v3  ;;  %2971 = vst [vmem:[#allocation3 + $0x4e0] sm:$0xf] %v2955_v63  ;;  %v11489_v36 = vld [vmem:[#allocation3 + $0x338] sm:$0xf] }
 0x253   :  { %6964 = vmatpush.bf16.msra.mxu0 %v14035_v51  ;;  %3392 = vst [vmem:[#allocation3 + $0xb8] sm:$0xf] %v3376_v55  ;;  %v14033_v51 = vld [vmem:[%s18447_s3 + $0x300] sm:$0xff]  ;;  %v3031_v2 = vld [vmem:[#allocation2 + $0xe4] sm:$0xff] }
 0x254   :  { %3019 = vst [vmem:[#allocation3 + $0x4e4] sm:$0xf] %v3003_v29  ;;  %v11491_v29 = vld [vmem:[#allocation3 + $0x39c] sm:$0xf0] }
 0x255   :  { %v6539_v56 = vpop.f32.mrf.mxu3  ;;  %v6493_v28 = vpop.f32.mrf.mxu2  ;;  %2869 = vst [vmem:[#allocation3 + $0x280] sm:$0xf] %v2853_v33  ;;  %v3219_v33 = vld [vmem:[#allocation2 + $0x73] sm:$0xff] }
 0x256   :  { %v6540_v17 = vadd.f32 %v6539_v56, %v6491_v15  ;;  %v6494_v62 = vadd.f32 %v6493_v28, %v15889_v60  ;;  %v14034_v60 = vld [vmem:[%s18447_s3 + $0x308] sm:$0xff]  ;;  %v2934_v56 = vld [vmem:[#allocation2 + $0x92] sm:$0xff]  ;;  %v2997_v28 = vpack.c.bf16 %v2981_v40, %v2981_v40  ;;  %3393 = vst [vmem:[#allocation3 + $0x11c] sm:$0xf] %v3377_v31 }
 0x257   :  { %v16272_v0 = vpop.f32.mrf.mxu0  ;;  %v16283_v35 = vpop.f32.mrf.mxu1  ;;  %6965 = vmatpush.bf16.msra.mxu0 %v14034_v60  ;;  %v3264_v15 = vld [vmem:[#allocation2 + $0x44] sm:$0xff]  ;;  %v2950_v37 = vpack.c.bf16 %v2934_v56, %v2934_v56  ;;  %v3265_v40 = vld [vmem:[#allocation2 + $0x54] sm:$0xff]  ;;  %v13928_v56 = vld [vmem:[#allocation3 + $0x5f8] sm:$0xf0] }
 0x258   :  { %v16275_v58 = vadd.f32 %v16155_v44, %v6540_v17  ;;  %v11502_v44 = vor.u32 %v13841_v14, %v11499_v10  ;;  %3013 = vst [vmem:[#allocation3 + $0x28c] sm:$0xf] %v2997_v28  ;;  %v16290_v59 = vpack.c.bf16 %v3264_v15, %v3264_v15  ;;  %v6398_v10 = vadd.f32 %v16054_v34, %v15915_v8  ;;  %v14019_v60 = vld [vmem:[%s18447_s3 + $0x290] sm:$0xff]  ;;  %v3217_v14 = vld [vmem:[#allocation2 + $0x53] sm:$0xff] }
 0x259   :  { %6801 = vmatmul.bf16.gmra.mxu0 %v11698_v27  ;;  %2966 = vst [vmem:[#allocation3 + $0x2ec] sm:$0xf] %v2950_v37  ;;  %v3362_v27 = vld [vmem:[#allocation2 + $0x71] sm:$0xff]  ;;  %v14047_v34 = vld [vmem:[%s18447_s3 + $0x370] sm:$0xff]  ;;  %6866 = vmatpush.bf16.msra.mxu2 %v14019_v60  ;;  %v13840_v37 = vld [vmem:[#allocation3 + $0x33c] sm:$0xf]  ;;  %v3281_v30 = vpack.c.bf16 %v3265_v40, %v3265_v40 }
 0x25a   :  { %6737 = vmatmul.bf16.gmra.mxu3 %v11394_v48  ;;  %6840 = vmatmul.bf16.gmra.mxu1 %v11502_v44  ;;  %v11490_v48 = vor.u32 %v13852_v49, %v11489_v36  ;;  %v6447_v8 = vadd.f32 %v15923_v47, %v6398_v10  ;;  %v3047_v44 = vpack.c.bf16 %v3031_v2, %v3031_v2  ;;  %v3266_v15 = vld [vmem:[#allocation2 + $0x64] sm:$0xff]  ;;  %v3267_v10 = vld [vmem:[#allocation2 + $0x74] sm:$0xff] }
 0x25b   :  { %6966 = vmatpush.bf16.msra.mxu0 %v14033_v51  ;;  %v3218_v51 = vld [vmem:[#allocation2 + $0x63] sm:$0xff]  ;;  %3296 = vst [vmem:[#allocation3 + $0xb0] sm:$0xf] %v16290_v59  ;;  %v3378_v45 = vpack.c.bf16 %v3362_v27, %v3362_v27  ;;  %v16310_v47 = vpack.c.bf16 %v3217_v14, %v3217_v14  ;;  %v3282_v27 = vpack.c.bf16 %v3266_v15, %v3266_v15 }
 0x25c   :  { %3063 = vst [vmem:[#allocation3 + $0x358] sm:$0xf] %v3047_v44  ;;  %v3234_v28 = vpack.c.bf16 %v3218_v51, %v3218_v51  ;;  %v11494_v2 = vor.u32 %v13840_v37, %v11491_v29  ;;  %v13866_v44 = vld [vmem:[#allocation3 + $0x40c] sm:$0xf]  ;;  %v14045_v51 = vld [vmem:[%s18447_s3 + $0x360] sm:$0xff] }
 0x25d   :  { %v6542_v3 = vpop.f32.mrf.mxu3  ;;  %v6495_v19 = vpop.f32.mrf.mxu2  ;;  %3394 = vst [vmem:[#allocation3 + $0x180] sm:$0xf] %v3378_v45  ;;  %v3408_v29 = vld [vmem:[#allocation2 + $0x52] sm:$0xff] }
 0x25e   :  { %v6543_v55 = vadd.f32 %v6542_v3, %v6494_v62  ;;  %v14048_v62 = vld [vmem:[%s18447_s3 + $0x378] sm:$0xff]  ;;  %v6496_v23 = vadd.f32 %v6495_v19, %v6447_v8  ;;  %v14027_v8 = vld [vmem:[%s18447_s3 + $0x2d0] sm:$0xff]  ;;  %3249 = vst [vmem:[#allocation3 + $0x110] sm:$0xf] %v16310_v47 }
 0x25f   :  { %v16288_v17 = vpop.f32.mrf.mxu0  ;;  %v16300_v24 = vpop.f32.mrf.mxu1  ;;  %7008 = vmatpush.bf16.msrb.mxu1 %v14048_v62  ;;  %v11599_v62 = vld [vmem:[#allocation3 + $0x46c] sm:$0xf0]  ;;  %3250 = vst [vmem:[#allocation3 + $0x174] sm:$0xf] %v3234_v28  ;;  %6915 = vmatpush.bf16.msra.mxu3 %v14027_v8  ;;  %v11589_v28 = vld [vmem:[#allocation3 + $0x400] sm:$0xf] }
 0x260   :  { %v16295_v43 = vadd.f32 %v16171_v52, %v6543_v55  ;;  %v2988_v52 = vld [vmem:[#allocation2 + $0x133] sm:$0xff]  ;;  %v11602_v31 = vor.u32 %v13866_v44, %v11599_v62  ;;  %3297 = vst [vmem:[#allocation3 + $0x114] sm:$0xf] %v3281_v30 }
 0x261   :  { %v3004_v63 = vpack.c.bf16 %v2988_v52, %v2988_v52  ;;  %3298 = vst [vmem:[#allocation3 + $0x178] sm:$0xf] %v3282_v27 }
 0x262   :  { %6693 = vmatmul.bf16.gmra.mxu2 %v11490_v48  ;;  %v11797_v48 = vld [vmem:[#allocation3 + $0x598] sm:$0xf]  ;;  %3535 = vst [vmem:[#allocation3 + $0x60] sm:$0xf] %v16290_v59  ;;  %v14044_v59 = vld [vmem:[%s18447_s3 + $0x358] sm:$0xff] }
 0x263   :  { %3020 = vst [vmem:[#allocation3 + $0x548] sm:$0xf] %v3004_v63  ;;  %7009 = vmatpush.bf16.msrb.mxu1 %v14047_v34  ;;  %v11798_v14 = vor.u32 %v13928_v56, %v11797_v48  ;;  %v16325_v34 = vpack.c.bf16 %v3219_v33, %v3219_v33  ;;  %v3407_v63 = vld [vmem:[#allocation2 + $0x42] sm:$0xff]  ;;  %v14403_v33 = vld [vmem:[%s18448_s4] ss:$0 sm:$0xff]  ;;  %v3424_v48 = vpack.c.bf16 %v3408_v29, %v3408_v29 }
 0x264   :  { %3536 = vst [vmem:[#allocation3 + $0xc4] sm:$0xf] %v3281_v30  ;;  %v11113_v29 = vld [vmem:[#allocation3 + $0x30] sm:$0xf] }
 0x265   :  { %v6544_v3 = vpop.f32.mrf.mxu3  ;;  %v6498_v49 = vpop.f32.mrf.mxu2  ;;  %3251 = vst [vmem:[#allocation3 + $0x1d8] sm:$0xf] %v16325_v34 }
 0x266   :  { %v6545_v55 = vadd.f32 %v6544_v3, %v6496_v23  ;;  %v6499_v36 = vadd.f32 %v6498_v49, %v15931_v11  ;;  %v14046_v11 = vld [vmem:[%s18447_s3 + $0x368] sm:$0xff]  ;;  %v3423_v3 = vpack.c.bf16 %v3407_v63, %v3407_v63  ;;  %3537 = vst [vmem:[#allocation3 + $0x128] sm:$0xf] %v3282_v27  ;;  %v14043_v27 = vld [vmem:[%s18447_s3 + $0x350] sm:$0xff] }
 0x267   :  { %v16313_v19 = vpop.f32.mrf.mxu0  ;;  %v16327_v52 = vpop.f32.mrf.mxu1  ;;  %7010 = vmatpush.bf16.msrb.mxu1 %v14046_v11  ;;  %v13877_v23 = vld [vmem:[#allocation3 + $0x460] sm:$0xf0]  ;;  %v13755_v11 = vld [vmem:[#allocation3 + $0x90] sm:$0xf0]  ;;  %3440 = vst [vmem:[#allocation3 + $0xbc] sm:$0xf] %v3424_v48 }
 0x268   :  { %v16316_v60 = vadd.f32 %v16179_v50, %v6545_v55  ;;  %v3283_v50 = vpack.c.bf16 %v3267_v10, %v3267_v10  ;;  %v3455_v49 = vld [vmem:[#allocation2 + $0x43] sm:$0xff]  ;;  %v6403_v55 = vadd.f32 %v14403_v33, %v15980_v42  ;;  %v11590_v10 = vor.u32 %v13877_v23, %v11589_v28  ;;  %3439 = vst [vmem:[#allocation3 + $0x58] sm:$0xf] %v3423_v3  ;;  %v11699_v28 = vld [vmem:[#allocation3 + $0x534] sm:$0xf0] }
 0x269   :  { %6806 = vmatmul.bf16.gmra.mxu0 %v11798_v14  ;;  %v3471_v42 = vpack.c.bf16 %v3455_v49, %v3455_v49  ;;  %v2843_v14 = vld [vmem:[#allocation2 + $0x120] sm:$0xff]  ;;  %v13891_v49 = vld [vmem:[#allocation3 + $0x4d4] sm:$0xf]  ;;  %3488 = vst [vmem:[#allocation3 + $0xc0] sm:$0xf] %v16310_v47 }
 0x26a   :  { %6742 = vmatmul.bf16.gmra.mxu3 %v11494_v2  ;;  %6845 = vmatmul.bf16.gmra.mxu1 %v11602_v31  ;;  %3299 = vst [vmem:[#allocation3 + $0x1dc] sm:$0xf] %v3283_v50  ;;  %v14018_v2 = vld [vmem:[%s18447_s3 + $0x288] sm:$0xff]  ;;  %v2859_v44 = vpack.c.bf16 %v2843_v14, %v2843_v14 }
 0x26b   :  { %7011 = vmatpush.bf16.msrb.mxu1 %v14045_v51  ;;  %3538 = vst [vmem:[#allocation3 + $0x18c] sm:$0xf] %v3283_v50  ;;  %6867 = vmatpush.bf16.msra.mxu2 %v14018_v2  ;;  %v11591_v51 = vld [vmem:[#allocation3 + $0x464] sm:$0xf0] }
 0x26c   :  { %v2891_v63 = vld [vmem:[#allocation2 + $0x121] sm:$0xff]  ;;  %3487 = vst [vmem:[#allocation3 + $0x5c] sm:$0xf] %v3471_v42 }
 0x26d   :  { %v6547_v45 = vpop.f32.mrf.mxu3  ;;  %v6500_v40 = vpop.f32.mrf.mxu2  ;;  %2875 = vst [vmem:[#allocation3 + $0x4d8] sm:$0xf] %v2859_v44  ;;  %v2702_v42 = vld [vmem:[#allocation2 + $0x142] sm:$0xff] }
 0x26e   :  { %v6548_v15 = vadd.f32 %v6547_v45, %v6499_v36  ;;  %v2798_v36 = vld [vmem:[#allocation2 + $0x144] sm:$0xff]  ;;  %3114 = vst [vmem:[#allocation3 + $0x488] sm:$0xf] %v2859_v44  ;;  %v2718_v14 = vpack.c.bf16 %v2702_v42, %v2702_v42  ;;  %v2844_v44 = vld [vmem:[#allocation2 + $0x130] sm:$0xff] }
 0x26f   :  { %v16334_v56 = vpop.f32.mrf.mxu0  ;;  %v16346_v62 = vpop.f32.mrf.mxu1  ;;  %v2814_v30 = vpack.c.bf16 %v2798_v36, %v2798_v36  ;;  %7012 = vmatpush.bf16.msrb.mxu1 %v14044_v59  ;;  %v13865_v45 = vld [vmem:[#allocation3 + $0x404] sm:$0xf]  ;;  %3490 = vst [vmem:[#allocation3 + $0x188] sm:$0xf] %v16325_v34 }
 0x270   :  { %v16341_v37 = vadd.f32 %v16196_v32, %v6548_v15  ;;  %v6452_v32 = vadd.f32 %v16038_v57, %v6403_v55  ;;  %v2907_v15 = vpack.c.bf16 %v2891_v63, %v2891_v63  ;;  %v11594_v55 = vor.u32 %v13865_v45, %v11591_v51  ;;  %v14026_v36 = vld [vmem:[%s18447_s3 + $0x2c8] sm:$0xff]  ;;  %2734 = vst [vmem:[#allocation3 + $0x5f8] sm:$0xf] %v2718_v14  ;;  %v13902_v45 = vld [vmem:[#allocation3 + $0x528] sm:$0xf0] }
 0x271   :  { %2830 = vst [vmem:[#allocation3 + $0x600] sm:$0xf] %v2814_v30  ;;  %v2654_v59 = vld [vmem:[#allocation2 + $0x141] sm:$0xff]  ;;  %6916 = vmatpush.bf16.msra.mxu3 %v14026_v36  ;;  %v2860_v51 = vpack.c.bf16 %v2844_v44, %v2844_v44  ;;  %v2838_v36 = vld [vmem:[#allocation2 + $0x90] sm:$0xff] }
 0x272   :  { %6698 = vmatmul.bf16.gmra.mxu2 %v11590_v10  ;;  %v6501_v8 = vadd.f32 %v6500_v40, %v6452_v32  ;;  %v3079_v40 = vld [vmem:[#allocation2 + $0xf0] sm:$0xff]  ;;  %v11114_v10 = vor.u32 %v13755_v11, %v11113_v29  ;;  %2923 = vst [vmem:[#allocation3 + $0x4dc] sm:$0xf] %v2907_v15  ;;  %v2670_v2 = vpack.c.bf16 %v2654_v59, %v2654_v59  ;;  %v14041_v11 = vld [vmem:[%s18447_s3 + $0x340] sm:$0xff] }
 0x273   :  { %7013 = vmatpush.bf16.msrb.mxu1 %v14043_v27  ;;  %v3095_v48 = vpack.c.bf16 %v3079_v40, %v3079_v40  ;;  %v3127_v32 = vld [vmem:[#allocation2 + $0xf1] sm:$0xff]  ;;  %3162 = vst [vmem:[#allocation3 + $0x48c] sm:$0xf] %v2907_v15  ;;  %v11702_v27 = vor.u32 %v13891_v49, %v11699_v28  ;;  %v11689_v40 = vld [vmem:[#allocation3 + $0x4c8] sm:$0xf]  ;;  %v2854_v59 = vpack.c.bf16 %v2838_v36, %v2838_v36 }
 0x274   :  { %2686 = vst [vmem:[#allocation3 + $0x5f4] sm:$0xf] %v2670_v2  ;;  %v2886_v2 = vld [vmem:[#allocation2 + $0x91] sm:$0xff] }
 0x275   :  { %v6549_v31 = vpop.f32.mrf.mxu3  ;;  %v6503_v50 = vpop.f32.mrf.mxu2  ;;  %3111 = vst [vmem:[#allocation3 + $0x35c] sm:$0xf] %v3095_v48  ;;  %v2982_v48 = vld [vmem:[#allocation2 + $0x93] sm:$0xff] }
 0x276   :  { %v6550_v57 = vadd.f32 %v6549_v31, %v6501_v8  ;;  %v6504_v23 = vadd.f32 %v6503_v50, %v16064_v20  ;;  %v14042_v20 = vld [vmem:[%s18447_s3 + $0x348] sm:$0xff]  ;;  %v3032_v8 = vld [vmem:[#allocation2 + $0xf4] sm:$0xff]  ;;  %v3143_v31 = vpack.c.bf16 %v3127_v32, %v3127_v32  ;;  %2973 = vst [vmem:[#allocation3 + $0x5a8] sm:$0xf] %v2718_v14  ;;  %v2902_v32 = vpack.c.bf16 %v2886_v2, %v2886_v2  ;;  %v11691_v14 = vld [vmem:[#allocation3 + $0x52c] sm:$0xf0] }
 0x277   :  { %v16356_v3 = vpop.f32.mrf.mxu0  ;;  %v16367_v30 = vpop.f32.mrf.mxu1  ;;  %7014 = vmatpush.bf16.msrb.mxu1 %v14042_v20  ;;  %v3048_v29 = vpack.c.bf16 %v3032_v8, %v3032_v8  ;;  %2876 = vst [vmem:[#allocation3 + $0x53c] sm:$0xf] %v2860_v51  ;;  %v13890_v51 = vld [vmem:[#allocation3 + $0x4cc] sm:$0xf] }
 0x278   :  { %v16359_v33 = vadd.f32 %v16213_v1, %v6550_v57  ;;  %v3175_v1 = vld [vmem:[#allocation2 + $0xf2] sm:$0xff]  ;;  %3159 = vst [vmem:[#allocation3 + $0x360] sm:$0xf] %v3143_v31  ;;  %v11799_v47 = vld [vmem:[#allocation3 + $0x5fc] sm:$0xf0] }
 0x279   :  { %6967 = vmatmul.bf16.vlgmr.msra.gmra.mxu0 %v11114_v10  ;;  %v3191_v50 = vpack.c.bf16 %v3175_v1, %v3175_v1  ;;  %v11690_v10 = vor.u32 %v13902_v45, %v11689_v40  ;;  %3064 = vst [vmem:[#allocation3 + $0x3bc] sm:$0xf] %v3048_v29  ;;  %v3033_v1 = vld [vmem:[#allocation2 + $0x104] sm:$0xff]  ;;  %v13916_v40 = vld [vmem:[#allocation3 + $0x59c] sm:$0xf] }
 0x27a   :  { %6747 = vmatmul.bf16.gmra.mxu3 %v11594_v55  ;;  %6850 = vmatmul.bf16.gmra.mxu1 %v11702_v27  ;;  %2870 = vst [vmem:[#allocation3 + $0x2e4] sm:$0xf] %v2854_v59  ;;  %v3049_v44 = vpack.c.bf16 %v3033_v1, %v3033_v1  ;;  %v3076_v45 = vld [vmem:[#allocation2 + $0x80] sm:$0xff]  ;;  %v3129_v59 = vld [vmem:[#allocation2 + $0x111] sm:$0xff] }
 0x27b   :  { %7015 = vmatpush.bf16.msrb.mxu1 %v14041_v11  ;;  %3207 = vst [vmem:[#allocation3 + $0x364] sm:$0xf] %v3191_v50  ;;  %v13780_v11 = vld [vmem:[#allocation3 + $0x158] sm:$0xf0]  ;;  %v3092_v36 = vpack.c.bf16 %v3076_v45, %v3076_v45  ;;  %v11789_v45 = vld [vmem:[#allocation3 + $0x590] sm:$0xf] }
 0x27c   :  { %2918 = vst [vmem:[#allocation3 + $0x2e8] sm:$0xf] %v2902_v32 }
 0x27d   :  { %v6552_v63 = vpop.f32.mrf.mxu3  ;;  %v6505_v57 = vpop.f32.mrf.mxu2  ;;  %3157 = vst [vmem:[#allocation3 + $0x298] sm:$0xf] %v2902_v32 }
 0x27e   :  { %v6553_v15 = vadd.f32 %v6552_v63, %v6504_v23  ;;  %v6506_v49 = vadd.f32 %v6505_v57, %v16087_v41  ;;  %v14017_v23 = vld [vmem:[%s18447_s3 + $0x280] sm:$0xff]  ;;  %v3176_v41 = vld [vmem:[#allocation2 + $0x102] sm:$0xff]  ;;  %3065 = vst [vmem:[#allocation3 + $0x420] sm:$0xf] %v3049_v44 }
 0x27f   :  { %v16373_v28 = vpop.f32.mrf.mxu0  ;;  %v16378_v20 = vpop.f32.mrf.mxu1  ;;  %v3192_v42 = vpack.c.bf16 %v3176_v41, %v3176_v41  ;;  %6868 = vmatpush.bf16.msra.mxu2 %v14017_v23  ;;  %v11213_v63 = vld [vmem:[#allocation3 + $0xf8] sm:$0xf]  ;;  %v3081_v41 = vld [vmem:[#allocation2 + $0x110] sm:$0xff]  ;;  %3108 = vst [vmem:[#allocation3 + $0x230] sm:$0xf] %v3092_v36 }
 0x280   :  { %v16376_v55 = vadd.f32 %v16234_v26, %v6553_v15  ;;  %v2998_v26 = vpack.c.bf16 %v2982_v48, %v2982_v48  ;;  %v11694_v15 = vor.u32 %v13890_v51, %v11691_v14  ;;  %v11802_v48 = vor.u32 %v13916_v40, %v11799_v47  ;;  %3347 = vst [vmem:[#allocation3 + $0x1e0] sm:$0xf] %v3092_v36 }
 0x281   :  { %3208 = vst [vmem:[#allocation3 + $0x3c8] sm:$0xf] %v3192_v42  ;;  %v3177_v42 = vld [vmem:[#allocation2 + $0x112] sm:$0xff] }
 0x282   :  { %6703 = vmatmul.bf16.gmra.mxu2 %v11690_v10  ;;  %3014 = vst [vmem:[#allocation3 + $0x2f0] sm:$0xf] %v2998_v26  ;;  %v11214_v10 = vor.u32 %v13780_v11, %v11213_v63  ;;  %v3034_v26 = vld [vmem:[#allocation2 + $0x114] sm:$0xff]  ;;  %v3193_v32 = vpack.c.bf16 %v3177_v42, %v3177_v42  ;;  %v3409_v63 = vld [vmem:[#allocation2 + $0x62] sm:$0xff] }
 0x283   :  { %v3050_v1 = vpack.c.bf16 %v3034_v26, %v3034_v26  ;;  %v13927_v11 = vld [vmem:[#allocation3 + $0x5f0] sm:$0xf0]  ;;  %3304 = vst [vmem:[#allocation3 + $0x3d0] sm:$0xf] %v3049_v44  ;;  %v11791_v26 = vld [vmem:[#allocation3 + $0x5f4] sm:$0xf0] }
 0x284   :  { %3209 = vst [vmem:[#allocation3 + $0x42c] sm:$0xf] %v3193_v32  ;;  %v11790_v40 = vor.u32 %v13927_v11, %v11789_v45  ;;  %v13915_v11 = vld [vmem:[#allocation3 + $0x594] sm:$0xf] }
 0x285   :  { %v6554_v27 = vpop.f32.mrf.mxu3  ;;  %v6508_v8 = vpop.f32.mrf.mxu2  ;;  %3066 = vst [vmem:[#allocation3 + $0x484] sm:$0xf] %v3050_v1  ;;  %v13805_v1 = vld [vmem:[#allocation3 + $0x220] sm:$0xf0] }
 0x286   :  { %v6555_v31 = vadd.f32 %v6554_v27, %v6506_v49  ;;  %v6509_v50 = vadd.f32 %v6508_v8, %v16124_v22  ;;  %v14025_v49 = vld [vmem:[%s18447_s3 + $0x2c0] sm:$0xff]  ;;  %v3172_v22 = vld [vmem:[#allocation2 + $0x82] sm:$0xff]  ;;  %v3097_v27 = vpack.c.bf16 %v3081_v41, %v3081_v41 }
 0x287   :  { %v16385_v57 = vpop.f32.mrf.mxu0  ;;  %v16393_v23 = vpop.f32.mrf.mxu1  ;;  %v3188_v2 = vpack.c.bf16 %v3172_v22, %v3172_v22  ;;  %6917 = vmatpush.bf16.msra.mxu3 %v14025_v49  ;;  %v3178_v22 = vld [vmem:[#allocation2 + $0x122] sm:$0xff] }
 0x288   :  { %v16388_v29 = vadd.f32 %v16250_v21, %v6555_v31  ;;  %v3145_v21 = vpack.c.bf16 %v3129_v59, %v3129_v59  ;;  %3113 = vst [vmem:[#allocation3 + $0x424] sm:$0xf] %v3097_v27  ;;  %v3457_v59 = vld [vmem:[#allocation2 + $0x63] sm:$0xff]  ;;  %v3194_v41 = vpack.c.bf16 %v3178_v22, %v3178_v22 }
 0x289   :  { %6972 = vmatmul.bf16.gmra.mxu0 %v11214_v10  ;;  %3204 = vst [vmem:[#allocation3 + $0x238] sm:$0xf] %v3188_v2  ;;  %v3410_v10 = vld [vmem:[#allocation2 + $0x72] sm:$0xff] }
 0x28a   :  { %6752 = vmatmul.bf16.gmra.mxu3 %v11694_v15  ;;  %6855 = vmatmul.bf16.gmra.mxu1 %v11802_v48  ;;  %3161 = vst [vmem:[#allocation3 + $0x428] sm:$0xf] %v3145_v21  ;;  %v3029_v48 = vld [vmem:[#allocation2 + $0x84] sm:$0xff]  ;;  %v3473_v21 = vpack.c.bf16 %v3457_v59, %v3457_v59  ;;  %v3223_v59 = vld [vmem:[#allocation2 + $0xf3] sm:$0xff] }
 0x28b   :  { %3352 = vst [vmem:[#allocation3 + $0x3d4] sm:$0xf] %v3097_v27  ;;  %v3045_v2 = vpack.c.bf16 %v3029_v48, %v3029_v48  ;;  %v11115_v27 = vld [vmem:[#allocation3 + $0x94] sm:$0xf0] }
 0x28c   :  { %3210 = vst [vmem:[#allocation3 + $0x490] sm:$0xf] %v3194_v41  ;;  %v3271_v41 = vld [vmem:[#allocation2 + $0xf4] sm:$0xff] }
 0x28d   :  { %v6557_v14 = vpop.f32.mrf.mxu3  ;;  %v6510_v8 = vpop.f32.mrf.mxu2  ;;  %3061 = vst [vmem:[#allocation3 + $0x290] sm:$0xf] %v3045_v2  ;;  %v3239_v2 = vpack.c.bf16 %v3223_v59, %v3223_v59 }
 0x28e   :  { %v6558_v31 = vadd.f32 %v6557_v14, %v6509_v50  ;;  %v6511_v51 = vadd.f32 %v6510_v8, %v16137_v4  ;;  %v14056_v50 = vld [vmem:[%s18447_s3 + $0x3b8] sm:$0xff]  ;;  %v3425_v4 = vpack.c.bf16 %v3409_v63, %v3409_v63  ;;  %v11313_v8 = vld [vmem:[#allocation3 + $0x1c0] sm:$0xf]  ;;  %v11794_v63 = vor.u32 %v13915_v11, %v11791_v26  ;;  %3489 = vst [vmem:[#allocation3 + $0x124] sm:$0xf] %v3473_v21 }
 0x28f   :  { %v16396_v47 = vpop.f32.mrf.mxu0  ;;  %v16401_v49 = vpop.f32.mrf.mxu1  ;;  %7057 = vmatpush.bf16.msrb.mxu2 %v14056_v50  ;;  %v11314_v45 = vor.u32 %v13805_v1, %v11313_v8  ;;  %v3179_v50 = vld [vmem:[#allocation2 + $0x132] sm:$0xff]  ;;  %v3287_v21 = vpack.c.bf16 %v3271_v41, %v3271_v41  ;;  %v11105_v8 = vld [vmem:[#allocation3 + $0x28] sm:$0xf]  ;;  %3255 = vst [vmem:[#allocation3 + $0x368] sm:$0xf] %v3239_v2  ;;  %v6626_v41 = vadd.f32 %v16146_v54, %v16184_v61 }
 0x290   :  { %v16399_v15 = vadd.f32 %v16272_v0, %v6558_v31  ;;  %v3426_v0 = vpack.c.bf16 %v3410_v10, %v3410_v10  ;;  %3441 = vst [vmem:[#allocation3 + $0x120] sm:$0xf] %v3425_v4  ;;  %v3131_v10 = vld [vmem:[#allocation2 + $0x131] sm:$0xff]  ;;  %v3195_v48 = vpack.c.bf16 %v3179_v50, %v3179_v50  ;;  %v14063_v61 = vld [vmem:[%s18447_s3 + $0x3f0] sm:$0xff] }
 0x291   :  { %v3147_v4 = vpack.c.bf16 %v3131_v10, %v3131_v10  ;;  %v3083_v11 = vld [vmem:[#allocation2 + $0x130] sm:$0xff]  ;;  %3303 = vst [vmem:[#allocation3 + $0x36c] sm:$0xf] %v3287_v21 }
 0x292   :  { %6708 = vmatmul.bf16.gmra.mxu2 %v11790_v40  ;;  %3442 = vst [vmem:[#allocation3 + $0x184] sm:$0xf] %v3426_v0  ;;  %v14064_v40 = vld [vmem:[%s18447_s3 + $0x3f8] sm:$0xff] }
 0x293   :  { %7106 = vmatpush.bf16.msrb.mxu3 %v14064_v40  ;;  %3163 = vst [vmem:[#allocation3 + $0x4f0] sm:$0xf] %v3147_v4  ;;  %v14072_v40 = vld [vmem:[%s18447_s3 + $0x438] sm:$0xff] }
 0x294   :  { %3211 = vst [vmem:[#allocation3 + $0x4f4] sm:$0xf] %v3195_v48  ;;  %v3036_v50 = vld [vmem:[#allocation2 + $0x134] sm:$0xff]  ;;  %7155 = vmatpush.bf16.msrb.mxu0 %v14072_v40  ;;  %v11107_v2 = vld [vmem:[#allocation3 + $0x8c] sm:$0xf0] }
 0x295   :  { %v6559_v42 = vpop.f32.mrf.mxu3  ;;  %v6513_v32 = vpop.f32.mrf.mxu2 }
 0x296   :  { %v6560_v14 = vadd.f32 %v6559_v42, %v6511_v51  ;;  %v6514_v36 = vadd.f32 %v6513_v32, %v16152_v6  ;;  %v13743_v6 = vld [vmem:[#allocation3 + $0x34] sm:$0xf]  ;;  %v13754_v32 = vld [vmem:[#allocation3 + $0x88] sm:$0xf0] }
 0x297   :  { %v16407_v31 = vpop.f32.mrf.mxu0  ;;  %v16415_v51 = vpop.f32.mrf.mxu1  ;;  %v11118_v22 = vor.u32 %v13743_v6, %v11115_v27  ;;  %v3319_v27 = vld [vmem:[#allocation2 + $0x100] sm:$0xff]  ;;  %v3099_v6 = vpack.c.bf16 %v3083_v11, %v3083_v11  ;;  %7107 = vmatpush.bf16.msrb.mxu3 %v14063_v61 }
 0x298   :  { %v16410_v44 = vadd.f32 %v16288_v17, %v6560_v14  ;;  %v3035_v17 = vld [vmem:[#allocation2 + $0x124] sm:$0xff]  ;;  %v3335_v10 = vpack.c.bf16 %v3319_v27, %v3319_v27  ;;  %v11215_v11 = vld [vmem:[#allocation3 + $0x15c] sm:$0xf0] }
 0x299   :  { %6977 = vmatmul.bf16.gmra.mxu0 %v11314_v45  ;;  %v3051_v0 = vpack.c.bf16 %v3035_v17, %v3035_v17  ;;  %v11106_v45 = vor.u32 %v13754_v32, %v11105_v8  ;;  %3115 = vst [vmem:[#allocation3 + $0x4ec] sm:$0xf] %v3099_v6  ;;  %v3224_v17 = vld [vmem:[#allocation2 + $0x103] sm:$0xff] }
 0x29a   :  { %6757 = vmatmul.bf16.gmra.mxu3 %v11794_v63  ;;  %7016 = vmatmul.bf16.vlgmr.msrb.gmra.mxu1 %v11118_v22  ;;  %v3367_v22 = vld [vmem:[#allocation2 + $0x101] sm:$0xff]  ;;  %3351 = vst [vmem:[#allocation3 + $0x370] sm:$0xf] %v3335_v10  ;;  %v3240_v59 = vpack.c.bf16 %v3224_v17, %v3224_v17 }
 0x29b   :  { %3067 = vst [vmem:[#allocation3 + $0x4e8] sm:$0xf] %v3051_v0  ;;  %v3383_v4 = vpack.c.bf16 %v3367_v22, %v3367_v22  ;;  %v11413_v8 = vld [vmem:[#allocation3 + $0x288] sm:$0xf] }
 0x29c   :  { %3306 = vst [vmem:[#allocation3 + $0x498] sm:$0xf] %v3051_v0  ;;  %v13742_v0 = vld [vmem:[#allocation3 + $0x2c] sm:$0xf]  ;;  %v3268_v10 = vld [vmem:[#allocation2 + $0x84] sm:$0xff] }
 0x29d   :  { %v6562_v42 = vpop.f32.mrf.mxu3  ;;  %v6515_v26 = vpop.f32.mrf.mxu2  ;;  %3354 = vst [vmem:[#allocation3 + $0x49c] sm:$0xf] %v3099_v6  ;;  %v3220_v6 = vld [vmem:[#allocation2 + $0x83] sm:$0xff]  ;;  %v3284_v22 = vpack.c.bf16 %v3268_v10, %v3268_v10 }
 0x29e   :  { %v6563_v1 = vadd.f32 %v6562_v42, %v6514_v36  ;;  %v6516_v34 = vadd.f32 %v6515_v26, %v16168_v18  ;;  %v14055_v18 = vld [vmem:[%s18447_s3 + $0x3b0] sm:$0xff]  ;;  %3399 = vst [vmem:[#allocation3 + $0x374] sm:$0xf] %v3383_v4 }
 0x29f   :  { %v16419_v14 = vpop.f32.mrf.mxu0  ;;  %v16427_v36 = vpop.f32.mrf.mxu1  ;;  %7058 = vmatpush.bf16.msrb.mxu2 %v14055_v18  ;;  %v13830_v42 = vld [vmem:[#allocation3 + $0x2e8] sm:$0xf0]  ;;  %3256 = vst [vmem:[#allocation3 + $0x3cc] sm:$0xf] %v3240_v59  ;;  %v3226_v10 = vld [vmem:[#allocation2 + $0x123] sm:$0xff] }
 0x2a0   :  { %v16422_v63 = vadd.f32 %v16313_v19, %v6563_v1  ;;  %v3052_v19 = vpack.c.bf16 %v3036_v50, %v3036_v50  ;;  %v11414_v54 = vor.u32 %v13830_v42, %v11413_v8  ;;  %3495 = vst [vmem:[#allocation3 + $0x37c] sm:$0xf] %v3240_v59  ;;  %v3236_v50 = vpack.c.bf16 %v3220_v6, %v3220_v6  ;;  %v13779_v42 = vld [vmem:[#allocation3 + $0x150] sm:$0xf0]  ;;  %v3369_v6 = vld [vmem:[#allocation2 + $0x121] sm:$0xff] }
 0x2a1   :  { %v6628_v59 = vadd.f32 %v16161_v9, %v16201_v39  ;;  %3300 = vst [vmem:[#allocation3 + $0x240] sm:$0xf] %v3284_v22  ;;  %v14071_v9 = vld [vmem:[%s18447_s3 + $0x430] sm:$0xff] }
 0x2a2   :  { %6869 = vmatmul.bf16.vlgmr.msra.gmra.mxu2 %v11106_v45  ;;  %3068 = vst [vmem:[#allocation3 + $0x54c] sm:$0xf] %v3052_v19  ;;  %v11110_v45 = vor.u32 %v13742_v0, %v11107_v2  ;;  %v3368_v19 = vld [vmem:[#allocation2 + $0x111] sm:$0xff]  ;;  %7156 = vmatpush.bf16.msrb.mxu0 %v14071_v9 }
 0x2a3   :  { %v3384_v4 = vpack.c.bf16 %v3368_v19, %v3368_v19  ;;  %3252 = vst [vmem:[#allocation3 + $0x23c] sm:$0xf] %v3236_v50  ;;  %v3242_v19 = vpack.c.bf16 %v3226_v10, %v3226_v10  ;;  %v3077_v9 = vld [vmem:[#allocation2 + $0x90] sm:$0xff] }
 0x2a4   :  { %3539 = vst [vmem:[#allocation3 + $0x1f0] sm:$0xf] %v3284_v22  ;;  %v3370_v10 = vld [vmem:[#allocation2 + $0x131] sm:$0xff] }
 0x2a5   :  { %v6564_v48 = vpop.f32.mrf.mxu3  ;;  %v6674_v21 = vpop.f32.mrf.mxu2  ;;  %3400 = vst [vmem:[#allocation3 + $0x3d8] sm:$0xf] %v3384_v4 }
 0x2a6   :  { %v6565_v26 = vadd.f32 %v6564_v48, %v6516_v34  ;;  %v6675_v32 = vadd.f32 %v6674_v21, %v6626_v41  ;;  %v13768_v34 = vld [vmem:[#allocation3 + $0xfc] sm:$0xf]  ;;  %v3273_v41 = vld [vmem:[#allocation2 + $0x114] sm:$0xff]  ;;  %3258 = vst [vmem:[#allocation3 + $0x494] sm:$0xf] %v3242_v19 }
 0x2a7   :  { %v16434_v1 = vpop.f32.mrf.mxu0  ;;  %v16442_v40 = vpop.f32.mrf.mxu1  ;;  %v11218_v18 = vor.u32 %v13768_v34, %v11215_v11  ;;  %v3289_v48 = vpack.c.bf16 %v3273_v41, %v3273_v41  ;;  %v11205_v11 = vld [vmem:[#allocation3 + $0xf0] sm:$0xf]  ;;  %3491 = vst [vmem:[#allocation3 + $0x1ec] sm:$0xf] %v3236_v50 }
 0x2a8   :  { %v16437_v27 = vadd.f32 %v16334_v56, %v6565_v26  ;;  %v3225_v56 = vld [vmem:[#allocation2 + $0x113] sm:$0xff]  ;;  %v11206_v61 = vor.u32 %v13779_v42, %v11205_v11  ;;  %3497 = vst [vmem:[#allocation3 + $0x444] sm:$0xf] %v3242_v19 }
 0x2a9   :  { %6982 = vmatmul.bf16.gmra.mxu0 %v11414_v54  ;;  %v3241_v17 = vpack.c.bf16 %v3225_v56, %v3225_v56  ;;  %3305 = vst [vmem:[#allocation3 + $0x434] sm:$0xf] %v3289_v48  ;;  %v6631_v56 = vadd.f32 %v16176_v16, %v16218_v5  ;;  %v13767_v42 = vld [vmem:[#allocation3 + $0xf4] sm:$0xf]  ;;  %v11513_v11 = vld [vmem:[#allocation3 + $0x350] sm:$0xf] }
 0x2aa   :  { %6918 = vmatmul.bf16.vlgmr.msra.gmra.mxu3 %v11110_v45  ;;  %7021 = vmatmul.bf16.gmra.mxu1 %v11218_v18  ;;  %v3321_v45 = vld [vmem:[#allocation2 + $0x120] sm:$0xff]  ;;  %3544 = vst [vmem:[#allocation3 + $0x3e4] sm:$0xf] %v3289_v48 }
 0x2ab   :  { %3257 = vst [vmem:[#allocation3 + $0x430] sm:$0xf] %v3241_v17  ;;  %v3337_v39 = vpack.c.bf16 %v3321_v45, %v3321_v45  ;;  %v3363_v18 = vld [vmem:[#allocation2 + $0x81] sm:$0xff] }
 0x2ac   :  { %v3379_v4 = vpack.c.bf16 %v3363_v18, %v3363_v18  ;;  %3496 = vst [vmem:[#allocation3 + $0x3e0] sm:$0xf] %v3241_v17 }
 0x2ad   :  { %v6723_v2 = vpop.f32.mrf.mxu3  ;;  %v6676_v21 = vpop.f32.mrf.mxu2  ;;  %3353 = vst [vmem:[#allocation3 + $0x438] sm:$0xf] %v3337_v39  ;;  %v14062_v39 = vld [vmem:[%s18447_s3 + $0x3e8] sm:$0xff] }
 0x2ae   :  { %v6724_v26 = vadd.f32 %v6723_v2, %v6675_v32  ;;  %v6677_v0 = vadd.f32 %v6676_v21, %v6628_v59  ;;  %v14054_v32 = vld [vmem:[%s18447_s3 + $0x3a8] sm:$0xff]  ;;  %v11207_v59 = vld [vmem:[#allocation3 + $0x154] sm:$0xf0]  ;;  %v13855_v21 = vld [vmem:[#allocation3 + $0x3b0] sm:$0xf0]  ;;  %7108 = vmatpush.bf16.msrb.mxu3 %v14062_v39 }
 0x2af   :  { %v16446_v8 = vpop.f32.mrf.mxu0  ;;  %v16454_v34 = vpop.f32.mrf.mxu1  ;;  %7059 = vmatpush.bf16.msrb.mxu2 %v14054_v32  ;;  %3395 = vst [vmem:[#allocation3 + $0x1e4] sm:$0xf] %v3379_v4  ;;  %v11210_v16 = vor.u32 %v13767_v42, %v11207_v59  ;;  %v11514_v5 = vor.u32 %v13855_v21, %v11513_v11  ;;  %v3093_v32 = vpack.c.bf16 %v3077_v9, %v3077_v9  ;;  %v11305_v21 = vld [vmem:[#allocation3 + $0x1b8] sm:$0xf]  ;;  %v14070_v11 = vld [vmem:[%s18447_s3 + $0x428] sm:$0xff] }
 0x2b0   :  { %v16449_v54 = vadd.f32 %v16356_v3, %v6724_v26  ;;  %v3385_v3 = vpack.c.bf16 %v3369_v6, %v3369_v6  ;;  %v13793_v6 = vld [vmem:[#allocation3 + $0x1c4] sm:$0xf]  ;;  %7157 = vmatpush.bf16.msrb.mxu0 %v14070_v11 }
 0x2b1   :  { %3109 = vst [vmem:[#allocation3 + $0x294] sm:$0xf] %v3093_v32  ;;  %v3174_v9 = vld [vmem:[#allocation2 + $0xa2] sm:$0xff] }
 0x2b2   :  { %6874 = vmatmul.bf16.gmra.mxu2 %v11206_v61  ;;  %3401 = vst [vmem:[#allocation3 + $0x43c] sm:$0xf] %v3385_v3  ;;  %v11315_v61 = vld [vmem:[#allocation3 + $0x224] sm:$0xf0]  ;;  %v3030_v3 = vld [vmem:[#allocation2 + $0x94] sm:$0xff] }
 0x2b3   :  { %v11318_v50 = vor.u32 %v13793_v6, %v11315_v61  ;;  %v3046_v18 = vpack.c.bf16 %v3030_v3, %v3030_v3  ;;  %3348 = vst [vmem:[#allocation3 + $0x244] sm:$0xf] %v3093_v32  ;;  %v3190_v32 = vpack.c.bf16 %v3174_v9, %v3174_v9  ;;  %v3078_v6 = vld [vmem:[#allocation2 + $0xa0] sm:$0xff]  ;;  %v13818_v9 = vld [vmem:[#allocation3 + $0x28c] sm:$0xf] }
 0x2b5   :  { %v6725_v41 = vpop.f32.mrf.mxu3  ;;  %v6679_v2 = vpop.f32.mrf.mxu2  ;;  %3062 = vst [vmem:[#allocation3 + $0x2f4] sm:$0xf] %v3046_v18  ;;  %v3094_v18 = vpack.c.bf16 %v3078_v6, %v3078_v6 }
 0x2b6   :  { %v6726_v22 = vadd.f32 %v6725_v41, %v6677_v0  ;;  %v6680_v26 = vadd.f32 %v6679_v2, %v6631_v56  ;;  %v6633_v56 = vadd.f32 %v16189_v46, %v16237_v25  ;;  %v13804_v41 = vld [vmem:[#allocation3 + $0x218] sm:$0xf0]  ;;  %v3126_v25 = vld [vmem:[#allocation2 + $0xa1] sm:$0xff]  ;;  %3206 = vst [vmem:[#allocation3 + $0x300] sm:$0xf] %v3190_v32 }
 0x2b7   :  { %v16461_v45 = vpop.f32.mrf.mxu0  ;;  %v16469_v0 = vpop.f32.mrf.mxu1  ;;  %v11306_v42 = vor.u32 %v13804_v41, %v11305_v21  ;;  %v14053_v46 = vld [vmem:[%s18447_s3 + $0x3a0] sm:$0xff]  ;;  %3110 = vst [vmem:[#allocation3 + $0x2f8] sm:$0xf] %v3094_v18 }
 0x2b8   :  { %v16464_v48 = vadd.f32 %v16373_v28, %v6726_v22  ;;  %v3386_v28 = vpack.c.bf16 %v3370_v10, %v3370_v10  ;;  %7060 = vmatpush.bf16.msrb.mxu2 %v14053_v46  ;;  %v11613_v21 = vld [vmem:[#allocation3 + $0x418] sm:$0xf]  ;;  %3349 = vst [vmem:[#allocation3 + $0x2a8] sm:$0xf] %v3094_v18 }
 0x2b9   :  { %6987 = vmatmul.bf16.gmra.mxu0 %v11514_v5  ;;  %v3142_v5 = vpack.c.bf16 %v3126_v25, %v3126_v25  ;;  %v14061_v25 = vld [vmem:[%s18447_s3 + $0x3e0] sm:$0xff] }
 0x2ba   :  { %6923 = vmatmul.bf16.gmra.mxu3 %v11210_v16  ;;  %7026 = vmatmul.bf16.gmra.mxu1 %v11318_v50  ;;  %3402 = vst [vmem:[#allocation3 + $0x4a0] sm:$0xf] %v3386_v28  ;;  %v11307_v16 = vld [vmem:[#allocation3 + $0x21c] sm:$0xf0]  ;;  %v13880_v50 = vld [vmem:[#allocation3 + $0x478] sm:$0xf0] }
 0x2bb   :  { %v3227_v28 = vld [vmem:[#allocation2 + $0x133] sm:$0xff]  ;;  %3158 = vst [vmem:[#allocation3 + $0x2fc] sm:$0xf] %v3142_v5  ;;  %v11614_v46 = vor.u32 %v13880_v50, %v11613_v21  ;;  %7109 = vmatpush.bf16.msrb.mxu3 %v14061_v25  ;;  %v3511_v5 = vld [vmem:[#allocation2 + $0x104] sm:$0xff] }
 0x2bc   :  { %v2893_v50 = vld [vmem:[#allocation2 + $0x141] sm:$0xff]  ;;  %v14068_v25 = vld [vmem:[%s18447_s3 + $0x418] sm:$0xff] }
 0x2bd   :  { %v6728_v17 = vpop.f32.mrf.mxu3  ;;  %v6681_v4 = vpop.f32.mrf.mxu2  ;;  %v2909_v18 = vpack.c.bf16 %v2893_v50, %v2893_v50  ;;  %v3417_v50 = vld [vmem:[#allocation2 + $0x122] sm:$0xff] }
 0x2be   :  { %v6729_v59 = vadd.f32 %v6728_v17, %v6680_v26  ;;  %v6682_v2 = vadd.f32 %v6681_v4, %v6633_v56  ;;  %v3173_v26 = vld [vmem:[#allocation2 + $0x92] sm:$0xff]  ;;  %v13792_v4 = vld [vmem:[#allocation3 + $0x1bc] sm:$0xf] }
 0x2bf   :  { %v16473_v19 = vpop.f32.mrf.mxu0  ;;  %v16481_v61 = vpop.f32.mrf.mxu1  ;;  %v3189_v39 = vpack.c.bf16 %v3173_v26, %v3173_v26  ;;  %v3275_v56 = vld [vmem:[#allocation2 + $0x134] sm:$0xff]  ;;  %v11310_v11 = vor.u32 %v13792_v4, %v11307_v16  ;;  %v2845_v16 = vld [vmem:[#allocation2 + $0x140] sm:$0xff]  ;;  %2925 = vst [vmem:[#allocation3 + $0x5a4] sm:$0xf] %v2909_v18 }
 0x2c0   :  { %v16476_v22 = vadd.f32 %v16385_v57, %v6729_v59  ;;  %v6636_v57 = vadd.f32 %v16206_v13, %v16255_v12  ;;  %v16490_v13 = vpack.c.bf16 %v3227_v28, %v3227_v28  ;;  %v2861_v32 = vpack.c.bf16 %v2845_v16, %v2845_v16  ;;  %v3415_v4 = vld [vmem:[#allocation2 + $0x102] sm:$0xff]  ;;  %3164 = vst [vmem:[#allocation3 + $0x554] sm:$0xf] %v2909_v18 }
 0x2c1   :  { %3205 = vst [vmem:[#allocation3 + $0x29c] sm:$0xf] %v3189_v39  ;;  %v6638_v39 = vadd.f32 %v16224_v38, %v16275_v58 }
 0x2c2   :  { %6879 = vmatmul.bf16.gmra.mxu2 %v11306_v42  ;;  %v11415_v42 = vld [vmem:[#allocation3 + $0x2ec] sm:$0xf0]  ;;  %3259 = vst [vmem:[#allocation3 + $0x4f8] sm:$0xf] %v16490_v13 }
 0x2c3   :  { %2877 = vst [vmem:[#allocation3 + $0x5a0] sm:$0xf] %v2861_v32 }
 0x2c4   :  { %3116 = vst [vmem:[#allocation3 + $0x550] sm:$0xf] %v2861_v32 }
 0x2c5   :  { %v6730_v3 = vpop.f32.mrf.mxu3  ;;  %v6684_v10 = vpop.f32.mrf.mxu2  ;;  %3498 = vst [vmem:[#allocation3 + $0x4a8] sm:$0xf] %v16490_v13  ;;  %v3221_v13 = vld [vmem:[#allocation2 + $0x93] sm:$0xff] }
 0x2c6   :  { %v6731_v17 = vadd.f32 %v6730_v3, %v6682_v2  ;;  %v6685_v41 = vadd.f32 %v6684_v10, %v6636_v57  ;;  %v3291_v2 = vpack.c.bf16 %v3275_v56, %v3275_v56  ;;  %v11418_v57 = vor.u32 %v13818_v9, %v11415_v42  ;;  %v13829_v10 = vld [vmem:[#allocation3 + $0x2e0] sm:$0xf0]  ;;  %v11405_v42 = vld [vmem:[#allocation3 + $0x280] sm:$0xf] }
 0x2c7   :  { %v16488_v59 = vpop.f32.mrf.mxu0  ;;  %v16498_v26 = vpop.f32.mrf.mxu1  ;;  %v11406_v58 = vor.u32 %v13829_v10, %v11405_v42  ;;  %v3513_v10 = vld [vmem:[#allocation2 + $0x124] sm:$0xff]  ;;  %v11515_v42 = vld [vmem:[#allocation3 + $0x3b4] sm:$0xf0] }
 0x2c8   :  { %v16493_v12 = vadd.f32 %v16396_v47, %v6731_v17  ;;  %v14069_v47 = vld [vmem:[%s18447_s3 + $0x420] sm:$0xff]  ;;  %3307 = vst [vmem:[#allocation3 + $0x4fc] sm:$0xf] %v3291_v2  ;;  %v3527_v17 = vpack.c.bf16 %v3511_v5, %v3511_v5  ;;  %v6641_v5 = vadd.f32 %v16243_v53, %v16295_v43  ;;  %v2989_v53 = vld [vmem:[#allocation2 + $0x143] sm:$0xff] }
 0x2c9   :  { %6992 = vmatmul.bf16.gmra.mxu0 %v11614_v46  ;;  %v2942_v46 = vld [vmem:[#allocation2 + $0x152] sm:$0xff]  ;;  %3546 = vst [vmem:[#allocation3 + $0x4ac] sm:$0xf] %v3291_v2  ;;  %v3411_v43 = vld [vmem:[#allocation2 + $0x82] sm:$0xff]  ;;  %v3433_v2 = vpack.c.bf16 %v3417_v50, %v3417_v50 }
 0x2ca   :  { %6928 = vmatmul.bf16.gmra.mxu3 %v11310_v11  ;;  %7031 = vmatmul.bf16.gmra.mxu1 %v11418_v57  ;;  %v3416_v11 = vld [vmem:[#allocation2 + $0x112] sm:$0xff]  ;;  %v2958_v9 = vpack.c.bf16 %v2942_v46, %v2942_v46  ;;  %3543 = vst [vmem:[#allocation3 + $0x380] sm:$0xf] %v3527_v17  ;;  %v3529_v17 = vpack.c.bf16 %v3513_v10, %v3513_v10 }
 0x2cb   :  { %7158 = vmatpush.bf16.msrb.mxu0 %v14069_v47  ;;  %v14052_v57 = vld [vmem:[%s18447_s3 + $0x398] sm:$0xff]  ;;  %v3431_v47 = vpack.c.bf16 %v3415_v4, %v3415_v4  ;;  %v3432_v16 = vpack.c.bf16 %v3416_v11, %v3416_v11  ;;  %v11713_v4 = vld [vmem:[#allocation3 + $0x4e0] sm:$0xf]  ;;  %v13817_v11 = vld [vmem:[#allocation3 + $0x284] sm:$0xf]  ;;  %v3237_v10 = vpack.c.bf16 %v3221_v13, %v3221_v13 }
 0x2cc   :  { %2974 = vst [vmem:[#allocation3 + $0x60c] sm:$0xf] %v2958_v9  ;;  %7061 = vmatpush.bf16.msrb.mxu2 %v14052_v57  ;;  %v14060_v57 = vld [vmem:[%s18447_s3 + $0x3d8] sm:$0xff] }
 0x2cd   :  { %v6733_v6 = vpop.f32.mrf.mxu3  ;;  %v6686_v3 = vpop.f32.mrf.mxu2  ;;  %3447 = vst [vmem:[#allocation3 + $0x378] sm:$0xf] %v3431_v47  ;;  %v14066_v47 = vld [vmem:[%s18447_s3 + $0x408] sm:$0xff]  ;;  %7110 = vmatpush.bf16.msrb.mxu3 %v14060_v57 }
 0x2ce   :  { %v6734_v28 = vadd.f32 %v6733_v6, %v6685_v41  ;;  %v6687_v56 = vadd.f32 %v6686_v3, %v6638_v39  ;;  %v13905_v39 = vld [vmem:[#allocation3 + $0x540] sm:$0xf0]  ;;  %v11407_v6 = vld [vmem:[#allocation3 + $0x2e4] sm:$0xf0]  ;;  %3448 = vst [vmem:[#allocation3 + $0x3dc] sm:$0xf] %v3432_v16  ;;  %v3427_v16 = vpack.c.bf16 %v3411_v43, %v3411_v43 }
 0x2cf   :  { %v16506_v21 = vpop.f32.mrf.mxu0  ;;  %v16514_v41 = vpop.f32.mrf.mxu1  ;;  %7159 = vmatpush.bf16.msrb.mxu0 %v14068_v25  ;;  %v11714_v46 = vor.u32 %v13905_v39, %v11713_v4  ;;  %v11410_v9 = vor.u32 %v13817_v11, %v11407_v6  ;;  %3545 = vst [vmem:[#allocation3 + $0x448] sm:$0xf] %v3529_v17  ;;  %v3364_v39 = vld [vmem:[#allocation2 + $0x91] sm:$0xff]  ;;  %v13854_v11 = vld [vmem:[#allocation3 + $0x3a8] sm:$0xf0] }
 0x2d0   :  { %v16509_v38 = vadd.f32 %v16407_v31, %v6734_v28  ;;  %v14067_v31 = vld [vmem:[%s18447_s3 + $0x410] sm:$0xff]  ;;  %3449 = vst [vmem:[#allocation3 + $0x440] sm:$0xf] %v3433_v2  ;;  %v3380_v6 = vpack.c.bf16 %v3364_v39, %v3364_v39 }
 0x2d1   :  { %3443 = vst [vmem:[#allocation3 + $0x1e8] sm:$0xf] %v3427_v16  ;;  %v6646_v16 = vadd.f32 %v16283_v35, %v16341_v37 }
 0x2d2   :  { %6884 = vmatmul.bf16.gmra.mxu2 %v11406_v58  ;;  %3396 = vst [vmem:[#allocation3 + $0x248] sm:$0xf] %v3380_v6 }
 0x2d3   :  { %7160 = vmatpush.bf16.msrb.mxu0 %v14067_v31  ;;  %v3005_v31 = vpack.c.bf16 %v2989_v53, %v2989_v53  ;;  %3253 = vst [vmem:[#allocation3 + $0x2a0] sm:$0xf] %v3237_v10 }
 0x2d4   :  { %3492 = vst [vmem:[#allocation3 + $0x250] sm:$0xf] %v3237_v10 }
 0x2d5   :  { %v6735_v32 = vpop.f32.mrf.mxu3  ;;  %v6689_v3 = vpop.f32.mrf.mxu2  ;;  %3021 = vst [vmem:[#allocation3 + $0x5ac] sm:$0xf] %v3005_v31  ;;  %v3270_v31 = vld [vmem:[#allocation2 + $0xa4] sm:$0xff] }
 0x2d6   :  { %v6736_v28 = vadd.f32 %v6735_v32, %v6687_v56  ;;  %v6690_v18 = vadd.f32 %v6689_v3, %v6641_v5  ;;  %v13843_v56 = vld [vmem:[#allocation3 + $0x354] sm:$0xf]  ;;  %v14065_v3 = vld [vmem:[%s18447_s3 + $0x400] sm:$0xff]  ;;  %v3286_v13 = vpack.c.bf16 %v3270_v31, %v3270_v31 }
 0x2d7   :  { %v16524_v58 = vpop.f32.mrf.mxu0  ;;  %v16536_v5 = vpop.f32.mrf.mxu1  ;;  %v3269_v32 = vld [vmem:[#allocation2 + $0x94] sm:$0xff]  ;;  %7161 = vmatpush.bf16.msrb.mxu0 %v14066_v47  ;;  %v3222_v47 = vld [vmem:[#allocation2 + $0xa3] sm:$0xff] }
 0x2d8   :  { %v16528_v25 = vadd.f32 %v16419_v14, %v6736_v28  ;;  %v11518_v14 = vor.u32 %v13843_v56, %v11515_v42  ;;  %v3285_v50 = vpack.c.bf16 %v3269_v32, %v3269_v32  ;;  %v6643_v28 = vadd.f32 %v16260_v7, %v16316_v60  ;;  %v3418_v42 = vld [vmem:[#allocation2 + $0x132] sm:$0xff]  ;;  %3302 = vst [vmem:[#allocation3 + $0x308] sm:$0xf] %v3286_v13 }
 0x2d9   :  { %6997 = vmatmul.bf16.gmra.mxu0 %v11714_v46  ;;  %v3434_v43 = vpack.c.bf16 %v3418_v42, %v3418_v42  ;;  %v14080_v7 = vld [vmem:[%s18447_s3 + $0x478] sm:$0xff]  ;;  %v3238_v39 = vpack.c.bf16 %v3222_v47, %v3222_v47  ;;  %3541 = vst [vmem:[#allocation3 + $0x2b8] sm:$0xf] %v3286_v13 }
 0x2da   :  { %6933 = vmatmul.bf16.gmra.mxu3 %v11410_v9  ;;  %7036 = vmatmul.bf16.gmra.mxu1 %v11518_v14  ;;  %3301 = vst [vmem:[#allocation3 + $0x2a4] sm:$0xf] %v3285_v50  ;;  %v11505_v9 = vld [vmem:[#allocation3 + $0x348] sm:$0xf]  ;;  %v11507_v14 = vld [vmem:[#allocation3 + $0x3ac] sm:$0xf0] }
 0x2db   :  { %7162 = vmatpush.bf16.msrb.mxu0 %v14065_v3  ;;  %3540 = vst [vmem:[#allocation3 + $0x254] sm:$0xf] %v3285_v50  ;;  %v11506_v57 = vor.u32 %v13854_v11, %v11505_v9  ;;  %7204 = vmatpush.bf16.msra.mxu1 %v14080_v7  ;;  %v13930_v3 = vld [vmem:[#allocation3 + $0x608] sm:$0xf0]  ;;  %v11615_v11 = vld [vmem:[#allocation3 + $0x47c] sm:$0xf0] }
 0x2dc   :  { %3450 = vst [vmem:[#allocation3 + $0x4a4] sm:$0xf] %v3434_v43  ;;  %v13842_v50 = vld [vmem:[#allocation3 + $0x34c] sm:$0xf]  ;;  %v13868_v43 = vld [vmem:[#allocation3 + $0x41c] sm:$0xf] }
 0x2dd   :  { %v6738_v4 = vpop.f32.mrf.mxu3  ;;  %v6691_v17 = vpop.f32.mrf.mxu2  ;;  %3254 = vst [vmem:[#allocation3 + $0x304] sm:$0xf] %v3238_v39  ;;  %v11510_v35 = vor.u32 %v13842_v50, %v11507_v14  ;;  %v3180_v9 = vld [vmem:[#allocation2 + $0x142] sm:$0xff]  ;;  %v11605_v14 = vld [vmem:[#allocation3 + $0x410] sm:$0xf] }
 0x2de   :  { %v6739_v46 = vadd.f32 %v6738_v4, %v6690_v18  ;;  %v6692_v53 = vadd.f32 %v6691_v17, %v6643_v28  ;;  %v14051_v18 = vld [vmem:[%s18447_s3 + $0x390] sm:$0xff]  ;;  %3493 = vst [vmem:[#allocation3 + $0x2b4] sm:$0xf] %v3238_v39  ;;  %v3196_v7 = vpack.c.bf16 %v3180_v9, %v3180_v9  ;;  %v14076_v50 = vld [vmem:[%s18447_s3 + $0x458] sm:$0xff] }
 0x2df   :  { %v16543_v2 = vpop.f32.mrf.mxu0  ;;  %v16551_v60 = vpop.f32.mrf.mxu1  ;;  %7062 = vmatpush.bf16.msrb.mxu2 %v14051_v18  ;;  %v11813_v17 = vld [vmem:[#allocation3 + $0x5a8] sm:$0xf]  ;;  %v14077_v18 = vld [vmem:[%s18447_s3 + $0x460] sm:$0xff] }
 0x2e0   :  { %v16546_v56 = vadd.f32 %v16434_v1, %v6739_v46  ;;  %v14079_v1 = vld [vmem:[%s18447_s3 + $0x470] sm:$0xff]  ;;  %v11814_v37 = vor.u32 %v13930_v3, %v11813_v17  ;;  %3212 = vst [vmem:[#allocation3 + $0x558] sm:$0xf] %v3196_v7  ;;  %v13867_v7 = vld [vmem:[#allocation3 + $0x414] sm:$0xf] }
 0x2e1   :  { %7205 = vmatpush.bf16.msra.mxu1 %v14079_v1  ;;  %v14059_v46 = vld [vmem:[%s18447_s3 + $0x3d0] sm:$0xff]  ;;  %v6648_v1 = vadd.f32 %v16300_v24, %v16359_v33  ;;  %v14050_v33 = vld [vmem:[%s18447_s3 + $0x388] sm:$0xff] }
 0x2e2   :  { %6889 = vmatmul.bf16.gmra.mxu2 %v11506_v57  ;;  %7111 = vmatpush.bf16.msrb.mxu3 %v14059_v46  ;;  %v11607_v46 = vld [vmem:[#allocation3 + $0x474] sm:$0xf0] }
 0x2e3   :  { %7063 = vmatpush.bf16.msrb.mxu2 %v14050_v33  ;;  %v6653_v33 = vadd.f32 %v16346_v62, %v16388_v29  ;;  %v14049_v62 = vld [vmem:[%s18447_s3 + $0x380] sm:$0xff]  ;;  %v6656_v29 = vadd.f32 %v16367_v30, %v16399_v15  ;;  %v13918_v15 = vld [vmem:[#allocation3 + $0x5ac] sm:$0xf] }
 0x2e4   :  { %v14057_v30 = vld [vmem:[%s18447_s3 + $0x3c0] sm:$0xff] }
 0x2e5   :  { %v6740_v32 = vpop.f32.mrf.mxu3  ;;  %v6694_v6 = vpop.f32.mrf.mxu2 }
 0x2e6   :  { %v6741_v10 = vadd.f32 %v6740_v32, %v6692_v53  ;;  %v6695_v28 = vadd.f32 %v6694_v6, %v6646_v16  ;;  %v14078_v53 = vld [vmem:[%s18447_s3 + $0x468] sm:$0xff]  ;;  %v13879_v16 = vld [vmem:[#allocation3 + $0x470] sm:$0xf0] }
 0x2e7   :  { %v16561_v4 = vpop.f32.mrf.mxu0  ;;  %v16572_v57 = vpop.f32.mrf.mxu1  ;;  %7206 = vmatpush.bf16.msra.mxu1 %v14078_v53  ;;  %v11606_v3 = vor.u32 %v13879_v16, %v11605_v14  ;;  %v11610_v16 = vor.u32 %v13867_v7, %v11607_v46  ;;  %v13893_v14 = vld [vmem:[#allocation3 + $0x4e4] sm:$0xf]  ;;  %v11705_v7 = vld [vmem:[#allocation3 + $0x4d8] sm:$0xf]  ;;  %7064 = vmatpush.bf16.msrb.mxu2 %v14049_v62 }
 0x2e8   :  { %v16564_v42 = vadd.f32 %v16446_v8, %v6741_v10  ;;  %v11618_v8 = vor.u32 %v13868_v43, %v11615_v11  ;;  %v2990_v10 = vld [vmem:[#allocation2 + $0x153] sm:$0xff]  ;;  %v13757_v43 = vld [vmem:[#allocation3 + $0xa0] sm:$0xf0] }
 0x2e9   :  { %7002 = vmatmul.bf16.gmra.mxu0 %v11814_v37  ;;  %v3006_v24 = vpack.c.bf16 %v2990_v10, %v2990_v10  ;;  %v2894_v10 = vld [vmem:[#allocation2 + $0x151] sm:$0xff] }
 0x2ea   :  { %6938 = vmatmul.bf16.gmra.mxu3 %v11510_v35  ;;  %7041 = vmatmul.bf16.gmra.mxu1 %v11618_v8  ;;  %v6651_v35 = vadd.f32 %v16327_v52, %v16376_v55  ;;  %v14058_v52 = vld [vmem:[%s18447_s3 + $0x3c8] sm:$0xff] }
 0x2eb   :  { %7207 = vmatpush.bf16.msra.mxu1 %v14077_v18  ;;  %3022 = vst [vmem:[#allocation3 + $0x610] sm:$0xf] %v3006_v24  ;;  %v14074_v55 = vld [vmem:[%s18447_s3 + $0x448] sm:$0xff]  ;;  %v2910_v24 = vpack.c.bf16 %v2894_v10, %v2894_v10  ;;  %7112 = vmatpush.bf16.msrb.mxu3 %v14058_v52  ;;  %v13782_v52 = vld [vmem:[#allocation3 + $0x168] sm:$0xf0] }
 0x2ec   :  { %v11229_v10 = vld [vmem:[#allocation3 + $0x108] sm:$0xf] }
 0x2ed   :  { %v6743_v47 = vpop.f32.mrf.mxu3  ;;  %v6696_v31 = vpop.f32.mrf.mxu2  ;;  %2926 = vst [vmem:[#allocation3 + $0x608] sm:$0xf] %v2910_v24 }
 0x2ee   :  { %v6744_v39 = vadd.f32 %v6743_v47, %v6695_v28  ;;  %v6697_v13 = vadd.f32 %v6696_v31, %v6648_v1  ;;  %v3037_v28 = vld [vmem:[#allocation2 + $0x144] sm:$0xff]  ;;  %v11129_v47 = vld [vmem:[#allocation3 + $0x40] sm:$0xf]  ;;  %3165 = vst [vmem:[#allocation3 + $0x5b8] sm:$0xf] %v2910_v24 }
 0x2ef   :  { %v16579_v32 = vpop.f32.mrf.mxu0  ;;  %v3053_v17 = vpack.c.bf16 %v3037_v28, %v3037_v28  ;;  %7208 = vmatpush.bf16.msra.mxu1 %v14076_v50  ;;  %v16593_v11 = vpop.f32.mrf.mxu1  ;;  %v11715_v1 = vld [vmem:[#allocation3 + $0x544] sm:$0xf0]  ;;  %7113 = vmatpush.bf16.msrb.mxu3 %v14057_v30  ;;  %v11329_v30 = vld [vmem:[#allocation3 + $0x1d0] sm:$0xf] }
 0x2f0   :  { %v16582_v6 = vadd.f32 %v16461_v45, %v6744_v39  ;;  %v14075_v45 = vld [vmem:[%s18447_s3 + $0x450] sm:$0xff]  ;;  %v11130_v39 = vor.u32 %v13757_v43, %v11129_v47  ;;  %v11718_v50 = vor.u32 %v13893_v14, %v11715_v1  ;;  %v13892_v14 = vld [vmem:[#allocation3 + $0x4dc] sm:$0xf] }
 0x2f1   :  { %3069 = vst [vmem:[#allocation3 + $0x5b0] sm:$0xf] %v3053_v17 }
 0x2f2   :  { %6894 = vmatmul.bf16.gmra.mxu2 %v11606_v3  ;;  %3308 = vst [vmem:[#allocation3 + $0x560] sm:$0xf] %v3053_v17 }
 0x2f3   :  { %7209 = vmatpush.bf16.msra.mxu1 %v14075_v45  ;;  %v13904_v45 = vld [vmem:[#allocation3 + $0x538] sm:$0xf0] }
 0x2f4   :  { %v11706_v47 = vor.u32 %v13904_v45, %v11705_v7  ;;  %v11805_v7 = vld [vmem:[#allocation3 + $0x5a0] sm:$0xf] }
 0x2f5   :  { %v6745_v37 = vpop.f32.mrf.mxu3  ;;  %v6699_v53 = vpop.f32.mrf.mxu2 }
 0x2f6   :  { %v6746_v9 = vadd.f32 %v6745_v37, %v6697_v13  ;;  %v6700_v8 = vadd.f32 %v6699_v53, %v6651_v35  ;;  %v2846_v13 = vld [vmem:[#allocation2 + $0x150] sm:$0xff] }
 0x2f7   :  { %v16597_v18 = vpop.f32.mrf.mxu0  ;;  %v2862_v3 = vpack.c.bf16 %v2846_v13, %v2846_v13  ;;  %7210 = vmatpush.bf16.msra.mxu1 %v14074_v55  ;;  %v3412_v35 = vld [vmem:[#allocation2 + $0x92] sm:$0xff]  ;;  %v16613_v37 = vpop.f32.mrf.mxu1 }
 0x2f8   :  { %v16600_v31 = vadd.f32 %v16473_v19, %v6746_v9  ;;  %v14073_v19 = vld [vmem:[%s18447_s3 + $0x440] sm:$0xff]  ;;  %v3428_v43 = vpack.c.bf16 %v3412_v35, %v3412_v35 }
 0x2f9   :  { %7163 = vmatmul.bf16.vlgmr.msrb.gmra.mxu0 %v11130_v39  ;;  %2878 = vst [vmem:[#allocation3 + $0x604] sm:$0xf] %v2862_v3  ;;  %v11815_v3 = vld [vmem:[#allocation3 + $0x60c] sm:$0xf0] }
 0x2fa   :  { %6943 = vmatmul.bf16.gmra.mxu3 %v11610_v16  ;;  %7046 = vmatmul.bf16.gmra.mxu1 %v11718_v50  ;;  %3444 = vst [vmem:[#allocation3 + $0x24c] sm:$0xf] %v3428_v43  ;;  %v11707_v16 = vld [vmem:[#allocation3 + $0x53c] sm:$0xf0] }
 0x2fb   :  { %7211 = vmatpush.bf16.msra.mxu1 %v14073_v19  ;;  %v11710_v19 = vor.u32 %v13892_v14, %v11707_v16  ;;  %v3228_v16 = vld [vmem:[#allocation2 + $0x143] sm:$0xff] }
 0x2fc   :  { %v11807_v14 = vld [vmem:[#allocation3 + $0x604] sm:$0xf0] }
 0x2fd   :  { %v6748_v28 = vpop.f32.mrf.mxu3  ;;  %v6701_v17 = vpop.f32.mrf.mxu2 }
 0x2fe   :  { %v6749_v46 = vadd.f32 %v6748_v28, %v6700_v8  ;;  %v6702_v53 = vadd.f32 %v6701_v17, %v6653_v33  ;;  %v11230_v33 = vor.u32 %v13782_v52, %v11229_v10  ;;  %v11818_v28 = vor.u32 %v13918_v15, %v11815_v3  ;;  %v13807_v10 = vld [vmem:[#allocation3 + $0x230] sm:$0xf0]  ;;  %v13917_v15 = vld [vmem:[#allocation3 + $0x5a4] sm:$0xf] }
 0x2ff   :  { %v16615_v9 = vpop.f32.mrf.mxu0  ;;  %v16627_v50 = vpop.f32.mrf.mxu1  ;;  %v6658_v17 = vadd.f32 %v16378_v20, %v16410_v44  ;;  %v3323_v20 = vld [vmem:[#allocation2 + $0x140] sm:$0xff] }
 0x300   :  { %v16618_v1 = vadd.f32 %v16488_v59, %v6749_v46  ;;  %v13929_v46 = vld [vmem:[#allocation3 + $0x600] sm:$0xf0]  ;;  %v3339_v52 = vpack.c.bf16 %v3323_v20, %v3323_v20 }
 0x301   :  { %v11806_v62 = vor.u32 %v13929_v46, %v11805_v7  ;;  %v3371_v44 = vld [vmem:[#allocation2 + $0x141] sm:$0xff] }
 0x302   :  { %6899 = vmatmul.bf16.gmra.mxu2 %v11706_v47  ;;  %3355 = vst [vmem:[#allocation3 + $0x500] sm:$0xf] %v3339_v52  ;;  %v13745_v46 = vld [vmem:[#allocation3 + $0x44] sm:$0xf]  ;;  %v3085_v52 = vld [vmem:[#allocation2 + $0x150] sm:$0xff] }
 0x305   :  { %v6750_v8 = vpop.f32.mrf.mxu3  ;;  %v6704_v39 = vpop.f32.mrf.mxu2 }
 0x306   :  { %v6751_v55 = vadd.f32 %v6750_v8, %v6702_v53  ;;  %v6705_v13 = vadd.f32 %v6704_v39, %v6656_v29  ;;  %v14088_v29 = vld [vmem:[%s18447_s3 + $0x4b8] sm:$0xff]  ;;  %v6661_v39 = vadd.f32 %v16393_v23, %v16422_v63  ;;  %v11810_v23 = vor.u32 %v13917_v15, %v11807_v14 }
 0x307   :  { %v16625_v59 = vpop.f32.mrf.mxu0  ;;  %v16645_v8 = vpop.f32.mrf.mxu1  ;;  %7253 = vmatpush.bf16.msra.mxu2 %v14088_v29  ;;  %v11330_v63 = vor.u32 %v13807_v10, %v11329_v30  ;;  %v13756_v29 = vld [vmem:[#allocation3 + $0x98] sm:$0xf0]  ;;  %v3101_v14 = vpack.c.bf16 %v3085_v52, %v3085_v52  ;;  %v3134_v10 = vld [vmem:[#allocation2 + $0x161] sm:$0xff] }
 0x308   :  { %v16630_v24 = vadd.f32 %v16506_v21, %v6751_v55  ;;  %v3387_v55 = vpack.c.bf16 %v3371_v44, %v3371_v44  ;;  %v11123_v30 = vld [vmem:[#allocation3 + $0x9c] sm:$0xf0] }
 0x309   :  { %7168 = vmatmul.bf16.gmra.mxu0 %v11230_v33  ;;  %3117 = vst [vmem:[#allocation3 + $0x5b4] sm:$0xf] %v3101_v14  ;;  %v3182_v52 = vld [vmem:[#allocation2 + $0x162] sm:$0xff] }
 0x30a   :  { %6948 = vmatmul.bf16.gmra.mxu3 %v11710_v19  ;;  %7051 = vmatmul.bf16.gmra.mxu1 %v11818_v28  ;;  %3403 = vst [vmem:[#allocation3 + $0x504] sm:$0xf] %v3387_v55 }
 0x30b   :  { %3356 = vst [vmem:[#allocation3 + $0x564] sm:$0xf] %v3101_v14  ;;  %v3086_v14 = vld [vmem:[#allocation2 + $0x160] sm:$0xff] }
 0x30d   :  { %v6753_v45 = vpop.f32.mrf.mxu3  ;;  %v6706_v35 = vpop.f32.mrf.mxu2 }
 0x30e   :  { %v6754_v21 = vadd.f32 %v6753_v45, %v6705_v13  ;;  %v6707_v53 = vadd.f32 %v6706_v35, %v6658_v17  ;;  %v3244_v13 = vpack.c.bf16 %v3228_v16, %v3228_v16  ;;  %v11131_v17 = vld [vmem:[#allocation3 + $0xa4] sm:$0xf0]  ;;  %v14096_v35 = vld [vmem:[%s18447_s3 + $0x4f8] sm:$0xff] }
 0x30f   :  { %v16637_v43 = vpop.f32.mrf.mxu0  ;;  %7302 = vmatpush.bf16.msra.mxu3 %v14096_v35 }
 0x310   :  { %v16640_v47 = vadd.f32 %v16524_v58, %v6754_v21  ;;  %3260 = vst [vmem:[#allocation3 + $0x55c] sm:$0xf] %v3244_v13  ;;  %v11134_v21 = vor.u32 %v13745_v46, %v11131_v17  ;;  %v11429_v17 = vld [vmem:[#allocation3 + $0x298] sm:$0xf] }
 0x311   :  { %3499 = vst [vmem:[#allocation3 + $0x50c] sm:$0xf] %v3244_v13 }
 0x312   :  { %6904 = vmatmul.bf16.gmra.mxu2 %v11806_v62 }
 0x315   :  { %v6755_v58 = vpop.f32.mrf.mxu3  ;;  %v6709_v3 = vpop.f32.mrf.mxu2 }
 0x316   :  { %v6756_v19 = vadd.f32 %v6755_v58, %v6707_v53  ;;  %v6710_v33 = vadd.f32 %v6709_v3, %v6661_v39  ;;  %v16657_v53 = vpop.f32.mrf.mxu1  ;;  %v11121_v39 = vld [vmem:[#allocation3 + $0x38] sm:$0xf]  ;;  %v14104_v58 = vld [vmem:[%s18447_s3 + $0x538] sm:$0xff] }
 0x317   :  { %v16649_v28 = vpop.f32.mrf.mxu0  ;;  %v11122_v13 = vor.u32 %v13756_v29, %v11121_v39  ;;  %7351 = vmatpush.bf16.msra.mxu0 %v14104_v58  ;;  %v14095_v29 = vld [vmem:[%s18447_s3 + $0x4f0] sm:$0xff] }
 0x318   :  { %v16652_v45 = vadd.f32 %v16543_v2, %v6756_v19  ;;  %v6663_v2 = vadd.f32 %v16401_v49, %v16437_v27  ;;  %v14087_v49 = vld [vmem:[%s18447_s3 + $0x4b0] sm:$0xff]  ;;  %v3038_v27 = vld [vmem:[#allocation2 + $0x154] sm:$0xff]  ;;  %v3150_v19 = vpack.c.bf16 %v3134_v10, %v3134_v10  ;;  %7303 = vmatpush.bf16.msra.mxu3 %v14095_v29  ;;  %v3102_v10 = vpack.c.bf16 %v3086_v14, %v3086_v14  ;;  %v11529_v14 = vld [vmem:[#allocation3 + $0x360] sm:$0xf] }
 0x319   :  { %7173 = vmatmul.bf16.gmra.mxu0 %v11330_v63  ;;  %v3054_v3 = vpack.c.bf16 %v3038_v27, %v3038_v27  ;;  %7254 = vmatpush.bf16.msra.mxu2 %v14087_v49 }
 0x31a   :  { %6953 = vmatmul.bf16.gmra.mxu3 %v11810_v23  ;;  %7212 = vmatmul.bf16.vlgmr.msra.gmra.mxu1 %v11134_v21  ;;  %v13832_v23 = vld [vmem:[#allocation3 + $0x2f8] sm:$0xf0]  ;;  %3166 = vst [vmem:[#allocation3 + $0x61c] sm:$0xf] %v3150_v19 }
 0x31b   :  { %3070 = vst [vmem:[#allocation3 + $0x614] sm:$0xf] %v3054_v3  ;;  %v13744_v21 = vld [vmem:[#allocation3 + $0x3c] sm:$0xf]  ;;  %v13781_v3 = vld [vmem:[#allocation3 + $0x160] sm:$0xf0] }
 0x31c   :  { %3118 = vst [vmem:[#allocation3 + $0x618] sm:$0xf] %v3102_v10 }
 0x31d   :  { %v6758_v7 = vpop.f32.mrf.mxu3  ;;  %v6711_v62 = vpop.f32.mrf.mxu2  ;;  %3357 = vst [vmem:[#allocation3 + $0x5c8] sm:$0xf] %v3102_v10  ;;  %v3419_v10 = vld [vmem:[#allocation2 + $0x142] sm:$0xff] }
 0x31e   :  { %v6759_v20 = vadd.f32 %v6758_v7, %v6710_v33  ;;  %v6712_v44 = vadd.f32 %v6711_v62, %v6663_v2  ;;  %v16674_v63 = vpop.f32.mrf.mxu1  ;;  %v11231_v7 = vld [vmem:[#allocation3 + $0x16c] sm:$0xf0] }
 0x31f   :  { %v16661_v16 = vpop.f32.mrf.mxu0 }
 0x320   :  { %v16664_v55 = vadd.f32 %v16561_v4, %v6759_v20  ;;  %v6822_v4 = vadd.f32 %v16415_v51, %v16449_v54  ;;  %v11126_v51 = vor.u32 %v13744_v21, %v11123_v30  ;;  %v11430_v54 = vor.u32 %v13832_v23, %v11429_v17  ;;  %v13770_v20 = vld [vmem:[#allocation3 + $0x10c] sm:$0xf]  ;;  %v3366_v17 = vld [vmem:[#allocation2 + $0xb1] sm:$0xff] }
 0x321   :  { %v11234_v39 = vor.u32 %v13770_v20, %v11231_v7  ;;  %v11223_v20 = vld [vmem:[#allocation3 + $0x164] sm:$0xf0] }
 0x322   :  { %7065 = vmatmul.bf16.vlgmr.msrb.gmra.mxu2 %v11122_v13  ;;  %v6824_v13 = vadd.f32 %v16427_v36, %v16464_v48  ;;  %v3382_v36 = vpack.c.bf16 %v3366_v17, %v3366_v17 }
 0x324   :  { %3398 = vst [vmem:[#allocation3 + $0x310] sm:$0xf] %v3382_v36 }
 0x325   :  { %v6760_v33 = vpop.f32.mrf.mxu3  ;;  %v6870_v15 = vpop.f32.mrf.mxu2 }
 0x326   :  { %v6761_v35 = vadd.f32 %v6760_v33, %v6712_v44  ;;  %v6871_v46 = vadd.f32 %v6870_v15, %v6822_v4  ;;  %v3181_v44 = vld [vmem:[#allocation2 + $0x152] sm:$0xff]  ;;  %v3365_v15 = vld [vmem:[#allocation2 + $0xa1] sm:$0xff]  ;;  %v16688_v48 = vpop.f32.mrf.mxu1 }
 0x327   :  { %v16676_v2 = vpop.f32.mrf.mxu0  ;;  %v3197_v58 = vpack.c.bf16 %v3181_v44, %v3181_v44  ;;  %v3318_v4 = vld [vmem:[#allocation2 + $0xb0] sm:$0xff]  ;;  %v3381_v21 = vpack.c.bf16 %v3365_v15, %v3365_v15  ;;  %v13857_v44 = vld [vmem:[#allocation3 + $0x3c0] sm:$0xf0]  ;;  %v3435_v15 = vpack.c.bf16 %v3419_v10, %v3419_v10 }
 0x328   :  { %v16679_v62 = vadd.f32 %v16579_v32, %v6761_v35  ;;  %v3198_v32 = vpack.c.bf16 %v3182_v52, %v3182_v52  ;;  %v3334_v30 = vpack.c.bf16 %v3318_v4, %v3318_v4  ;;  %v11221_v35 = vld [vmem:[#allocation3 + $0x100] sm:$0xf] }
 0x329   :  { %7178 = vmatmul.bf16.gmra.mxu0 %v11430_v54  ;;  %3213 = vst [vmem:[#allocation3 + $0x5bc] sm:$0xf] %v3197_v58  ;;  %v14086_v54 = vld [vmem:[%s18447_s3 + $0x4a8] sm:$0xff] }
 0x32a   :  { %7114 = vmatmul.bf16.vlgmr.msrb.gmra.mxu3 %v11126_v51  ;;  %7217 = vmatmul.bf16.gmra.mxu1 %v11234_v39  ;;  %3214 = vst [vmem:[#allocation3 + $0x620] sm:$0xf] %v3198_v32  ;;  %v11222_v51 = vor.u32 %v13781_v3, %v11221_v35 }
 0x32b   :  { %3350 = vst [vmem:[#allocation3 + $0x30c] sm:$0xf] %v3334_v30  ;;  %7255 = vmatpush.bf16.msra.mxu2 %v14086_v54  ;;  %v13795_v30 = vld [vmem:[#allocation3 + $0x1d4] sm:$0xf] }
 0x32c   :  { %3397 = vst [vmem:[#allocation3 + $0x2ac] sm:$0xf] %v3381_v21 }
 0x32d   :  { %v6919_v49 = vpop.f32.mrf.mxu3  ;;  %v6872_v27 = vpop.f32.mrf.mxu2  ;;  %3451 = vst [vmem:[#allocation3 + $0x508] sm:$0xf] %v3435_v15  ;;  %v11629_v15 = vld [vmem:[#allocation3 + $0x428] sm:$0xf] }
 0x32e   :  { %v6920_v19 = vadd.f32 %v6919_v49, %v6871_v46  ;;  %v6873_v33 = vadd.f32 %v6872_v27, %v6824_v13  ;;  %v14103_v46 = vld [vmem:[%s18447_s3 + $0x530] sm:$0xff]  ;;  %v13769_v13 = vld [vmem:[#allocation3 + $0x104] sm:$0xf]  ;;  %v11331_v49 = vld [vmem:[#allocation3 + $0x234] sm:$0xf0]  ;;  %v16709_v17 = vpop.f32.mrf.mxu1 }
 0x32f   :  { %v16686_v23 = vpop.f32.mrf.mxu0  ;;  %7352 = vmatpush.bf16.msra.mxu0 %v14103_v46  ;;  %v3515_v27 = vld [vmem:[#allocation2 + $0x144] sm:$0xff]  ;;  %v11226_v4 = vor.u32 %v13769_v13, %v11223_v20  ;;  %v11334_v35 = vor.u32 %v13795_v30, %v11331_v49  ;;  %v13806_v46 = vld [vmem:[#allocation3 + $0x228] sm:$0xf0]  ;;  %v3277_v13 = vld [vmem:[#allocation2 + $0x154] sm:$0xff] }
 0x330   :  { %v16691_v7 = vadd.f32 %v16597_v18, %v6920_v19  ;;  %v6827_v18 = vadd.f32 %v16442_v40, %v16476_v22  ;;  %v11530_v19 = vor.u32 %v13857_v44, %v11529_v14  ;;  %v14094_v40 = vld [vmem:[%s18447_s3 + $0x4e8] sm:$0xff]  ;;  %v3531_v22 = vpack.c.bf16 %v3515_v27, %v3515_v27  ;;  %v11321_v20 = vld [vmem:[#allocation3 + $0x1c8] sm:$0xf]  ;;  %v11323_v27 = vld [vmem:[#allocation3 + $0x22c] sm:$0xf0] }
 0x331   :  { %7304 = vmatpush.bf16.msra.mxu3 %v14094_v40  ;;  %v11322_v44 = vor.u32 %v13806_v46, %v11321_v20  ;;  %v3293_v40 = vpack.c.bf16 %v3277_v13, %v3277_v13  ;;  %v13794_v30 = vld [vmem:[#allocation3 + $0x1cc] sm:$0xf]  ;;  %v14093_v46 = vld [vmem:[%s18447_s3 + $0x4e0] sm:$0xff] }
 0x332   :  { %7070 = vmatmul.bf16.gmra.mxu2 %v11222_v51  ;;  %3547 = vst [vmem:[#allocation3 + $0x510] sm:$0xf] %v3531_v22  ;;  %v3510_v22 = vld [vmem:[#allocation2 + $0xb4] sm:$0xff] }
 0x333   :  { %3309 = vst [vmem:[#allocation3 + $0x5c4] sm:$0xf] %v3293_v40 }
 0x334   :  { %3548 = vst [vmem:[#allocation3 + $0x574] sm:$0xf] %v3293_v40 }
 0x335   :  { %v6921_v29 = vpop.f32.mrf.mxu3  ;;  %v6875_v39 = vpop.f32.mrf.mxu2  ;;  %7305 = vmatpush.bf16.msra.mxu3 %v14093_v46  ;;  %v11423_v46 = vld [vmem:[#allocation3 + $0x2f4] sm:$0xf0] }
 0x336   :  { %v6922_v52 = vadd.f32 %v6921_v29, %v6873_v33  ;;  %v6876_v58 = vadd.f32 %v6875_v39, %v6827_v18  ;;  %v3372_v33 = vld [vmem:[#allocation2 + $0x151] sm:$0xff] }
 0x337   :  { %v16701_v32 = vpop.f32.mrf.mxu0  ;;  %v3388_v21 = vpack.c.bf16 %v3372_v33, %v3372_v33 }
 0x338   :  { %v16704_v3 = vadd.f32 %v16615_v9, %v6922_v52  ;;  %v6829_v9 = vadd.f32 %v16454_v34, %v16493_v12  ;;  %v14102_v52 = vld [vmem:[%s18447_s3 + $0x528] sm:$0xff]  ;;  %v14085_v34 = vld [vmem:[%s18447_s3 + $0x4a0] sm:$0xff] }
 0x339   :  { %7183 = vmatmul.bf16.gmra.mxu0 %v11530_v19  ;;  %3404 = vst [vmem:[#allocation3 + $0x568] sm:$0xf] %v3388_v21  ;;  %7256 = vmatpush.bf16.msra.mxu2 %v14085_v34  ;;  %v3229_v12 = vld [vmem:[#allocation2 + $0x153] sm:$0xff]  ;;  %v13882_v19 = vld [vmem:[#allocation3 + $0x488] sm:$0xf0]  ;;  %v3230_v34 = vld [vmem:[#allocation2 + $0x163] sm:$0xff] }
 0x33a   :  { %7119 = vmatmul.bf16.gmra.mxu3 %v11226_v4  ;;  %7222 = vmatmul.bf16.gmra.mxu1 %v11334_v35  ;;  %v3245_v14 = vpack.c.bf16 %v3229_v12, %v3229_v12  ;;  %v3526_v35 = vpack.c.bf16 %v3510_v22, %v3510_v22  ;;  %v3278_v12 = vld [vmem:[#allocation2 + $0x164] sm:$0xff] }
 0x33b   :  { %7353 = vmatpush.bf16.msra.mxu0 %v14102_v52  ;;  %v13831_v52 = vld [vmem:[#allocation3 + $0x2f0] sm:$0xf0] }
 0x33c   :  { %3261 = vst [vmem:[#allocation3 + $0x5c0] sm:$0xf] %v3245_v14 }
 0x33d   :  { %v6924_v36 = vpop.f32.mrf.mxu3  ;;  %v6877_v51 = vpop.f32.mrf.mxu2  ;;  %3542 = vst [vmem:[#allocation3 + $0x31c] sm:$0xf] %v3526_v35 }
 0x33e   :  { %v6925_v54 = vadd.f32 %v6924_v36, %v6876_v58  ;;  %v6878_v18 = vadd.f32 %v6877_v51, %v6829_v9  ;;  %v16724_v58 = vpop.f32.mrf.mxu1  ;;  %v13820_v9 = vld [vmem:[#allocation3 + $0x29c] sm:$0xf]  ;;  %v11431_v36 = vld [vmem:[#allocation3 + $0x2fc] sm:$0xf0]  ;;  %v11630_v51 = vor.u32 %v13882_v19, %v11629_v15  ;;  %3500 = vst [vmem:[#allocation3 + $0x570] sm:$0xf] %v3245_v14 }
 0x33f   :  { %v16713_v29 = vpop.f32.mrf.mxu0  ;;  %v11421_v14 = vld [vmem:[#allocation3 + $0x290] sm:$0xf] }
 0x340   :  { %v16716_v39 = vadd.f32 %v16625_v59, %v6925_v54  ;;  %v6832_v59 = vadd.f32 %v16469_v0, %v16509_v38  ;;  %v11326_v38 = vor.u32 %v13794_v30, %v11323_v27  ;;  %v11434_v54 = vor.u32 %v13820_v9, %v11431_v36  ;;  %v14099_v30 = vld [vmem:[%s18447_s3 + $0x510] sm:$0xff]  ;;  %v3462_v15 = vld [vmem:[#allocation2 + $0xb3] sm:$0xff] }
 0x341   :  { %v3246_v27 = vpack.c.bf16 %v3230_v34, %v3230_v34  ;;  %v11422_v22 = vor.u32 %v13831_v52, %v11421_v14  ;;  %v3478_v9 = vpack.c.bf16 %v3462_v15, %v3462_v15  ;;  %v13819_v36 = vld [vmem:[#allocation3 + $0x294] sm:$0xf]  ;;  %v11729_v52 = vld [vmem:[#allocation3 + $0x4f0] sm:$0xf]  ;;  %v11531_v34 = vld [vmem:[#allocation3 + $0x3c4] sm:$0xf0] }
 0x342   :  { %7075 = vmatmul.bf16.gmra.mxu2 %v11322_v44 }
 0x343   :  { %3262 = vst [vmem:[#allocation3 + $0x624] sm:$0xf] %v3246_v27 }
 0x344   :  { %3501 = vst [vmem:[#allocation3 + $0x5d4] sm:$0xf] %v3246_v27  ;;  %v14092_v27 = vld [vmem:[%s18447_s3 + $0x4d8] sm:$0xff] }
 0x345   :  { %v6926_v49 = vpop.f32.mrf.mxu3  ;;  %v6880_v4 = vpop.f32.mrf.mxu2  ;;  %3494 = vst [vmem:[#allocation3 + $0x318] sm:$0xf] %v3478_v9  ;;  %7306 = vmatpush.bf16.msra.mxu3 %v14092_v27  ;;  %v11521_v9 = vld [vmem:[#allocation3 + $0x358] sm:$0xf] }
 0x346   :  { %v6927_v10 = vadd.f32 %v6926_v49, %v6878_v18  ;;  %v6881_v33 = vadd.f32 %v6880_v4, %v6832_v59  ;;  %v14101_v18 = vld [vmem:[%s18447_s3 + $0x520] sm:$0xff]  ;;  %v16741_v13 = vpop.f32.mrf.mxu1  ;;  %v3294_v4 = vpack.c.bf16 %v3278_v12, %v3278_v12 }
 0x347   :  { %v16728_v21 = vpop.f32.mrf.mxu0  ;;  %7354 = vmatpush.bf16.msra.mxu0 %v14101_v18  ;;  %v13907_v18 = vld [vmem:[#allocation3 + $0x550] sm:$0xf0] }
 0x348   :  { %v16731_v0 = vadd.f32 %v16637_v43, %v6927_v10  ;;  %v6834_v43 = vadd.f32 %v16481_v61, %v16528_v25  ;;  %v14100_v61 = vld [vmem:[%s18447_s3 + $0x518] sm:$0xff]  ;;  %3310 = vst [vmem:[#allocation3 + $0x628] sm:$0xf] %v3294_v4  ;;  %v3413_v10 = vld [vmem:[#allocation2 + $0xa2] sm:$0xff] }
 0x349   :  { %7188 = vmatmul.bf16.gmra.mxu0 %v11630_v51  ;;  %v14084_v25 = vld [vmem:[%s18447_s3 + $0x498] sm:$0xff]  ;;  %3549 = vst [vmem:[#allocation3 + $0x5d8] sm:$0xf] %v3294_v4  ;;  %v13845_v4 = vld [vmem:[#allocation3 + $0x364] sm:$0xf] }
 0x34a   :  { %7124 = vmatmul.bf16.gmra.mxu3 %v11326_v38  ;;  %7227 = vmatmul.bf16.gmra.mxu1 %v11434_v54  ;;  %v6837_v38 = vadd.f32 %v16498_v26, %v16546_v56  ;;  %v11426_v26 = vor.u32 %v13819_v36, %v11423_v46  ;;  %v11730_v56 = vor.u32 %v13907_v18, %v11729_v52  ;;  %v14111_v46 = vld [vmem:[%s18447_s3 + $0x570] sm:$0xff]  ;;  %v11523_v18 = vld [vmem:[#allocation3 + $0x3bc] sm:$0xf0]  ;;  %v13932_v52 = vld [vmem:[#allocation3 + $0x618] sm:$0xf0] }
 0x34b   :  { %7355 = vmatpush.bf16.msra.mxu0 %v14100_v61  ;;  %7257 = vmatpush.bf16.msra.mxu2 %v14084_v25  ;;  %v11534_v14 = vor.u32 %v13845_v4, %v11531_v34 }
 0x34d   :  { %v6929_v20 = vpop.f32.mrf.mxu3  ;;  %v6882_v44 = vpop.f32.mrf.mxu2 }
 0x34e   :  { %v6930_v59 = vadd.f32 %v6929_v20, %v6881_v33  ;;  %v6883_v49 = vadd.f32 %v6882_v44, %v6834_v43  ;;  %v3429_v33 = vpack.c.bf16 %v3413_v10, %v3413_v10  ;;  %v16761_v12 = vpop.f32.mrf.mxu1  ;;  %v13856_v10 = vld [vmem:[#allocation3 + $0x3b8] sm:$0xf0] }
 0x34f   :  { %v16743_v19 = vpop.f32.mrf.mxu0  ;;  %7356 = vmatpush.bf16.msra.mxu0 %v14099_v30  ;;  %v3420_v30 = vld [vmem:[#allocation2 + $0x152] sm:$0xff] }
 0x350   :  { %v16746_v40 = vadd.f32 %v16649_v28, %v6930_v59  ;;  %v3414_v28 = vld [vmem:[#allocation2 + $0xb2] sm:$0xff]  ;;  %3445 = vst [vmem:[#allocation3 + $0x2b0] sm:$0xf] %v3429_v33  ;;  %v3436_v15 = vpack.c.bf16 %v3420_v30, %v3420_v30 }
 0x351   :  { %v3430_v35 = vpack.c.bf16 %v3414_v28, %v3414_v28 }
 0x352   :  { %7080 = vmatmul.bf16.gmra.mxu2 %v11422_v22  ;;  %v6839_v22 = vadd.f32 %v16514_v41, %v16564_v42  ;;  %3452 = vst [vmem:[#allocation3 + $0x56c] sm:$0xf] %v3436_v15  ;;  %v14083_v41 = vld [vmem:[%s18447_s3 + $0x490] sm:$0xff] }
 0x353   :  { %3446 = vst [vmem:[#allocation3 + $0x314] sm:$0xf] %v3430_v35  ;;  %7258 = vmatpush.bf16.msra.mxu2 %v14083_v41 }
 0x355   :  { %v6931_v51 = vpop.f32.mrf.mxu3  ;;  %v6885_v54 = vpop.f32.mrf.mxu2 }
 0x356   :  { %v6932_v43 = vadd.f32 %v6931_v51, %v6883_v49  ;;  %v6886_v20 = vadd.f32 %v6885_v54, %v6837_v38  ;;  %v14098_v49 = vld [vmem:[%s18447_s3 + $0x508] sm:$0xff]  ;;  %v11522_v38 = vor.u32 %v13856_v10, %v11521_v9  ;;  %v14112_v51 = vld [vmem:[%s18447_s3 + $0x578] sm:$0xff]  ;;  %v16788_v42 = vpop.f32.mrf.mxu1  ;;  %v6844_v10 = vadd.f32 %v16551_v60, %v16600_v31  ;;  %v14107_v31 = vld [vmem:[%s18447_s3 + $0x550] sm:$0xff] }
 0x357   :  { %v16759_v44 = vpop.f32.mrf.mxu0  ;;  %7357 = vmatpush.bf16.msra.mxu0 %v14098_v49  ;;  %7400 = vmatpush.bf16.msrb.mxu1 %v14112_v51  ;;  %v11631_v49 = vld [vmem:[#allocation3 + $0x48c] sm:$0xf0]  ;;  %v11621_v51 = vld [vmem:[#allocation3 + $0x420] sm:$0xf] }
 0x358   :  { %v16764_v59 = vadd.f32 %v16661_v16, %v6932_v43  ;;  %v14097_v16 = vld [vmem:[%s18447_s3 + $0x500] sm:$0xff]  ;;  %v14082_v60 = vld [vmem:[%s18447_s3 + $0x488] sm:$0xff] }
 0x359   :  { %7193 = vmatmul.bf16.gmra.mxu0 %v11730_v56  ;;  %v13844_v56 = vld [vmem:[#allocation3 + $0x35c] sm:$0xf]  ;;  %7259 = vmatpush.bf16.msra.mxu2 %v14082_v60 }
 0x35a   :  { %7129 = vmatmul.bf16.gmra.mxu3 %v11426_v26  ;;  %7232 = vmatmul.bf16.gmra.mxu1 %v11534_v14  ;;  %v11526_v14 = vor.u32 %v13844_v56, %v11523_v18  ;;  %v11623_v18 = vld [vmem:[#allocation3 + $0x484] sm:$0xf0]  ;;  %v13869_v56 = vld [vmem:[#allocation3 + $0x424] sm:$0xf] }
 0x35b   :  { %7358 = vmatpush.bf16.msra.mxu0 %v14097_v16  ;;  %7401 = vmatpush.bf16.msrb.mxu1 %v14111_v46 }
 0x35d   :  { %v6934_v61 = vpop.f32.mrf.mxu3  ;;  %v6887_v25 = vpop.f32.mrf.mxu2 }
 0x35e   :  { %v6935_v28 = vadd.f32 %v6934_v61, %v6886_v20  ;;  %v6888_v33 = vadd.f32 %v6887_v25, %v6839_v22  ;;  %v11829_v20 = vld [vmem:[#allocation3 + $0x5b8] sm:$0xf]  ;;  %v13870_v22 = vld [vmem:[#allocation3 + $0x42c] sm:$0xf]  ;;  %v16809_v25 = vpop.f32.mrf.mxu1 }
 0x35f   :  { %v16777_v35 = vpop.f32.mrf.mxu0  ;;  %v11830_v16 = vor.u32 %v13932_v52, %v11829_v20  ;;  %v11634_v61 = vor.u32 %v13870_v22, %v11631_v49  ;;  %v13759_v20 = vld [vmem:[#allocation3 + $0xb0] sm:$0xf0] }
 0x360   :  { %v16780_v36 = vadd.f32 %v16676_v2, %v6935_v28  ;;  %v6842_v2 = vadd.f32 %v16536_v5, %v16582_v6  ;;  %v14091_v5 = vld [vmem:[%s18447_s3 + $0x4d0] sm:$0xff]  ;;  %v14110_v6 = vld [vmem:[%s18447_s3 + $0x568] sm:$0xff] }
 0x361   :  { %7307 = vmatpush.bf16.msra.mxu3 %v14091_v5  ;;  %7402 = vmatpush.bf16.msrb.mxu1 %v14110_v6  ;;  %v11626_v6 = vor.u32 %v13869_v56, %v11623_v18  ;;  %v13894_v56 = vld [vmem:[#allocation3 + $0x4ec] sm:$0xf] }
 0x362   :  { %7085 = vmatmul.bf16.gmra.mxu2 %v11522_v38 }
 0x365   :  { %v6936_v54 = vpop.f32.mrf.mxu3  ;;  %v6890_v43 = vpop.f32.mrf.mxu2 }
 0x366   :  { %v6937_v34 = vadd.f32 %v6936_v54, %v6888_v33  ;;  %v6891_v26 = vadd.f32 %v6890_v43, %v6842_v2  ;;  %v13881_v33 = vld [vmem:[#allocation3 + $0x480] sm:$0xf0]  ;;  %v14108_v2 = vld [vmem:[%s18447_s3 + $0x558] sm:$0xff]  ;;  %v16829_v52 = vpop.f32.mrf.mxu1 }
 0x367   :  { %v16795_v27 = vpop.f32.mrf.mxu0  ;;  %v11622_v46 = vor.u32 %v13881_v33, %v11621_v51  ;;  %v13906_v33 = vld [vmem:[#allocation3 + $0x548] sm:$0xf0] }
 0x368   :  { %v16798_v4 = vadd.f32 %v16686_v23, %v6937_v34  ;;  %v14109_v23 = vld [vmem:[%s18447_s3 + $0x560] sm:$0xff] }
 0x369   :  { %7198 = vmatmul.bf16.gmra.mxu0 %v11830_v16  ;;  %7403 = vmatpush.bf16.msrb.mxu1 %v14109_v23  ;;  %v11145_v16 = vld [vmem:[#allocation3 + $0x50] sm:$0xf] }
 0x36a   :  { %7134 = vmatmul.bf16.gmra.mxu3 %v11526_v14  ;;  %7237 = vmatmul.bf16.gmra.mxu1 %v11634_v61  ;;  %v11731_v14 = vld [vmem:[#allocation3 + $0x554] sm:$0xf0]  ;;  %v11146_v22 = vor.u32 %v13759_v20, %v11145_v16  ;;  %v13895_v61 = vld [vmem:[#allocation3 + $0x4f4] sm:$0xf]  ;;  %v11831_v16 = vld [vmem:[#allocation3 + $0x61c] sm:$0xf0] }
 0x36b   :  { %v11734_v23 = vor.u32 %v13895_v61, %v11731_v14  ;;  %v13920_v14 = vld [vmem:[#allocation3 + $0x5bc] sm:$0xf]  ;;  %v6854_v61 = vadd.f32 %v16627_v50, %v16652_v45  ;;  %v6857_v45 = vadd.f32 %v16645_v8, %v16664_v55  ;;  %v14128_v8 = vld [vmem:[%s18447_s3 + $0x5f8] sm:$0xff] }
 0x36c   :  { %v3374_v55 = vld [vmem:[#allocation2 + $0x171] sm:$0xff] }
 0x36d   :  { %v6939_v30 = vpop.f32.mrf.mxu3  ;;  %v6892_v28 = vpop.f32.mrf.mxu2  ;;  %7404 = vmatpush.bf16.msrb.mxu1 %v14108_v2 }
 0x36e   :  { %v6940_v15 = vadd.f32 %v6939_v30, %v6891_v26  ;;  %v6893_v9 = vadd.f32 %v6892_v28, %v6844_v10  ;;  %v6849_v10 = vadd.f32 %v16593_v11, %v16630_v24  ;;  %v16849_v2 = vpop.f32.mrf.mxu1  ;;  %v6852_v11 = vadd.f32 %v16613_v37, %v16640_v47  ;;  %v14089_v37 = vld [vmem:[%s18447_s3 + $0x4c0] sm:$0xff] }
 0x36f   :  { %v16813_v38 = vpop.f32.mrf.mxu0 }
 0x370   :  { %v16816_v41 = vadd.f32 %v16701_v32, %v6940_v15  ;;  %v6847_v32 = vadd.f32 %v16572_v57, %v16618_v1  ;;  %v14090_v57 = vld [vmem:[%s18447_s3 + $0x4c8] sm:$0xff] }
 0x371   :  { %7405 = vmatpush.bf16.msrb.mxu1 %v14107_v31  ;;  %v14106_v1 = vld [vmem:[%s18447_s3 + $0x548] sm:$0xff]  ;;  %7308 = vmatpush.bf16.msra.mxu3 %v14090_v57 }
 0x372   :  { %7090 = vmatmul.bf16.gmra.mxu2 %v11622_v46  ;;  %v11721_v46 = vld [vmem:[#allocation3 + $0x4e8] sm:$0xf] }
 0x373   :  { %v11722_v31 = vor.u32 %v13906_v33, %v11721_v46 }
 0x375   :  { %v6941_v54 = vpop.f32.mrf.mxu3  ;;  %v6895_v43 = vpop.f32.mrf.mxu2  ;;  %7406 = vmatpush.bf16.msrb.mxu1 %v14106_v1  ;;  %v11834_v1 = vor.u32 %v13920_v14, %v11831_v16  ;;  %7309 = vmatpush.bf16.msra.mxu3 %v14089_v37  ;;  %v3373_v14 = vld [vmem:[#allocation2 + $0x161] sm:$0xff] }
 0x376   :  { %v6942_v34 = vadd.f32 %v6941_v54, %v6893_v9  ;;  %v6896_v26 = vadd.f32 %v6895_v43, %v6847_v32  ;;  %v14081_v32 = vld [vmem:[%s18447_s3 + $0x480] sm:$0xff]  ;;  %v11723_v54 = vld [vmem:[#allocation3 + $0x54c] sm:$0xf0]  ;;  %v16867_v47 = vpop.f32.mrf.mxu1  ;;  %v3389_v37 = vpack.c.bf16 %v3373_v14, %v3373_v14 }
 0x377   :  { %v16831_v49 = vpop.f32.mrf.mxu0  ;;  %7260 = vmatpush.bf16.msra.mxu2 %v14081_v32  ;;  %v13784_v43 = vld [vmem:[#allocation3 + $0x178] sm:$0xf0]  ;;  %v14120_v32 = vld [vmem:[%s18447_s3 + $0x5b8] sm:$0xff] }
 0x378   :  { %v16834_v5 = vadd.f32 %v16713_v29, %v6942_v34  ;;  %v14105_v29 = vld [vmem:[%s18447_s3 + $0x540] sm:$0xff]  ;;  %3405 = vst [vmem:[#allocation3 + $0x5cc] sm:$0xf] %v3389_v37 }
 0x379   :  { %7359 = vmatmul.bf16.vlgmr.msra.gmra.mxu0 %v11146_v22  ;;  %7407 = vmatpush.bf16.msrb.mxu1 %v14105_v29  ;;  %v11726_v22 = vor.u32 %v13894_v56, %v11723_v54  ;;  %v11823_v54 = vld [vmem:[#allocation3 + $0x614] sm:$0xf0] }
 0x37a   :  { %7139 = vmatmul.bf16.gmra.mxu3 %v11626_v6  ;;  %7242 = vmatmul.bf16.gmra.mxu1 %v11734_v23  ;;  %v11147_v56 = vld [vmem:[#allocation3 + $0xb4] sm:$0xf0] }
 0x37b   :  { %7449 = vmatpush.bf16.msrb.mxu2 %v14120_v32  ;;  %7498 = vmatpush.bf16.msrb.mxu3 %v14128_v8 }
 0x37d   :  { %v6944_v30 = vpop.f32.mrf.mxu3  ;;  %v6897_v28 = vpop.f32.mrf.mxu2 }
 0x37e   :  { %v6945_v15 = vadd.f32 %v6944_v30, %v6896_v26  ;;  %v6898_v9 = vadd.f32 %v6897_v28, %v6849_v10  ;;  %v11245_v26 = vld [vmem:[#allocation3 + $0x118] sm:$0xf]  ;;  %v3326_v10 = vld [vmem:[#allocation2 + $0x170] sm:$0xff]  ;;  %v16879_v50 = vpop.f32.mrf.mxu1 }
 0x37f   :  { %v16847_v51 = vpop.f32.mrf.mxu0  ;;  %v11246_v57 = vor.u32 %v13784_v43, %v11245_v26  ;;  %v3342_v33 = vpack.c.bf16 %v3326_v10, %v3326_v10  ;;  %v13809_v43 = vld [vmem:[#allocation3 + $0x240] sm:$0xf0]  ;;  %v11345_v26 = vld [vmem:[#allocation3 + $0x1e0] sm:$0xf]  ;;  %v13758_v10 = vld [vmem:[#allocation3 + $0xa8] sm:$0xf0] }
 0x380   :  { %v16852_v60 = vadd.f32 %v16728_v21, %v6945_v15 }
 0x381   :  { %3358 = vst [vmem:[#allocation3 + $0x62c] sm:$0xf] %v3342_v33 }
 0x382   :  { %7095 = vmatmul.bf16.gmra.mxu2 %v11722_v31 }
 0x385   :  { %v6946_v24 = vpop.f32.mrf.mxu3  ;;  %v6900_v18 = vpop.f32.mrf.mxu2 }
 0x386   :  { %v6947_v20 = vadd.f32 %v6946_v24, %v6898_v9  ;;  %v6901_v34 = vadd.f32 %v6900_v18, %v6852_v11  ;;  %v11821_v9 = vld [vmem:[#allocation3 + $0x5b0] sm:$0xf]  ;;  %v13919_v24 = vld [vmem:[#allocation3 + $0x5b4] sm:$0xf] }
 0x387   :  { %v16859_v21 = vpop.f32.mrf.mxu0 }
 0x388   :  { %v16862_v6 = vadd.f32 %v16743_v19, %v6947_v20  ;;  %v13931_v19 = vld [vmem:[#allocation3 + $0x610] sm:$0xf0] }
 0x389   :  { %7364 = vmatmul.bf16.gmra.mxu0 %v11246_v57  ;;  %v11822_v31 = vor.u32 %v13931_v19, %v11821_v9  ;;  %v11346_v57 = vor.u32 %v13809_v43, %v11345_v26  ;;  %v13834_v43 = vld [vmem:[#allocation3 + $0x308] sm:$0xf0] }
 0x38a   :  { %7144 = vmatmul.bf16.gmra.mxu3 %v11726_v22  ;;  %7247 = vmatmul.bf16.gmra.mxu1 %v11834_v1  ;;  %v11826_v22 = vor.u32 %v13919_v24, %v11823_v54  ;;  %v13747_v1 = vld [vmem:[#allocation3 + $0x54] sm:$0xf]  ;;  %v11139_v54 = vld [vmem:[#allocation3 + $0xac] sm:$0xf0]  ;;  %v13746_v26 = vld [vmem:[#allocation3 + $0x4c] sm:$0xf] }
 0x38d   :  { %v6949_v23 = vpop.f32.mrf.mxu3  ;;  %v6902_v29 = vpop.f32.mrf.mxu2 }
 0x38e   :  { %v6950_v30 = vadd.f32 %v6949_v23, %v6901_v34  ;;  %v6903_v28 = vadd.f32 %v6902_v29, %v6854_v61  ;;  %v3390_v61 = vpack.c.bf16 %v3374_v55, %v3374_v55  ;;  %v11150_v23 = vor.u32 %v13747_v1, %v11147_v56  ;;  %v11247_v56 = vld [vmem:[#allocation3 + $0x17c] sm:$0xf0] }
 0x38f   :  { %v16871_v15 = vpop.f32.mrf.mxu0  ;;  %v7020_v1 = vadd.f32 %v16688_v48, %v16704_v3  ;;  %v3421_v48 = vld [vmem:[#allocation2 + $0x162] sm:$0xff] }
 0x390   :  { %v16874_v46 = vadd.f32 %v16759_v44, %v6950_v30  ;;  %3406 = vst [vmem:[#allocation3 + $0x630] sm:$0xf] %v3390_v61  ;;  %v16893_v30 = vpop.f32.mrf.mxu1 }
 0x392   :  { %7100 = vmatmul.bf16.gmra.mxu2 %v11822_v31  ;;  %v11137_v31 = vld [vmem:[#allocation3 + $0x48] sm:$0xf] }
 0x395   :  { %v6951_v11 = vpop.f32.mrf.mxu3  ;;  %v6905_v18 = vpop.f32.mrf.mxu2 }
 0x396   :  { %v6952_v44 = vadd.f32 %v6951_v11, %v6903_v28  ;;  %v6906_v20 = vadd.f32 %v6905_v18, %v6857_v45  ;;  %v11138_v45 = vor.u32 %v13758_v10, %v11137_v31  ;;  %v14136_v11 = vld [vmem:[%s18447_s3 + $0x638] sm:$0xff]  ;;  %v14118_v31 = vld [vmem:[%s18447_s3 + $0x5a8] sm:$0xff] }
 0x397   :  { %v16883_v34 = vpop.f32.mrf.mxu0  ;;  %7547 = vmatpush.bf16.msrb.mxu0 %v14136_v11 }
 0x398   :  { %v16886_v16 = vadd.f32 %v16777_v35, %v6952_v44  ;;  %v6859_v35 = vadd.f32 %v16657_v53, %v16679_v62  ;;  %v14119_v53 = vld [vmem:[%s18447_s3 + $0x5b0] sm:$0xff]  ;;  %v7018_v62 = vadd.f32 %v16674_v63, %v16691_v7  ;;  %v16908_v14 = vpop.f32.mrf.mxu1  ;;  %v13772_v7 = vld [vmem:[#allocation3 + $0x11c] sm:$0xf] }
 0x399   :  { %7369 = vmatmul.bf16.gmra.mxu0 %v11346_v57  ;;  %7450 = vmatpush.bf16.msrb.mxu2 %v14119_v53  ;;  %v11142_v57 = vor.u32 %v13746_v26, %v11139_v54  ;;  %v14127_v63 = vld [vmem:[%s18447_s3 + $0x5f0] sm:$0xff]  ;;  %v11250_v37 = vor.u32 %v13772_v7, %v11247_v56  ;;  %v13859_v26 = vld [vmem:[#allocation3 + $0x3d0] sm:$0xf0] }
 0x39a   :  { %7149 = vmatmul.bf16.gmra.mxu3 %v11826_v22  ;;  %7408 = vmatmul.bf16.vlgmr.msrb.gmra.mxu1 %v11150_v23  ;;  %v13783_v23 = vld [vmem:[#allocation3 + $0x170] sm:$0xf0]  ;;  %v11347_v7 = vld [vmem:[#allocation3 + $0x244] sm:$0xf0] }
 0x39b   :  { %7499 = vmatpush.bf16.msrb.mxu3 %v14127_v63  ;;  %v11545_v63 = vld [vmem:[#allocation3 + $0x370] sm:$0xf] }
 0x39d   :  { %v6954_v29 = vpop.f32.mrf.mxu3  ;;  %v6907_v19 = vpop.f32.mrf.mxu2  ;;  %7451 = vmatpush.bf16.msrb.mxu2 %v14118_v31 }
 0x39e   :  { %v6955_v28 = vadd.f32 %v6954_v29, %v6906_v20  ;;  %v6908_v33 = vadd.f32 %v6907_v19, %v6859_v35  ;;  %v11237_v19 = vld [vmem:[#allocation3 + $0x110] sm:$0xf] }
 0x39f   :  { %v16895_v9 = vpop.f32.mrf.mxu0 }
 0x3a0   :  { %v16898_v32 = vadd.f32 %v16795_v27, %v6955_v28  ;;  %v11445_v27 = vld [vmem:[#allocation3 + $0x2a8] sm:$0xf]  ;;  %v11238_v28 = vor.u32 %v13783_v23, %v11237_v19  ;;  %v16929_v3 = vpop.f32.mrf.mxu1 }
 0x3a1   :  { %v11446_v55 = vor.u32 %v13834_v43, %v11445_v27  ;;  %v7023_v27 = vadd.f32 %v16709_v17, %v16716_v39  ;;  %v14126_v17 = vld [vmem:[%s18447_s3 + $0x5e8] sm:$0xff] }
 0x3a2   :  { %7261 = vmatmul.bf16.vlgmr.msra.gmra.mxu2 %v11138_v45  ;;  %v3518_v45 = vld [vmem:[#allocation2 + $0x174] sm:$0xff]  ;;  %v13797_v39 = vld [vmem:[#allocation3 + $0x1e4] sm:$0xf]  ;;  %7500 = vmatpush.bf16.msrb.mxu3 %v14126_v17 }
 0x3a3   :  { %v3534_v53 = vpack.c.bf16 %v3518_v45, %v3518_v45  ;;  %v11337_v45 = vld [vmem:[#allocation3 + $0x1d8] sm:$0xf] }
 0x3a5   :  { %v6956_v24 = vpop.f32.mrf.mxu3  ;;  %v7066_v18 = vpop.f32.mrf.mxu2  ;;  %3550 = vst [vmem:[#allocation3 + $0x63c] sm:$0xf] %v3534_v53 }
 0x3a6   :  { %v6957_v44 = vadd.f32 %v6956_v24, %v6908_v33  ;;  %v7067_v20 = vadd.f32 %v7066_v18, %v7018_v62  ;;  %v14135_v33 = vld [vmem:[%s18447_s3 + $0x630] sm:$0xff]  ;;  %v3437_v62 = vpack.c.bf16 %v3421_v48, %v3421_v48  ;;  %v3470_v24 = vld [vmem:[#allocation2 + $0x173] sm:$0xff] }
 0x3a7   :  { %v16913_v8 = vpop.f32.mrf.mxu0  ;;  %7548 = vmatpush.bf16.msrb.mxu0 %v14135_v33  ;;  %v3486_v18 = vpack.c.bf16 %v3470_v24, %v3470_v24  ;;  %v11339_v24 = vld [vmem:[#allocation3 + $0x23c] sm:$0xf0] }
 0x3a8   :  { %v16911_v22 = vadd.f32 %v16813_v38, %v6957_v44  ;;  %v11239_v44 = vld [vmem:[#allocation3 + $0x174] sm:$0xf0]  ;;  %3453 = vst [vmem:[#allocation3 + $0x5d0] sm:$0xf] %v3437_v62  ;;  %v16941_v23 = vpop.f32.mrf.mxu1 }
 0x3a9   :  { %7374 = vmatmul.bf16.gmra.mxu0 %v11446_v55  ;;  %3502 = vst [vmem:[#allocation3 + $0x638] sm:$0xf] %v3486_v18  ;;  %v14117_v62 = vld [vmem:[%s18447_s3 + $0x5a0] sm:$0xff] }
 0x3aa   :  { %7310 = vmatmul.bf16.vlgmr.msra.gmra.mxu3 %v11142_v57  ;;  %7413 = vmatmul.bf16.gmra.mxu1 %v11250_v37  ;;  %v13771_v57 = vld [vmem:[#allocation3 + $0x114] sm:$0xf] }
 0x3ab   :  { %7452 = vmatpush.bf16.msrb.mxu2 %v14117_v62  ;;  %v11439_v62 = vld [vmem:[#allocation3 + $0x304] sm:$0xf0] }
 0x3ad   :  { %v7115_v61 = vpop.f32.mrf.mxu3  ;;  %v7068_v38 = vpop.f32.mrf.mxu2 }
 0x3ae   :  { %v7116_v35 = vadd.f32 %v7115_v61, %v7067_v20  ;;  %v7069_v29 = vadd.f32 %v7068_v38, %v7020_v1  ;;  %v11242_v1 = vor.u32 %v13771_v57, %v11239_v44  ;;  %v11546_v61 = vor.u32 %v13859_v26, %v11545_v63  ;;  %v13796_v44 = vld [vmem:[#allocation3 + $0x1dc] sm:$0xf]  ;;  %v11645_v26 = vld [vmem:[#allocation3 + $0x438] sm:$0xf]  ;;  %v11447_v57 = vld [vmem:[#allocation3 + $0x30c] sm:$0xf0] }
 0x3af   :  { %v16931_v11 = vpop.f32.mrf.mxu0  ;;  %v11350_v38 = vor.u32 %v13797_v39, %v11347_v7  ;;  %v11342_v63 = vor.u32 %v13796_v44, %v11339_v24  ;;  %v11437_v39 = vld [vmem:[#allocation3 + $0x2a0] sm:$0xf] }
 0x3b0   :  { %v16921_v10 = vadd.f32 %v16831_v49, %v7116_v35  ;;  %v3422_v49 = vld [vmem:[#allocation2 + $0x172] sm:$0xff]  ;;  %v16958_v18 = vpop.f32.mrf.mxu1 }
 0x3b1   :  { %v3438_v54 = vpack.c.bf16 %v3422_v49, %v3422_v49  ;;  %v14134_v49 = vld [vmem:[%s18447_s3 + $0x628] sm:$0xff] }
 0x3b2   :  { %7266 = vmatmul.bf16.gmra.mxu2 %v11238_v28  ;;  %v13808_v28 = vld [vmem:[#allocation3 + $0x238] sm:$0xf0]  ;;  %7549 = vmatpush.bf16.msrb.mxu0 %v14134_v49  ;;  %v13821_v49 = vld [vmem:[#allocation3 + $0x2a4] sm:$0xf] }
 0x3b3   :  { %3454 = vst [vmem:[#allocation3 + $0x634] sm:$0xf] %v3438_v54  ;;  %v11338_v53 = vor.u32 %v13808_v28, %v11337_v45  ;;  %v14132_v45 = vld [vmem:[%s18447_s3 + $0x618] sm:$0xff] }
 0x3b5   :  { %v7117_v43 = vpop.f32.mrf.mxu3  ;;  %v7071_v20 = vpop.f32.mrf.mxu2 }
 0x3b6   :  { %v7118_v56 = vadd.f32 %v7117_v43, %v7069_v29  ;;  %v7072_v55 = vadd.f32 %v7071_v20, %v7023_v27 }
 0x3b7   :  { %v16943_v35 = vpop.f32.mrf.mxu0 }
 0x3b8   :  { %v16936_v37 = vadd.f32 %v16847_v51, %v7118_v56  ;;  %v7025_v51 = vadd.f32 %v16724_v58, %v16731_v0  ;;  %v7028_v58 = vadd.f32 %v16741_v13, %v16746_v40  ;;  %v13822_v56 = vld [vmem:[#allocation3 + $0x2ac] sm:$0xf]  ;;  %v14125_v13 = vld [vmem:[%s18447_s3 + $0x5e0] sm:$0xff] }
 0x3b9   :  { %7379 = vmatmul.bf16.gmra.mxu0 %v11546_v61  ;;  %v11450_v40 = vor.u32 %v13822_v56, %v11447_v57  ;;  %7501 = vmatpush.bf16.msrb.mxu3 %v14125_v13  ;;  %v7030_v61 = vadd.f32 %v16761_v12, %v16764_v59  ;;  %v14116_v12 = vld [vmem:[%s18447_s3 + $0x598] sm:$0xff]  ;;  %v14131_v59 = vld [vmem:[%s18447_s3 + $0x610] sm:$0xff]  ;;  %v7035_v13 = vadd.f32 %v16809_v25, %v16798_v4 }
 0x3ba   :  { %7315 = vmatmul.bf16.gmra.mxu3 %v11242_v1  ;;  %7418 = vmatmul.bf16.gmra.mxu1 %v11350_v38  ;;  %v14133_v1 = vld [vmem:[%s18447_s3 + $0x620] sm:$0xff]  ;;  %v13833_v38 = vld [vmem:[#allocation3 + $0x300] sm:$0xf0]  ;;  %v14124_v56 = vld [vmem:[%s18447_s3 + $0x5d8] sm:$0xff]  ;;  %v7038_v25 = vadd.f32 %v16829_v52, %v16816_v41  ;;  %v7040_v52 = vadd.f32 %v16849_v2, %v16834_v5  ;;  %v7043_v5 = vadd.f32 %v16867_v47, %v16852_v60 }
 0x3bb   :  { %7550 = vmatpush.bf16.msrb.mxu0 %v14133_v1  ;;  %7453 = vmatpush.bf16.msrb.mxu2 %v14116_v12  ;;  %v11539_v12 = vld [vmem:[#allocation3 + $0x3cc] sm:$0xf0]  ;;  %v14122_v60 = vld [vmem:[%s18447_s3 + $0x5c8] sm:$0xff] }
 0x3bc   :  { %v13897_v47 = vld [vmem:[#allocation3 + $0x504] sm:$0xf] }
 0x3bd   :  { %v7120_v29 = vpop.f32.mrf.mxu3  ;;  %v7073_v19 = vpop.f32.mrf.mxu2  ;;  %7502 = vmatpush.bf16.msrb.mxu3 %v14124_v56  ;;  %v13883_v56 = vld [vmem:[#allocation3 + $0x490] sm:$0xf0] }
 0x3be   :  { %v7121_v33 = vadd.f32 %v7120_v29, %v7072_v55  ;;  %v7074_v31 = vadd.f32 %v7073_v19, %v7025_v51  ;;  %v16973_v19 = vpop.f32.mrf.mxu1 }
 0x3bf   :  { %v16960_v27 = vpop.f32.mrf.mxu0  ;;  %7551 = vmatpush.bf16.msrb.mxu0 %v14132_v45 }
 0x3c0   :  { %v16948_v48 = vadd.f32 %v16859_v21, %v7121_v33  ;;  %v13884_v21 = vld [vmem:[#allocation3 + $0x498] sm:$0xf0] }
 0x3c1   :  { %v11646_v7 = vor.u32 %v13884_v21, %v11645_v26  ;;  %v11745_v21 = vld [vmem:[#allocation3 + $0x500] sm:$0xf] }
 0x3c2   :  { %7271 = vmatmul.bf16.gmra.mxu2 %v11338_v53 }
 0x3c3   :  { %7552 = vmatpush.bf16.msrb.mxu0 %v14131_v59 }
 0x3c5   :  { %v7122_v0 = vpop.f32.mrf.mxu3  ;;  %v7076_v54 = vpop.f32.mrf.mxu2 }
 0x3c6   :  { %v7123_v43 = vadd.f32 %v7122_v0, %v7074_v31  ;;  %v7077_v20 = vadd.f32 %v7076_v54, %v7028_v58  ;;  %v11438_v31 = vor.u32 %v13833_v38, %v11437_v39  ;;  %v13909_v0 = vld [vmem:[#allocation3 + $0x560] sm:$0xf0]  ;;  %v17000_v57 = vpop.f32.mrf.mxu1  ;;  %v11537_v39 = vld [vmem:[#allocation3 + $0x368] sm:$0xf] }
 0x3c7   :  { %v16975_v28 = vpop.f32.mrf.mxu0  ;;  %v11746_v26 = vor.u32 %v13909_v0, %v11745_v21  ;;  %v14123_v21 = vld [vmem:[%s18447_s3 + $0x5d0] sm:$0xff] }
 0x3c8   :  { %v16963_v55 = vadd.f32 %v16871_v15, %v7123_v43  ;;  %v11547_v43 = vld [vmem:[#allocation3 + $0x3d4] sm:$0xf0]  ;;  %7503 = vmatpush.bf16.msrb.mxu3 %v14123_v21 }
 0x3c9   :  { %7384 = vmatmul.bf16.gmra.mxu0 %v11646_v7  ;;  %v11737_v21 = vld [vmem:[#allocation3 + $0x4f8] sm:$0xf] }
 0x3ca   :  { %7320 = vmatmul.bf16.gmra.mxu3 %v11342_v63  ;;  %7423 = vmatmul.bf16.gmra.mxu1 %v11450_v40 }
 0x3cc   :  { %7504 = vmatpush.bf16.msrb.mxu3 %v14122_v60 }
 0x3cd   :  { %v7125_v15 = vpop.f32.mrf.mxu3  ;;  %v7078_v17 = vpop.f32.mrf.mxu2 }
 0x3ce   :  { %v7126_v51 = vadd.f32 %v7125_v15, %v7077_v20  ;;  %v7079_v29 = vadd.f32 %v7078_v17, %v7030_v61  ;;  %v11442_v20 = vor.u32 %v13821_v49, %v11439_v62  ;;  %v13858_v61 = vld [vmem:[#allocation3 + $0x3c8] sm:$0xf0] }
 0x3cf   :  { %v17002_v63 = vpop.f32.mrf.mxu0  ;;  %v13846_v62 = vld [vmem:[#allocation3 + $0x36c] sm:$0xf] }
 0x3d0   :  { %v16978_v33 = vadd.f32 %v16883_v34, %v7126_v51  ;;  %v7033_v34 = vadd.f32 %v16788_v42, %v16780_v36  ;;  %v14130_v36 = vld [vmem:[%s18447_s3 + $0x608] sm:$0xff]  ;;  %v13847_v42 = vld [vmem:[#allocation3 + $0x374] sm:$0xf]  ;;  %v11538_v51 = vor.u32 %v13858_v61, %v11537_v39  ;;  %v11639_v61 = vld [vmem:[#allocation3 + $0x494] sm:$0xf0] }
 0x3d1   :  { %v11550_v7 = vor.u32 %v13847_v42, %v11547_v43  ;;  %7553 = vmatpush.bf16.msrb.mxu0 %v14130_v36  ;;  %v13872_v43 = vld [vmem:[#allocation3 + $0x43c] sm:$0xf] }
 0x3d2   :  { %7276 = vmatmul.bf16.gmra.mxu2 %v11438_v31  ;;  %v17015_v31 = vpop.f32.mrf.mxu1 }
 0x3d5   :  { %v7127_v53 = vpop.f32.mrf.mxu3  ;;  %v7081_v58 = vpop.f32.mrf.mxu2 }
 0x3d6   :  { %v7128_v24 = vadd.f32 %v7127_v53, %v7079_v29  ;;  %v7082_v54 = vadd.f32 %v7081_v58, %v7033_v34  ;;  %v14115_v29 = vld [vmem:[%s18447_s3 + $0x590] sm:$0xff]  ;;  %v11647_v58 = vld [vmem:[#allocation3 + $0x49c] sm:$0xf0] }
 0x3d7   :  { %7454 = vmatpush.bf16.msrb.mxu2 %v14115_v29  ;;  %v17017_v4 = vpop.f32.mrf.mxu0  ;;  %v11845_v34 = vld [vmem:[#allocation3 + $0x5c8] sm:$0xf]  ;;  %v11650_v41 = vor.u32 %v13872_v43, %v11647_v58  ;;  %v13871_v29 = vld [vmem:[#allocation3 + $0x434] sm:$0xf] }
 0x3d8   :  { %v16992_v44 = vadd.f32 %v16895_v9, %v7128_v24  ;;  %v14129_v9 = vld [vmem:[%s18447_s3 + $0x600] sm:$0xff]  ;;  %v11542_v24 = vor.u32 %v13846_v62, %v11539_v12 }
 0x3d9   :  { %7389 = vmatmul.bf16.gmra.mxu0 %v11746_v26 }
 0x3da   :  { %7325 = vmatmul.bf16.gmra.mxu3 %v11442_v20  ;;  %7428 = vmatmul.bf16.gmra.mxu1 %v11550_v7 }
 0x3db   :  { %7554 = vmatpush.bf16.msrb.mxu0 %v14129_v9  ;;  %v11637_v9 = vld [vmem:[#allocation3 + $0x430] sm:$0xf] }
 0x3dd   :  { %v7130_v40 = vpop.f32.mrf.mxu3  ;;  %v7083_v1 = vpop.f32.mrf.mxu2 }
 0x3de   :  { %v7131_v15 = vadd.f32 %v7130_v40, %v7082_v54  ;;  %v7084_v17 = vadd.f32 %v7083_v1, %v7035_v13  ;;  %v11638_v40 = vor.u32 %v13883_v56, %v11637_v9  ;;  %v14114_v1 = vld [vmem:[%s18447_s3 + $0x588] sm:$0xff] }
 0x3df   :  { %v17031_v36 = vpop.f32.mrf.mxu0  ;;  %7455 = vmatpush.bf16.msrb.mxu2 %v14114_v1  ;;  %v11739_v56 = vld [vmem:[#allocation3 + $0x55c] sm:$0xf0]  ;;  %v13896_v1 = vld [vmem:[#allocation3 + $0x4fc] sm:$0xf] }
 0x3e0   :  { %v17010_v38 = vadd.f32 %v16913_v8, %v7131_v15  ;;  %v13934_v8 = vld [vmem:[#allocation3 + $0x628] sm:$0xf0] }
 0x3e1   :  { %v11846_v54 = vor.u32 %v13934_v8, %v11845_v34  ;;  %v11642_v34 = vor.u32 %v13871_v29, %v11639_v61  ;;  %v7050_v29 = vadd.f32 %v16908_v14, %v16886_v16 }
 0x3e2   :  { %7281 = vmatmul.bf16.gmra.mxu2 %v11538_v51 }
 0x3e5   :  { %v7132_v45 = vpop.f32.mrf.mxu3  ;;  %v7086_v59 = vpop.f32.mrf.mxu2 }
 0x3e6   :  { %v7133_v53 = vadd.f32 %v7132_v45, %v7084_v17  ;;  %v7087_v49 = vadd.f32 %v7086_v59, %v7038_v25  ;;  %v13761_v17 = vld [vmem:[#allocation3 + $0xc0] sm:$0xf0]  ;;  %v11747_v25 = vld [vmem:[#allocation3 + $0x564] sm:$0xf0] }
 0x3e7   :  { %v17043_v12 = vpop.f32.mrf.mxu0 }
 0x3e8   :  { %v17022_v0 = vadd.f32 %v16931_v11, %v7133_v53  ;;  %v17029_v11 = vpop.f32.mrf.mxu1  ;;  %v11750_v53 = vor.u32 %v13897_v47, %v11747_v25 }
 0x3e9   :  { %7394 = vmatmul.bf16.gmra.mxu0 %v11846_v54 }
 0x3ea   :  { %7330 = vmatmul.bf16.gmra.mxu3 %v11542_v24  ;;  %7433 = vmatmul.bf16.gmra.mxu1 %v11650_v41  ;;  %v13908_v24 = vld [vmem:[#allocation3 + $0x558] sm:$0xf0] }
 0x3eb   :  { %v11738_v41 = vor.u32 %v13908_v24, %v11737_v21  ;;  %v11839_v24 = vld [vmem:[#allocation3 + $0x624] sm:$0xf0] }
 0x3ed   :  { %v7135_v20 = vpop.f32.mrf.mxu3  ;;  %v7088_v26 = vpop.f32.mrf.mxu2 }
 0x3ee   :  { %v7136_v42 = vadd.f32 %v7135_v20, %v7087_v49  ;;  %v7089_v7 = vadd.f32 %v7088_v26, %v7040_v52  ;;  %v7045_v49 = vadd.f32 %v16879_v50, %v16862_v6  ;;  %v14113_v52 = vld [vmem:[%s18447_s3 + $0x580] sm:$0xff]  ;;  %v7048_v6 = vadd.f32 %v16893_v30, %v16874_v46 }
 0x3ef   :  { %v17061_v26 = vpop.f32.mrf.mxu0  ;;  %7456 = vmatpush.bf16.msrb.mxu2 %v14113_v52 }
 0x3f0   :  { %v17034_v13 = vadd.f32 %v16943_v35, %v7136_v42  ;;  %v11161_v35 = vld [vmem:[#allocation3 + $0x60] sm:$0xf]  ;;  %v17041_v45 = vpop.f32.mrf.mxu1 }
 0x3f1   :  { %v11162_v8 = vor.u32 %v13761_v17, %v11161_v35  ;;  %v11837_v35 = vld [vmem:[#allocation3 + $0x5c0] sm:$0xf] }
 0x3f2   :  { %7286 = vmatmul.bf16.gmra.mxu2 %v11638_v40  ;;  %v11261_v40 = vld [vmem:[#allocation3 + $0x128] sm:$0xf] }
 0x3f5   :  { %v7137_v2 = vpop.f32.mrf.mxu3  ;;  %v7091_v15 = vpop.f32.mrf.mxu2 }
 0x3f6   :  { %v7138_v39 = vadd.f32 %v7137_v2, %v7089_v7  ;;  %v7092_v51 = vadd.f32 %v7091_v15, %v7043_v5  ;;  %v13786_v7 = vld [vmem:[#allocation3 + $0x188] sm:$0xf0]  ;;  %v11847_v2 = vld [vmem:[#allocation3 + $0x62c] sm:$0xf0]  ;;  %v11742_v15 = vor.u32 %v13896_v1, %v11739_v56  ;;  %v13760_v56 = vld [vmem:[#allocation3 + $0xb8] sm:$0xf0] }
 0x3f7   :  { %v13922_v5 = vld [vmem:[#allocation3 + $0x5cc] sm:$0xf]  ;;  %v11262_v17 = vor.u32 %v13786_v7, %v11261_v40 }
 0x3f8   :  { %v17046_v59 = vadd.f32 %v16960_v27, %v7138_v39  ;;  %v17059_v20 = vpop.f32.mrf.mxu1  ;;  %v14121_v39 = vld [vmem:[%s18447_s3 + $0x5c0] sm:$0xff]  ;;  %v11850_v46 = vor.u32 %v13922_v5, %v11847_v2  ;;  %v11155_v2 = vld [vmem:[#allocation3 + $0xbc] sm:$0xf0] }
 0x3f9   :  { %7555 = vmatmul.bf16.vlgmr.msrb.gmra.mxu0 %v11162_v8  ;;  %7505 = vmatpush.bf16.msrb.mxu3 %v14121_v39 }
 0x3fa   :  { %7335 = vmatmul.bf16.gmra.mxu3 %v11642_v34  ;;  %7438 = vmatmul.bf16.gmra.mxu1 %v11750_v53  ;;  %v13933_v34 = vld [vmem:[#allocation3 + $0x620] sm:$0xf0] }
 0x3fb   :  { %v11838_v53 = vor.u32 %v13933_v34, %v11837_v35  ;;  %v7216_v35 = vadd.f32 %v16973_v19, %v16936_v37  ;;  %v13785_v34 = vld [vmem:[#allocation3 + $0x180] sm:$0xf0] }
 0x3fc   :  { %v13773_v19 = vld [vmem:[#allocation3 + $0x124] sm:$0xf] }
 0x3fd   :  { %v7140_v62 = vpop.f32.mrf.mxu3  ;;  %v7093_v58 = vpop.f32.mrf.mxu2 }
 0x3fe   :  { %v7141_v27 = vadd.f32 %v7140_v62, %v7092_v51  ;;  %v7094_v54 = vadd.f32 %v7093_v58, %v7045_v49  ;;  %v7360_v51 = vpop.f32.mrf.mxu0  ;;  %v7053_v49 = vadd.f32 %v16929_v3, %v16898_v32  ;;  %v13921_v58 = vld [vmem:[#allocation3 + $0x5c4] sm:$0xf] }
 0x400   :  { %v17054_v43 = vadd.f32 %v16975_v28, %v7141_v27  ;;  %v17071_v30 = vpop.f32.mrf.mxu1 }
 0x402   :  { %7291 = vmatmul.bf16.gmra.mxu2 %v11738_v41  ;;  %v11361_v41 = vld [vmem:[#allocation3 + $0x1f0] sm:$0xf] }
 0x405   :  { %v7142_v50 = vpop.f32.mrf.mxu3  ;;  %v7096_v42 = vpop.f32.mrf.mxu2 }
 0x406   :  { %v7143_v28 = vadd.f32 %v7142_v50, %v7094_v54  ;;  %v7097_v9 = vadd.f32 %v7096_v42, %v7048_v6  ;;  %v13811_v54 = vld [vmem:[#allocation3 + $0x250] sm:$0xf0]  ;;  %v7362_v16 = vpop.f32.mrf.mxu0  ;;  %v11842_v6 = vor.u32 %v13921_v58, %v11839_v24  ;;  %v7055_v50 = vadd.f32 %v16941_v23, %v16911_v22  ;;  %v13836_v22 = vld [vmem:[#allocation3 + $0x318] sm:$0xf0] }
 0x407   :  { %v7219_v58 = vadd.f32 %v17000_v57, %v16948_v48  ;;  %v13810_v48 = vld [vmem:[#allocation3 + $0x248] sm:$0xf0] }
 0x408   :  { %v17066_v61 = vadd.f32 %v17002_v63, %v7143_v28  ;;  %v11153_v28 = vld [vmem:[#allocation3 + $0x58] sm:$0xf] }
 0x409   :  { %7560 = vmatmul.bf16.gmra.mxu0 %v11262_v17  ;;  %v11154_v1 = vor.u32 %v13760_v56, %v11153_v28  ;;  %v11461_v17 = vld [vmem:[#allocation3 + $0x2b8] sm:$0xf] }
 0x40a   :  { %7340 = vmatmul.bf16.gmra.mxu3 %v11742_v15  ;;  %7443 = vmatmul.bf16.gmra.mxu1 %v11850_v46  ;;  %v13748_v46 = vld [vmem:[#allocation3 + $0x5c] sm:$0xf] }
 0x40d   :  { %v7145_v25 = vpop.f32.mrf.mxu3  ;;  %v7098_v63 = vpop.f32.mrf.mxu2 }
 0x40e   :  { %v7146_v8 = vadd.f32 %v7145_v25, %v7097_v9  ;;  %v7099_v60 = vadd.f32 %v7098_v63, %v7050_v29  ;;  %v7365_v9 = vpop.f32.mrf.mxu0  ;;  %v11158_v25 = vor.u32 %v13748_v46, %v11155_v2  ;;  %v11462_v63 = vor.u32 %v13836_v22, %v11461_v17  ;;  %v11661_v22 = vld [vmem:[#allocation3 + $0x448] sm:$0xf] }
 0x410   :  { %v17076_v47 = vadd.f32 %v17017_v4, %v7146_v8  ;;  %v11362_v4 = vor.u32 %v13811_v54, %v11361_v41  ;;  %v11561_v41 = vld [vmem:[#allocation3 + $0x380] sm:$0xf] }
 0x412   :  { %7296 = vmatmul.bf16.gmra.mxu2 %v11838_v53  ;;  %v11253_v53 = vld [vmem:[#allocation3 + $0x120] sm:$0xf] }
 0x415   :  { %v7147_v62 = vpop.f32.mrf.mxu3  ;;  %v7101_v27 = vpop.f32.mrf.mxu2 }
 0x416   :  { %v7148_v14 = vadd.f32 %v7147_v62, %v7099_v60  ;;  %v7102_v21 = vadd.f32 %v7101_v27, %v7053_v49  ;;  %v11254_v62 = vor.u32 %v13785_v34, %v11253_v53  ;;  %v11255_v27 = vld [vmem:[#allocation3 + $0x184] sm:$0xf0] }
 0x418   :  { %v17081_v52 = vadd.f32 %v17031_v36, %v7148_v14  ;;  %v7214_v36 = vadd.f32 %v16958_v18, %v16921_v10  ;;  %v13861_v14 = vld [vmem:[#allocation3 + $0x3e0] sm:$0xf0] }
 0x419   :  { %7565 = vmatmul.bf16.gmra.mxu0 %v11362_v4  ;;  %v11258_v4 = vor.u32 %v13773_v19, %v11255_v27  ;;  %v13911_v27 = vld [vmem:[#allocation3 + $0x570] sm:$0xf0] }
 0x41a   :  { %7345 = vmatmul.bf16.gmra.mxu3 %v11842_v6 }
 0x41d   :  { %v7150_v32 = vpop.f32.mrf.mxu3  ;;  %v7103_v3 = vpop.f32.mrf.mxu2 }
 0x41e   :  { %v7151_v42 = vadd.f32 %v7150_v32, %v7102_v21  ;;  %v7104_v7 = vadd.f32 %v7103_v3, %v7055_v50  ;;  %v11562_v50 = vor.u32 %v13861_v14, %v11561_v41  ;;  %v11761_v14 = vld [vmem:[#allocation3 + $0x510] sm:$0xf]  ;;  %v7231_v41 = vadd.f32 %v17071_v30, %v17022_v0 }
 0x420   :  { %v17086_v40 = vadd.f32 %v17043_v12, %v7151_v42  ;;  %v7367_v12 = vpop.f32.mrf.mxu0 }
 0x422   :  { %7457 = vmatmul.bf16.vlgmr.msrb.gmra.mxu2 %v11154_v1 }
 0x425   :  { %v7152_v5 = vpop.f32.mrf.mxu3  ;;  %v7262_v15 = vpop.f32.mrf.mxu2 }
 0x426   :  { %v7153_v23 = vadd.f32 %v7152_v5, %v7104_v7  ;;  %v7263_v39 = vadd.f32 %v7262_v15, %v7214_v36  ;;  %v11353_v7 = vld [vmem:[#allocation3 + $0x1e8] sm:$0xf]  ;;  %v11355_v5 = vld [vmem:[#allocation3 + $0x24c] sm:$0xf0]  ;;  %v13886_v15 = vld [vmem:[#allocation3 + $0x4a8] sm:$0xf0] }
 0x427   :  { %v11354_v1 = vor.u32 %v13810_v48, %v11353_v7  ;;  %v11555_v7 = vld [vmem:[#allocation3 + $0x3dc] sm:$0xf0] }
 0x428   :  { %v17091_v29 = vadd.f32 %v17061_v26, %v7153_v23  ;;  %v7370_v26 = vpop.f32.mrf.mxu0 }
 0x429   :  { %7570 = vmatmul.bf16.gmra.mxu0 %v11462_v63 }
 0x42a   :  { %7506 = vmatmul.bf16.vlgmr.msrb.gmra.mxu3 %v11158_v25  ;;  %v11662_v25 = vor.u32 %v13886_v15, %v11661_v22 }
 0x42d   :  { %v7311_v10 = vpop.f32.mrf.mxu3  ;;  %v7264_v18 = vpop.f32.mrf.mxu2 }
 0x42e   :  { %v7312_v8 = vadd.f32 %v7311_v10, %v7263_v39  ;;  %v7265_v60 = vadd.f32 %v7264_v18, %v7216_v35  ;;  %v13835_v35 = vld [vmem:[#allocation3 + $0x310] sm:$0xf0] }
 0x430   :  { %v17095_v49 = vadd.f32 %v7360_v51, %v7312_v8  ;;  %v7221_v51 = vadd.f32 %v17015_v31, %v16963_v55  ;;  %v7372_v57 = vpop.f32.mrf.mxu0  ;;  %v13798_v31 = vld [vmem:[#allocation3 + $0x1ec] sm:$0xf] }
 0x431   :  { %v11358_v46 = vor.u32 %v13798_v31, %v11355_v5 }
 0x432   :  { %7462 = vmatmul.bf16.gmra.mxu2 %v11254_v62  ;;  %v13823_v62 = vld [vmem:[#allocation3 + $0x2b4] sm:$0xf] }
 0x435   :  { %v7313_v24 = vpop.f32.mrf.mxu3  ;;  %v7267_v54 = vpop.f32.mrf.mxu2 }
 0x436   :  { %v7314_v21 = vadd.f32 %v7313_v24, %v7265_v60  ;;  %v7268_v37 = vadd.f32 %v7267_v54, %v7219_v58  ;;  %v11455_v58 = vld [vmem:[#allocation3 + $0x314] sm:$0xf0] }
 0x438   :  { %v17099_v6 = vadd.f32 %v7362_v16, %v7314_v21  ;;  %v7224_v16 = vadd.f32 %v17029_v11, %v16978_v33  ;;  %v7375_v23 = vpop.f32.mrf.mxu0  ;;  %v11453_v11 = vld [vmem:[#allocation3 + $0x2b0] sm:$0xf] }
 0x439   :  { %7575 = vmatmul.bf16.gmra.mxu0 %v11562_v50  ;;  %v11454_v8 = vor.u32 %v13835_v35, %v11453_v11 }
 0x43a   :  { %7511 = vmatmul.bf16.gmra.mxu3 %v11258_v4  ;;  %v13860_v4 = vld [vmem:[#allocation3 + $0x3d8] sm:$0xf0] }
 0x43d   :  { %v7316_v32 = vpop.f32.mrf.mxu3  ;;  %v7269_v3 = vpop.f32.mrf.mxu2 }
 0x43e   :  { %v7317_v56 = vadd.f32 %v7316_v32, %v7268_v37  ;;  %v7270_v42 = vadd.f32 %v7269_v3, %v7221_v51  ;;  %v11458_v37 = vor.u32 %v13823_v62, %v11455_v58  ;;  %v11553_v32 = vld [vmem:[#allocation3 + $0x378] sm:$0xf] }
 0x440   :  { %v17103_v28 = vadd.f32 %v7365_v9, %v7317_v56  ;;  %v7226_v9 = vadd.f32 %v17041_v45, %v16992_v44  ;;  %v7377_v60 = vpop.f32.mrf.mxu0  ;;  %v7233_v44 = vpop.f32.mrf.mxu1 }
 0x441   :  { %v7234_v56 = vadd.f32 %v7233_v44, %v17034_v13  ;;  %v13885_v13 = vld [vmem:[#allocation3 + $0x4a0] sm:$0xf0] }
 0x442   :  { %7467 = vmatmul.bf16.gmra.mxu2 %v11354_v1 }
 0x445   :  { %v7318_v36 = vpop.f32.mrf.mxu3  ;;  %v7272_v2 = vpop.f32.mrf.mxu2 }
 0x446   :  { %v7319_v17 = vadd.f32 %v7318_v36, %v7270_v42  ;;  %v7273_v55 = vadd.f32 %v7272_v2, %v7224_v16  ;;  %v11861_v16 = vld [vmem:[#allocation3 + $0x5d8] sm:$0xf]  ;;  %v13936_v36 = vld [vmem:[#allocation3 + $0x638] sm:$0xf0] }
 0x447   :  { %v13848_v2 = vld [vmem:[#allocation3 + $0x37c] sm:$0xf] }
 0x448   :  { %v17107_v39 = vadd.f32 %v7367_v12, %v7319_v17  ;;  %v7229_v12 = vadd.f32 %v17059_v20, %v17010_v38  ;;  %v7380_v19 = vpop.f32.mrf.mxu0  ;;  %v17119_v3 = vpop.f32.mrf.mxu1  ;;  %v11558_v17 = vor.u32 %v13848_v2, %v11555_v7  ;;  %v13923_v2 = vld [vmem:[#allocation3 + $0x5d4] sm:$0xf] }
 0x449   :  { %7580 = vmatmul.bf16.gmra.mxu0 %v11662_v25  ;;  %v11653_v25 = vld [vmem:[#allocation3 + $0x440] sm:$0xf] }
 0x44a   :  { %7516 = vmatmul.bf16.gmra.mxu3 %v11358_v46 }
 0x44d   :  { %v7321_v63 = vpop.f32.mrf.mxu3  ;;  %v7274_v33 = vpop.f32.mrf.mxu2 }
 0x44e   :  { %v7322_v10 = vadd.f32 %v7321_v63, %v7273_v55  ;;  %v7275_v18 = vadd.f32 %v7274_v33, %v7226_v9  ;;  %v11862_v55 = vor.u32 %v13936_v36, %v11861_v16  ;;  %v11654_v33 = vor.u32 %v13885_v13, %v11653_v25 }
 0x450   :  { %v17111_v34 = vadd.f32 %v7370_v26, %v7322_v10  ;;  %v11762_v26 = vor.u32 %v13911_v27, %v11761_v14  ;;  %v17124_v0 = vpop.f32.mrf.mxu0  ;;  %v7238_v31 = vpop.f32.mrf.mxu1  ;;  %v13910_v27 = vld [vmem:[#allocation3 + $0x568] sm:$0xf0] }
 0x451   :  { %v7239_v35 = vadd.f32 %v7238_v31, %v17054_v43 }
 0x452   :  { %7472 = vmatmul.bf16.gmra.mxu2 %v11454_v8 }
 0x455   :  { %v7323_v53 = vpop.f32.mrf.mxu3  ;;  %v7277_v24 = vpop.f32.mrf.mxu2 }
 0x456   :  { %v7324_v45 = vadd.f32 %v7323_v53, %v7275_v18  ;;  %v7278_v54 = vadd.f32 %v7277_v24, %v7229_v12  ;;  %v11655_v18 = vld [vmem:[#allocation3 + $0x4a4] sm:$0xf0]  ;;  %v13873_v12 = vld [vmem:[#allocation3 + $0x444] sm:$0xf] }
 0x457   :  { %v11658_v53 = vor.u32 %v13873_v12, %v11655_v18 }
 0x458   :  { %v17115_v21 = vadd.f32 %v7372_v57, %v7324_v45  ;;  %v11554_v57 = vor.u32 %v13860_v4, %v11553_v32  ;;  %v7385_v9 = vpop.f32.mrf.mxu0  ;;  %v17132_v11 = vpop.f32.mrf.mxu1  ;;  %v13898_v4 = vld [vmem:[#allocation3 + $0x50c] sm:$0xf] }
 0x459   :  { %7585 = vmatmul.bf16.gmra.mxu0 %v11762_v26 }
 0x45a   :  { %7521 = vmatmul.bf16.gmra.mxu3 %v11458_v37 }
 0x45d   :  { %v7326_v38 = vpop.f32.mrf.mxu3  ;;  %v7279_v20 = vpop.f32.mrf.mxu2 }
 0x45e   :  { %v7327_v50 = vadd.f32 %v7326_v38, %v7278_v54  ;;  %v7280_v51 = vadd.f32 %v7279_v20, %v7231_v41  ;;  %v11753_v54 = vld [vmem:[#allocation3 + $0x508] sm:$0xf]  ;;  %v11755_v41 = vld [vmem:[#allocation3 + $0x56c] sm:$0xf0] }
 0x45f   :  { %v11754_v43 = vor.u32 %v13910_v27, %v11753_v54 }
 0x460   :  { %v17121_v48 = vadd.f32 %v7375_v23, %v7327_v50  ;;  %v17137_v62 = vpop.f32.mrf.mxu0  ;;  %v7243_v44 = vpop.f32.mrf.mxu1 }
 0x461   :  { %v7244_v26 = vadd.f32 %v7243_v44, %v17076_v47 }
 0x462   :  { %7477 = vmatmul.bf16.gmra.mxu2 %v11554_v57 }
 0x465   :  { %v7328_v42 = vpop.f32.mrf.mxu3  ;;  %v7282_v1 = vpop.f32.mrf.mxu2 }
 0x466   :  { %v7329_v30 = vadd.f32 %v7328_v42, %v7280_v51  ;;  %v7283_v5 = vadd.f32 %v7282_v1, %v7234_v56  ;;  %v11758_v51 = vor.u32 %v13898_v4, %v11755_v41  ;;  %v11853_v56 = vld [vmem:[#allocation3 + $0x5d0] sm:$0xf]  ;;  %v13935_v42 = vld [vmem:[#allocation3 + $0x630] sm:$0xf0] }
 0x467   :  { %v11854_v47 = vor.u32 %v13935_v42, %v11853_v56 }
 0x468   :  { %v17126_v15 = vadd.f32 %v7377_v60, %v7329_v30  ;;  %v7390_v37 = vpop.f32.mrf.mxu0  ;;  %v17146_v50 = vpop.f32.mrf.mxu1 }
 0x469   :  { %7590 = vmatmul.bf16.gmra.mxu0 %v11862_v55 }
 0x46a   :  { %7526 = vmatmul.bf16.gmra.mxu3 %v11558_v17  ;;  %v11855_v17 = vld [vmem:[#allocation3 + $0x634] sm:$0xf0] }
 0x46d   :  { %v7331_v22 = vpop.f32.mrf.mxu3  ;;  %v17128_v23 = vpop.f32.mrf.mxu2 }
 0x46e   :  { %v7332_v46 = vadd.f32 %v7331_v22, %v7283_v5  ;;  %v11858_v22 = vor.u32 %v13923_v2, %v11855_v17 }
 0x470   :  { %v17130_v63 = vadd.f32 %v7380_v19, %v7332_v46  ;;  %v17150_v1 = vpop.f32.mrf.mxu0  ;;  %v7248_v36 = vpop.f32.mrf.mxu1 }
 0x471   :  { %v7249_v30 = vadd.f32 %v7248_v36, %v17086_v40 }
 0x472   :  { %7482 = vmatmul.bf16.gmra.mxu2 %v11654_v33  ;;  %v14430_v33 = vmov 0.0  }
 0x473   :  { %7628 = vst [vmem:[#allocation5] sm:$0x3f] %v14430_v33 }
 0x474   :  { %7629 = vst [vmem:[#allocation5 + $0x8] sm:$0x3f] %v14430_v33 }
 0x475   :  { %v17135_v10 = vpop.f32.mrf.mxu3  ;;  %v7287_v8 = vpop.f32.mrf.mxu2  ;;  %7633 = vst [vmem:[#allocation5 + $0x28] sm:$0x3f] %v14430_v33 }
 0x476   :  { %v7288_v60 = vadd.f32 %v7287_v8, %v7239_v35  ;;  %7634 = vst [vmem:[#allocation5 + $0x30] sm:$0x3f] %v14430_v33 }
 0x477   :  { %7639 = vst [vmem:[#allocation5 + $0x58] sm:$0x3f] %v14430_v33 }
 0x478   :  { %v7395_v13 = vpop.f32.mrf.mxu0  ;;  %v17157_v46 = vpop.f32.mrf.mxu1  ;;  %7630 = vst [vmem:[#allocation5 + $0x10] sm:$0x3f] %v14430_v33 }
 0x479   :  { %7631 = vst [vmem:[#allocation5 + $0x18] sm:$0x3f] %v14430_v33 }
 0x47a   :  { %7531 = vmatmul.bf16.gmra.mxu3 %v11658_v53  ;;  %7632 = vst [vmem:[#allocation5 + $0x20] sm:$0x3f] %v14430_v33  ;;  %v7736_v53 = vld [vmem:[#allocation5] sm:$0xf] }
 0x47b   :  { %7635 = vst [vmem:[#allocation5 + $0x38] sm:$0x3f] %v14430_v33 }
 0x47c   :  { %7636 = vst [vmem:[#allocation5 + $0x40] sm:$0x3f] %v14430_v33 }
 0x47d   :  { %v7336_v58 = vpop.f32.mrf.mxu3  ;;  %v17139_v24 = vpop.f32.mrf.mxu2  ;;  %7637 = vst [vmem:[#allocation5 + $0x48] sm:$0x3f] %v14430_v33 }
 0x47e   :  { %v7337_v45 = vadd.f32 %v7336_v58, %v7288_v60  ;;  %7638 = vst [vmem:[#allocation5 + $0x50] sm:$0x3f] %v14430_v33  ;;  %v14162_v33 = vld [vmem:[%s18449_s5 + $0x38] sm:$0xff] }
 0x47f   :  { %7752 = vst [vmem:[#allocation1] ss:$2 sm:$0xff] %v7736_v53  ;;  %8852 = vmatpush.bf16.msra.mxu1 %v14162_v33 }
 0x480   :  { %v17141_v14 = vadd.f32 %v7385_v9, %v7337_v45  ;;  %v17163_v18 = vpop.f32.mrf.mxu0  ;;  %v7409_v60 = vpop.f32.mrf.mxu1 }
 0x481   :  { %v7410_v58 = vadd.f32 %v7409_v60, %v17095_v49 }
 0x482   :  { %7487 = vmatmul.bf16.gmra.mxu2 %v11754_v43  ;;  %v7740_v43 = vld [vmem:[#allocation5 + $0x30] sm:$0xf] }
 0x483   :  { %7760 = vst [vmem:[#allocation1 + $0x20] ss:$2 sm:$0xff] %v7740_v43 }
 0x485   :  { %v17144_v19 = vpop.f32.mrf.mxu3  ;;  %v7292_v38 = vpop.f32.mrf.mxu2 }
 0x486   :  { %v7293_v20 = vadd.f32 %v7292_v38, %v7244_v26 }
 0x488   :  { %v7556_v44 = vpop.f32.mrf.mxu0  ;;  %v7411_v26 = vpop.f32.mrf.mxu1 }
 0x48a   :  { %7536 = vmatmul.bf16.gmra.mxu3 %v11758_v51 }
 0x48d   :  { %v7341_v32 = vpop.f32.mrf.mxu3  ;;  %v17148_v57 = vpop.f32.mrf.mxu2 }
 0x48e   :  { %v7342_v7 = vadd.f32 %v7341_v32, %v7293_v20  ;;  %v7412_v20 = vadd.f32 %v7411_v26, %v17099_v6  ;;  %v7783_v26 = vld [vmem:[#allocation5 + $0x1] sm:$0xf] }
 0x490   :  { %v17152_v16 = vadd.f32 %v7390_v37, %v7342_v7  ;;  %v7558_v56 = vpop.f32.mrf.mxu0  ;;  %v7414_v36 = vpop.f32.mrf.mxu1 }
 0x491   :  { %v7415_v6 = vadd.f32 %v7414_v36, %v17103_v28  ;;  %v14161_v28 = vld [vmem:[%s18449_s5 + $0x30] sm:$0xff]  ;;  %v7830_v36 = vld [vmem:[#allocation5 + $0x2] sm:$0xf] }
 0x492   :  { %7492 = vmatmul.bf16.gmra.mxu2 %v11854_v47  ;;  %8853 = vmatpush.bf16.msra.mxu1 %v14161_v28 }
 0x495   :  { %v17155_v5 = vpop.f32.mrf.mxu3  ;;  %v7297_v55 = vpop.f32.mrf.mxu2 }
 0x496   :  { %v7298_v31 = vadd.f32 %v7297_v55, %v7249_v30 }
 0x49a   :  { %7541 = vmatmul.bf16.gmra.mxu3 %v11858_v22  ;;  %v7561_v22 = vpop.f32.mrf.mxu0 }
 0x49d   :  { %v7346_v25 = vpop.f32.mrf.mxu3  ;;  %v17159_v9 = vpop.f32.mrf.mxu2 }
 0x49e   :  { %v7347_v35 = vadd.f32 %v7346_v25, %v7298_v31 }
 0x4a0   :  { %v17161_v40 = vadd.f32 %v7395_v13, %v7347_v35  ;;  %v7416_v35 = vpop.f32.mrf.mxu1 }
 0x4a5   :  { %v17165_v8 = vpop.f32.mrf.mxu3  ;;  %v7458_v12 = vpop.f32.mrf.mxu2 }
 0x4a6   :  { %v7459_v27 = vadd.f32 %v7458_v12, %v7410_v58 }
 0x4ad   :  { %v7507_v45 = vpop.f32.mrf.mxu3  ;;  %v7460_v41 = vpop.f32.mrf.mxu2 }
 0x4ae   :  { %v7508_v54 = vadd.f32 %v7507_v45, %v7459_v27  ;;  %v7461_v4 = vadd.f32 %v7460_v41, %v7412_v20  ;;  %v7417_v27 = vadd.f32 %v7416_v35, %v17107_v39 }
 0x4b0   :  { %v7557_v37 = vadd.f32 %v7556_v44, %v7508_v54  ;;  %v7563_v44 = vpop.f32.mrf.mxu0 }
 0x4b2   :  { %v7596_v38 = vmax.f32 %v7557_v37, 0.0 }
 0x4b4   :  { %7612 = vst [vmem:[#allocation4] sm:$0xff] %v7596_v38  ;;  %v7419_v38 = vpop.f32.mrf.mxu1 }
 0x4b5   :  { %v7509_v51 = vpop.f32.mrf.mxu3  ;;  %v7463_v13 = vpop.f32.mrf.mxu2 }
 0x4b6   :  { %v7510_v32 = vadd.f32 %v7509_v51, %v7461_v4  ;;  %v7464_v60 = vadd.f32 %v7463_v13, %v7415_v6 }
 0x4b8   :  { %v7559_v42 = vadd.f32 %v7558_v56, %v7510_v32  ;;  %v7420_v32 = vadd.f32 %v7419_v38, %v17111_v34 }
 0x4ba   :  { %v7597_v7 = vmax.f32 %v7559_v42, 0.0 }
 0x4bb   :  { %v7640_v49 = vld [vmem:[#allocation4] ss:$2 sm:$0xf]  ;;  %v7672_v47 = vld [vmem:[#allocation4 + $0x1] ss:$2 sm:$0xf] }
 0x4bc   :  { %7613 = vst [vmem:[#allocation4 + $0x8] sm:$0xff] %v7597_v7  ;;  %v7703_v17 = vmax.f32 %v7640_v49, %v7672_v47  ;;  %v7566_v49 = vpop.f32.mrf.mxu0 }
 0x4bd   :  { %v7512_v25 = vpop.f32.mrf.mxu3  ;;  %v7465_v54 = vpop.f32.mrf.mxu2 }
 0x4be   :  { %v7513_v12 = vadd.f32 %v7512_v25, %v7464_v60  ;;  %v7466_v43 = vadd.f32 %v7465_v54, %v7417_v27 }
 0x4c0   :  { %v7562_v58 = vadd.f32 %v7561_v22, %v7513_v12 }
 0x4c2   :  { %v7598_v45 = vmax.f32 %v7562_v58, 0.0 }
 0x4c3   :  { %v7642_v30 = vld [vmem:[#allocation4 + $0x8] ss:$2 sm:$0xf]  ;;  %v7674_v2 = vld [vmem:[#allocation4 + $0x9] ss:$2 sm:$0xf] }
 0x4c4   :  { %v7704_v55 = vmax.f32 %v7642_v30, %v7674_v2  ;;  %7614 = vst [vmem:[#allocation4 + $0x10] sm:$0xff] %v7598_v45  ;;  %v7568_v27 = vpop.f32.mrf.mxu0 }
 0x4c5   :  { %v7514_v37 = vpop.f32.mrf.mxu3  ;;  %v7468_v56 = vpop.f32.mrf.mxu2 }
 0x4c6   :  { %v7719_v31 = vmax.f32 %v7703_v17, %v7704_v55  ;;  %v7515_v41 = vadd.f32 %v7514_v37, %v7466_v43  ;;  %v7469_v42 = vadd.f32 %v7468_v56, %v7420_v32  ;;  %v7421_v17 = vpop.f32.mrf.mxu1 }
 0x4c7   :  { %v7422_v13 = vadd.f32 %v7421_v17, %v17115_v21 }
 0x4c8   :  { %7728 = vst [vmem:[#allocation5 + $0x9] sm:$0xf] %v7719_v31  ;;  %v7564_v4 = vadd.f32 %v7563_v44, %v7515_v41 }
 0x4ca   :  { %v7599_v39 = vmax.f32 %v7564_v4, 0.0 }
 0x4cb   :  { %v7644_v31 = vld [vmem:[#allocation4 + $0x10] ss:$2 sm:$0xf]  ;;  %v7676_v22 = vld [vmem:[#allocation4 + $0x11] ss:$2 sm:$0xf] }
 0x4cc   :  { %7615 = vst [vmem:[#allocation4 + $0x18] sm:$0xff] %v7599_v39  ;;  %v7705_v12 = vmax.f32 %v7644_v31, %v7676_v22 }
 0x4cd   :  { %v7517_v7 = vpop.f32.mrf.mxu3  ;;  %v7470_v34 = vpop.f32.mrf.mxu2 }
 0x4ce   :  { %v7518_v47 = vadd.f32 %v7517_v7, %v7469_v42  ;;  %v7471_v35 = vadd.f32 %v7470_v34, %v7422_v13  ;;  %v7424_v38 = vpop.f32.mrf.mxu1  ;;  %v7571_v42 = vpop.f32.mrf.mxu0 }
 0x4cf   :  { %v7737_v53 = vld [vmem:[#allocation5 + $0x8] sm:$0xf]  ;;  %v7425_v7 = vadd.f32 %v7424_v38, %v17121_v48  ;;  %v14159_v48 = vld [vmem:[%s18449_s5 + $0x20] sm:$0xff] }
 0x4d0   :  { %7754 = vst [vmem:[#allocation1 + $0x1] ss:$2 sm:$0xff] %v7737_v53  ;;  %v7784_v51 = vld [vmem:[#allocation5 + $0x9] sm:$0xf]  ;;  %v7567_v2 = vadd.f32 %v7566_v49, %v7518_v47  ;;  %v14160_v47 = vld [vmem:[%s18449_s5 + $0x28] sm:$0xff] }
 0x4d1   :  { %v7831_v30 = vld [vmem:[#allocation5 + $0xa] sm:$0xf]  ;;  %8854 = vmatpush.bf16.msra.mxu1 %v14160_v47 }
 0x4d2   :  { %v7600_v6 = vmax.f32 %v7567_v2, 0.0  ;;  %v7877_v28 = vld [vmem:[#allocation5 + $0x8] sm:$0xf] }
 0x4d3   :  { %v7646_v25 = vld [vmem:[#allocation4 + $0x18] ss:$2 sm:$0xf]  ;;  %v7678_v33 = vld [vmem:[#allocation4 + $0x19] ss:$2 sm:$0xf] }
 0x4d4   :  { %v7706_v53 = vmax.f32 %v7646_v25, %v7678_v33  ;;  %7616 = vst [vmem:[#allocation4 + $0x20] sm:$0xff] %v7600_v6 }
 0x4d5   :  { %v7519_v60 = vpop.f32.mrf.mxu3  ;;  %v7473_v49 = vpop.f32.mrf.mxu2  ;;  %8855 = vmatpush.bf16.msra.mxu1 %v14159_v48 }
 0x4d6   :  { %v7520_v58 = vadd.f32 %v7519_v60, %v7471_v35  ;;  %v7720_v44 = vmax.f32 %v7705_v12, %v7706_v53  ;;  %v7474_v2 = vadd.f32 %v7473_v49, %v7425_v7  ;;  %v7573_v13 = vpop.f32.mrf.mxu0  ;;  %v7236_v60 = vadd.f32 %v17119_v3, %v17046_v59 }
 0x4d7   :  { %v17177_v20 = vld.sshfl [vmem:[#allocation1] sm:$0xff pattern:$0x75316420] }
 0x4d8   :  { %7799 = vst [vmem:[#allocation1] ss:$2 sm:$0xff] %v7783_v26  ;;  %v7569_v45 = vadd.f32 %v7568_v27, %v7520_v58  ;;  %v7285_v58 = vadd.f32 %v17128_v23, %v7236_v60 }
 0x4d9   :  { %7801 = vst [vmem:[#allocation1 + $0x1] ss:$2 sm:$0xff] %v7784_v51 }
 0x4da   :  { %7729 = vst [vmem:[#allocation5 + $0x11] sm:$0xf] %v7720_v44  ;;  %v7601_v43 = vmax.f32 %v7569_v45, 0.0 }
 0x4db   :  { %v7648_v37 = vld [vmem:[#allocation4 + $0x20] ss:$2 sm:$0xf]  ;;  %v7680_v41 = vld [vmem:[#allocation4 + $0x21] ss:$2 sm:$0xf] }
 0x4dc   :  { %7617 = vst [vmem:[#allocation4 + $0x28] sm:$0xff] %v7601_v43  ;;  %v7707_v39 = vmax.f32 %v7648_v37, %v7680_v41 }
 0x4dd   :  { %v7475_v25 = vpop.f32.mrf.mxu2 }
 0x4de   :  { %v7576_v59 = vpop.f32.mrf.mxu0 }
 0x4e0   :  { %v17180_v55 = vld.sshfl [vmem:[#allocation1] sm:$0xff pattern:$0x75316420] }
 0x4e1   :  { %7846 = vst [vmem:[#allocation1] ss:$2 sm:$0xff] %v7830_v36  ;;  %v7738_v21 = vld [vmem:[#allocation5 + $0x10] sm:$0xf]  ;;  %v7522_v36 = vpop.f32.mrf.mxu3 }
 0x4e2   :  { %7848 = vst [vmem:[#allocation1 + $0x1] ss:$2 sm:$0xff] %v7831_v30  ;;  %v7878_v26 = vld [vmem:[#allocation5 + $0x10] sm:$0xf]  ;;  %v7426_v30 = vpop.f32.mrf.mxu1  ;;  %v7523_v17 = vadd.f32 %v7522_v36, %v7474_v2 }
 0x4e3   :  { %7756 = vst [vmem:[#allocation1 + $0x10] ss:$2 sm:$0xff] %v7738_v21  ;;  %v7650_v4 = vld [vmem:[#allocation4 + $0x28] ss:$2 sm:$0xf]  ;;  %v7427_v6 = vadd.f32 %v7426_v30, %v17126_v15 }
 0x4e4   :  { %v7682_v51 = vld [vmem:[#allocation4 + $0x29] ss:$2 sm:$0xf]  ;;  %v7572_v22 = vadd.f32 %v7571_v42, %v7523_v17  ;;  %v7785_v27 = vld [vmem:[#allocation5 + $0x11] sm:$0xf] }
 0x4e5   :  { %v7708_v32 = vmax.f32 %v7650_v4, %v7682_v51  ;;  %v7476_v33 = vadd.f32 %v7475_v25, %v7427_v6  ;;  %v7478_v37 = vpop.f32.mrf.mxu2  ;;  %v7832_v38 = vld [vmem:[#allocation5 + $0x12] sm:$0xf] }
 0x4e6   :  { %v7602_v34 = vmax.f32 %v7572_v22, 0.0 }
 0x4e7   :  { %v7721_v56 = vmax.f32 %v7707_v39, %v7708_v32 }
 0x4e8   :  { %7618 = vst [vmem:[#allocation4 + $0x30] sm:$0xff] %v7602_v34 }
 0x4e9   :  { %v17183_v54 = vld.sshfl [vmem:[#allocation1] sm:$0xff pattern:$0x75316420]  ;;  %7730 = vst [vmem:[#allocation5 + $0x19] sm:$0xf] %v7721_v56  ;;  %v7524_v35 = vpop.f32.mrf.mxu3 }
 0x4ea   :  { %7893 = vst [vmem:[#allocation1] ss:$2 sm:$0xff] %v7877_v28  ;;  %v7525_v12 = vadd.f32 %v7524_v35, %v7476_v33  ;;  %v7429_v53 = vpop.f32.mrf.mxu1  ;;  %v7334_v28 = vadd.f32 %v17135_v10, %v7285_v58 }
 0x4eb   :  { %7895 = vst [vmem:[#allocation1 + $0x1] ss:$2 sm:$0xff] %v7878_v26  ;;  %v7430_v21 = vadd.f32 %v7429_v53, %v17130_v63 }
 0x4ec   :  { %v7574_v44 = vadd.f32 %v7573_v13, %v7525_v12  ;;  %v7383_v3 = vadd.f32 %v17124_v0, %v7334_v28 }
 0x4ed   :  { %v7479_v26 = vadd.f32 %v7478_v37, %v7430_v21  ;;  %v7480_v63 = vpop.f32.mrf.mxu2  ;;  %v14158_v37 = vld [vmem:[%s18449_s5 + $0x18] sm:$0xff] }
 0x4ee   :  { %v7603_v43 = vmax.f32 %v7574_v44, 0.0  ;;  %v7241_v44 = vadd.f32 %v17132_v11, %v17066_v61  ;;  %v7775_v61 = vpack.c.bf16 %v17177_v20, %v17177_v20  ;;  %8856 = vmatpush.bf16.msra.mxu1 %v14158_v37 }
 0x4ef   :  { %v7652_v56 = vld [vmem:[#allocation4 + $0x30] ss:$2 sm:$0xf]  ;;  %v7684_v10 = vld [vmem:[#allocation4 + $0x31] ss:$2 sm:$0xf] }
 0x4f0   :  { %v7739_v31 = vld [vmem:[#allocation5 + $0x18] sm:$0xf]  ;;  %7619 = vst [vmem:[#allocation4 + $0x38] sm:$0xff] %v7603_v43  ;;  %v7709_v2 = vmax.f32 %v7652_v56, %v7684_v10  ;;  %v7290_v28 = vadd.f32 %v17139_v24, %v7241_v44  ;;  %v14194_v24 = vld [vmem:[%s18449_s5 + $0x138] sm:$0xff] }
 0x4f1   :  { %7758 = vst [vmem:[#allocation1 + $0x11] ss:$2 sm:$0xff] %v7739_v31  ;;  %v7786_v45 = vld [vmem:[#allocation5 + $0x19] sm:$0xf]  ;;  %v7527_v41 = vpop.f32.mrf.mxu3  ;;  %v7578_v31 = vpop.f32.mrf.mxu0  ;;  %8928 = vmatpush.bf16.msra.mxu3 %v14194_v24 }
 0x4f2   :  { %v7528_v23 = vadd.f32 %v7527_v41, %v7479_v26  ;;  %v7833_v4 = vld [vmem:[#allocation5 + $0x1a] sm:$0xf]  ;;  %v7431_v39 = vpop.f32.mrf.mxu1  ;;  %v7339_v21 = vadd.f32 %v17144_v19, %v7290_v28  ;;  %7779 = vst [vmem:[#allocation6] sm:$0xf] %v7775_v61 }
 0x4f3   :  { %v7432_v7 = vadd.f32 %v7431_v39, %v7383_v3  ;;  %v7879_v34 = vld [vmem:[#allocation5 + $0x18] sm:$0xf]  ;;  %v14156_v39 = vld [vmem:[%s18449_s5 + $0x8] sm:$0xff] }
 0x4f4   :  { %v7577_v51 = vadd.f32 %v7576_v59, %v7528_v23  ;;  %v14186_v59 = vld [vmem:[%s18449_s5 + $0xf8] sm:$0xff]  ;;  %v7388_v20 = vadd.f32 %v17137_v62, %v7339_v21  ;;  %v14184_v62 = vld [vmem:[%s18449_s5 + $0xe8] sm:$0xff] }
 0x4f5   :  { %v7481_v36 = vadd.f32 %v7480_v63, %v7432_v7  ;;  %v7483_v41 = vpop.f32.mrf.mxu2  ;;  %8909 = vmatpush.bf16.msra.mxu2 %v14186_v59 }
 0x4f6   :  { %v7604_v42 = vmax.f32 %v7577_v51, 0.0 }
 0x4f7   :  { %v7654_v49 = vld [vmem:[#allocation4 + $0x38] ss:$2 sm:$0xf]  ;;  %v7686_v47 = vld [vmem:[#allocation4 + $0x39] ss:$2 sm:$0xf] }
 0x4f8   :  { %v17196_v15 = vld.sshfl [vmem:[#allocation1 + $0x10] sm:$0xff pattern:$0x75316420]  ;;  %v7710_v0 = vmax.f32 %v7654_v49, %v7686_v47  ;;  %7620 = vst [vmem:[#allocation4 + $0x40] sm:$0xff] %v7604_v42 }
 0x4f9   :  { %7803 = vst [vmem:[#allocation1 + $0x10] ss:$2 sm:$0xff] %v7785_v27  ;;  %v7529_v30 = vpop.f32.mrf.mxu3  ;;  %v7581_v43 = vpop.f32.mrf.mxu0  ;;  %v7776_v11 = vpack.c.bf16 %v17196_v15, %v17196_v15  ;;  %v14193_v49 = vld [vmem:[%s18449_s5 + $0x130] sm:$0xff] }
 0x4fa   :  { %7805 = vst [vmem:[#allocation1 + $0x11] ss:$2 sm:$0xff] %v7786_v45  ;;  %v7530_v17 = vadd.f32 %v7529_v30, %v7481_v36  ;;  %v7722_v22 = vmax.f32 %v7709_v2, %v7710_v0  ;;  %v7434_v60 = vpop.f32.mrf.mxu1  ;;  %v14155_v36 = vld [vmem:[%s18449_s5] sm:$0xff]  ;;  %v7246_v0 = vadd.f32 %v17146_v50, %v17081_v52  ;;  %8929 = vmatpush.bf16.msra.mxu3 %v14193_v49  ;;  %v14182_v52 = vld [vmem:[%s18449_s5 + $0xd8] sm:$0xff] }
 0x4fb   :  { %v7435_v26 = vadd.f32 %v7434_v60, %v17141_v14  ;;  %v14157_v14 = vld [vmem:[%s18449_s5 + $0x10] sm:$0xff]  ;;  %7780 = vst [vmem:[#allocation6 + $0x24] sm:$0xf] %v7776_v11  ;;  %v14183_v2 = vld [vmem:[%s18449_s5 + $0xe0] sm:$0xff] }
 0x4fc   :  { %v7579_v6 = vadd.f32 %v7578_v31, %v7530_v17  ;;  %7731 = vst [vmem:[#allocation5 + $0x21] sm:$0xf] %v7722_v22  ;;  %8857 = vmatpush.bf16.msra.mxu1 %v14157_v14  ;;  %v7787_v17 = vld [vmem:[#allocation5 + $0x31] sm:$0xf]  ;;  %v14192_v22 = vld [vmem:[%s18449_s5 + $0x128] sm:$0xff] }
 0x4fd   :  { %v7484_v23 = vadd.f32 %v7483_v41, %v7435_v26  ;;  %v7485_v7 = vpop.f32.mrf.mxu2 }
 0x4fe   :  { %v7605_v25 = vmax.f32 %v7579_v6, 0.0  ;;  %8930 = vmatpush.bf16.msra.mxu3 %v14192_v22 }
 0x4ff   :  { %v7656_v33 = vld [vmem:[#allocation4 + $0x40] ss:$2 sm:$0xf]  ;;  %v7688_v35 = vld [vmem:[#allocation4 + $0x41] ss:$2 sm:$0xf] }
 0x500   :  { %7621 = vst [vmem:[#allocation4 + $0x48] sm:$0xff] %v7605_v25  ;;  %v7711_v58 = vmax.f32 %v7656_v33, %v7688_v35  ;;  %8858 = vmatpush.bf16.msra.mxu1 %v14156_v39  ;;  %v7295_v25 = vadd.f32 %v17148_v57, %v7246_v0  ;;  %v14191_v57 = vld [vmem:[%s18449_s5 + $0x120] sm:$0xff]  ;;  %v7251_v0 = vadd.f32 %v17157_v46, %v17091_v29  ;;  %v7925_v46 = vld [vmem:[#allocation5 + $0x11] sm:$0xf] }
 0x501   :  { %v17201_v32 = vld.sshfl [vmem:[#allocation1 + $0x10] sm:$0xff pattern:$0x75316420]  ;;  %v7532_v3 = vpop.f32.mrf.mxu3  ;;  %v7583_v56 = vpop.f32.mrf.mxu0 }
 0x502   :  { %7850 = vst [vmem:[#allocation1 + $0x10] ss:$2 sm:$0xff] %v7832_v38  ;;  %v7436_v19 = vpop.f32.mrf.mxu1  ;;  %v14185_v38 = vld [vmem:[%s18449_s5 + $0xf0] sm:$0xff]  ;;  %v7533_v15 = vadd.f32 %v7532_v3, %v7484_v23  ;;  %v14141_v30 = vld [vmem:[#allocation6 + $0x20] sm:$0xf0]  ;;  %v7344_v50 = vadd.f32 %v17155_v5, %v7295_v25  ;;  %8931 = vmatpush.bf16.msra.mxu3 %v14191_v57  ;;  %v7300_v22 = vadd.f32 %v17159_v9, %v7251_v0  ;;  %v14179_v9 = vld [vmem:[%s18449_s5 + $0xc0] sm:$0xff] }
 0x503   :  { %7852 = vst [vmem:[#allocation1 + $0x11] ss:$2 sm:$0xff] %v7833_v4  ;;  %v7880_v48 = vld [vmem:[#allocation5 + $0x20] sm:$0xf]  ;;  %8910 = vmatpush.bf16.msra.mxu2 %v14185_v38  ;;  %v7437_v10 = vadd.f32 %v7436_v19, %v7388_v20  ;;  %v14181_v5 = vld [vmem:[%s18449_s5 + $0xd0] sm:$0xff]  ;;  %v14223_v0 = vld [vmem:[%s18449_s5 + $0x220] sm:$0xff] }
 0x504   :  { %v7582_v51 = vadd.f32 %v7581_v43, %v7533_v15  ;;  %8859 = vmatpush.bf16.msra.mxu1 %v14155_v36  ;;  %v7393_v28 = vadd.f32 %v17150_v1, %v7344_v50  ;;  %v14180_v25 = vld [vmem:[%s18449_s5 + $0xc8] sm:$0xff]  ;;  %v14189_v50 = vld [vmem:[%s18449_s5 + $0x110] sm:$0xff] }
 0x505   :  { %v7486_v47 = vadd.f32 %v7485_v7, %v7437_v10 }
 0x506   :  { %v7606_v42 = vmax.f32 %v7582_v51, 0.0 }
 0x507   :  { %v7658_v12 = vld [vmem:[#allocation4 + $0x48] ss:$2 sm:$0xf]  ;;  %v7690_v53 = vld [vmem:[#allocation4 + $0x49] ss:$2 sm:$0xf]  ;;  %8911 = vmatpush.bf16.msra.mxu2 %v14184_v62 }
 0x508   :  { %v7712_v27 = vmax.f32 %v7658_v12, %v7690_v53  ;;  %7622 = vst [vmem:[#allocation4 + $0x50] sm:$0xff] %v7606_v42 }
 0x509   :  { %v7534_v63 = vpop.f32.mrf.mxu3 }
 0x50a   :  { %v17203_v13 = vld.sshfl [vmem:[#allocation1 + $0x10] sm:$0xff pattern:$0x75316420]  ;;  %v7723_v45 = vmax.f32 %v7711_v58, %v7712_v27  ;;  %v7535_v31 = vadd.f32 %v7534_v63, %v7486_v47  ;;  %v7439_v6 = vpop.f32.mrf.mxu1  ;;  %v7488_v58 = vpop.f32.mrf.mxu2 }
 0x50b   :  { %7897 = vst [vmem:[#allocation1 + $0x10] ss:$2 sm:$0xff] %v7879_v34  ;;  %v12665_v34 = vld [vmem:[#allocation6] sm:$0xf]  ;;  %8912 = vmatpush.bf16.msra.mxu2 %v14183_v2  ;;  %v7440_v53 = vadd.f32 %v7439_v6, %v17152_v16  ;;  %v7834_v16 = vld [vmem:[#allocation5 + $0x32] sm:$0xf]  ;;  %v7349_v6 = vadd.f32 %v17165_v8, %v7300_v22 }
 0x50c   :  { %7899 = vst [vmem:[#allocation1 + $0x11] ss:$2 sm:$0xff] %v7880_v48  ;;  %v12666_v33 = vor.u32 %v14141_v30, %v12665_v34  ;;  %v7584_v35 = vadd.f32 %v7583_v56, %v7535_v31  ;;  %v7924_v34 = vld [vmem:[#allocation5 + $0x9] sm:$0xf] }
 0x50d   :  { %7732 = vst [vmem:[#allocation5 + $0x39] sm:$0xf] %v7723_v45  ;;  %v7489_v44 = vadd.f32 %v7488_v58, %v7440_v53  ;;  %v7586_v45 = vpop.f32.mrf.mxu0 }
 0x50e   :  { %v7607_v12 = vmax.f32 %v7584_v35, 0.0  ;;  %8860 = vmatmul.bf16.vlgmr.msra.gmra.mxu1 %v12666_v33  ;;  %v14190_v33 = vld [vmem:[%s18449_s5 + $0x118] sm:$0xff] }
 0x50f   :  { %8913 = vmatpush.bf16.msra.mxu2 %v14182_v52  ;;  %v7660_v59 = vld [vmem:[#allocation4 + $0x50] ss:$2 sm:$0xf]  ;;  %v7692_v3 = vld [vmem:[#allocation4 + $0x51] ss:$2 sm:$0xf]  ;;  %8932 = vmatpush.bf16.msra.mxu3 %v14190_v33 }
 0x510   :  { %7623 = vst [vmem:[#allocation4 + $0x58] sm:$0xff] %v7607_v12  ;;  %v7713_v38 = vmax.f32 %v7660_v59, %v7692_v3  ;;  %v7908_v52 = vld.sshfl [vmem:[#allocation1] sm:$0xff pattern:$0x75316420]  ;;  %v7927_v59 = vld [vmem:[#allocation5 + $0x21] sm:$0xf] }
 0x511   :  { %v7537_v27 = vpop.f32.mrf.mxu3  ;;  %v7916_v57 = vpack.c.bf16 %v7908_v52, %v7908_v52  ;;  %7940 = vst [vmem:[#allocation1] ss:$2 sm:$0xff] %v7924_v34  ;;  %v14187_v3 = vld [vmem:[%s18449_s5 + $0x100] sm:$0xff] }
 0x512   :  { %v7538_v43 = vadd.f32 %v7537_v27, %v7489_v44  ;;  %v7441_v26 = vpop.f32.mrf.mxu1  ;;  %v7490_v24 = vpop.f32.mrf.mxu2  ;;  %7942 = vst [vmem:[#allocation1 + $0x1] ss:$2 sm:$0xff] %v7925_v46 }
 0x513   :  { %8914 = vmatpush.bf16.msra.mxu2 %v14181_v5  ;;  %v7442_v11 = vadd.f32 %v7441_v26, %v7393_v28  ;;  %v7909_v53 = vld.sshfl [vmem:[#allocation1 + $0x10] sm:$0xff pattern:$0x75316420]  ;;  %7920 = vst [vmem:[#allocation6 + $0xc] sm:$0xf] %v7916_v57  ;;  %8933 = vmatpush.bf16.msra.mxu3 %v14189_v50  ;;  %v14188_v28 = vld [vmem:[%s18449_s5 + $0x108] sm:$0xff] }
 0x514   :  { %v7741_v4 = vld [vmem:[#allocation5 + $0x38] sm:$0xf]  ;;  %v7587_v37 = vadd.f32 %v7586_v45, %v7538_v43  ;;  %v7917_v58 = vpack.c.bf16 %v7909_v53, %v7909_v53  ;;  %v14226_v26 = vld [vmem:[%s18449_s5 + $0x238] sm:$0xff]  ;;  %7946 = vst [vmem:[#allocation1 + $0x11] ss:$2 sm:$0xff] %v7927_v59  ;;  %v14221_v57 = vld [vmem:[%s18449_s5 + $0x210] sm:$0xff] }
 0x515   :  { %7762 = vst [vmem:[#allocation1 + $0x21] ss:$2 sm:$0xff] %v7741_v4  ;;  %v7788_v60 = vld [vmem:[#allocation5 + $0x39] sm:$0xf]  ;;  %v7491_v1 = vadd.f32 %v7490_v24, %v7442_v11  ;;  %v7588_v4 = vpop.f32.mrf.mxu0  ;;  %v14225_v11 = vld [vmem:[%s18449_s5 + $0x230] sm:$0xff]  ;;  %9004 = vmatpush.bf16.msra.mxu0 %v14226_v26 }
 0x516   :  { %v7835_v21 = vld [vmem:[#allocation5 + $0x3a] sm:$0xf]  ;;  %v7608_v61 = vmax.f32 %v7587_v37, 0.0  ;;  %7921 = vst [vmem:[#allocation6 + $0x30] sm:$0xf] %v7917_v58 }
 0x517   :  { %v7662_v14 = vld [vmem:[#allocation4 + $0x58] ss:$2 sm:$0xf]  ;;  %v7694_v23 = vld [vmem:[#allocation4 + $0x59] ss:$2 sm:$0xf]  ;;  %8915 = vmatpush.bf16.msra.mxu2 %v14180_v25  ;;  %8934 = vmatpush.bf16.msra.mxu3 %v14188_v28 }
 0x518   :  { %v7714_v20 = vmax.f32 %v7662_v14, %v7694_v23  ;;  %7624 = vst [vmem:[#allocation4 + $0x60] sm:$0xff] %v7608_v61  ;;  %v7881_v10 = vld [vmem:[#allocation5 + $0x38] sm:$0xf]  ;;  %v7971_v14 = vld [vmem:[#allocation5 + $0xa] sm:$0xf] }
 0x519   :  { %v7539_v19 = vpop.f32.mrf.mxu3  ;;  %v7955_v24 = vld.sshfl [vmem:[#allocation1] sm:$0xff pattern:$0x75316420]  ;;  %9005 = vmatpush.bf16.msra.mxu0 %v14225_v11  ;;  %v8022_v50 = vld [vmem:[#allocation5 + $0x28] sm:$0xf] }
 0x51a   :  { %v7540_v15 = vadd.f32 %v7539_v19, %v7491_v1  ;;  %v7724_v51 = vmax.f32 %v7713_v38, %v7714_v20  ;;  %v14170_v19 = vld [vmem:[%s18449_s5 + $0x78] sm:$0xff]  ;;  %v7963_v1 = vpack.c.bf16 %v7955_v24, %v7955_v24  ;;  %7987 = vst [vmem:[#allocation1] ss:$2 sm:$0xff] %v7971_v14  ;;  %v14219_v26 = vld [vmem:[%s18449_s5 + $0x200] sm:$0xff]  ;;  %v8069_v11 = vld [vmem:[#allocation5 + $0x29] sm:$0xf] }
 0x51b   :  { %8916 = vmatpush.bf16.msra.mxu2 %v14179_v9  ;;  %8871 = vmatpush.bf16.msrb.mxu1 %v14170_v19  ;;  %v14166_v24 = vld [vmem:[%s18449_s5 + $0x58] sm:$0xff]  ;;  %v8068_v19 = vld [vmem:[#allocation5 + $0x21] sm:$0xf] }
 0x51c   :  { %v17251_v48 = vld.sshfl [vmem:[#allocation1 + $0x20] sm:$0xff pattern:$0x75316420]  ;;  %v7589_v39 = vadd.f32 %v7588_v4, %v7540_v15  ;;  %7733 = vst [vmem:[#allocation5 + $0x41] sm:$0xf] %v7724_v51  ;;  %v14169_v4 = vld [vmem:[%s18449_s5 + $0x70] sm:$0xff]  ;;  %8935 = vmatpush.bf16.msra.mxu3 %v14187_v3 }
 0x51d   :  { %7807 = vst [vmem:[#allocation1 + $0x20] ss:$2 sm:$0xff] %v7787_v17  ;;  %v7444_v17 = vpop.f32.mrf.mxu1  ;;  %v7591_v8 = vpop.f32.mrf.mxu0  ;;  %v7972_v51 = vld [vmem:[#allocation5 + $0x12] sm:$0xf] }
 0x51e   :  { %7809 = vst [vmem:[#allocation1 + $0x21] ss:$2 sm:$0xff] %v7788_v60  ;;  %v7609_v42 = vmax.f32 %v7589_v39, 0.0  ;;  %v7445_v35 = vadd.f32 %v7444_v17, %v17161_v40  ;;  %v7493_v60 = vpop.f32.mrf.mxu2  ;;  %v7398_v40 = vadd.f32 %v17163_v18, %v7349_v6  ;;  %v7777_v17 = vpack.c.bf16 %v17251_v48, %v17251_v48  ;;  %v14167_v6 = vld [vmem:[%s18449_s5 + $0x60] sm:$0xff]  ;;  %v14222_v48 = vld [vmem:[%s18449_s5 + $0x218] sm:$0xff] }
 0x51f   :  { %v7664_v63 = vld [vmem:[#allocation4 + $0x60] ss:$2 sm:$0xf]  ;;  %v7696_v49 = vld [vmem:[#allocation4 + $0x61] ss:$2 sm:$0xf]  ;;  %8872 = vmatpush.bf16.msrb.mxu1 %v14169_v4 }
 0x520   :  { %7625 = vst [vmem:[#allocation4 + $0x68] sm:$0xff] %v7609_v42  ;;  %v7715_v30 = vmax.f32 %v7664_v63, %v7696_v49  ;;  %v7494_v12 = vadd.f32 %v7493_v60, %v7445_v35  ;;  %v14138_v42 = vld [vmem:[#allocation6 + $0xc] sm:$0xf]  ;;  %v12675_v63 = vld [vmem:[#allocation6 + $0x2c] sm:$0xf0] }
 0x521   :  { %v7542_v29 = vpop.f32.mrf.mxu3  ;;  %7967 = vst [vmem:[#allocation6 + $0x10] sm:$0xf] %v7963_v1  ;;  %v12678_v49 = vor.u32 %v14138_v42, %v12675_v63  ;;  %v8019_v35 = vld [vmem:[#allocation5 + $0x10] sm:$0xf]  ;;  %v7822_v1 = vpack.c.bf16 %v17180_v55, %v17180_v55  ;;  %v14164_v55 = vld [vmem:[%s18449_s5 + $0x48] sm:$0xff] }
 0x522   :  { %v7543_v27 = vadd.f32 %v7542_v29, %v7494_v12  ;;  %7989 = vst [vmem:[#allocation1 + $0x1] ss:$2 sm:$0xff] %v7972_v51  ;;  %v8020_v29 = vld [vmem:[#allocation5 + $0x18] sm:$0xf]  ;;  %v8113_v4 = vld [vmem:[#allocation5 + $0x12] sm:$0xf] }
 0x523   :  { %v7742_v7 = vld [vmem:[#allocation5 + $0x40] sm:$0xf]  ;;  %8917 = vmatmul.bf16.vlgmr.msra.gmra.mxu2 %v12678_v49  ;;  %7781 = vst [vmem:[#allocation6 + $0x48] sm:$0xf] %v7777_v17  ;;  %v8114_v51 = vld [vmem:[#allocation5 + $0x1a] sm:$0xf] }
 0x524   :  { %7764 = vst [vmem:[#allocation1 + $0x30] ss:$2 sm:$0xff] %v7742_v7  ;;  %v7882_v62 = vld [vmem:[#allocation5 + $0x40] sm:$0xf]  ;;  %v7592_v5 = vadd.f32 %v7591_v8, %v7543_v27  ;;  %v8116_v42 = vld [vmem:[#allocation5 + $0x2a] sm:$0xf] }
 0x525   :  { %v17265_v41 = vld.sshfl [vmem:[#allocation1 + $0x20] sm:$0xff pattern:$0x75316420]  ;;  %v7446_v45 = vpop.f32.mrf.mxu1  ;;  %v7789_v23 = vld [vmem:[#allocation5 + $0x41] sm:$0xf]  ;;  %v7593_v20 = vpop.f32.mrf.mxu0  ;;  %v14217_v49 = vld [vmem:[%s18449_s5 + $0x1f0] sm:$0xff] }
 0x526   :  { %7854 = vst [vmem:[#allocation1 + $0x20] ss:$2 sm:$0xff] %v7834_v16  ;;  %v7447_v43 = vadd.f32 %v7446_v45, %v7398_v40  ;;  %v7926_v16 = vld [vmem:[#allocation5 + $0x19] sm:$0xf]  ;;  %v7495_v37 = vpop.f32.mrf.mxu2  ;;  %v14224_v7 = vld [vmem:[%s18449_s5 + $0x228] sm:$0xff]  ;;  %v14178_v17 = vld [vmem:[%s18449_s5 + $0xb8] sm:$0xff] }
 0x527   :  { %7856 = vst [vmem:[#allocation1 + $0x21] ss:$2 sm:$0xff] %v7835_v21  ;;  %v7666_v47 = vld [vmem:[#allocation4 + $0x68] ss:$2 sm:$0xf]  ;;  %v7610_v21 = vmax.f32 %v7592_v5, 0.0  ;;  %9006 = vmatpush.bf16.msra.mxu0 %v14224_v7 }
 0x528   :  { %v7698_v36 = vld [vmem:[#allocation4 + $0x69] ss:$2 sm:$0xf]  ;;  %7944 = vst [vmem:[#allocation1 + $0x10] ss:$2 sm:$0xff] %v7926_v16  ;;  %v7496_v61 = vadd.f32 %v7495_v37, %v7447_v43  ;;  %v14220_v43 = vld [vmem:[%s18449_s5 + $0x208] sm:$0xff] }
 0x529   :  { %v7716_v2 = vmax.f32 %v7666_v47, %v7698_v36  ;;  %v7544_v18 = vpop.f32.mrf.mxu3  ;;  %7626 = vst [vmem:[#allocation4 + $0x70] sm:$0xff] %v7610_v21  ;;  %v14168_v47 = vld [vmem:[%s18449_s5 + $0x68] sm:$0xff]  ;;  %v17324_v46 = vld.sshfl [vmem:[#allocation1] sm:$0xff pattern:$0x75316420] }
 0x52a   :  { %v7545_v38 = vadd.f32 %v7544_v18, %v7496_v61  ;;  %v7836_v22 = vld [vmem:[#allocation5 + $0x42] sm:$0xf]  ;;  %8873 = vmatpush.bf16.msrb.mxu1 %v14168_v47  ;;  %8035 = vst [vmem:[#allocation1] ss:$2 sm:$0xff] %v8019_v35  ;;  %v12681_v40 = vld [vmem:[#allocation6 + $0x10] sm:$0xf] }
 0x52b   :  { %v7725_v31 = vmax.f32 %v7715_v30, %v7716_v2  ;;  %v7973_v30 = vld [vmem:[#allocation5 + $0x1a] sm:$0xf]  ;;  %9007 = vmatpush.bf16.msra.mxu0 %v14223_v0  ;;  %8037 = vst [vmem:[#allocation1 + $0x1] ss:$2 sm:$0xff] %v8020_v29  ;;  %v8021_v27 = vld [vmem:[#allocation5 + $0x20] sm:$0xf] }
 0x52c   :  { %v8066_v21 = vld [vmem:[#allocation5 + $0x11] sm:$0xf]  ;;  %v8067_v37 = vld [vmem:[#allocation5 + $0x19] sm:$0xf]  ;;  %v12701_v59 = vld [vmem:[#allocation6 + $0x48] sm:$0xf] }
 0x52d   :  { %7734 = vst [vmem:[#allocation5 + $0x49] sm:$0xf] %v7725_v31  ;;  %v7974_v31 = vld [vmem:[#allocation5 + $0x22] sm:$0xf]  ;;  %v7928_v7 = vld [vmem:[#allocation5 + $0x39] sm:$0xf] }
 0x52e   :  { %v17267_v56 = vld.sshfl [vmem:[#allocation1 + $0x20] sm:$0xff pattern:$0x75316420]  ;;  %8874 = vmatpush.bf16.msrb.mxu1 %v14167_v6  ;;  %7826 = vst [vmem:[#allocation6 + $0x4] sm:$0xf] %v7822_v1  ;;  %v14208_v63 = vld [vmem:[%s18449_s5 + $0x1a8] sm:$0xff] }
 0x52f   :  { %7901 = vst [vmem:[#allocation1 + $0x20] ss:$2 sm:$0xff] %v7881_v10  ;;  %v7594_v10 = vadd.f32 %v7593_v20, %v7545_v38  ;;  %v7956_v36 = vld.sshfl [vmem:[#allocation1 + $0x10] sm:$0xff pattern:$0x75316420]  ;;  %9008 = vmatpush.bf16.msra.mxu0 %v14222_v48  ;;  %v7823_v20 = vpack.c.bf16 %v17201_v32, %v17201_v32  ;;  %v14218_v32 = vld [vmem:[%s18449_s5 + $0x1f8] sm:$0xff]  ;;  %v7824_v48 = vpack.c.bf16 %v17265_v41, %v17265_v41 }
 0x530   :  { %7903 = vst [vmem:[#allocation1 + $0x21] ss:$2 sm:$0xff] %v7882_v62  ;;  %v7964_v2 = vpack.c.bf16 %v7956_v36, %v7956_v36  ;;  %v7668_v25 = vld [vmem:[#allocation4 + $0x70] ss:$2 sm:$0xf]  ;;  %v14165_v38 = vld [vmem:[%s18449_s5 + $0x50] sm:$0xff]  ;;  %8985 = vmatpush.bf16.msrb.mxu3 %v14218_v32 }
 0x531   :  { %v7611_v62 = vmax.f32 %v7594_v10, 0.0  ;;  %7991 = vst [vmem:[#allocation1 + $0x10] ss:$2 sm:$0xff] %v7973_v30  ;;  %v7700_v33 = vld [vmem:[#allocation4 + $0x71] ss:$2 sm:$0xf] }
 0x532   :  { %7968 = vst [vmem:[#allocation6 + $0x34] sm:$0xf] %v7964_v2  ;;  %v7717_v12 = vmax.f32 %v7668_v25, %v7700_v33  ;;  %v17336_v18 = vld.sshfl [vmem:[#allocation1] sm:$0xff pattern:$0x75316420]  ;;  %8875 = vmatpush.bf16.msrb.mxu1 %v14166_v24  ;;  %v14216_v25 = vld [vmem:[%s18449_s5 + $0x1e8] sm:$0xff] }
 0x533   :  { %7627 = vst [vmem:[#allocation4 + $0x78] sm:$0xff] %v7611_v62  ;;  %9009 = vmatpush.bf16.msra.mxu0 %v14221_v57  ;;  %v8115_v62 = vld [vmem:[#allocation5 + $0x22] sm:$0xf]  ;;  %v14163_v30 = vld [vmem:[%s18449_s5 + $0x40] sm:$0xff]  ;;  %v8058_v24 = vpack.c.bf16 %v17336_v18, %v17336_v18  ;;  %v14213_v1 = vld [vmem:[%s18449_s5 + $0x1d0] sm:$0xff]  ;;  %v7870_v18 = vpack.c.bf16 %v17203_v13, %v17203_v13 }
 0x534   :  { %v7743_v44 = vld [vmem:[#allocation5 + $0x48] sm:$0xf]  ;;  %7993 = vst [vmem:[#allocation1 + $0x11] ss:$2 sm:$0xff] %v7974_v31  ;;  %v7929_v36 = vld [vmem:[#allocation5 + $0x41] sm:$0xf]  ;;  %8986 = vmatpush.bf16.msrb.mxu3 %v14217_v49 }
 0x535   :  { %7766 = vst [vmem:[#allocation1 + $0x31] ss:$2 sm:$0xff] %v7743_v44  ;;  %v7790_v15 = vld [vmem:[#allocation5 + $0x49] sm:$0xf]  ;;  %v14207_v31 = vld [vmem:[%s18449_s5 + $0x1a0] sm:$0xff] }
 0x536   :  { %v7837_v34 = vld [vmem:[#allocation5 + $0x4a] sm:$0xf]  ;;  %8082 = vst [vmem:[#allocation1] ss:$2 sm:$0xff] %v8066_v21  ;;  %8876 = vmatpush.bf16.msrb.mxu1 %v14165_v38  ;;  %v14137_v29 = vld [vmem:[#allocation6 + $0x4] sm:$0xf] }
 0x537   :  { %v7883_v28 = vld [vmem:[#allocation5 + $0x48] sm:$0xf]  ;;  %9010 = vmatpush.bf16.msra.mxu0 %v14220_v43  ;;  %8084 = vst [vmem:[#allocation1 + $0x1] ss:$2 sm:$0xff] %v8067_v37  ;;  %v14214_v43 = vld [vmem:[%s18449_s5 + $0x1d8] sm:$0xff] }
 0x538   :  { %7827 = vst [vmem:[#allocation6 + $0x28] sm:$0xf] %v7823_v20  ;;  %v7910_v47 = vld.sshfl [vmem:[#allocation1 + $0x20] sm:$0xff pattern:$0x75316420]  ;;  %8987 = vmatpush.bf16.msrb.mxu3 %v14216_v25  ;;  %v7869_v20 = vpack.c.bf16 %v17183_v54, %v17183_v54  ;;  %v14172_v25 = vld [vmem:[%s18449_s5 + $0x88] sm:$0xff] }
 0x539   :  { %v14143_v58 = vld [vmem:[#allocation6 + $0x30] sm:$0xf0]  ;;  %v7918_v2 = vpack.c.bf16 %v7910_v47, %v7910_v47  ;;  %7948 = vst [vmem:[#allocation1 + $0x20] ss:$2 sm:$0xff] %v7928_v7  ;;  %v7930_v6 = vld [vmem:[#allocation5 + $0x49] sm:$0xf] }
 0x53a   :  { %v7670_v52 = vld [vmem:[#allocation4 + $0x78] ss:$2 sm:$0xf]  ;;  %v7702_v8 = vld [vmem:[#allocation4 + $0x79] ss:$2 sm:$0xf]  ;;  %v12682_v45 = vor.u32 %v14143_v58, %v12681_v40  ;;  %8877 = vmatpush.bf16.msrb.mxu1 %v14164_v55 }
 0x53b   :  { %v7718_v53 = vmax.f32 %v7670_v52, %v7702_v8  ;;  %v17329_v44 = vld.sshfl [vmem:[#allocation1 + $0x10] sm:$0xff pattern:$0x75316420]  ;;  %9011 = vmatpush.bf16.msra.mxu0 %v14219_v26  ;;  %7950 = vst [vmem:[#allocation1 + $0x21] ss:$2 sm:$0xff] %v7929_v36  ;;  %v14176_v58 = vld [vmem:[%s18449_s5 + $0xa8] sm:$0xff] }
 0x53c   :  { %v7770_v39 = vld.sshfl [vmem:[#allocation1 + $0x30] sm:$0xff pattern:$0x75316420]  ;;  %8039 = vst [vmem:[#allocation1 + $0x10] ss:$2 sm:$0xff] %v8021_v27  ;;  %8936 = vmatmul.bf16.vlgmr.msra.gmra.mxu3 %v12682_v45  ;;  %v14211_v36 = vld [vmem:[%s18449_s5 + $0x1c0] sm:$0xff] }
 0x53d   :  { %7811 = vst [vmem:[#allocation1 + $0x30] ss:$2 sm:$0xff] %v7789_v23  ;;  %v7778_v9 = vpack.c.bf16 %v7770_v39, %v7770_v39  ;;  %v7726_v5 = vmax.f32 %v7717_v12, %v7718_v53  ;;  %v14210_v23 = vld [vmem:[%s18449_s5 + $0x1b8] sm:$0xff]  ;;  %v14209_v39 = vld [vmem:[%s18449_s5 + $0x1b0] sm:$0xff]  ;;  %v14215_v53 = vld [vmem:[%s18449_s5 + $0x1e0] sm:$0xff] }
 0x53e   :  { %7813 = vst [vmem:[#allocation1 + $0x31] ss:$2 sm:$0xff] %v7790_v15  ;;  %8966 = vmatpush.bf16.msrb.mxu2 %v14210_v23  ;;  %v17362_v10 = vld.sshfl [vmem:[#allocation1] sm:$0xff pattern:$0x75316420]  ;;  %8878 = vmatpush.bf16.msrb.mxu1 %v14163_v30 }
 0x53f   :  { %7782 = vst [vmem:[#allocation6 + $0x6c] sm:$0xf] %v7778_v9  ;;  %v12667_v35 = vld [vmem:[#allocation6 + $0x24] sm:$0xf0]  ;;  %v7975_v40 = vld [vmem:[#allocation5 + $0x3a] sm:$0xf]  ;;  %8988 = vmatpush.bf16.msrb.mxu3 %v14215_v53  ;;  %v8105_v54 = vpack.c.bf16 %v17362_v10, %v17362_v10 }
 0x540   :  { %8041 = vst [vmem:[#allocation1 + $0x11] ss:$2 sm:$0xff] %v8022_v50  ;;  %v14177_v9 = vld [vmem:[%s18449_s5 + $0xb0] sm:$0xff]  ;;  %v12670_v8 = vor.u32 %v14137_v29, %v12667_v35  ;;  %v14206_v50 = vld [vmem:[%s18449_s5 + $0x198] sm:$0xff] }
 0x541   :  { %7735 = vst [vmem:[#allocation5 + $0x51] sm:$0xf] %v7726_v5  ;;  %v7976_v5 = vld [vmem:[#allocation5 + $0x42] sm:$0xf]  ;;  %v7977_v26 = vld [vmem:[#allocation5 + $0x4a] sm:$0xf] }
 0x542   :  { %8129 = vst [vmem:[#allocation1] ss:$2 sm:$0xff] %v8113_v4  ;;  %8967 = vmatpush.bf16.msrb.mxu2 %v14209_v39  ;;  %8890 = vmatpush.bf16.msra.mxu1 %v14178_v17  ;;  %v7957_v57 = vld.sshfl [vmem:[#allocation1 + $0x20] sm:$0xff pattern:$0x75316420]  ;;  %v14173_v10 = vld [vmem:[%s18449_s5 + $0x90] sm:$0xff]  ;;  %v7871_v17 = vpack.c.bf16 %v17267_v56, %v17267_v56 }
 0x543   :  { %8131 = vst [vmem:[#allocation1 + $0x1] ss:$2 sm:$0xff] %v8114_v51  ;;  %v7965_v27 = vpack.c.bf16 %v7957_v57, %v7957_v57  ;;  %8989 = vmatpush.bf16.msrb.mxu3 %v14214_v43  ;;  %v14203_v4 = vld [vmem:[%s18449_s5 + $0x180] sm:$0xff]  ;;  %v8024_v49 = vld [vmem:[#allocation5 + $0x48] sm:$0xf] }
 0x544   :  { %7922 = vst [vmem:[#allocation6 + $0x54] sm:$0xf] %v7918_v2  ;;  %v14171_v56 = vld [vmem:[%s18449_s5 + $0x80] sm:$0xff]  ;;  %v14201_v53 = vld [vmem:[%s18449_s5 + $0x170] sm:$0xff]  ;;  %v8117_v43 = vld [vmem:[#allocation5 + $0x42] sm:$0xf] }
 0x545   :  { %v17319_v60 = vld.sshfl [vmem:[#allocation1 + $0x30] sm:$0xff pattern:$0x75316420]  ;;  %7828 = vst [vmem:[#allocation6 + $0x4c] sm:$0xf] %v7824_v48 }
 0x546   :  { %7858 = vst [vmem:[#allocation1 + $0x30] ss:$2 sm:$0xff] %v7836_v22  ;;  %v14150_v3 = vld [vmem:[#allocation6 + $0x68] sm:$0xf0]  ;;  %8968 = vmatpush.bf16.msrb.mxu2 %v14208_v63  ;;  %v7825_v12 = vpack.c.bf16 %v17319_v60, %v17319_v60  ;;  %8891 = vmatpush.bf16.msra.mxu1 %v14177_v9  ;;  %v8070_v48 = vld [vmem:[#allocation5 + $0x41] sm:$0xf] }
 0x547   :  { %7860 = vst [vmem:[#allocation1 + $0x31] ss:$2 sm:$0xff] %v7837_v34  ;;  %v12702_v61 = vor.u32 %v14150_v3, %v12701_v59  ;;  %v17344_v14 = vld.sshfl [vmem:[#allocation1 + $0x10] sm:$0xff pattern:$0x75316420]  ;;  %v14175_v3 = vld [vmem:[%s18449_s5 + $0xa0] sm:$0xff]  ;;  %8990 = vmatpush.bf16.msrb.mxu3 %v14213_v1 }
 0x548   :  { %8086 = vst [vmem:[#allocation1 + $0x10] ss:$2 sm:$0xff] %v8068_v19  ;;  %v7884_v15 = vld [vmem:[#allocation5 + $0x50] sm:$0xf]  ;;  %v14205_v60 = vld [vmem:[%s18449_s5 + $0x190] sm:$0xff]  ;;  %v8059_v38 = vpack.c.bf16 %v17344_v14, %v17344_v14  ;;  %v14212_v14 = vld [vmem:[%s18449_s5 + $0x1c8] sm:$0xff] }
 0x549   :  { %8865 = vmatmul.bf16.gmra.mxu1 %v12702_v61  ;;  %8088 = vst [vmem:[#allocation1 + $0x11] ss:$2 sm:$0xff] %v8069_v11  ;;  %v7931_v33 = vld [vmem:[#allocation5 + $0x51] sm:$0xf]  ;;  %v14204_v11 = vld [vmem:[%s18449_s5 + $0x188] sm:$0xff] }
 0x54a   :  { %v8144_v52 = vld.sshfl [vmem:[#allocation1] sm:$0xff pattern:$0x75316420]  ;;  %8969 = vmatpush.bf16.msrb.mxu2 %v14207_v31  ;;  %7829 = vst [vmem:[#allocation6 + $0x70] sm:$0xf] %v7825_v12  ;;  %8892 = vmatpush.bf16.msra.mxu1 %v14176_v58  ;;  %v8011_v58 = vpack.c.bf16 %v17329_v44, %v17329_v44  ;;  %v14198_v1 = vld [vmem:[%s18449_s5 + $0x158] sm:$0xff] }
 0x54b   :  { %v8152_v41 = vpack.c.bf16 %v8144_v52, %v8144_v52  ;;  %7969 = vst [vmem:[#allocation6 + $0x58] sm:$0xf] %v7965_v27  ;;  %v14147_v21 = vld [vmem:[#allocation6 + $0x54] sm:$0xf]  ;;  %8991 = vmatpush.bf16.msrb.mxu3 %v14212_v14  ;;  %v8025_v31 = vld [vmem:[#allocation5 + $0x50] sm:$0xf] }
 0x54c   :  { %7995 = vst [vmem:[#allocation1 + $0x20] ss:$2 sm:$0xff] %v7975_v40  ;;  %v7978_v19 = vld [vmem:[#allocation5 + $0x52] sm:$0xf]  ;;  %v14146_v51 = vld [vmem:[#allocation6 + $0x4c] sm:$0xf]  ;;  %v8010_v40 = vpack.c.bf16 %v17324_v46, %v17324_v46 }
 0x54d   :  { %8156 = vst [vmem:[#allocation6 + $0x20] sm:$0xf] %v8152_v41  ;;  %v8073_v9 = vld [vmem:[#allocation5 + $0x59] sm:$0xf]  ;;  %v8071_v52 = vld [vmem:[#allocation5 + $0x49] sm:$0xf] }
 0x54e   :  { %v17334_v16 = vld.sshfl [vmem:[#allocation1 + $0x30] sm:$0xff pattern:$0x75316420]  ;;  %8970 = vmatpush.bf16.msrb.mxu2 %v14206_v50  ;;  %7997 = vst [vmem:[#allocation1 + $0x21] ss:$2 sm:$0xff] %v7976_v5  ;;  %8893 = vmatpush.bf16.msra.mxu1 %v14175_v3  ;;  %v14200_v5 = vld [vmem:[%s18449_s5 + $0x168] sm:$0xff] }
 0x54f   :  { %7905 = vst [vmem:[#allocation1 + $0x30] ss:$2 sm:$0xff] %v7883_v28  ;;  %8992 = vmatpush.bf16.msrb.mxu3 %v14211_v36  ;;  %v8120_v44 = vld [vmem:[#allocation5 + $0x5a] sm:$0xf] }
 0x550   :  { %7907 = vst [vmem:[#allocation1 + $0x31] ss:$2 sm:$0xff] %v7884_v15  ;;  %v17376_v0 = vld.sshfl [vmem:[#allocation1 + $0x10] sm:$0xff pattern:$0x75316420]  ;;  %v14174_v15 = vld [vmem:[%s18449_s5 + $0x98] sm:$0xff] }
 0x551   :  { %8133 = vst [vmem:[#allocation1 + $0x10] ss:$2 sm:$0xff] %v8115_v62  ;;  %v12703_v13 = vld [vmem:[#allocation6 + $0x6c] sm:$0xf0]  ;;  %v8106_v55 = vpack.c.bf16 %v17376_v0, %v17376_v0  ;;  %v8026_v62 = vld [vmem:[#allocation5 + $0x58] sm:$0xf] }
 0x552   :  { %8135 = vst [vmem:[#allocation1 + $0x11] ss:$2 sm:$0xff] %v8116_v42  ;;  %8971 = vmatpush.bf16.msrb.mxu2 %v14205_v60  ;;  %v8023_v42 = vld [vmem:[#allocation5 + $0x40] sm:$0xf]  ;;  %v12706_v47 = vor.u32 %v14146_v51, %v12703_v13  ;;  %8894 = vmatpush.bf16.msra.mxu1 %v14174_v15  ;;  %v12717_v2 = vld [vmem:[#allocation6 + $0x58] sm:$0xf] }
 0x553   :  { %8062 = vst [vmem:[#allocation6 + $0x18] sm:$0xf] %v8058_v24  ;;  %v14197_v15 = vld [vmem:[%s18449_s5 + $0x150] sm:$0xff] }
 0x554   :  { %8063 = vst [vmem:[#allocation6 + $0x3c] sm:$0xf] %v8059_v38  ;;  %v12697_v39 = vld [vmem:[#allocation6 + $0x20] sm:$0xf] }
 0x555   :  { %7873 = vst [vmem:[#allocation6 + $0x8] sm:$0xf] %v7869_v20  ;;  %v17439_v63 = vld.sshfl [vmem:[#allocation1 + $0x20] sm:$0xff pattern:$0x75316420] }
 0x556   :  { %8972 = vmatpush.bf16.msrb.mxu2 %v14204_v11  ;;  %7874 = vst [vmem:[#allocation6 + $0x2c] sm:$0xf] %v7870_v18  ;;  %8895 = vmatpush.bf16.msra.mxu1 %v14173_v10  ;;  %v8119_v11 = vld [vmem:[#allocation5 + $0x52] sm:$0xf] }
 0x557   :  { %v7911_v22 = vld.sshfl [vmem:[#allocation1 + $0x30] sm:$0xff pattern:$0x75316420]  ;;  %8109 = vst [vmem:[#allocation6 + $0x1c] sm:$0xf] %v8105_v54 }
 0x558   :  { %v7919_v34 = vpack.c.bf16 %v7911_v22, %v7911_v22  ;;  %7952 = vst [vmem:[#allocation1 + $0x30] ss:$2 sm:$0xff] %v7930_v6  ;;  %v7872_v6 = vpack.c.bf16 %v17334_v16, %v17334_v16  ;;  %v14202_v16 = vld [vmem:[%s18449_s5 + $0x178] sm:$0xff] }
 0x559   :  { %7954 = vst [vmem:[#allocation1 + $0x31] ss:$2 sm:$0xff] %v7931_v33  ;;  %8879 = vmatmul.bf16.vlgmr.msrb.gmra.mxu1 %v12670_v8  ;;  %v8145_v45 = vld.sshfl [vmem:[#allocation1 + $0x10] sm:$0xff pattern:$0x75316420] }
 0x55a   :  { %7923 = vst [vmem:[#allocation6 + $0x78] sm:$0xf] %v7919_v34  ;;  %v8153_v28 = vpack.c.bf16 %v8145_v45, %v8145_v45  ;;  %8973 = vmatpush.bf16.msrb.mxu2 %v14203_v4  ;;  %v12689_v33 = vld [vmem:[#allocation6 + $0x18] sm:$0xf]  ;;  %8896 = vmatpush.bf16.msra.mxu1 %v14172_v25  ;;  %v8072_v8 = vld [vmem:[#allocation5 + $0x51] sm:$0xf] }
 0x55b   :  { %8110 = vst [vmem:[#allocation6 + $0x40] sm:$0xf] %v8106_v55  ;;  %v14144_v34 = vld [vmem:[#allocation6 + $0x38] sm:$0xf0]  ;;  %v14196_v55 = vld [vmem:[%s18449_s5 + $0x148] sm:$0xff] }
 0x55c   :  { %8157 = vst [vmem:[#allocation6 + $0x44] sm:$0xf] %v8153_v28  ;;  %v12690_v35 = vor.u32 %v14144_v34, %v12689_v33  ;;  %v12673_v27 = vld [vmem:[#allocation6 + $0x8] sm:$0xf] }
 0x55d   :  { %8043 = vst [vmem:[#allocation1 + $0x20] ss:$2 sm:$0xff] %v8023_v42  ;;  %v14142_v41 = vld [vmem:[#allocation6 + $0x28] sm:$0xf0]  ;;  %v14195_v42 = vld [vmem:[%s18449_s5 + $0x140] sm:$0xff] }
 0x55e   :  { %8045 = vst [vmem:[#allocation1 + $0x21] ss:$2 sm:$0xff] %v8024_v49  ;;  %8897 = vmatpush.bf16.msra.mxu1 %v14171_v56  ;;  %v12674_v45 = vor.u32 %v14142_v41, %v12673_v27  ;;  %v14140_v28 = vld [vmem:[#allocation6 + $0x1c] sm:$0xf] }
 0x55f   :  { %7875 = vst [vmem:[#allocation6 + $0x50] sm:$0xf] %v7871_v17 }
 0x560   :  { %v7958_v61 = vld.sshfl [vmem:[#allocation1 + $0x30] sm:$0xff pattern:$0x75316420]  ;;  %7876 = vst [vmem:[#allocation6 + $0x74] sm:$0xf] %v7872_v6 }
 0x561   :  { %v12711_v37 = vld [vmem:[#allocation6 + $0x74] sm:$0xf0]  ;;  %v7966_v23 = vpack.c.bf16 %v7958_v61, %v7958_v61  ;;  %7999 = vst [vmem:[#allocation1 + $0x30] ss:$2 sm:$0xff] %v7977_v26 }
 0x562   :  { %v12714_v59 = vor.u32 %v14147_v21, %v12711_v37  ;;  %8001 = vst [vmem:[#allocation1 + $0x31] ss:$2 sm:$0xff] %v7978_v19  ;;  %8947 = vmatpush.bf16.msrb.mxu1 %v14202_v16  ;;  %v12691_v60 = vld [vmem:[#allocation6 + $0x3c] sm:$0xf0]  ;;  %v8118_v37 = vld [vmem:[#allocation5 + $0x4a] sm:$0xf] }
 0x563   :  { %7970 = vst [vmem:[#allocation6 + $0x7c] sm:$0xf] %v7966_v23  ;;  %v14145_v32 = vld [vmem:[#allocation6 + $0x40] sm:$0xf0]  ;;  %v12694_v46 = vor.u32 %v14140_v28, %v12691_v60  ;;  %v14393_v16 = vld [vmem:[%s18450_s6] ss:$0 sm:$0xff] }
 0x564   :  { %8922 = vmatmul.bf16.gmra.mxu2 %v12714_v59  ;;  %v12698_v7 = vor.u32 %v14145_v32, %v12697_v39  ;;  %8014 = vst [vmem:[#allocation6 + $0x14] sm:$0xf] %v8010_v40  ;;  %v14199_v59 = vld [vmem:[%s18449_s5 + $0x160] sm:$0xff] }
 0x565   :  { %v8052_v29 = vld.sshfl [vmem:[#allocation1 + $0x20] sm:$0xff pattern:$0x75316420]  ;;  %8015 = vst [vmem:[#allocation6 + $0x38] sm:$0xf] %v8011_v58 }
 0x566   :  { %9012 = vmatmul.bf16.vlgmr.msra.gmra.mxu0 %v12698_v7  ;;  %v8060_v50 = vpack.c.bf16 %v8052_v29, %v8052_v29  ;;  %8090 = vst [vmem:[#allocation1 + $0x20] ss:$2 sm:$0xff] %v8070_v48  ;;  %8948 = vmatpush.bf16.msrb.mxu1 %v14201_v53  ;;  %v12709_v4 = vld [vmem:[#allocation6 + $0x50] sm:$0xf] }
 0x567   :  { %8092 = vst [vmem:[#allocation1 + $0x21] ss:$2 sm:$0xff] %v8071_v52  ;;  %v14151_v20 = vld [vmem:[#allocation6 + $0x70] sm:$0xf0] }
 0x568   :  { %8064 = vst [vmem:[#allocation6 + $0x60] sm:$0xf] %v8060_v50  ;;  %v12710_v14 = vor.u32 %v14151_v20, %v12709_v4 }
 0x569   :  { %v17447_v30 = vld.sshfl [vmem:[#allocation1 + $0x30] sm:$0xff pattern:$0x75316420]  ;;  %8884 = vmatmul.bf16.gmra.mxu1 %v12706_v47 }
 0x56a   :  { %v14152_v0 = vld [vmem:[#allocation6 + $0x78] sm:$0xf0]  ;;  %8047 = vst [vmem:[#allocation1 + $0x30] ss:$2 sm:$0xff] %v8025_v31  ;;  %8949 = vmatpush.bf16.msrb.mxu1 %v14200_v5 }
 0x56b   :  { %v12718_v22 = vor.u32 %v14152_v0, %v12717_v2  ;;  %8049 = vst [vmem:[#allocation1 + $0x31] ss:$2 sm:$0xff] %v8026_v62  ;;  %v14139_v10 = vld [vmem:[#allocation6 + $0x14] sm:$0xf]  ;;  %v8012_v2 = vpack.c.bf16 %v17439_v63, %v17439_v63  ;;  %v8013_v0 = vpack.c.bf16 %v17447_v30, %v17447_v30 }
 0x56c   :  { %v12683_v47 = vld [vmem:[#allocation6 + $0x34] sm:$0xf0] }
 0x56d   :  { %8941 = vmatmul.bf16.gmra.mxu3 %v12718_v22  ;;  %v12686_v36 = vor.u32 %v14139_v10, %v12683_v47  ;;  %8016 = vst [vmem:[#allocation6 + $0x5c] sm:$0xf] %v8012_v2 }
 0x56e   :  { %v8099_v21 = vld.sshfl [vmem:[#allocation1 + $0x20] sm:$0xff pattern:$0x75316420]  ;;  %8950 = vmatpush.bf16.msrb.mxu1 %v14199_v59  ;;  %8017 = vst [vmem:[#allocation6 + $0x80] sm:$0xf] %v8013_v0 }
 0x56f   :  { %v8107_v26 = vpack.c.bf16 %v8099_v21, %v8099_v21  ;;  %8137 = vst [vmem:[#allocation1 + $0x20] ss:$2 sm:$0xff] %v8117_v43  ;;  %v12725_v3 = vld [vmem:[#allocation6 + $0x60] sm:$0xf] }
 0x570   :  { %8139 = vst [vmem:[#allocation1 + $0x21] ss:$2 sm:$0xff] %v8118_v37 }
 0x571   :  { %8111 = vst [vmem:[#allocation6 + $0x64] sm:$0xf] %v8107_v26 }
 0x572   :  { %v8053_v12 = vld.sshfl [vmem:[#allocation1 + $0x30] sm:$0xff pattern:$0x75316420]  ;;  %8951 = vmatpush.bf16.msrb.mxu1 %v14198_v1 }
 0x573   :  { %v8061_v57 = vpack.c.bf16 %v8053_v12, %v8053_v12  ;;  %8094 = vst [vmem:[#allocation1 + $0x30] ss:$2 sm:$0xff] %v8072_v8 }
 0x574   :  { %8974 = vmatmul.bf16.vlgmr.msrb.gmra.mxu2 %v12690_v35  ;;  %8096 = vst [vmem:[#allocation1 + $0x31] ss:$2 sm:$0xff] %v8073_v9  ;;  %v14148_v31 = vld [vmem:[#allocation6 + $0x5c] sm:$0xf] }
 0x575   :  { %8065 = vst [vmem:[#allocation6 + $0x84] sm:$0xf] %v8061_v57  ;;  %v12719_v17 = vld [vmem:[#allocation6 + $0x7c] sm:$0xf0] }
 0x576   :  { %8952 = vmatpush.bf16.msrb.mxu1 %v14197_v15  ;;  %v12722_v22 = vor.u32 %v14148_v31, %v12719_v17 }
 0x577   :  { %v8146_v38 = vld.sshfl [vmem:[#allocation1 + $0x20] sm:$0xff pattern:$0x75316420] }
 0x578   :  { %v8154_v18 = vpack.c.bf16 %v8146_v38, %v8146_v38  ;;  %v14149_v39 = vld [vmem:[#allocation6 + $0x64] sm:$0xf] }
 0x579   :  { %8898 = vmatmul.bf16.vlgmr.msra.gmra.mxu1 %v12674_v45 }
 0x57a   :  { %8158 = vst [vmem:[#allocation6 + $0x68] sm:$0xf] %v8154_v18  ;;  %8953 = vmatpush.bf16.msrb.mxu1 %v14196_v55 }
 0x57b   :  { %v8100_v19 = vld.sshfl [vmem:[#allocation1 + $0x30] sm:$0xff pattern:$0x75316420] }
 0x57c   :  { %v14153_v61 = vld [vmem:[#allocation6 + $0x80] sm:$0xf0]  ;;  %v8108_v23 = vpack.c.bf16 %v8100_v19, %v8100_v19  ;;  %8141 = vst [vmem:[#allocation1 + $0x30] ss:$2 sm:$0xff] %v8119_v11 }
 0x57d   :  { %8993 = vmatmul.bf16.vlgmr.msrb.gmra.mxu3 %v12694_v46  ;;  %v12726_v24 = vor.u32 %v14153_v61, %v12725_v3  ;;  %8143 = vst [vmem:[#allocation1 + $0x31] ss:$2 sm:$0xff] %v8120_v44 }
 0x57e   :  { %8112 = vst [vmem:[#allocation6 + $0x88] sm:$0xf] %v8108_v23  ;;  %8954 = vmatpush.bf16.msrb.mxu1 %v14195_v42 }
 0x581   :  { %v12733_v7 = vld [vmem:[#allocation6 + $0x68] sm:$0xf] }
 0x584   :  { %8979 = vmatmul.bf16.gmra.mxu2 %v12726_v24  ;;  %v8147_v54 = vld.sshfl [vmem:[#allocation1 + $0x30] sm:$0xff pattern:$0x75316420] }
 0x585   :  { %v12727_v51 = vld [vmem:[#allocation6 + $0x84] sm:$0xf0]  ;;  %v8155_v13 = vpack.c.bf16 %v8147_v54, %v8147_v54 }
 0x586   :  { %v12730_v32 = vor.u32 %v14149_v39, %v12727_v51 }
 0x587   :  { %8159 = vst [vmem:[#allocation6 + $0x8c] sm:$0xf] %v8155_v13 }
 0x589   :  { %8903 = vmatmul.bf16.gmra.mxu1 %v12710_v14 }
 0x58b   :  { %v8861_v6 = vpop.f32.mrf.mxu1 }
 0x58c   :  { %v8862_v45 = vadd.f32 %v14393_v16, %v8861_v6 }
 0x58d   :  { %8998 = vmatmul.bf16.gmra.mxu3 %v12730_v32 }
 0x58e   :  { %v14154_v62 = vld [vmem:[#allocation6 + $0x88] sm:$0xf0] }
 0x58f   :  { %v12734_v49 = vor.u32 %v14154_v62, %v12733_v7 }
 0x591   :  { %9017 = vmatmul.bf16.gmra.mxu0 %v12734_v49 }
 0x593   :  { %v8863_v34 = vpop.f32.mrf.mxu1 }
 0x594   :  { %v8864_v59 = vadd.f32 %v14393_v16, %v8863_v34 }
 0x599   :  { %8955 = vmatmul.bf16.vlgmr.msrb.gmra.mxu1 %v12686_v36 }
 0x5a6   :  { %v8918_v8 = vpop.f32.mrf.mxu2 }
 0x5a9   :  { %8960 = vmatmul.bf16.gmra.mxu1 %v12722_v22 }
 0x5ae   :  { %v8920_v41 = vpop.f32.mrf.mxu2 }
 0x5bf   :  { %v8937_v50 = vpop.f32.mrf.mxu3 }
 0x5c6   :  { %v8866_v25 = vpop.f32.mrf.mxu1 }
 0x5c7   :  { %v8867_v63 = vadd.f32 %v14393_v16, %v8866_v25  ;;  %v8939_v53 = vpop.f32.mrf.mxu3 }
 0x5ce   :  { %v8868_v33 = vpop.f32.mrf.mxu1 }
 0x5cf   :  { %v8869_v30 = vadd.f32 %v14393_v16, %v8868_v33 }
 0x5d6   :  { %v8880_v35 = vpop.f32.mrf.mxu1 }
 0x5d7   :  { %v8881_v60 = vadd.f32 %v8880_v35, %v8862_v45 }
 0x5de   :  { %v8882_v56 = vpop.f32.mrf.mxu1 }
 0x5df   :  { %v8883_v11 = vadd.f32 %v8882_v56, %v8864_v59 }
 0x5e3   :  { %v9013_v23 = vpop.f32.mrf.mxu0 }
 0x5e6   :  { %v8885_v48 = vpop.f32.mrf.mxu1 }
 0x5e7   :  { %v8886_v29 = vadd.f32 %v8885_v48, %v8867_v63  ;;  %v8923_v40 = vpop.f32.mrf.mxu2 }
 0x5eb   :  { %v9015_v36 = vpop.f32.mrf.mxu0 }
 0x5ee   :  { %v8887_v9 = vpop.f32.mrf.mxu1 }
 0x5ef   :  { %v17494_v52 = vadd.f32 %v8887_v9, %v8869_v30  ;;  %v17496_v28 = vpop.f32.mrf.mxu2 }
 0x5f0   :  { %v8942_v58 = vpop.f32.mrf.mxu3 }
 0x5f6   :  { %v8899_v12 = vpop.f32.mrf.mxu1 }
 0x5f7   :  { %v8900_v5 = vadd.f32 %v8899_v12, %v8881_v60  ;;  %v8975_v3 = vpop.f32.mrf.mxu2 }
 0x5f8   :  { %v17500_v46 = vpop.f32.mrf.mxu3 }
 0x5f9   :  { %v8919_v21 = vadd.f32 %v8918_v8, %v8900_v5 }
 0x5fb   :  { %v8938_v37 = vadd.f32 %v8937_v50, %v8919_v21 }
 0x5fe   :  { %v8901_v57 = vpop.f32.mrf.mxu1 }
 0x5ff   :  { %v8902_v1 = vadd.f32 %v8901_v57, %v8883_v11  ;;  %v8977_v51 = vpop.f32.mrf.mxu2 }
 0x600   :  { %v8994_v24 = vpop.f32.mrf.mxu3 }
 0x601   :  { %v8921_v18 = vadd.f32 %v8920_v41, %v8902_v1 }
 0x603   :  { %v8940_v4 = vadd.f32 %v8939_v53, %v8921_v18 }
 0x606   :  { %v8904_v27 = vpop.f32.mrf.mxu1 }
 0x607   :  { %v8905_v31 = vadd.f32 %v8904_v27, %v8886_v29  ;;  %v8980_v12 = vpop.f32.mrf.mxu2 }
 0x608   :  { %v8996_v32 = vpop.f32.mrf.mxu3 }
 0x609   :  { %v8924_v16 = vadd.f32 %v8923_v40, %v8905_v31 }
 0x60b   :  { %v8943_v8 = vadd.f32 %v8942_v58, %v8924_v16 }
 0x60e   :  { %v17498_v43 = vpop.f32.mrf.mxu1 }
 0x610   :  { %v8999_v45 = vpop.f32.mrf.mxu3 }
 0x616   :  { %v8956_v26 = vpop.f32.mrf.mxu1 }
 0x617   :  { %v8957_v44 = vadd.f32 %v8956_v26, %v8938_v37 }
 0x619   :  { %v8976_v61 = vadd.f32 %v8975_v3, %v8957_v44 }
 0x61b   :  { %v8995_v19 = vadd.f32 %v8994_v24, %v8976_v61  ;;  %v9018_v61 = vpop.f32.mrf.mxu0 }
 0x61d   :  { %v9014_v38 = vadd.f32 %v9013_v23, %v8995_v19 }
 0x61e   :  { %v8958_v14 = vpop.f32.mrf.mxu1 }
 0x61f   :  { %v9023_v20 = vmax.f32 %v9014_v38, 0.0  ;;  %v8959_v54 = vadd.f32 %v8958_v14, %v8940_v4 }
 0x621   :  { %v9031_v15 = vrot.slane %v9023_v20, 4  ;;  %9039 = vst [vmem:[#allocation7] sm:$0xf] %v9023_v20  ;;  %v8978_v39 = vadd.f32 %v8977_v51, %v8959_v54 }
 0x623   :  { %9040 = vst [vmem:[#allocation7 + $0x4] sm:$0xf] %v9031_v15  ;;  %v8997_v10 = vadd.f32 %v8996_v32, %v8978_v39 }
 0x625   :  { %v9016_v6 = vadd.f32 %v9015_v36, %v8997_v10 }
 0x626   :  { %v8961_v50 = vpop.f32.mrf.mxu1 }
 0x627   :  { %v9024_v33 = vmax.f32 %v9016_v6, 0.0  ;;  %v8962_v29 = vadd.f32 %v8961_v50, %v8943_v8  ;;  %v9020_v8 = vpop.f32.mrf.mxu0 }
 0x628   :  { %v9047_v13 = vld [vmem:[#allocation7] sm:$0x1]  ;;  %v9049_v55 = vld [vmem:[#allocation7 + $0x1] sm:$0x1]  ;;  %v9094_v42 = vld [vmem:[#allocation7 + $0x2] sm:$0x1] }
 0x629   :  { %v9096_v7 = vld [vmem:[#allocation7 + $0x3] sm:$0x1]  ;;  %v9051_v2 = vmax.f32 %v9047_v13, %v9049_v55  ;;  %v9032_v63 = vrot.slane %v9024_v33, 4  ;;  %9041 = vst [vmem:[#allocation7 + $0x8] sm:$0xf] %v9024_v33  ;;  %v8981_v27 = vadd.f32 %v8980_v12, %v8962_v29  ;;  %v8907_v13 = vadd.f32 %v17498_v43, %v17494_v52 }
 0x62a   :  { %v9054_v62 = vld [vmem:[#allocation7 + $0x4] sm:$0x1]  ;;  %v9056_v49 = vld [vmem:[#allocation7 + $0x5] sm:$0x1]  ;;  %v9100_v47 = vld [vmem:[#allocation7 + $0x6] sm:$0x1]  ;;  %v9098_v25 = vmax.f32 %v9094_v42, %v9096_v7 }
 0x62b   :  { %v9058_v0 = vmax.f32 %v9054_v62, %v9056_v49  ;;  %v9102_v17 = vld [vmem:[#allocation7 + $0x7] sm:$0x1]  ;;  %9042 = vst [vmem:[#allocation7 + $0xc] sm:$0xf] %v9032_v63  ;;  %v9000_v3 = vadd.f32 %v8999_v45, %v8981_v27  ;;  %v8926_v62 = vadd.f32 %v17496_v28, %v8907_v13  ;;  %v9001_v63 = vpop.f32.mrf.mxu3 }
 0x62c   :  { %v9104_v22 = vmax.f32 %v9100_v47, %v9102_v17 }
 0x62d   :  { %v9060_v34 = vmax.f32 %v9051_v2, %v9058_v0  ;;  %v9019_v23 = vadd.f32 %v9018_v61, %v9000_v3  ;;  %v8945_v6 = vadd.f32 %v17500_v46, %v8926_v62  ;;  %v14289_v62 = vld [vmem:[%s18451_s7 + $0x1ec] sm:$0xf0] }
 0x62e   :  { %v9106_v56 = vmax.f32 %v9098_v25, %v9104_v22 }
 0x62f   :  { %v9062_v35 = vpack.c.bf16 %v9060_v34, %v9060_v34  ;;  %v9025_v20 = vmax.f32 %v9019_v23, 0.0  ;;  %v8963_v34 = vpop.f32.mrf.mxu1 }
 0x630   :  { %v9108_v9 = vpack.c.bf16 %v9106_v56, %v9106_v56  ;;  %v9139_v53 = vld [vmem:[#allocation7 + $0x8] sm:$0x1]  ;;  %v9141_v57 = vld [vmem:[#allocation7 + $0x9] sm:$0x1]  ;;  %v9184_v26 = vld [vmem:[#allocation7 + $0xa] sm:$0x1]  ;;  %v8964_v28 = vadd.f32 %v8963_v34, %v8945_v6 }
 0x631   :  { %v9066_v48 = vrot.slane %v9062_v35, 3  ;;  %v9143_v21 = vmax.f32 %v9139_v53, %v9141_v57  ;;  %v9186_v44 = vld [vmem:[#allocation7 + $0xb] sm:$0x1]  ;;  %v9033_v4 = vrot.slane %v9025_v20, 4  ;;  %9043 = vst [vmem:[#allocation7 + $0x10] sm:$0xf] %v9025_v20 }
 0x632   :  { %v9112_v41 = vrot.slane %v9108_v9, 3  ;;  %v9146_v60 = vld [vmem:[#allocation7 + $0xc] sm:$0x1]  ;;  %v9148_v40 = vld [vmem:[#allocation7 + $0xd] sm:$0x1]  ;;  %v9188_v1 = vmax.f32 %v9184_v26, %v9186_v44 }
 0x633   :  { %v9071_v30 = vsel %vm9068_vm1, %v9062_v35, %v9066_v48  ;;  %v9190_v5 = vld [vmem:[#allocation7 + $0xe] sm:$0x1]  ;;  %v9150_v37 = vmax.f32 %v9146_v60, %v9148_v40  ;;  %v9192_v59 = vld [vmem:[#allocation7 + $0xf] sm:$0x1]  ;;  %9044 = vst [vmem:[#allocation7 + $0x14] sm:$0xf] %v9033_v4  ;;  %v8982_v35 = vpop.f32.mrf.mxu2 }
 0x634   :  { %9075 = vst [vmem:[#allocation1] ss:$4 sm:$0xff] %v9071_v30  ;;  %v9116_v58 = vsel %vm9068_vm1, %v9108_v9, %v9112_v41  ;;  %v9194_v24 = vmax.f32 %v9190_v5, %v9192_v59  ;;  %v8983_v16 = vadd.f32 %v8982_v35, %v8964_v28  ;;  %v13121_v6 = vld [vmem:[%s18451_s7 + $0xc0] sm:$0xf]  ;;  %v14253_v34 = vld [vmem:[%s18451_s7 + $0xcc] sm:$0xf0] }
 0x635   :  { %v9152_v19 = vmax.f32 %v9143_v21, %v9150_v37  ;;  %v13249_v28 = vld [vmem:[%s18451_s7 + $0x1c0] sm:$0xf]  ;;  %v14285_v35 = vld [vmem:[%s18451_s7 + $0x1cc] sm:$0xf0] }
 0x636   :  { %v9196_v18 = vmax.f32 %v9188_v1, %v9194_v24  ;;  %v9002_v9 = vadd.f32 %v9001_v63, %v8983_v16  ;;  %v13250_v63 = vor.u32 %v14285_v35, %v13249_v28  ;;  %v14265_v28 = vld [vmem:[%s18451_s7 + $0x12c] sm:$0xf0] }
 0x637   :  { %v9154_v38 = vpack.c.bf16 %v9152_v19, %v9152_v19 }
 0x638   :  { %v9198_v51 = vpack.c.bf16 %v9196_v18, %v9196_v18  ;;  %v9048_v39 = vld [vmem:[#allocation7 + $0x10] sm:$0x1]  ;;  %v9050_v32 = vld [vmem:[#allocation7 + $0x11] sm:$0x1]  ;;  %v9095_v42 = vld [vmem:[#allocation7 + $0x12] sm:$0x1]  ;;  %v9021_v50 = vadd.f32 %v9020_v8, %v9002_v9 }
 0x639   :  { %v9158_v15 = vrot.slane %v9154_v38, 3  ;;  %v9097_v7 = vld [vmem:[#allocation7 + $0x13] sm:$0x1]  ;;  %v9052_v36 = vmax.f32 %v9048_v39, %v9050_v32  ;;  %v13137_v39 = vld [vmem:[%s18451_s7 + $0xe0] sm:$0xf] }
 0x63a   :  { %v9202_v55 = vrot.slane %v9198_v51, 3  ;;  %v9055_v49 = vld [vmem:[#allocation7 + $0x14] sm:$0x1]  ;;  %v9057_v47 = vld [vmem:[#allocation7 + $0x15] sm:$0x1]  ;;  %v9099_v43 = vmax.f32 %v9095_v42, %v9097_v7  ;;  %v9026_v12 = vmax.f32 %v9021_v50, 0.0 }
 0x63b   :  { %v17503_v11 = vld [vmem:[#allocation1] sm:$0xf]  ;;  %v9162_v54 = vsel %vm9068_vm1, %v9154_v38, %v9158_v15  ;;  %v9101_v10 = vld [vmem:[#allocation7 + $0x16] sm:$0x1]  ;;  %v9059_v2 = vmax.f32 %v9055_v49, %v9057_v47  ;;  %v9103_v0 = vld [vmem:[#allocation7 + $0x17] sm:$0x1] }
 0x63c   :  { %9120 = vst [vmem:[#allocation1] ss:$4 sm:$0xff] %v9116_v58  ;;  %v9206_v31 = vsel %vm9068_vm1, %v9198_v51, %v9202_v55  ;;  %v9105_v22 = vmax.f32 %v9101_v10, %v9103_v0  ;;  %v9034_v41 = vrot.slane %v9026_v12, 4  ;;  %v9082_v27 = vunpack.c.l.b16 %v17503_v11  ;;  %v14257_v32 = vld [vmem:[%s18451_s7 + $0xec] sm:$0xf0] }
 0x63d   :  { %v9061_v52 = vmax.f32 %v9052_v36, %v9059_v2  ;;  %9045 = vst [vmem:[#allocation7 + $0x18] sm:$0xf] %v9026_v12  ;;  %v13138_v7 = vor.u32 %v14257_v32, %v13137_v39  ;;  %v13393_v49 = vld [vmem:[%s18451_s7 + $0x2e0] sm:$0xf]  ;;  %v14321_v47 = vld [vmem:[%s18451_s7 + $0x2ec] sm:$0xf0] }
 0x63e   :  { %v9107_v33 = vmax.f32 %v9099_v43, %v9105_v22  ;;  %9046 = vst [vmem:[#allocation7 + $0x1c] sm:$0xf] %v9034_v41  ;;  %v13394_v0 = vor.u32 %v14321_v47, %v13393_v49  ;;  %v14353_v22 = vld [vmem:[%s18451_s7 + $0x3ec] sm:$0xf0]  ;;  %v13105_v50 = vld [vmem:[%s18451_s7 + $0xa0] sm:$0xf] }
 0x63f   :  { %v9063_v25 = vpack.c.bf16 %v9061_v52, %v9061_v52  ;;  %10017 = vmatpush.bf16.msra.mxu1 %v13138_v7  ;;  %v14349_v8 = vld [vmem:[%s18451_s7 + $0x3cc] sm:$0xf0]  ;;  %v13233_v41 = vld [vmem:[%s18451_s7 + $0x1a0] sm:$0xf] }
 0x640   :  { %v9109_v30 = vpack.c.bf16 %v9107_v33, %v9107_v33  ;;  %10043 = vmatpush.bf16.msra.mxu3 %v13394_v0  ;;  %v13122_v33 = vor.u32 %v14253_v34, %v13121_v6  ;;  %v14249_v12 = vld [vmem:[%s18451_s7 + $0xac] sm:$0xf0]  ;;  %v13057_v7 = vld [vmem:[%s18451_s7 + $0x40] sm:$0xf] }
 0x641   :  { %v9067_v56 = vrot.slane %v9063_v25, 3  ;;  %v14337_v32 = vld [vmem:[%s18451_s7 + $0x36c] sm:$0xf0]  ;;  %v13185_v49 = vld [vmem:[%s18451_s7 + $0x140] sm:$0xf] }
 0x642   :  { %v9113_v29 = vrot.slane %v9109_v30, 3  ;;  %v13441_v0 = vld [vmem:[%s18451_s7 + $0x340] sm:$0xf] }
 0x643   :  { %v17506_v14 = vld [vmem:[#allocation1] sm:$0xf]  ;;  %v9074_v48 = vsel %vm9068_vm1, %v9063_v25, %v9067_v56  ;;  %10018 = vmatpush.bf16.msra.mxu1 %v13122_v33 }
 0x644   :  { %9166 = vst [vmem:[#allocation1] ss:$4 sm:$0xff] %v9162_v54  ;;  %v9119_v53 = vsel %vm9068_vm1, %v9109_v30, %v9113_v29  ;;  %v9140_v5 = vld [vmem:[#allocation7 + $0x18] sm:$0x1]  ;;  %v9142_v21 = vld [vmem:[#allocation7 + $0x19] sm:$0x1]  ;;  %v9127_v11 = vunpack.c.l.b16 %v17506_v14 }
 0x645   :  { %9079 = vst [vmem:[#allocation1 + $0x20] ss:$4 sm:$0xff] %v9074_v48  ;;  %v9185_v37 = vld [vmem:[#allocation7 + $0x1a] sm:$0x1]  ;;  %v9187_v59 = vld [vmem:[#allocation7 + $0x1b] sm:$0x1]  ;;  %v9144_v23 = vmax.f32 %v9140_v5, %v9142_v21 }
 0x646   :  { %v9147_v61 = vld [vmem:[#allocation7 + $0x1c] sm:$0x1]  ;;  %v9149_v58 = vld [vmem:[#allocation7 + $0x1d] sm:$0x1]  ;;  %v9191_v24 = vld [vmem:[#allocation7 + $0x1e] sm:$0x1]  ;;  %v9189_v18 = vmax.f32 %v9185_v37, %v9187_v59 }
 0x647   :  { %v9151_v1 = vmax.f32 %v9147_v61, %v9149_v58  ;;  %v9193_v38 = vld [vmem:[#allocation7 + $0x1f] sm:$0x1]  ;;  %v13265_v14 = vld [vmem:[%s18451_s7 + $0x1e0] sm:$0xf]  ;;  %v14317_v48 = vld [vmem:[%s18451_s7 + $0x2cc] sm:$0xf0] }
 0x648   :  { %v9195_v15 = vmax.f32 %v9191_v24, %v9193_v38  ;;  %v13266_v2 = vor.u32 %v14289_v62, %v13265_v14  ;;  %v13377_v56 = vld [vmem:[%s18451_s7 + $0x2c0] sm:$0xf]  ;;  %v14345_v5 = vld [vmem:[%s18451_s7 + $0x3ac] sm:$0xf0] }
 0x649   :  { %v9153_v4 = vmax.f32 %v9144_v23, %v9151_v1  ;;  %v13505_v30 = vld [vmem:[%s18451_s7 + $0x3c0] sm:$0xf]  ;;  %v13378_v9 = vor.u32 %v14317_v48, %v13377_v56  ;;  %v14245_v37 = vld [vmem:[%s18451_s7 + $0x8c] sm:$0xf0] }
 0x64a   :  { %v9197_v51 = vmax.f32 %v9189_v18, %v9195_v15  ;;  %10030 = vmatpush.bf16.msra.mxu2 %v13266_v2  ;;  %v13506_v29 = vor.u32 %v14349_v8, %v13505_v30  ;;  %v13089_v21 = vld [vmem:[%s18451_s7 + $0x80] sm:$0xf]  ;;  %v14277_v59 = vld [vmem:[%s18451_s7 + $0x18c] sm:$0xf0] }
 0x64b   :  { %v17512_v17 = vld [vmem:[#allocation1] sm:$0xf]  ;;  %v9155_v55 = vpack.c.bf16 %v9153_v4, %v9153_v4  ;;  %10044 = vmatpush.bf16.msra.mxu3 %v13378_v9  ;;  %v13090_v61 = vor.u32 %v14245_v37, %v13089_v21  ;;  %v14309_v58 = vld [vmem:[%s18451_s7 + $0x28c] sm:$0xf0] }
 0x64c   :  { %9210 = vst [vmem:[#allocation1] ss:$4 sm:$0xff] %v9206_v31  ;;  %v9080_v46 = vld [vmem:[#allocation1 + $0x20] sm:$0xf]  ;;  %v17532_v42 = vpack.c.bf16 %v9197_v51, %v9197_v51  ;;  %v14237_v62 = vld [vmem:[%s18451_s7 + $0x4c] sm:$0xf0] }
 0x64d   :  { %v9083_v57 = vunpack.c.l.b16 %v9080_v46  ;;  %9124 = vst [vmem:[#allocation1 + $0x20] ss:$4 sm:$0xff] %v9119_v53  ;;  %v9159_v36 = vrot.slane %v9155_v55, 3  ;;  %v13521_v31 = vld [vmem:[%s18451_s7 + $0x3e0] sm:$0xf]  ;;  %v13106_v53 = vor.u32 %v14249_v12, %v13105_v50 }
 0x64e   :  { %v9203_v52 = vrot.slane %v17532_v42, 3  ;;  %v13522_v43 = vor.u32 %v14353_v22, %v13521_v31  ;;  %v14281_v46 = vld [vmem:[%s18451_s7 + $0x1ac] sm:$0xf0]  ;;  %10031 = vmatpush.bf16.msra.mxu2 %v13250_v63  ;;  %v13473_v24 = vld [vmem:[%s18451_s7 + $0x380] sm:$0xf] }
 0x64f   :  { %v9084_v45 = vrot.slane %v9083_v57, 7  ;;  %v9165_v16 = vsel %vm9068_vm1, %v9155_v55, %v9159_v36  ;;  %v13234_v57 = vor.u32 %v14281_v46, %v13233_v41  ;;  %10019 = vmatpush.bf16.msra.mxu1 %v13106_v53  ;;  %v13073_v38 = vld [vmem:[%s18451_s7 + $0x60] sm:$0xf]  ;;  %v14301_v2 = vld [vmem:[%s18451_s7 + $0x24c] sm:$0xf0] }
 0x650   :  { %10056 = vmatpush.bf16.msrb.mxu0 %v13522_v43  ;;  %v9209_v15 = vsel %vm9068_vm1, %v17532_v42, %v9203_v52  ;;  %v13329_v51 = vld [vmem:[%s18451_s7 + $0x260] sm:$0xf]  ;;  %v14333_v31 = vld [vmem:[%s18451_s7 + $0x34c] sm:$0xf0]  ;;  %v13058_v52 = vor.u32 %v14237_v62, %v13057_v7  ;;  %v14315_v7 = vld [vmem:[%s18451_s7 + $0x2c4] sm:$0xf] }
 0x651   :  { %v9086_v60 = vsel %vm9085_vm2, %v9084_v45, %v9082_v27  ;;  %v13361_v27 = vld [vmem:[%s18451_s7 + $0x2a0] sm:$0xf]  ;;  %v14313_v45 = vld [vmem:[%s18451_s7 + $0x2ac] sm:$0xf0]  ;;  %v13442_v56 = vor.u32 %v14333_v31, %v13441_v0  ;;  %v13379_v62 = vld [vmem:[%s18451_s7 + $0x2d0] sm:$0xf0] }
 0x652   :  { %v9087_v40 = vpack.c.b16 %v9086_v60, %v9086_v60  ;;  %v13489_v60 = vld [vmem:[%s18451_s7 + $0x3a0] sm:$0xf]  ;;  %10032 = vmatpush.bf16.msra.mxu2 %v13234_v57  ;;  %v14297_v63 = vld [vmem:[%s18451_s7 + $0x22c] sm:$0xf0]  ;;  %v14247_v0 = vld [vmem:[%s18451_s7 + $0xa4] sm:$0xf] }
 0x653   :  { %v13457_v55 = vld [vmem:[%s18451_s7 + $0x360] sm:$0xf]  ;;  %10020 = vmatpush.bf16.msra.mxu1 %v13090_v61  ;;  %v14329_v9 = vld [vmem:[%s18451_s7 + $0x32c] sm:$0xf0]  ;;  %v13107_v31 = vld [vmem:[%s18451_s7 + $0xb0] sm:$0xf0] }
 0x654   :  { %v9088_v26 = vrot.slane %v9087_v40, 3  ;;  %v9125_v44 = vld [vmem:[#allocation1 + $0x20] sm:$0xf]  ;;  %10057 = vmatpush.bf16.msrb.mxu0 %v13506_v29  ;;  %v13458_v47 = vor.u32 %v14337_v32, %v13457_v55  ;;  %v14229_v29 = vld [vmem:[%s18451_s7 + $0xc] sm:$0xf0] }
 0x655   :  { %v9128_v3 = vunpack.c.l.b16 %v9125_v44  ;;  %9170 = vst [vmem:[#allocation1 + $0x20] ss:$4 sm:$0xff] %v9165_v16  ;;  %v13217_v44 = vld [vmem:[%s18451_s7 + $0x180] sm:$0xf]  ;;  %v14325_v21 = vld [vmem:[%s18451_s7 + $0x30c] sm:$0xf0] }
 0x656   :  { %v9091_v19 = vsel %vm9068_vm1, %v9087_v40, %v9088_v26  ;;  %v13362_v40 = vor.u32 %v14313_v45, %v13361_v27  ;;  %v13490_v26 = vor.u32 %v14345_v5, %v13489_v60  ;;  %v13218_v23 = vor.u32 %v14277_v59, %v13217_v44  ;;  %v13313_v36 = vld [vmem:[%s18451_s7 + $0x240] sm:$0xf]  ;;  %v14261_v27 = vld [vmem:[%s18451_s7 + $0x10c] sm:$0xf0]  ;;  %v13139_v44 = vld [vmem:[%s18451_s7 + $0xf0] sm:$0xf0] }
 0x657   :  { %9093 = vst [vmem:[#allocation8] sm:$0x1] %v9091_v19  ;;  %v9129_v20 = vrot.slane %v9128_v3, 7  ;;  %v13345_v3 = vld [vmem:[%s18451_s7 + $0x280] sm:$0xf]  ;;  %v13314_v34 = vor.u32 %v14301_v2, %v13313_v36  ;;  %v13382_v2 = vor.u32 %v14315_v7, %v13379_v62 }
 0x658   :  { %v14341_v19 = vld [vmem:[%s18451_s7 + $0x38c] sm:$0xf0]  ;;  %10045 = vmatpush.bf16.msra.mxu3 %v13362_v40  ;;  %v13346_v1 = vor.u32 %v14309_v58, %v13345_v3  ;;  %10058 = vmatpush.bf16.msrb.mxu0 %v13490_v26  ;;  %v9211_v22 = vld [vmem:[#allocation1] sm:$0xf]  ;;  %v14255_v26 = vld [vmem:[%s18451_s7 + $0xe4] sm:$0xf] }
 0x659   :  { %v9130_v54 = vsel %vm9085_vm2, %v9129_v20, %v9127_v11  ;;  %v14241_v11 = vld [vmem:[%s18451_s7 + $0x6c] sm:$0xf0]  ;;  %v13201_v20 = vld [vmem:[%s18451_s7 + $0x160] sm:$0xf]  ;;  %v13474_v4 = vor.u32 %v14341_v19, %v13473_v24  ;;  %10033 = vmatpush.bf16.msra.mxu2 %v13218_v23  ;;  %v9217_v41 = vunpack.c.l.b16 %v9211_v22  ;;  %v14287_v59 = vld [vmem:[%s18451_s7 + $0x1e4] sm:$0xf] }
 0x65a   :  { %v9131_v13 = vpack.c.b16 %v9130_v54, %v9130_v54  ;;  %v14273_v54 = vld [vmem:[%s18451_s7 + $0x16c] sm:$0xf0]  ;;  %v13074_v39 = vor.u32 %v14241_v11, %v13073_v38  ;;  %v13041_v43 = vld [vmem:[%s18451_s7 + $0x20] sm:$0xf]  ;;  %v13267_v58 = vld [vmem:[%s18451_s7 + $0x1f0] sm:$0xf0] }
 0x65b   :  { %v13202_v14 = vor.u32 %v14273_v54, %v13201_v20  ;;  %v13169_v33 = vld [vmem:[%s18451_s7 + $0x120] sm:$0xf]  ;;  %v14293_v40 = vld [vmem:[%s18451_s7 + $0x20c] sm:$0xf0]  ;;  %v14319_v24 = vld [vmem:[%s18451_s7 + $0x2e4] sm:$0xf]  ;;  %v13270_v54 = vor.u32 %v14287_v59, %v13267_v58 }
 0x65c   :  { %v9132_v10 = vrot.slane %v9131_v13, 3  ;;  %v17633_v18 = vld [vmem:[#allocation1 + $0x20] sm:$0xf]  ;;  %10046 = vmatpush.bf16.msra.mxu3 %v13346_v1  ;;  %10059 = vmatpush.bf16.msrb.mxu0 %v13474_v4  ;;  %v13170_v53 = vor.u32 %v14265_v28, %v13169_v33  ;;  %v13395_v19 = vld [vmem:[%s18451_s7 + $0x2f0] sm:$0xf0]  ;;  %v13142_v4 = vor.u32 %v14255_v26, %v13139_v44  ;;  %v13110_v28 = vor.u32 %v14247_v0, %v13107_v31 }
 0x65d   :  { %9214 = vst [vmem:[#allocation1 + $0x20] ss:$4 sm:$0xff] %v9209_v15  ;;  %10021 = vmatpush.bf16.msra.mxu1 %v13074_v39  ;;  %10034 = vmatpush.bf16.msra.mxu2 %v13202_v14  ;;  %v13297_v16 = vld [vmem:[%s18451_s7 + $0x220] sm:$0xf]  ;;  %v14351_v38 = vld [vmem:[%s18451_s7 + $0x3e4] sm:$0xf] }
 0x65e   :  { %v9135_v25 = vsel %vm9068_vm1, %v9131_v13, %v9132_v10  ;;  %v14305_v13 = vld [vmem:[%s18451_s7 + $0x26c] sm:$0xf0]  ;;  %v13425_v30 = vld [vmem:[%s18451_s7 + $0x320] sm:$0xf]  ;;  %v13298_v57 = vor.u32 %v14297_v63, %v13297_v16  ;;  %v13523_v11 = vld [vmem:[%s18451_s7 + $0x3f0] sm:$0xf0] }
 0x65f   :  { %9137 = vst [vmem:[#allocation8 + $0x1] sm:$0x1] %v9135_v25  ;;  %v13330_v42 = vor.u32 %v14305_v13, %v13329_v51  ;;  %v14269_v10 = vld [vmem:[%s18451_s7 + $0x14c] sm:$0xf0]  ;;  %v13025_v50 = vld [vmem:[%s18451_s7] sm:$0xf]  ;;  %v13426_v60 = vor.u32 %v14329_v9, %v13425_v30  ;;  %v13398_v51 = vor.u32 %v14319_v24, %v13395_v19  ;;  %v13526_v14 = vor.u32 %v14351_v38, %v13523_v11 }
 0x660   :  { %v13186_v6 = vor.u32 %v14269_v10, %v13185_v49  ;;  %v14233_v25 = vld [vmem:[%s18451_s7 + $0x2c] sm:$0xf0]  ;;  %10060 = vmatpush.bf16.msrb.mxu0 %v13458_v47  ;;  %v13153_v12 = vld [vmem:[%s18451_s7 + $0x100] sm:$0xf]  ;;  %v13026_v61 = vor.u32 %v14229_v29, %v13025_v50  ;;  %v14251_v13 = vld [vmem:[%s18451_s7 + $0xc4] sm:$0xf]  ;;  %v9173_v19 = vunpack.c.l.b16 %v17512_v17 }
 0x661   :  { %10047 = vmatpush.bf16.msra.mxu3 %v13330_v42  ;;  %10022 = vmatpush.bf16.msra.mxu1 %v13058_v52  ;;  %v13042_v8 = vor.u32 %v14233_v25, %v13041_v43  ;;  %v13281_v45 = vld [vmem:[%s18451_s7 + $0x200] sm:$0xf]  ;;  %v13154_v23 = vor.u32 %v14261_v27, %v13153_v12  ;;  %v13123_v55 = vld [vmem:[%s18451_s7 + $0xd0] sm:$0xf0]  ;;  %v14283_v39 = vld [vmem:[%s18451_s7 + $0x1c4] sm:$0xf] }
 0x662   :  { %10035 = vmatpush.bf16.msra.mxu2 %v13186_v6  ;;  %v13409_v5 = vld [vmem:[%s18451_s7 + $0x300] sm:$0xf]  ;;  %v13282_v1 = vor.u32 %v14293_v40, %v13281_v45  ;;  %v13251_v42 = vld [vmem:[%s18451_s7 + $0x1d0] sm:$0xf0]  ;;  %v14347_v49 = vld [vmem:[%s18451_s7 + $0x3c4] sm:$0xf]  ;;  %v13126_v10 = vor.u32 %v14251_v13, %v13123_v55 }
 0x663   :  { %v13410_v15 = vor.u32 %v14325_v21, %v13409_v5  ;;  %v13507_v47 = vld [vmem:[%s18451_s7 + $0x3d0] sm:$0xf0]  ;;  %v13254_v36 = vor.u32 %v14283_v39, %v13251_v42  ;;  %v14279_v22 = vld [vmem:[%s18451_s7 + $0x1a4] sm:$0xf] }
 0x664   :  { %v9215_v35 = vld [vmem:[#allocation1 + $0x20] sm:$0xf]  ;;  %10061 = vmatpush.bf16.msrb.mxu0 %v13442_v56  ;;  %v13510_v52 = vor.u32 %v14347_v49, %v13507_v47  ;;  %v13235_v43 = vld [vmem:[%s18451_s7 + $0x1b0] sm:$0xf0]  ;;  %v14311_v6 = vld [vmem:[%s18451_s7 + $0x2a4] sm:$0xf] }
 0x665   :  { %v9218_v48 = vunpack.c.l.b16 %v9215_v35  ;;  %10048 = vmatpush.bf16.msra.mxu3 %v13314_v34  ;;  %10023 = vmatpush.bf16.msra.mxu1 %v13042_v8  ;;  %v13363_v34 = vld [vmem:[%s18451_s7 + $0x2b0] sm:$0xf0]  ;;  %v14343_v25 = vld [vmem:[%s18451_s7 + $0x3a4] sm:$0xf]  ;;  %v13238_v35 = vor.u32 %v14279_v22, %v13235_v43 }
 0x666   :  { %10036 = vmatpush.bf16.msra.mxu2 %v13170_v53  ;;  %v13491_v33 = vld [vmem:[%s18451_s7 + $0x3b0] sm:$0xf0]  ;;  %v13366_v56 = vor.u32 %v14311_v6, %v13363_v34  ;;  %v14243_v16 = vld [vmem:[%s18451_s7 + $0x84] sm:$0xf] }
 0x667   :  { %v9219_v46 = vrot.slane %v9218_v48, 7  ;;  %v13091_v63 = vld [vmem:[%s18451_s7 + $0x90] sm:$0xf0]  ;;  %v14275_v48 = vld [vmem:[%s18451_s7 + $0x184] sm:$0xf]  ;;  %v13494_v30 = vor.u32 %v14343_v25, %v13491_v33 }
 0x668   :  { %10062 = vmatpush.bf16.msrb.mxu0 %v13426_v60  ;;  %v13219_v9 = vld [vmem:[%s18451_s7 + $0x190] sm:$0xf0]  ;;  %v14307_v8 = vld [vmem:[%s18451_s7 + $0x284] sm:$0xf]  ;;  %v9174_v60 = vunpack.c.l.b16 %v17633_v18 }
 0x669   :  { %v9220_v37 = vsel %vm9085_vm2, %v9219_v46, %v9217_v41  ;;  %10049 = vmatpush.bf16.msra.mxu3 %v13298_v57  ;;  %10024 = vmatpush.bf16.msra.mxu1 %v13026_v61  ;;  %v13347_v50 = vld [vmem:[%s18451_s7 + $0x290] sm:$0xf0]  ;;  %v14339_v29 = vld [vmem:[%s18451_s7 + $0x384] sm:$0xf]  ;;  %v13094_v41 = vor.u32 %v14243_v16, %v13091_v63  ;;  %v13222_v46 = vor.u32 %v14275_v48, %v13219_v9 }
 0x66a   :  { %v9221_v3 = vpack.c.b16 %v9220_v37, %v9220_v37  ;;  %10037 = vmatpush.bf16.msra.mxu2 %v13154_v23  ;;  %v13475_v12 = vld [vmem:[%s18451_s7 + $0x390] sm:$0xf0]  ;;  %v13350_v53 = vor.u32 %v14307_v8, %v13347_v50  ;;  %v14239_v57 = vld [vmem:[%s18451_s7 + $0x64] sm:$0xf]  ;;  %v9175_v23 = vrot.slane %v9174_v60, 7 }
 0x66b   :  { %v13075_v27 = vld [vmem:[%s18451_s7 + $0x70] sm:$0xf0]  ;;  %v14271_v45 = vld [vmem:[%s18451_s7 + $0x164] sm:$0xf]  ;;  %v13478_v40 = vor.u32 %v14339_v29, %v13475_v12  ;;  %v13145_v8 = vld [vmem:[%s18451_s7 + $0xe8] sm:$0xf] }
 0x66c   :  { %v9222_v20 = vrot.slane %v9221_v3, 3  ;;  %10063 = vmatpush.bf16.msrb.mxu0 %v13410_v15  ;;  %v13203_v5 = vld [vmem:[%s18451_s7 + $0x170] sm:$0xf0]  ;;  %v14303_v21 = vld [vmem:[%s18451_s7 + $0x264] sm:$0xf]  ;;  %v13078_v44 = vor.u32 %v14239_v57, %v13075_v27 }
 0x66d   :  { %10050 = vmatpush.bf16.msra.mxu3 %v13282_v1  ;;  %10069 = vmatpush.bf16.msrb.mxu1 %v13142_v4  ;;  %v13331_v37 = vld [vmem:[%s18451_s7 + $0x270] sm:$0xf0]  ;;  %v14335_v26 = vld [vmem:[%s18451_s7 + $0x364] sm:$0xf]  ;;  %v9176_v4 = vsel %vm9085_vm2, %v9175_v23, %v9173_v19  ;;  %v14258_v50 = vld [vmem:[%s18451_s7 + $0xf4] sm:$0xf0] }
 0x66e   :  { %v9225_v32 = vsel %vm9068_vm1, %v9221_v3, %v9222_v20  ;;  %10082 = vmatpush.bf16.msrb.mxu2 %v13270_v54  ;;  %v13459_v18 = vld [vmem:[%s18451_s7 + $0x370] sm:$0xf0]  ;;  %v14235_v59 = vld [vmem:[%s18451_s7 + $0x44] sm:$0xf]  ;;  %v13206_v3 = vor.u32 %v14271_v45, %v13203_v5  ;;  %v13334_v61 = vor.u32 %v14303_v21, %v13331_v37  ;;  %v9177_v13 = vpack.c.b16 %v9176_v4, %v9176_v4  ;;  %v13273_v29 = vld [vmem:[%s18451_s7 + $0x1e8] sm:$0xf] }
 0x66f   :  { %9227 = vst [vmem:[#allocation8 + $0x3] sm:$0x1] %v9225_v32  ;;  %v13059_v58 = vld [vmem:[%s18451_s7 + $0x50] sm:$0xf0]  ;;  %v14267_v24 = vld [vmem:[%s18451_s7 + $0x144] sm:$0xf]  ;;  %v13462_v1 = vor.u32 %v14335_v26, %v13459_v18 }
 0x670   :  { %10108 = vmatpush.bf16.msra.mxu0 %v13526_v14  ;;  %v13187_v38 = vld [vmem:[%s18451_s7 + $0x150] sm:$0xf0]  ;;  %v14299_v11 = vld [vmem:[%s18451_s7 + $0x244] sm:$0xf]  ;;  %v13062_v54 = vor.u32 %v14235_v59, %v13059_v58  ;;  %v9178_v47 = vrot.slane %v9177_v13, 3 }
 0x671   :  { %10095 = vmatpush.bf16.msrb.mxu3 %v13398_v51  ;;  %10070 = vmatpush.bf16.msrb.mxu1 %v13126_v10  ;;  %v13315_v20 = vld [vmem:[%s18451_s7 + $0x250] sm:$0xf0]  ;;  %v14331_v15 = vld [vmem:[%s18451_s7 + $0x344] sm:$0xf]  ;;  %v13190_v55 = vor.u32 %v14267_v24, %v13187_v38  ;;  %v14290_v12 = vld [vmem:[%s18451_s7 + $0x1f4] sm:$0xf0] }
 0x672   :  { %10083 = vmatpush.bf16.msrb.mxu2 %v13254_v36  ;;  %v13443_v17 = vld [vmem:[%s18451_s7 + $0x350] sm:$0xf0]  ;;  %v14231_v51 = vld [vmem:[%s18451_s7 + $0x24] sm:$0xf]  ;;  %v13318_v39 = vor.u32 %v14299_v11, %v13315_v20  ;;  %v9181_v31 = vsel %vm9068_vm1, %v9177_v13, %v9178_v47  ;;  %v14354_v57 = vld [vmem:[%s18451_s7 + $0x3f4] sm:$0xf0]  ;;  %v13274_v5 = vor.u32 %v14290_v12, %v13273_v29 }
 0x673   :  { %v13043_v32 = vld [vmem:[%s18451_s7 + $0x30] sm:$0xf0]  ;;  %v14263_v14 = vld [vmem:[%s18451_s7 + $0x124] sm:$0xf]  ;;  %v13446_v7 = vor.u32 %v14331_v15, %v13443_v17  ;;  %9183 = vst [vmem:[#allocation8 + $0x2] sm:$0x1] %v9181_v31 }
 0x674   :  { %10109 = vmatpush.bf16.msra.mxu0 %v13510_v52  ;;  %v13171_v42 = vld [vmem:[%s18451_s7 + $0x130] sm:$0xf0]  ;;  %v14295_v62 = vld [vmem:[%s18451_s7 + $0x224] sm:$0xf]  ;;  %v13129_v27 = vld [vmem:[%s18451_s7 + $0xc8] sm:$0xf] }
 0x675   :  { %10096 = vmatpush.bf16.msrb.mxu3 %v13382_v2  ;;  %10071 = vmatpush.bf16.msrb.mxu1 %v13110_v28  ;;  %v13299_v49 = vld [vmem:[%s18451_s7 + $0x230] sm:$0xf0]  ;;  %v14327_v10 = vld [vmem:[%s18451_s7 + $0x324] sm:$0xf]  ;;  %v13046_v2 = vor.u32 %v14231_v51, %v13043_v32  ;;  %v13174_v22 = vor.u32 %v14263_v14, %v13171_v42  ;;  %v14254_v45 = vld [vmem:[%s18451_s7 + $0xd4] sm:$0xf0] }
 0x676   :  { %10084 = vmatpush.bf16.msrb.mxu2 %v13238_v35  ;;  %v13427_v36 = vld [vmem:[%s18451_s7 + $0x330] sm:$0xf0]  ;;  %v14227_v0 = vld [vmem:[%s18451_s7 + $0x4] sm:$0xf]  ;;  %v13302_v52 = vor.u32 %v14295_v62, %v13299_v49  ;;  %v13257_v60 = vld [vmem:[%s18451_s7 + $0x1c8] sm:$0xf]  ;;  %v13130_v23 = vor.u32 %v14254_v45, %v13129_v27 }
 0x677   :  { %v13027_v43 = vld [vmem:[%s18451_s7 + $0x10] sm:$0xf0]  ;;  %v14259_v6 = vld [vmem:[%s18451_s7 + $0x104] sm:$0xf]  ;;  %v13430_v34 = vor.u32 %v14327_v10, %v13427_v36  ;;  %v14286_v21 = vld [vmem:[%s18451_s7 + $0x1d4] sm:$0xf0] }
 0x678   :  { %10110 = vmatpush.bf16.msra.mxu0 %v13494_v30  ;;  %v13155_v25 = vld [vmem:[%s18451_s7 + $0x110] sm:$0xf0]  ;;  %v14291_v33 = vld [vmem:[%s18451_s7 + $0x204] sm:$0xf]  ;;  %v13030_v16 = vor.u32 %v14227_v0, %v13027_v43  ;;  %v13385_v37 = vld [vmem:[%s18451_s7 + $0x2c8] sm:$0xf] }
 0x679   :  { %10097 = vmatpush.bf16.msrb.mxu3 %v13366_v56  ;;  %10072 = vmatpush.bf16.msrb.mxu1 %v13094_v41  ;;  %v13283_v28 = vld [vmem:[%s18451_s7 + $0x210] sm:$0xf0]  ;;  %v14323_v35 = vld [vmem:[%s18451_s7 + $0x304] sm:$0xf]  ;;  %v13158_v63 = vor.u32 %v14259_v6, %v13155_v25  ;;  %v13401_v41 = vld [vmem:[%s18451_s7 + $0x2e8] sm:$0xf] }
 0x67a   :  { %10085 = vmatpush.bf16.msrb.mxu2 %v13222_v46  ;;  %v13411_v56 = vld [vmem:[%s18451_s7 + $0x310] sm:$0xf0]  ;;  %v13286_v48 = vor.u32 %v14291_v33, %v13283_v28  ;;  %v9228_v9 = vld [vmem:[#allocation8] sm:$0xf]  ;;  %v13513_v24 = vld [vmem:[%s18451_s7 + $0x3c8] sm:$0xf] }
 0x67b   :  { %v13414_v30 = vor.u32 %v14323_v35, %v13411_v56  ;;  %9368 = vst [vmem:[#allocation1] ss:$9 sm:$0xff] %v9228_v9  ;;  %v14322_v46 = vld [vmem:[%s18451_s7 + $0x2f4] sm:$0xf0]  ;;  %v13113_v38 = vld [vmem:[%s18451_s7 + $0xa8] sm:$0xf] }
 0x67c   :  { %10111 = vmatpush.bf16.msra.mxu0 %v13478_v40  ;;  %v13146_v40 = vor.u32 %v14258_v50, %v13145_v8  ;;  %v14318_v26 = vld [vmem:[%s18451_s7 + $0x2d4] sm:$0xf0]  ;;  %v13241_v17 = vld [vmem:[%s18451_s7 + $0x1a8] sm:$0xf] }
 0x67d   :  { %10098 = vmatpush.bf16.msrb.mxu3 %v13350_v53  ;;  %10073 = vmatpush.bf16.msrb.mxu1 %v13078_v44  ;;  %v13529_v53 = vld [vmem:[%s18451_s7 + $0x3e8] sm:$0xf]  ;;  %v14350_v19 = vld [vmem:[%s18451_s7 + $0x3d4] sm:$0xf0]  ;;  %v13386_v20 = vor.u32 %v14318_v26, %v13385_v37 }
 0x67e   :  { %10086 = vmatpush.bf16.msrb.mxu2 %v13206_v3  ;;  %v13402_v3 = vor.u32 %v14322_v46, %v13401_v41  ;;  %v14250_v11 = vld [vmem:[%s18451_s7 + $0xb4] sm:$0xf0]  ;;  %v13514_v15 = vor.u32 %v14350_v19, %v13513_v24  ;;  %v13497_v13 = vld [vmem:[%s18451_s7 + $0x3a8] sm:$0xf] }
 0x67f   :  { %v14282_v4 = vld [vmem:[%s18451_s7 + $0x1b4] sm:$0xf0]  ;;  %v13097_v14 = vld [vmem:[%s18451_s7 + $0x88] sm:$0xf] }
 0x680   :  { %10112 = vmatpush.bf16.msra.mxu0 %v13462_v1  ;;  %v13258_v1 = vor.u32 %v14286_v21, %v13257_v60  ;;  %v14314_v51 = vld [vmem:[%s18451_s7 + $0x2b4] sm:$0xf0]  ;;  %v13242_v32 = vor.u32 %v14282_v4, %v13241_v17  ;;  %v13225_v49 = vld [vmem:[%s18451_s7 + $0x188] sm:$0xf] }
 0x681   :  { %10099 = vmatpush.bf16.msrb.mxu3 %v13334_v61  ;;  %10074 = vmatpush.bf16.msrb.mxu1 %v13062_v54  ;;  %v13530_v61 = vor.u32 %v14354_v57, %v13529_v53  ;;  %v13369_v54 = vld [vmem:[%s18451_s7 + $0x2a8] sm:$0xf]  ;;  %v14246_v42 = vld [vmem:[%s18451_s7 + $0x94] sm:$0xf0] }
 0x682   :  { %10087 = vmatpush.bf16.msrb.mxu2 %v13190_v55  ;;  %v17964_v18 = vld [vmem:[#allocation1] sm:$0xff]  ;;  %v17966_v44 = vld [vmem:[#allocation1 + $0x9] sm:$0xff]  ;;  %v17968_v59 = vld [vmem:[#allocation1 + $0x12] sm:$0xff]  ;;  %v13098_v31 = vor.u32 %v14246_v42, %v13097_v14 }
 0x683   :  { %10025 = vmatmul.bf16.vlgmr.msra.gmra.mxu1 %v17964_v18  ;;  %10038 = vmatmul.bf16.vlgmr.msra.gmra.mxu2 %v17966_v44  ;;  %v17972_v58 = vld [vmem:[#allocation1 + $0x1b] sm:$0xff]  ;;  %v13353_v10 = vld [vmem:[%s18451_s7 + $0x288] sm:$0xf]  ;;  %v14288_v14 = vld [vmem:[%s18451_s7 + $0x1ec] sm:$0xf] }
 0x684   :  { %10113 = vmatpush.bf16.msra.mxu0 %v13446_v7  ;;  %10051 = vmatmul.bf16.vlgmr.msra.gmra.mxu3 %v17968_v59  ;;  %v14346_v55 = vld [vmem:[%s18451_s7 + $0x3b4] sm:$0xf0]  ;;  %v13370_v7 = vor.u32 %v14314_v51, %v13369_v54  ;;  %v13209_v25 = vld [vmem:[%s18451_s7 + $0x168] sm:$0xf]  ;;  %v13275_v42 = vld [vmem:[%s18451_s7 + $0x1f8] sm:$0xf0] }
 0x685   :  { %10100 = vmatpush.bf16.msrb.mxu3 %v13318_v39  ;;  %10075 = vmatpush.bf16.msrb.mxu1 %v13046_v2  ;;  %v13114_v39 = vor.u32 %v14250_v11, %v13113_v38  ;;  %v13498_v62 = vor.u32 %v14346_v55, %v13497_v13  ;;  %v14278_v47 = vld [vmem:[%s18451_s7 + $0x194] sm:$0xf0]  ;;  %v13481_v2 = vld [vmem:[%s18451_s7 + $0x388] sm:$0xf] }
 0x686   :  { %10088 = vmatpush.bf16.msrb.mxu2 %v13174_v22  ;;  %10064 = vmatmul.bf16.vlgmr.msrb.gmra.mxu0 %v17972_v58  ;;  %v14310_v36 = vld [vmem:[%s18451_s7 + $0x294] sm:$0xf0]  ;;  %v13226_v22 = vor.u32 %v14278_v47, %v13225_v49  ;;  %v13337_v28 = vld [vmem:[%s18451_s7 + $0x268] sm:$0xf]  ;;  %v13403_v47 = vld [vmem:[%s18451_s7 + $0x2f8] sm:$0xf0] }
 0x687   :  { %v14342_v0 = vld [vmem:[%s18451_s7 + $0x394] sm:$0xf0]  ;;  %v13354_v6 = vor.u32 %v14310_v36, %v13353_v10  ;;  %v13465_v56 = vld [vmem:[%s18451_s7 + $0x368] sm:$0xf]  ;;  %v14352_v10 = vld [vmem:[%s18451_s7 + $0x3ec] sm:$0xf] }
 0x688   :  { %10114 = vmatpush.bf16.msra.mxu0 %v13430_v34  ;;  %v14242_v43 = vld [vmem:[%s18451_s7 + $0x74] sm:$0xf0]  ;;  %v13482_v34 = vor.u32 %v14342_v0, %v13481_v2  ;;  %v13193_v29 = vld [vmem:[%s18451_s7 + $0x148] sm:$0xf]  ;;  %v13531_v36 = vld [vmem:[%s18451_s7 + $0x3f8] sm:$0xf0] }
 0x689   :  { %10101 = vmatpush.bf16.msrb.mxu3 %v13302_v52  ;;  %10076 = vmatpush.bf16.msrb.mxu1 %v13030_v16  ;;  %v13081_v52 = vld [vmem:[%s18451_s7 + $0x68] sm:$0xf]  ;;  %v14274_v33 = vld [vmem:[%s18451_s7 + $0x174] sm:$0xf0] }
 0x68a   :  { %10089 = vmatpush.bf16.msrb.mxu2 %v13158_v63  ;;  %v14306_v35 = vld [vmem:[%s18451_s7 + $0x274] sm:$0xf0]  ;;  %v13082_v63 = vor.u32 %v14242_v43, %v13081_v52  ;;  %v13321_v41 = vld [vmem:[%s18451_s7 + $0x248] sm:$0xf]  ;;  %v14252_v52 = vld [vmem:[%s18451_s7 + $0xcc] sm:$0xf] }
 0x68b   :  { %v14338_v16 = vld [vmem:[%s18451_s7 + $0x374] sm:$0xf0]  ;;  %v13338_v8 = vor.u32 %v14306_v35, %v13337_v28  ;;  %v13449_v53 = vld [vmem:[%s18451_s7 + $0x348] sm:$0xf]  ;;  %v13131_v43 = vld [vmem:[%s18451_s7 + $0xd8] sm:$0xf0] }
 0x68c   :  { %10115 = vmatpush.bf16.msra.mxu0 %v13414_v30  ;;  %v13065_v30 = vld [vmem:[%s18451_s7 + $0x48] sm:$0xf]  ;;  %v14238_v9 = vld [vmem:[%s18451_s7 + $0x54] sm:$0xf0]  ;;  %v13466_v50 = vor.u32 %v14338_v16, %v13465_v56  ;;  %v14316_v28 = vld [vmem:[%s18451_s7 + $0x2cc] sm:$0xf] }
 0x68d   :  { %10102 = vmatpush.bf16.msrb.mxu3 %v13286_v48  ;;  %10121 = vmatpush.bf16.msra.mxu1 %v13146_v40  ;;  %v13210_v48 = vor.u32 %v14274_v33, %v13209_v25  ;;  %v14270_v12 = vld [vmem:[%s18451_s7 + $0x154] sm:$0xf0]  ;;  %v13066_v27 = vor.u32 %v14238_v9, %v13065_v30  ;;  %v13049_v60 = vld [vmem:[%s18451_s7 + $0x28] sm:$0xf]  ;;  %v14284_v25 = vld [vmem:[%s18451_s7 + $0x1cc] sm:$0xf] }
 0x68e   :  { %10134 = vmatpush.bf16.msra.mxu2 %v13274_v5  ;;  %v14302_v46 = vld [vmem:[%s18451_s7 + $0x254] sm:$0xf0]  ;;  %v13194_v45 = vor.u32 %v14270_v12, %v13193_v29  ;;  %v13177_v37 = vld [vmem:[%s18451_s7 + $0x128] sm:$0xf]  ;;  %v13259_v33 = vld [vmem:[%s18451_s7 + $0x1d8] sm:$0xf0] }
 0x68f   :  { %v14334_v57 = vld [vmem:[%s18451_s7 + $0x354] sm:$0xf0]  ;;  %v13322_v5 = vor.u32 %v14302_v46, %v13321_v41  ;;  %v13433_v24 = vld [vmem:[%s18451_s7 + $0x328] sm:$0xf]  ;;  %v13387_v35 = vld [vmem:[%s18451_s7 + $0x2d8] sm:$0xf0] }
 0x690   :  { %10160 = vmatpush.bf16.msrb.mxu0 %v13530_v61  ;;  %v14234_v40 = vld [vmem:[%s18451_s7 + $0x34] sm:$0xf0]  ;;  %v13450_v21 = vor.u32 %v14334_v57, %v13449_v53  ;;  %v13289_v54 = vld [vmem:[%s18451_s7 + $0x208] sm:$0xf]  ;;  %v14348_v56 = vld [vmem:[%s18451_s7 + $0x3cc] sm:$0xf] }
 0x691   :  { %10147 = vmatpush.bf16.msra.mxu3 %v13402_v3  ;;  %10122 = vmatpush.bf16.msra.mxu1 %v13130_v23  ;;  %v14266_v26 = vld [vmem:[%s18451_s7 + $0x134] sm:$0xf0]  ;;  %v13305_v3 = vld [vmem:[%s18451_s7 + $0x228] sm:$0xf]  ;;  %v13515_v16 = vld [vmem:[%s18451_s7 + $0x3d8] sm:$0xf0] }
 0x692   :  { %10135 = vmatpush.bf16.msra.mxu2 %v13258_v1  ;;  %v14298_v61 = vld [vmem:[%s18451_s7 + $0x234] sm:$0xf0]  ;;  %v13033_v23 = vld [vmem:[%s18451_s7 + $0x8] sm:$0xf]  ;;  %v13050_v1 = vor.u32 %v14234_v40, %v13049_v60  ;;  %v13178_v38 = vor.u32 %v14266_v26, %v13177_v37  ;;  %v14248_v30 = vld [vmem:[%s18451_s7 + $0xac] sm:$0xf] }
 0x693   :  { %10077 = vmatmul.bf16.vlgmr.msrb.gmra.mxu1 %v17964_v18  ;;  %10090 = vmatmul.bf16.vlgmr.msrb.gmra.mxu2 %v17966_v44  ;;  %v14330_v19 = vld [vmem:[%s18451_s7 + $0x334] sm:$0xf0]  ;;  %v13306_v17 = vor.u32 %v14298_v61, %v13305_v3  ;;  %v13417_v13 = vld [vmem:[%s18451_s7 + $0x308] sm:$0xf]  ;;  %v13115_v9 = vld [vmem:[%s18451_s7 + $0xb8] sm:$0xf0] }
 0x694   :  { %10161 = vmatpush.bf16.msrb.mxu0 %v13514_v15  ;;  %10103 = vmatmul.bf16.vlgmr.msrb.gmra.mxu3 %v17968_v59  ;;  %v14230_v11 = vld [vmem:[%s18451_s7 + $0x14] sm:$0xf0]  ;;  %v13434_v4 = vor.u32 %v14330_v19, %v13433_v24  ;;  %v14280_v29 = vld [vmem:[%s18451_s7 + $0x1ac] sm:$0xf]  ;;  %v13243_v12 = vld [vmem:[%s18451_s7 + $0x1b8] sm:$0xf0] }
 0x695   :  { %10148 = vmatpush.bf16.msra.mxu3 %v13386_v20  ;;  %10123 = vmatpush.bf16.msra.mxu1 %v13114_v39  ;;  %v13161_v20 = vld [vmem:[%s18451_s7 + $0x108] sm:$0xf]  ;;  %v14262_v15 = vld [vmem:[%s18451_s7 + $0x114] sm:$0xf0]  ;;  %v14256_v39 = vld [vmem:[%s18451_s7 + $0xec] sm:$0xf] }
 0x696   :  { %10136 = vmatpush.bf16.msra.mxu2 %v13242_v32  ;;  %10116 = vmatmul.bf16.vlgmr.msra.gmra.mxu0 %v17972_v58  ;;  %v14294_v51 = vld [vmem:[%s18451_s7 + $0x214] sm:$0xf0]  ;;  %v13147_v32 = vld [vmem:[%s18451_s7 + $0xf8] sm:$0xf0]  ;;  %v13162_v49 = vor.u32 %v14262_v15, %v13161_v20  ;;  %v14312_v41 = vld [vmem:[%s18451_s7 + $0x2ac] sm:$0xf] }
 0x697   :  { %v14326_v55 = vld [vmem:[%s18451_s7 + $0x314] sm:$0xf0]  ;;  %v13290_v2 = vor.u32 %v14294_v51, %v13289_v54  ;;  %v13371_v46 = vld [vmem:[%s18451_s7 + $0x2b8] sm:$0xf0]  ;;  %v14344_v53 = vld [vmem:[%s18451_s7 + $0x3ac] sm:$0xf] }
 0x698   :  { %10162 = vmatpush.bf16.msrb.mxu0 %v13498_v62  ;;  %v13034_v62 = vor.u32 %v14230_v11, %v13033_v23  ;;  %v13418_v0 = vor.u32 %v14326_v55, %v13417_v13  ;;  %v13499_v57 = vld [vmem:[%s18451_s7 + $0x3b8] sm:$0xf0]  ;;  %v14244_v60 = vld [vmem:[%s18451_s7 + $0x8c] sm:$0xf] }
 0x699   :  { %10149 = vmatpush.bf16.msra.mxu3 %v13370_v7  ;;  %10124 = vmatpush.bf16.msra.mxu1 %v13098_v31  ;;  %v14320_v7 = vld [vmem:[%s18451_s7 + $0x2ec] sm:$0xf]  ;;  %v13150_v31 = vor.u32 %v14256_v39, %v13147_v32  ;;  %v13099_v40 = vld [vmem:[%s18451_s7 + $0x98] sm:$0xf0] }
 0x69a   :  { %10137 = vmatpush.bf16.msra.mxu2 %v13226_v22  ;;  %v13278_v22 = vor.u32 %v14288_v14, %v13275_v42  ;;  %v14276_v37 = vld [vmem:[%s18451_s7 + $0x18c] sm:$0xf]  ;;  %v13227_v26 = vld [vmem:[%s18451_s7 + $0x198] sm:$0xf0]  ;;  %v13102_v23 = vor.u32 %v14244_v60, %v13099_v40 }
 0x69b   :  { %v14308_v3 = vld [vmem:[%s18451_s7 + $0x28c] sm:$0xf]  ;;  %v13355_v61 = vld [vmem:[%s18451_s7 + $0x298] sm:$0xf0] }
 0x69c   :  { %10163 = vmatpush.bf16.msrb.mxu0 %v13482_v34  ;;  %v13534_v34 = vor.u32 %v14352_v10, %v13531_v36  ;;  %v14340_v24 = vld [vmem:[%s18451_s7 + $0x38c] sm:$0xf]  ;;  %v13483_v19 = vld [vmem:[%s18451_s7 + $0x398] sm:$0xf0]  ;;  %v13358_v20 = vor.u32 %v14308_v3, %v13355_v61 }
 0x69d   :  { %10150 = vmatpush.bf16.msra.mxu3 %v13354_v6  ;;  %10125 = vmatpush.bf16.msra.mxu1 %v13082_v63  ;;  %v13406_v6 = vor.u32 %v14320_v7, %v13403_v47  ;;  %v13134_v63 = vor.u32 %v14252_v52, %v13131_v43  ;;  %v13083_v11 = vld [vmem:[%s18451_s7 + $0x78] sm:$0xf0]  ;;  %v13486_v15 = vor.u32 %v14340_v24, %v13483_v19  ;;  %v14304_v54 = vld [vmem:[%s18451_s7 + $0x26c] sm:$0xf]  ;;  %v14355_v19 = vld [vmem:[%s18453_s9] sm:$0xff] }
 0x69e   :  { %10138 = vmatpush.bf16.msra.mxu2 %v13210_v48  ;;  %v13262_v48 = vor.u32 %v14284_v25, %v13259_v33  ;;  %v13339_v51 = vld [vmem:[%s18451_s7 + $0x278] sm:$0xf0]  ;;  %v14336_v13 = vld [vmem:[%s18451_s7 + $0x36c] sm:$0xf] }
 0x69f   :  { %v13467_v55 = vld [vmem:[%s18451_s7 + $0x378] sm:$0xf0]  ;;  %v14236_v14 = vld [vmem:[%s18451_s7 + $0x4c] sm:$0xf]  ;;  %v13342_v7 = vor.u32 %v14304_v54, %v13339_v51 }
 0x6a0   :  { %10164 = vmatpush.bf16.msrb.mxu0 %v13466_v50  ;;  %v13518_v50 = vor.u32 %v14348_v56, %v13515_v16  ;;  %v13067_v42 = vld [vmem:[%s18451_s7 + $0x58] sm:$0xf0]  ;;  %v14300_v10 = vld [vmem:[%s18451_s7 + $0x24c] sm:$0xf] }
 0x6a1   :  { %10151 = vmatpush.bf16.msra.mxu3 %v13338_v8  ;;  %10126 = vmatpush.bf16.msra.mxu1 %v13066_v27  ;;  %v13390_v8 = vor.u32 %v14316_v28, %v13387_v35  ;;  %v13118_v27 = vor.u32 %v14248_v30, %v13115_v9  ;;  %v13195_v47 = vld [vmem:[%s18451_s7 + $0x158] sm:$0xf0]  ;;  %v14232_v52 = vld [vmem:[%s18451_s7 + $0x2c] sm:$0xf] }
 0x6a2   :  { %10139 = vmatpush.bf16.msra.mxu2 %v13194_v45  ;;  %v13246_v45 = vor.u32 %v14280_v29, %v13243_v12  ;;  %v13323_v36 = vld [vmem:[%s18451_s7 + $0x258] sm:$0xf0]  ;;  %v14264_v25 = vld [vmem:[%s18451_s7 + $0x12c] sm:$0xf] }
 0x6a3   :  { %v13051_v43 = vld [vmem:[%s18451_s7 + $0x38] sm:$0xf0]  ;;  %v14296_v28 = vld [vmem:[%s18451_s7 + $0x22c] sm:$0xf] }
 0x6a4   :  { %10165 = vmatpush.bf16.msrb.mxu0 %v13450_v21  ;;  %v13502_v21 = vor.u32 %v14344_v53, %v13499_v57  ;;  %v13179_v33 = vld [vmem:[%s18451_s7 + $0x138] sm:$0xf0]  ;;  %v14328_v56 = vld [vmem:[%s18451_s7 + $0x32c] sm:$0xf] }
 0x6a5   :  { %10152 = vmatpush.bf16.msra.mxu3 %v13322_v5  ;;  %10127 = vmatpush.bf16.msra.mxu1 %v13050_v1  ;;  %v13374_v5 = vor.u32 %v14312_v41, %v13371_v46  ;;  %v13230_v1 = vor.u32 %v14276_v37, %v13227_v26  ;;  %v13307_v35 = vld [vmem:[%s18451_s7 + $0x238] sm:$0xf0]  ;;  %v14228_v30 = vld [vmem:[%s18451_s7 + $0xc] sm:$0xf]  ;;  %v14359_v26 = vld [vmem:[%s18453_s9 + $0x20] sm:$0xff] }
 0x6a6   :  { %10140 = vmatpush.bf16.msra.mxu2 %v13178_v38  ;;  %v14240_v38 = vld [vmem:[%s18451_s7 + $0x6c] sm:$0xf]  ;;  %v13435_v16 = vld [vmem:[%s18451_s7 + $0x338] sm:$0xf0] }
 0x6a7   :  { %v13086_v39 = vor.u32 %v14240_v38, %v13083_v11  ;;  %v13035_v9 = vld [vmem:[%s18451_s7 + $0x18] sm:$0xf0]  ;;  %v14260_v29 = vld [vmem:[%s18451_s7 + $0x10c] sm:$0xf]  ;;  %v18375_v38 = vld [vmem:[%s18452_s8] sm:$0xf] }
 0x6a8   :  { %10166 = vmatpush.bf16.msrb.mxu0 %v13434_v4  ;;  %v13211_v4 = vld [vmem:[%s18451_s7 + $0x178] sm:$0xf0]  ;;  %v14292_v41 = vld [vmem:[%s18451_s7 + $0x20c] sm:$0xf]  ;;  %v14365_v11 = vld [vmem:[%s18453_s9 + $0x50] sm:$0xff] }
 0x6a9   :  { %10153 = vmatpush.bf16.msra.mxu3 %v13306_v17  ;;  %10128 = vmatpush.bf16.msra.mxu1 %v13034_v62  ;;  %v14272_v17 = vld [vmem:[%s18451_s7 + $0x16c] sm:$0xf]  ;;  %v13470_v62 = vor.u32 %v14336_v13, %v13467_v55  ;;  %v13163_v12 = vld [vmem:[%s18451_s7 + $0x118] sm:$0xf0]  ;;  %v14363_v55 = vld [vmem:[%s18453_s9 + $0x40] sm:$0xff] }
 0x6aa   :  { %10141 = vmatpush.bf16.msra.mxu2 %v13162_v49  ;;  %v13214_v32 = vor.u32 %v14272_v17, %v13211_v4  ;;  %v14268_v49 = vld [vmem:[%s18451_s7 + $0x14c] sm:$0xf]  ;;  %v13291_v46 = vld [vmem:[%s18451_s7 + $0x218] sm:$0xf0]  ;;  %v9359_v17 = vperm.slane %v18375_v38, 0 }
 0x6ab   :  { %v14324_v53 = vld [vmem:[%s18451_s7 + $0x30c] sm:$0xf]  ;;  %v13419_v57 = vld [vmem:[%s18451_s7 + $0x318] sm:$0xf0]  ;;  %v13294_v60 = vor.u32 %v14292_v41, %v13291_v46 }
 0x6ac   :  { %10167 = vmatpush.bf16.msrb.mxu0 %v13418_v0  ;;  %10129 = vmatmul.bf16.vlgmr.msra.gmra.mxu1 %v17964_v18  ;;  %v13451_v0 = vld [vmem:[%s18451_s7 + $0x358] sm:$0xf0]  ;;  %v13422_v40 = vor.u32 %v14324_v53, %v13419_v57  ;;  %v14360_v37 = vld [vmem:[%s18453_s9 + $0x28] sm:$0xff] }
 0x6ad   :  { %10154 = vmatpush.bf16.msra.mxu3 %v13290_v2  ;;  %10173 = vmatpush.bf16.msrb.mxu1 %v13150_v31  ;;  %v14332_v2 = vld [vmem:[%s18451_s7 + $0x34c] sm:$0xf]  ;;  %v13070_v31 = vor.u32 %v14236_v14, %v13067_v42  ;;  %v14378_v24 = vld [vmem:[%s18453_s9 + $0xb8] sm:$0xff] }
 0x6ae   :  { %10186 = vmatpush.bf16.msrb.mxu2 %v13278_v22  ;;  %v13198_v22 = vor.u32 %v14268_v49, %v13195_v47  ;;  %v14356_v3 = vld [vmem:[%s18453_s9 + $0x8] sm:$0xff]  ;;  %v14374_v47 = vld [vmem:[%s18453_s9 + $0x98] sm:$0xff] }
 0x6af   :  { %10142 = vmatmul.bf16.vlgmr.msra.gmra.mxu2 %v17966_v44  ;;  %10168 = vmatmul.bf16.vlgmr.msrb.gmra.mxu0 %v17972_v58  ;;  %v14368_v61 = vld [vmem:[%s18453_s9 + $0x68] sm:$0xff]  ;;  %v14382_v57 = vld [vmem:[%s18453_s9 + $0xd8] sm:$0xff] }
 0x6b0   :  { %10212 = vmatpush.bf16.msra.mxu0 %v13534_v34  ;;  %10155 = vmatmul.bf16.vlgmr.msra.gmra.mxu3 %v17968_v59  ;;  %v13454_v34 = vor.u32 %v14332_v2, %v13451_v0  ;;  %v14364_v54 = vld [vmem:[%s18453_s9 + $0x48] sm:$0xff] }
 0x6b1   :  { %10199 = vmatpush.bf16.msrb.mxu3 %v13406_v6  ;;  %10174 = vmatpush.bf16.msrb.mxu1 %v13134_v63  ;;  %v13326_v6 = vor.u32 %v14300_v10, %v13323_v36  ;;  %v13054_v63 = vor.u32 %v14232_v52, %v13051_v43  ;;  %v14376_v51 = vld [vmem:[%s18453_s9 + $0xa8] sm:$0xff]  ;;  %v9360_v52 = vperm.slane %v18375_v38, 1 }
 0x6b2   :  { %10187 = vmatpush.bf16.msrb.mxu2 %v13262_v48  ;;  %v13182_v48 = vor.u32 %v14264_v25, %v13179_v33  ;;  %v14372_v25 = vld [vmem:[%s18453_s9 + $0x88] sm:$0xff]  ;;  %v14385_v33 = vld [vmem:[%s18453_s9 + $0xf0] sm:$0xff] }
 0x6b4   :  { %10213 = vmatpush.bf16.msra.mxu0 %v13518_v50  ;;  %v13438_v50 = vor.u32 %v14328_v56, %v13435_v16 }
 0x6b5   :  { %10200 = vmatpush.bf16.msrb.mxu3 %v13390_v8  ;;  %10175 = vmatpush.bf16.msrb.mxu1 %v13118_v27  ;;  %v13310_v8 = vor.u32 %v14296_v28, %v13307_v35  ;;  %v13038_v27 = vor.u32 %v14228_v30, %v13035_v9  ;;  %v14384_v30 = vld [vmem:[%s18453_s9 + $0xe8] sm:$0xff] }
 0x6b6   :  { %10188 = vmatpush.bf16.msrb.mxu2 %v13246_v45  ;;  %v13166_v45 = vor.u32 %v14260_v29, %v13163_v12  ;;  %v14383_v29 = vld [vmem:[%s18453_s9 + $0xe0] sm:$0xff] }
 0x6b8   :  { %10214 = vmatpush.bf16.msra.mxu0 %v13502_v21  ;;  %v14361_v21 = vld [vmem:[%s18453_s9 + $0x30] sm:$0xff] }
 0x6b9   :  { %10201 = vmatpush.bf16.msrb.mxu3 %v13374_v5  ;;  %10176 = vmatpush.bf16.msrb.mxu1 %v13102_v23  ;;  %v14362_v5 = vld [vmem:[%s18453_s9 + $0x38] sm:$0xff]  ;;  %v14367_v23 = vld [vmem:[%s18453_s9 + $0x60] sm:$0xff] }
 0x6ba   :  { %10189 = vmatpush.bf16.msrb.mxu2 %v13230_v1  ;;  %v14366_v1 = vld [vmem:[%s18453_s9 + $0x58] sm:$0xff] }
 0x6bc   :  { %10215 = vmatpush.bf16.msra.mxu0 %v13486_v15 }
 0x6bd   :  { %10202 = vmatpush.bf16.msrb.mxu3 %v13358_v20  ;;  %10177 = vmatpush.bf16.msrb.mxu1 %v13086_v39  ;;  %v14377_v20 = vld [vmem:[%s18453_s9 + $0xb0] sm:$0xff]  ;;  %v14375_v39 = vld [vmem:[%s18453_s9 + $0xa0] sm:$0xff] }
 0x6be   :  { %10190 = vmatpush.bf16.msrb.mxu2 %v13214_v32 }
 0x6c0   :  { %10216 = vmatpush.bf16.msra.mxu0 %v13470_v62 }
 0x6c1   :  { %10203 = vmatpush.bf16.msrb.mxu3 %v13342_v7  ;;  %10178 = vmatpush.bf16.msrb.mxu1 %v13070_v31 }
 0x6c2   :  { %10191 = vmatpush.bf16.msrb.mxu2 %v13198_v22 }
 0x6c4   :  { %10217 = vmatpush.bf16.msra.mxu0 %v13454_v34  ;;  %v14386_v34 = vld [vmem:[%s18453_s9 + $0xf8] sm:$0xff] }
 0x6c5   :  { %10204 = vmatpush.bf16.msrb.mxu3 %v13326_v6  ;;  %10179 = vmatpush.bf16.msrb.mxu1 %v13054_v63  ;;  %v14373_v6 = vld [vmem:[%s18453_s9 + $0x90] sm:$0xff]  ;;  %v14371_v63 = vld [vmem:[%s18453_s9 + $0x80] sm:$0xff] }
 0x6c6   :  { %10192 = vmatpush.bf16.msrb.mxu2 %v13182_v48 }
 0x6c8   :  { %10218 = vmatpush.bf16.msra.mxu0 %v13438_v50 }
 0x6c9   :  { %10205 = vmatpush.bf16.msrb.mxu3 %v13310_v8  ;;  %10180 = vmatpush.bf16.msrb.mxu1 %v13038_v27 }
 0x6ca   :  { %10193 = vmatpush.bf16.msrb.mxu2 %v13166_v45  ;;  %v9361_v45 = vperm.slane %v18375_v38, 2 }
 0x6cc   :  { %10219 = vmatpush.bf16.msra.mxu0 %v13422_v40  ;;  %10181 = vmatmul.bf16.vlgmr.msrb.gmra.mxu1 %v17964_v18  ;;  %v14358_v18 = vld [vmem:[%s18453_s9 + $0x18] sm:$0xff] }
 0x6cd   :  { %10206 = vmatpush.bf16.msrb.mxu3 %v13294_v60  ;;  %10493 = vmatpush.bf16.msra.mxu1 %v14362_v5 }
 0x6ce   :  { %10194 = vmatmul.bf16.vlgmr.msrb.gmra.mxu2 %v17966_v44  ;;  %v14370_v44 = vld [vmem:[%s18453_s9 + $0x78] sm:$0xff] }
 0x6cf   :  { %10220 = vmatmul.bf16.vlgmr.msra.gmra.mxu0 %v17972_v58  ;;  %10506 = vmatpush.bf16.msra.mxu2 %v14370_v44  ;;  %v14369_v58 = vld [vmem:[%s18453_s9 + $0x70] sm:$0xff] }
 0x6d0   :  { %10207 = vmatmul.bf16.vlgmr.msrb.gmra.mxu3 %v17968_v59  ;;  %v14357_v59 = vld [vmem:[%s18453_s9 + $0x10] sm:$0xff]  ;;  %10532 = vmatpush.bf16.msrb.mxu0 %v14386_v34 }
 0x6d1   :  { %10494 = vmatpush.bf16.msra.mxu1 %v14361_v21  ;;  %10519 = vmatpush.bf16.msra.mxu3 %v14378_v24  ;;  %v14380_v24 = vld [vmem:[%s18453_s9 + $0xc8] sm:$0xff] }
 0x6d3   :  { %10507 = vmatpush.bf16.msra.mxu2 %v14369_v58  ;;  %v14381_v58 = vld [vmem:[%s18453_s9 + $0xd0] sm:$0xff] }
 0x6d4   :  { %10533 = vmatpush.bf16.msrb.mxu0 %v14385_v33 }
 0x6d5   :  { %10495 = vmatpush.bf16.msra.mxu1 %v14360_v37  ;;  %10520 = vmatpush.bf16.msra.mxu3 %v14377_v20  ;;  %v9362_v20 = vperm.slane %v18375_v38, 3 }
 0x6d7   :  { %10508 = vmatpush.bf16.msra.mxu2 %v14368_v61 }
 0x6d8   :  { %10534 = vmatpush.bf16.msrb.mxu0 %v14384_v30 }
 0x6d9   :  { %10496 = vmatpush.bf16.msra.mxu1 %v14359_v26  ;;  %10521 = vmatpush.bf16.msra.mxu3 %v14376_v51 }
 0x6db   :  { %10509 = vmatpush.bf16.msra.mxu2 %v14367_v23 }
 0x6dc   :  { %10535 = vmatpush.bf16.msrb.mxu0 %v14383_v29 }
 0x6dd   :  { %10497 = vmatpush.bf16.msra.mxu1 %v14358_v18  ;;  %10522 = vmatpush.bf16.msra.mxu3 %v14375_v39 }
 0x6df   :  { %10510 = vmatpush.bf16.msra.mxu2 %v14366_v1  ;;  %v14379_v1 = vld [vmem:[%s18453_s9 + $0xc0] sm:$0xff] }
 0x6e0   :  { %10536 = vmatpush.bf16.msrb.mxu0 %v14382_v57 }
 0x6e1   :  { %10498 = vmatpush.bf16.msra.mxu1 %v14357_v59  ;;  %10523 = vmatpush.bf16.msra.mxu3 %v14374_v47 }
 0x6e3   :  { %10511 = vmatpush.bf16.msra.mxu2 %v14365_v11 }
 0x6e4   :  { %10537 = vmatpush.bf16.msrb.mxu0 %v14381_v58 }
 0x6e5   :  { %10499 = vmatpush.bf16.msra.mxu1 %v14356_v3  ;;  %10524 = vmatpush.bf16.msra.mxu3 %v14373_v6 }
 0x6e7   :  { %10512 = vmatpush.bf16.msra.mxu2 %v14364_v54 }
 0x6e8   :  { %10538 = vmatpush.bf16.msrb.mxu0 %v14380_v24 }
 0x6e9   :  { %10500 = vmatpush.bf16.msra.mxu1 %v14355_v19  ;;  %10525 = vmatpush.bf16.msra.mxu3 %v14372_v25 }
 0x6eb   :  { %10513 = vmatpush.bf16.msra.mxu2 %v14363_v55 }
 0x6ec   :  { %10539 = vmatpush.bf16.msrb.mxu0 %v14379_v1 }
 0x6ed   :  { %10526 = vmatpush.bf16.msra.mxu3 %v14371_v63 }
 0x700   :  { %v10026_v15 = vpop.f32.mrf.mxu1 }
 0x701   :  { %v10027_v13 = vadd.f32 %v10026_v15, %v9359_v17 }
 0x703   :  { %v10065_v4 = vpop.f32.mrf.mxu0 }
 0x706   :  { %v10039_v32 = vpop.f32.mrf.mxu2 }
 0x707   :  { %v10040_v14 = vadd.f32 %v10039_v32, %v10027_v13  ;;  %v10052_v42 = vpop.f32.mrf.mxu3 }
 0x708   :  { %v10028_v7 = vpop.f32.mrf.mxu1 }
 0x709   :  { %v10053_v62 = vadd.f32 %v10052_v42, %v10040_v14 }
 0x70b   :  { %v10067_v49 = vpop.f32.mrf.mxu0  ;;  %v10066_v10 = vadd.f32 %v10065_v4, %v10053_v62 }
 0x70d   :  { %v10225_v36 = vmax.f32 %v10066_v10, 0.0 }
 0x70e   :  { %v10041_v2 = vpop.f32.mrf.mxu2 }
 0x70f   :  { %v10229_v0 = vpack.c.bf16 %v10225_v36, %v10225_v36  ;;  %v10054_v31 = vpop.f32.mrf.mxu3 }
 0x710   :  { %v10078_v22 = vpop.f32.mrf.mxu1 }
 0x711   :  { %10501 = vmatmul.bf16.vlgmr.msra.gmra.mxu1 %v10229_v0  ;;  %v10079_v28 = vadd.f32 %v10078_v22, %v9360_v52  ;;  %v14394_v0 = vld [vmem:[%s18454_s10] ss:$0 sm:$0xff]  ;;  %s14431_s10 = smov [#allocation9]  }
 0x712   :  { %s10564_s24 = sshll.u32 %s14431_s10, 4  ;;  %s10565_s24 = int_to_ptr.vmem [resolvable:$true] %s10564_s24 }
 0x713   :  { %v10117_v43 = vpop.f32.mrf.mxu0 }
 0x716   :  { %v10091_v35 = vpop.f32.mrf.mxu2 }
 0x717   :  { %v10092_v56 = vadd.f32 %v10091_v35, %v10079_v28  ;;  %v10104_v16 = vpop.f32.mrf.mxu3 }
 0x718   :  { %v10080_v48 = vpop.f32.mrf.mxu1 }
 0x719   :  { %v10105_v9 = vadd.f32 %v10104_v16, %v10092_v56 }
 0x71b   :  { %v10119_v8 = vpop.f32.mrf.mxu0  ;;  %v10118_v50 = vadd.f32 %v10117_v43, %v10105_v9 }
 0x71d   :  { %v10226_v12 = vmax.f32 %v10118_v50, 0.0 }
 0x71e   :  { %v10093_v41 = vpop.f32.mrf.mxu2 }
 0x71f   :  { %v10230_v46 = vpack.c.bf16 %v10226_v12, %v10226_v12  ;;  %v10106_v53 = vpop.f32.mrf.mxu3 }
 0x721   :  { %10514 = vmatmul.bf16.vlgmr.msra.gmra.mxu2 %v10230_v46 }
 0x729   :  { %v10130_v27 = vpop.f32.mrf.mxu1 }
 0x72a   :  { %v10131_v40 = vadd.f32 %v10130_v27, %v9361_v45 }
 0x72c   :  { %v10169_v60 = vpop.f32.mrf.mxu0 }
 0x731   :  { %v10132_v26 = vpop.f32.mrf.mxu1 }
 0x732   :  { %v10143_v5 = vpop.f32.mrf.mxu2 }
 0x733   :  { %v10144_v21 = vadd.f32 %v10143_v5, %v10131_v40  ;;  %v10156_v37 = vpop.f32.mrf.mxu3 }
 0x734   :  { %v10171_v44 = vpop.f32.mrf.mxu0 }
 0x735   :  { %v10157_v18 = vadd.f32 %v10156_v37, %v10144_v21 }
 0x737   :  { %v10170_v59 = vadd.f32 %v10169_v60, %v10157_v18 }
 0x739   :  { %v10227_v3 = vmax.f32 %v10170_v59, 0.0 }
 0x73a   :  { %v10145_v61 = vpop.f32.mrf.mxu2 }
 0x73b   :  { %v10231_v19 = vpack.c.bf16 %v10227_v3, %v10227_v3  ;;  %v10158_v23 = vpop.f32.mrf.mxu3 }
 0x73d   :  { %10527 = vmatmul.bf16.vlgmr.msra.gmra.mxu3 %v10231_v19 }
 0x749   :  { %v10182_v11 = vpop.f32.mrf.mxu1 }
 0x74a   :  { %v10183_v17 = vadd.f32 %v10182_v11, %v9362_v20 }
 0x74c   :  { %v10221_v15 = vpop.f32.mrf.mxu0 }
 0x751   :  { %v10195_v4 = vpop.f32.mrf.mxu2  ;;  %v10184_v13 = vpop.f32.mrf.mxu1 }
 0x752   :  { %v10196_v54 = vadd.f32 %v10195_v4, %v10183_v17 }
 0x753   :  { %v10208_v51 = vpop.f32.mrf.mxu3 }
 0x754   :  { %v10209_v55 = vadd.f32 %v10208_v51, %v10196_v54  ;;  %v10223_v39 = vpop.f32.mrf.mxu0 }
 0x756   :  { %v10222_v32 = vadd.f32 %v10221_v15, %v10209_v55 }
 0x758   :  { %v10228_v14 = vmax.f32 %v10222_v32, 0.0 }
 0x759   :  { %v10197_v42 = vpop.f32.mrf.mxu2 }
 0x75a   :  { %v10232_v7 = vpack.c.bf16 %v10228_v14, %v10228_v14 }
 0x75b   :  { %v10210_v62 = vpop.f32.mrf.mxu3 }
 0x75c   :  { %10540 = vmatmul.bf16.vlgmr.msrb.gmra.mxu0 %v10232_v7 }
 0x78e   :  { %v10502_v49 = vpop.f32.mrf.mxu1 }
 0x78f   :  { %v10503_v31 = vadd.f32 %v14394_v0, %v10502_v49 }
 0x796   :  { %v10504_v47 = vpop.f32.mrf.mxu1 }
 0x7a4   :  { %v10515_v10 = vpop.f32.mrf.mxu2 }
 0x7a5   :  { %v10516_v22 = vadd.f32 %v10515_v10, %v10503_v31 }
 0x7ac   :  { %v10517_v36 = vpop.f32.mrf.mxu2 }
 0x7c0   :  { %v10528_v2 = vpop.f32.mrf.mxu3 }
 0x7c1   :  { %v10529_v52 = vadd.f32 %v10528_v2, %v10516_v22 }
 0x7c8   :  { %v10530_v38 = vpop.f32.mrf.mxu3 }
 0x7d9   :  { %v10541_v43 = vpop.f32.mrf.mxu0 }
 0x7da   :  { %v10542_v6 = vadd.f32 %v10541_v43, %v10529_v52 }
 0x7dc   :  { %v10546_v34 = vsel %vm10545_vm3, %v10542_v6, -inf }
 0x7dd   :  { %10547 = vmax.xlane.f32.xlu0 %v10546_v34 }
 0x7e1   :  { %v10543_v25 = vpop.f32.mrf.mxu0 }
 0x850   :  { %v10548_v33 = vpop.xlane.xlu0 %10547 }
 0x851   :  { %v10549_v28 = vsub.f32 %v10542_v6, %v10548_v33 }
 0x853   :  { %v10550_v35 = vmul.f32 1.442695, %v10549_v28 }
 0x855   :  { %14395 = vpow2.f32 %v10550_v35 }
 0x85b   :  { %v14396_v56 = vpop.eup %14395 }
 0x85c   :  { %v10552_v16 = vsel %vm10545_vm3, %v14396_v56, 0.0 }
 0x85d   :  { %10553 = vadd.xlane.f32.xlu0 %v10552_v16 }
 0x8d0   :  { %v10554_v63 = vpop.xlane.xlu0 %10553 }
 0x8d1   :  { %14397 = vlog2.f32 %v10554_v63 }
 0x8d7   :  { %v14398_v48 = vpop.eup %14397 }
 0x8d8   :  { %v10556_v30 = vmul.f32 0.6931472, %v14398_v48 }
 0x8da   :  { %v10557_v9 = vsub.f32 %v10549_v28, %v10556_v30 }
 0x8dc   :  { %10558 = vst.msk [vmem:[#allocation9] sm:$0x3] %vm10545_vm3, %v10557_v9 }
 0x8dd   :  { %10569 = dma.vmem_to_hbm [thread:$0]  %s10565_s24, 32, %s10567_s26, [#allocation10]  }
 0x8de   :  { %14428 = dma.done.wait [#allocation10], 32  }
 0x8df   :  { %14429 = vsyncadd [#allocation10], 4294967264 }
 0x8e0   :  { %10574 = vsyncpa [#allocation10], 1 }

</bundles_post_ra>
